<compile_context>
chip_gen: v7x
topology: tpu7x:2x2x1
jax: 0.10.0
libtpu: 0.0.40
codegen_flags: <defaults>
</compile_context>

<pallas_src>
import functools

import jax
import jax.numpy as jnp
from jax import lax
from jax.experimental import pallas as pl
from jax.experimental.pallas import tpu as pltpu


# ------------------------------ in-kernel helpers -----------------------------

def _layernorm(x, g, b, eps):
    mean = jnp.mean(x, axis=-1, keepdims=True)
    var = jnp.mean((x - mean) ** 2, axis=-1, keepdims=True)
    return (x - mean) * lax.rsqrt(var + eps) * g + b


def _encoder_layer(x, mask_row, wqkv, bqkv, wo, bo, ln1g, ln1b,
                   w1, b1, w2, b2, ln2g, ln2b, *, num_heads, eps, use_mask):
    """One PyTorch nn.TransformerEncoderLayer (post-norm, relu FFN, eval-mode dropout),
    fully in VMEM for one sequence.  x: (S, D) f32."""
    S, D = x.shape
    hd = D // num_heads
    scale = 1.0 / (hd ** 0.5)

    xb = x.astype(jnp.bfloat16)
    # Fused QKV: one (S,D)x(D,3D) MXU op instead of three (S,D)x(D,D); f32 accumulation.
    qkv = jnp.dot(xb, wqkv, preferred_element_type=jnp.float32) + bqkv      # (S, 3D)
    q = qkv[:, :D]
    k = qkv[:, D:2 * D]
    v = qkv[:, 2 * D:]

    if use_mask:
        mask_full = jnp.broadcast_to(mask_row, (S, S))   # hoisted out of the head loop

    # Per-head attention, accumulated straight through the output projection:
    # sublane slices of Wo are aligned; no masked scratch stores, no concat.
    attn = jnp.zeros((S, D), jnp.float32)
    for h in range(num_heads):
        sl = slice(h * hd, (h + 1) * hd)
        qh, kh, vh = q[:, sl], k[:, sl], v[:, sl]
        s = lax.dot_general(qh, kh, (((1,), (1,)), ((), ())),
                            preferred_element_type=jnp.float32) * scale
        if use_mask:
            s = s + mask_full
        s = s - jnp.max(s, axis=-1, keepdims=True)
        p = jnp.exp(s)
        p = p * pl.reciprocal(jnp.sum(p, axis=-1, keepdims=True), approx=True)
        oh = jnp.dot(p, vh, preferred_element_type=jnp.float32)             # (S, hd)
        attn = attn + jnp.dot(oh.astype(jnp.bfloat16), wo[sl, :],
                              preferred_element_type=jnp.float32)
    attn = attn + bo

    x2 = _layernorm(x + attn, ln1g, ln1b, eps)
    h1 = jnp.maximum(jnp.dot(x2.astype(jnp.bfloat16), w1,
                             preferred_element_type=jnp.float32) + b1, 0.0)
    h2 = jnp.dot(h1.astype(jnp.bfloat16), w2,
                 preferred_element_type=jnp.float32) + b2
    return _layernorm(x2 + h2, ln2g, ln2b, eps)


def _full_spec(shape):
    shape = tuple(shape)
    return pl.BlockSpec(shape, lambda *_: (0,) * len(shape))


# ---------------------- fused text path (emb LN + all layers) -----------------

def _text_path_kernel(x_ref, mask_ref,
                      wqkv_ref, bqkv_ref, wo_ref, bo_ref, ln1g_ref, ln1b_ref,
                      w1_ref, b1_ref, w2_ref, b2_ref, ln2g_ref, ln2b_ref,
                      embg_ref, embb_ref,
                      seq_ref, *, num_layers, num_heads, eps):
    x = _layernorm(x_ref[0], embg_ref[...], embb_ref[...], eps)             # (S, D)
    mask_row = mask_ref[0]                                                  # (1, S)
    for l in range(num_layers):                                             # in-kernel layer loop
        x = _encoder_layer(x, mask_row,
                           wqkv_ref[l], bqkv_ref[l], wo_ref[l], bo_ref[l],
                           ln1g_ref[l], ln1b_ref[l],
                           w1_ref[l], b1_ref[l], w2_ref[l], b2_ref[l],
                           ln2g_ref[l], ln2b_ref[l],
                           num_heads=num_heads, eps=eps, use_mask=True)
    seq_ref[0] = x[0:1, :]                                                  # CLS row only


def text_encoder_forward(x_emb, mask_bias, stack, emb_g, emb_b, *, num_heads, eps=1e-5):
    """x_emb: (B, S, D) token+pos embeddings; returns sequence_output (B, D)."""
    B, S, D = x_emb.shape
    nl = stack["wqkv"].shape[0]
    mask3 = mask_bias.reshape(B, 1, S)

    seq3 = pl.pallas_call(
        functools.partial(_text_path_kernel, num_layers=nl, num_heads=num_heads, eps=eps),
        out_shape=jax.ShapeDtypeStruct((B, 1, D), jnp.float32),
        grid=(B,),
        in_specs=[pl.BlockSpec((1, S, D), lambda b: (b, 0, 0)),
                  pl.BlockSpec((1, 1, S), lambda b: (b, 0, 0)),
                  _full_spec(stack["wqkv"].shape), _full_spec(stack["bqkv"].shape),
                  _full_spec(stack["wo"].shape), _full_spec(stack["bo"].shape),
                  _full_spec(stack["ln1_g"].shape), _full_spec(stack["ln1_b"].shape),
                  _full_spec(stack["w1"].shape), _full_spec(stack["b1"].shape),
                  _full_spec(stack["w2"].shape), _full_spec(stack["b2"].shape),
                  _full_spec(stack["ln2_g"].shape), _full_spec(stack["ln2_b"].shape),
                  _full_spec(emb_g.shape), _full_spec(emb_b.shape)],
        out_specs=pl.BlockSpec((1, 1, D), lambda b: (b, 0, 0)),
        compiler_params=pltpu.CompilerParams(dimension_semantics=("parallel",)),
    )(x_emb, mask3, stack["wqkv"], stack["bqkv"], stack["wo"], stack["bo"],
      stack["ln1_g"], stack["ln1_b"], stack["w1"], stack["b1"],
      stack["w2"], stack["b2"], stack["ln2_g"], stack["ln2_b"], emb_g, emb_b)
    return seq3.reshape(B, D)


# ------------- fused graph path (Graphormer layers) + tail (classifier) -------

def _graph_tail_kernel(lemb_ref, seq_ref,
                       wqkv_ref, bqkv_ref, wo_ref, bo_ref, ln1g_ref, ln1b_ref,
                       w1_ref, b1_ref, w2_ref, b2_ref, ln2g_ref, ln2b_ref,
                       lpw_ref, lpb_ref, clsw_ref, clsb_ref,
                       phw1_ref, phb1_ref, phw2_ref, phb2_ref,
                       logits_ref, z_ref, *, num_layers, num_heads, eps):
    g = lemb_ref[...]                                                       # (N, L)
    for l in range(num_layers):                                             # no mask in graph path
        g = _encoder_layer(g, None,
                           wqkv_ref[l], bqkv_ref[l], wo_ref[l], bo_ref[l],
                           ln1g_ref[l], ln1b_ref[l],
                           w1_ref[l], b1_ref[l], w2_ref[l], b2_ref[l],
                           ln2g_ref[l], ln2b_ref[l],
                           num_heads=num_heads, eps=eps, use_mask=False)
    # get_label_features(): mean over label nodes, then nn.Linear(label_dim, hidden).
    lf = jnp.mean(g, axis=0, keepdims=True)                                 # (1, L)
    lf = jnp.dot(lf.astype(jnp.bfloat16), lpw_ref[...],
                 preferred_element_type=jnp.float32) + lpb_ref[...]         # (1, H)
    combined = seq_ref[...] + lf                                            # (B, H)
    cb = combined.astype(jnp.bfloat16)
    # classifier (lane-padded to 128 cols, padding cols are zero; sliced outside)
    logits_ref[...] = jnp.dot(cb, clsw_ref[...],
                              preferred_element_type=jnp.float32) + clsb_ref[...]
    # projection head: Linear -> ReLU -> Linear
    z = jnp.maximum(jnp.dot(cb, phw1_ref[...],
                            preferred_element_type=jnp.float32) + phb1_ref[...], 0.0)
    z_ref[...] = jnp.dot(z.astype(jnp.bfloat16), phw2_ref[...],
                         preferred_element_type=jnp.float32) + phb2_ref[...]


def graph_and_tail_forward(label_emb, seq_out, stack, tail, *, num_heads, eps=1e-5):
    N, L = label_emb.shape
    B, H = seq_out.shape
    NP = tail["cls_b"].shape[1]
    nl = stack["wqkv"].shape[0]

    return pl.pallas_call(
        functools.partial(_graph_tail_kernel, num_layers=nl, num_heads=num_heads, eps=eps),
        out_shape=(jax.ShapeDtypeStruct((B, NP), jnp.float32),
                   jax.ShapeDtypeStruct((B, H), jnp.float32)),
        grid=(1,),
        in_specs=[_full_spec((N, L)), _full_spec((B, H)),
                  _full_spec(stack["wqkv"].shape), _full_spec(stack["bqkv"].shape),
                  _full_spec(stack["wo"].shape), _full_spec(stack["bo"].shape),
                  _full_spec(stack["ln1_g"].shape), _full_spec(stack["ln1_b"].shape),
                  _full_spec(stack["w1"].shape), _full_spec(stack["b1"].shape),
                  _full_spec(stack["w2"].shape), _full_spec(stack["w2"].shape[:1] + (1, stack["w2"].shape[2])),
                  _full_spec(stack["ln2_g"].shape), _full_spec(stack["ln2_b"].shape),
                  _full_spec(tail["lab_proj_w"].shape), _full_spec(tail["lab_proj_b"].shape),
                  _full_spec(tail["cls_w"].shape), _full_spec(tail["cls_b"].shape),
                  _full_spec(tail["ph_w1"].shape), _full_spec(tail["ph_b1"].shape),
                  _full_spec(tail["ph_w2"].shape), _full_spec(tail["ph_b2"].shape)],
        out_specs=(_full_spec((B, NP)), _full_spec((B, H))),
        compiler_params=pltpu.CompilerParams(dimension_semantics=("arbitrary",)),
    )(label_emb, seq_out,
      stack["wqkv"], stack["bqkv"], stack["wo"], stack["bo"],
      stack["ln1_g"], stack["ln1_b"], stack["w1"], stack["b1"],
      stack["w2"], stack["b2"], stack["ln2_g"], stack["ln2_b"],
      tail["lab_proj_w"], tail["lab_proj_b"], tail["cls_w"], tail["cls_b"],
      tail["ph_w1"], tail["ph_b1"], tail["ph_w2"], tail["ph_b2"])


# ----------------------------- parameter init ---------------------------------

def _init_encoder_stack(key, n_layers, d, ffn):
    def one(k):
        ks = jax.random.split(k, 4)
        nb = lambda kk, shape: (jax.random.normal(kk, shape, jnp.float32) * 0.02).astype(jnp.bfloat16)
        z = lambda shape: jnp.zeros(shape, jnp.float32)
        return dict(
            wqkv=nb(ks[0], (d, 3 * d)), bqkv=z((1, 3 * d)),
            wo=nb(ks[1], (d, d)), bo=z((1, d)),
            ln1_g=jnp.ones((1, d), jnp.float32), ln1_b=z((1, d)),
            w1=nb(ks[2], (d, ffn)), b1=z((1, ffn)),
            w2=nb(ks[3], (ffn, d)), b2=z((1, d)),
            ln2_g=jnp.ones((1, d), jnp.float32), ln2_b=z((1, d)),
        )
    layers = [one(k) for k in jax.random.split(key, n_layers)]
    return {name: jnp.stack([lyr[name] for lyr in layers]) for name in layers[0]}


def init_params(key, cfg):
    ks = jax.random.split(key, 9)
    nf = lambda k, shape: jax.random.normal(k, shape, jnp.float32) * 0.02
    nb = lambda k, shape: nf(k, shape).astype(jnp.bfloat16)
    z = lambda shape: jnp.zeros(shape, jnp.float32)
    H, L, NL, NP = cfg["hidden"], cfg["label_dim"], cfg["num_labels"], cfg["num_labels_padded"]
    # classifier weight lane-padded to NP columns; padding columns zeroed (padded logits == 0)
    cls_w = (nf(ks[0], (H, NP)) * (jnp.arange(NP)[None, :] < NL)).astype(jnp.bfloat16)
    return dict(
        word_emb=nf(ks[1], (cfg["vocab"], H)),
        pos_emb=nf(ks[2], (cfg["max_pos"], H)),
        emb_ln_g=jnp.ones((1, H), jnp.float32), emb_ln_b=z((1, H)),
        bert_stack=_init_encoder_stack(ks[3], cfg["bert_layers"], H, cfg["bert_ffn"]),
        label_emb=nf(ks[4], (cfg["num_nodes"], L)),          # nn.Embedding(len(nodes), L).weight
        graph_stack=_init_encoder_stack(ks[5], cfg["graph_layers"], L, cfg["graph_ffn"]),
        tail=dict(
            lab_proj_w=nb(ks[6], (L, H)), lab_proj_b=z((1, H)),   # the nn.Linear(128, 768) in forward
            ph_w1=nb(ks[7], (H, H)), ph_b1=z((1, H)),             # projection_head[0]
            ph_w2=nb(ks[8], (H, H)), ph_b2=z((1, H)),             # projection_head[2]
            cls_w=cls_w, cls_b=z((1, NP)),                        # classifier
        ),
    )


# ----------------------------------- forward ----------------------------------

def hierarchical_text_model_forward(params, cfg, input_ids, attention_mask):
    B, S = input_ids.shape

    # TODO(synk): pretrained BertModel replaced by a small deterministic synthetic
    # transformer encoder with the same structure (token/pos embeddings + LN +
    # post-norm self-attn layers + CLS pooling). label_graph edges are unused by forward.
    x = params["word_emb"][input_ids] + params["pos_emb"][:S][None, :, :]        # (B, S, H)
    mask_bias = (1.0 - attention_mask.astype(jnp.float32)) * -1e9                # (B, S)

    # ONE pallas_call: embedding LN + all encoder layers; emits CLS row directly.
    sequence_output = text_encoder_forward(
        x, mask_bias, params["bert_stack"], params["emb_ln_g"], params["emb_ln_b"],
        num_heads=cfg["bert_heads"])                                             # (B, H)

    # ONE pallas_call: Graphormer layers + mean + label proj + classifier + projection head.
    logits_padded, z_i = graph_and_tail_forward(
        params["label_emb"], sequence_output, params["graph_stack"], params["tail"],
        num_heads=cfg["graph_heads"])

    logits = logits_padded[:, :cfg["num_labels"]]
    return logits, z_i                                   # positives path not exercised


# ------------------------------------ main -------------------------------------

if __name__ == "__main__":
    cfg = dict(vocab=100, max_pos=16,
               hidden=128, bert_layers=2, bert_heads=8, bert_ffn=256,
               label_dim=128, num_nodes=16, graph_layers=2, graph_heads=8, graph_ffn=256,
               num_labels=8, num_labels_padded=128)
    key = jax.random.PRNGKey(0)
    pkey, dkey = jax.random.split(key)
    params = init_params(pkey, cfg)

    B, S = 2, 8
    input_ids = jax.random.randint(dkey, (B, S), 0, cfg["vocab"], dtype=jnp.int32)
    attention_mask = jnp.ones((B, S), jnp.int32).at[1, 6:].set(0)

    fwd = jax.jit(lambda ids, m: hierarchical_text_model_forward(params, cfg, ids, m))
    logits, z_i = fwd(input_ids, attention_mask)
    jax.block_until_ready((logits, z_i))
    assert logits.shape == (B, cfg["num_labels"]) and z_i.shape == (B, cfg["hidden"])
    assert bool(jnp.all(jnp.isfinite(logits))) and bool(jnp.all(jnp.isfinite(z_i)))
    print("KERNEL_OK")
</pallas_src>

<mosaic_0001>
module attributes {stable_mosaic.version = 11 : i64} {
  func.func @_text_path_kernel(%arg0: i32, %arg1: memref<1x8x128xf32, #tpu.memory_space<vmem>>, %arg2: memref<1x1x8xf32, #tpu.memory_space<vmem>>, %arg3: memref<2x128x384xbf16, #tpu.memory_space<vmem>>, %arg4: memref<2x1x384xf32, #tpu.memory_space<vmem>>, %arg5: memref<2x128x128xbf16, #tpu.memory_space<vmem>>, %arg6: memref<2x1x128xf32, #tpu.memory_space<vmem>>, %arg7: memref<2x1x128xf32, #tpu.memory_space<vmem>>, %arg8: memref<2x1x128xf32, #tpu.memory_space<vmem>>, %arg9: memref<2x128x256xbf16, #tpu.memory_space<vmem>>, %arg10: memref<2x1x256xf32, #tpu.memory_space<vmem>>, %arg11: memref<2x256x128xbf16, #tpu.memory_space<vmem>>, %arg12: memref<2x1x128xf32, #tpu.memory_space<vmem>>, %arg13: memref<2x1x128xf32, #tpu.memory_space<vmem>>, %arg14: memref<2x1x128xf32, #tpu.memory_space<vmem>>, %arg15: memref<1x128xf32, #tpu.memory_space<vmem>>, %arg16: memref<1x128xf32, #tpu.memory_space<vmem>>, %arg17: memref<1x1x128xf32, #tpu.memory_space<vmem>>) attributes {dimension_semantics = [#tpu.dimension_semantics<parallel>], iteration_bounds = array<i64: 2>, scalar_prefetch = 0 : i64, scratch_operands = 0 : i64, tpu.core_type = #tpu.core_type<tc>, window_params = [{transform_indices = @transform_0, window_bounds = array<i64: 1, 8, 128>}, {transform_indices = @transform_1, window_bounds = array<i64: 1, 1, 8>}, {pipeline_mode = #tpu.pipeline_mode<synchronous>, transform_indices = @transform_2, window_bounds = array<i64: 2, 128, 384>}, {pipeline_mode = #tpu.pipeline_mode<synchronous>, transform_indices = @transform_3, window_bounds = array<i64: 2, 1, 384>}, {pipeline_mode = #tpu.pipeline_mode<synchronous>, transform_indices = @transform_4, window_bounds = array<i64: 2, 128, 128>}, {pipeline_mode = #tpu.pipeline_mode<synchronous>, transform_indices = @transform_5, window_bounds = array<i64: 2, 1, 128>}, {pipeline_mode = #tpu.pipeline_mode<synchronous>, transform_indices = @transform_6, window_bounds = array<i64: 2, 1, 128>}, {pipeline_mode = #tpu.pipeline_mode<synchronous>, transform_indices = @transform_7, window_bounds = array<i64: 2, 1, 128>}, {pipeline_mode = #tpu.pipeline_mode<synchronous>, transform_indices = @transform_8, window_bounds = array<i64: 2, 128, 256>}, {pipeline_mode = #tpu.pipeline_mode<synchronous>, transform_indices = @transform_9, window_bounds = array<i64: 2, 1, 256>}, {pipeline_mode = #tpu.pipeline_mode<synchronous>, transform_indices = @transform_10, window_bounds = array<i64: 2, 256, 128>}, {pipeline_mode = #tpu.pipeline_mode<synchronous>, transform_indices = @transform_11, window_bounds = array<i64: 2, 1, 128>}, {pipeline_mode = #tpu.pipeline_mode<synchronous>, transform_indices = @transform_12, window_bounds = array<i64: 2, 1, 128>}, {pipeline_mode = #tpu.pipeline_mode<synchronous>, transform_indices = @transform_13, window_bounds = array<i64: 2, 1, 128>}, {pipeline_mode = #tpu.pipeline_mode<synchronous>, transform_indices = @transform_14, window_bounds = array<i64: 1, 128>}, {pipeline_mode = #tpu.pipeline_mode<synchronous>, transform_indices = @transform_15, window_bounds = array<i64: 1, 128>}, {transform_indices = @transform_16, window_bounds = array<i64: 1, 1, 128>}]} {
    %c0 = arith.constant 0 : index
    %c0_0 = arith.constant 0 : index
    %c0_1 = arith.constant 0 : index
    %0 = vector.load %arg1[%c0, %c0_0, %c0_1] : memref<1x8x128xf32, #tpu.memory_space<vmem>>, vector<1x8x128xf32>
    %1 = vector.shape_cast %0 : vector<1x8x128xf32> to vector<8x128xf32>
    %c0_2 = arith.constant 0 : index
    %c0_3 = arith.constant 0 : index
    %2 = vector.load %arg15[%c0_2, %c0_3] : memref<1x128xf32, #tpu.memory_space<vmem>>, vector<1x128xf32>
    %c0_4 = arith.constant 0 : index
    %c0_5 = arith.constant 0 : index
    %3 = vector.load %arg16[%c0_4, %c0_5] : memref<1x128xf32, #tpu.memory_space<vmem>>, vector<1x128xf32>
    %cst = arith.constant dense<0.000000e+00> : vector<8xf32>
    %4 = vector.multi_reduction <add>, %1, %cst [1] : vector<8x128xf32> to vector<8xf32>
    %5 = vector.shape_cast %4 : vector<8xf32> to vector<8x1xf32>
    %cst_6 = arith.constant 1.280000e+02 : f32
    %6 = vector.broadcast %cst_6 : f32 to vector<8x1xf32>
    %7 = arith.divf %5, %6 : vector<8x1xf32>
    %8 = vector.broadcast %7 : vector<8x1xf32> to vector<8x128xf32>
    %9 = arith.subf %1, %8 : vector<8x128xf32>
    %10 = arith.mulf %9, %9 : vector<8x128xf32>
    %cst_7 = arith.constant dense<0.000000e+00> : vector<8xf32>
    %11 = vector.multi_reduction <add>, %10, %cst_7 [1] : vector<8x128xf32> to vector<8xf32>
    %12 = vector.shape_cast %11 : vector<8xf32> to vector<8x1xf32>
    %cst_8 = arith.constant 1.280000e+02 : f32
    %13 = vector.broadcast %cst_8 : f32 to vector<8x1xf32>
    %14 = arith.divf %12, %13 : vector<8x1xf32>
    %15 = vector.broadcast %7 : vector<8x1xf32> to vector<8x128xf32>
    %16 = arith.subf %1, %15 : vector<8x128xf32>
    %cst_9 = arith.constant 9.99999974E-6 : f32
    %17 = vector.broadcast %cst_9 : f32 to vector<8x1xf32>
    %18 = arith.addf %14, %17 : vector<8x1xf32>
    %19 = math.rsqrt %18 : vector<8x1xf32>
    %20 = vector.broadcast %19 : vector<8x1xf32> to vector<8x128xf32>
    %21 = arith.mulf %16, %20 : vector<8x128xf32>
    %22 = vector.broadcast %2 : vector<1x128xf32> to vector<8x128xf32>
    %23 = arith.mulf %21, %22 : vector<8x128xf32>
    %24 = vector.broadcast %3 : vector<1x128xf32> to vector<8x128xf32>
    %25 = arith.addf %23, %24 : vector<8x128xf32>
    %c0_10 = arith.constant 0 : index
    %c0_11 = arith.constant 0 : index
    %c0_12 = arith.constant 0 : index
    %26 = vector.load %arg2[%c0_10, %c0_11, %c0_12] : memref<1x1x8xf32, #tpu.memory_space<vmem>>, vector<1x1x8xf32>
    %27 = vector.shape_cast %26 : vector<1x1x8xf32> to vector<1x8xf32>
    %c0_13 = arith.constant 0 : index
    %c0_14 = arith.constant 0 : index
    %c0_15 = arith.constant 0 : index
    %28 = vector.load %arg3[%c0_13, %c0_14, %c0_15] : memref<2x128x384xbf16, #tpu.memory_space<vmem>>, vector<1x128x384xbf16>
    %29 = vector.shape_cast %28 : vector<1x128x384xbf16> to vector<128x384xbf16>
    %c0_16 = arith.constant 0 : index
    %c0_17 = arith.constant 0 : index
    %c0_18 = arith.constant 0 : index
    %30 = vector.load %arg4[%c0_16, %c0_17, %c0_18] : memref<2x1x384xf32, #tpu.memory_space<vmem>>, vector<1x1x384xf32>
    %31 = vector.shape_cast %30 : vector<1x1x384xf32> to vector<1x384xf32>
    %c0_19 = arith.constant 0 : index
    %c0_20 = arith.constant 0 : index
    %c0_21 = arith.constant 0 : index
    %32 = vector.load %arg5[%c0_19, %c0_20, %c0_21] : memref<2x128x128xbf16, #tpu.memory_space<vmem>>, vector<1x128x128xbf16>
    %33 = vector.shape_cast %32 : vector<1x128x128xbf16> to vector<128x128xbf16>
    %c0_22 = arith.constant 0 : index
    %c0_23 = arith.constant 0 : index
    %c0_24 = arith.constant 0 : index
    %34 = vector.load %arg6[%c0_22, %c0_23, %c0_24] : memref<2x1x128xf32, #tpu.memory_space<vmem>>, vector<1x1x128xf32>
    %35 = vector.shape_cast %34 : vector<1x1x128xf32> to vector<1x128xf32>
    %c0_25 = arith.constant 0 : index
    %c0_26 = arith.constant 0 : index
    %c0_27 = arith.constant 0 : index
    %36 = vector.load %arg7[%c0_25, %c0_26, %c0_27] : memref<2x1x128xf32, #tpu.memory_space<vmem>>, vector<1x1x128xf32>
    %37 = vector.shape_cast %36 : vector<1x1x128xf32> to vector<1x128xf32>
    %c0_28 = arith.constant 0 : index
    %c0_29 = arith.constant 0 : index
    %c0_30 = arith.constant 0 : index
    %38 = vector.load %arg8[%c0_28, %c0_29, %c0_30] : memref<2x1x128xf32, #tpu.memory_space<vmem>>, vector<1x1x128xf32>
    %39 = vector.shape_cast %38 : vector<1x1x128xf32> to vector<1x128xf32>
    %c0_31 = arith.constant 0 : index
    %c0_32 = arith.constant 0 : index
    %c0_33 = arith.constant 0 : index
    %40 = vector.load %arg9[%c0_31, %c0_32, %c0_33] : memref<2x128x256xbf16, #tpu.memory_space<vmem>>, vector<1x128x256xbf16>
    %41 = vector.shape_cast %40 : vector<1x128x256xbf16> to vector<128x256xbf16>
    %c0_34 = arith.constant 0 : index
    %c0_35 = arith.constant 0 : index
    %c0_36 = arith.constant 0 : index
    %42 = vector.load %arg10[%c0_34, %c0_35, %c0_36] : memref<2x1x256xf32, #tpu.memory_space<vmem>>, vector<1x1x256xf32>
    %43 = vector.shape_cast %42 : vector<1x1x256xf32> to vector<1x256xf32>
    %c0_37 = arith.constant 0 : index
    %c0_38 = arith.constant 0 : index
    %c0_39 = arith.constant 0 : index
    %44 = vector.load %arg11[%c0_37, %c0_38, %c0_39] : memref<2x256x128xbf16, #tpu.memory_space<vmem>>, vector<1x256x128xbf16>
    %45 = vector.shape_cast %44 : vector<1x256x128xbf16> to vector<256x128xbf16>
    %c0_40 = arith.constant 0 : index
    %c0_41 = arith.constant 0 : index
    %c0_42 = arith.constant 0 : index
    %46 = vector.load %arg12[%c0_40, %c0_41, %c0_42] : memref<2x1x128xf32, #tpu.memory_space<vmem>>, vector<1x1x128xf32>
    %47 = vector.shape_cast %46 : vector<1x1x128xf32> to vector<1x128xf32>
    %c0_43 = arith.constant 0 : index
    %c0_44 = arith.constant 0 : index
    %c0_45 = arith.constant 0 : index
    %48 = vector.load %arg13[%c0_43, %c0_44, %c0_45] : memref<2x1x128xf32, #tpu.memory_space<vmem>>, vector<1x1x128xf32>
    %49 = vector.shape_cast %48 : vector<1x1x128xf32> to vector<1x128xf32>
    %c0_46 = arith.constant 0 : index
    %c0_47 = arith.constant 0 : index
    %c0_48 = arith.constant 0 : index
    %50 = vector.load %arg14[%c0_46, %c0_47, %c0_48] : memref<2x1x128xf32, #tpu.memory_space<vmem>>, vector<1x1x128xf32>
    %51 = vector.shape_cast %50 : vector<1x1x128xf32> to vector<1x128xf32>
    %52 = arith.truncf %25 : vector<8x128xf32> to vector<8x128xbf16>
    %cst_49 = arith.constant dense<0.000000e+00> : vector<8x384xf32>
    %53 = tpu.matmul %52, %29, %cst_49 {dimension_numbers = #tpu.dot_dimension_numbers<[1], [0], [0], [1], [0, 0, 1, 1], [], []>} : vector<8x128xbf16>, vector<128x384xbf16>, vector<8x384xf32> -> vector<8x384xf32>
    %54 = vector.broadcast %31 : vector<1x384xf32> to vector<8x384xf32>
    %55 = arith.addf %53, %54 : vector<8x384xf32>
    %56 = vector.extract_strided_slice %55 {offsets = [0, 0], sizes = [8, 128], strides = [1, 1]} : vector<8x384xf32> to vector<8x128xf32>
    %57 = vector.extract_strided_slice %55 {offsets = [0, 128], sizes = [8, 128], strides = [1, 1]} : vector<8x384xf32> to vector<8x128xf32>
    %58 = vector.extract_strided_slice %55 {offsets = [0, 256], sizes = [8, 128], strides = [1, 1]} : vector<8x384xf32> to vector<8x128xf32>
    %59 = vector.shape_cast %27 : vector<1x8xf32> to vector<1x8xf32>
    %60 = vector.broadcast %59 : vector<1x8xf32> to vector<8x8xf32>
    %cst_50 = arith.constant 0.000000e+00 : f32
    %61 = vector.broadcast %cst_50 : f32 to vector<8x128xf32>
    %62 = vector.extract_strided_slice %56 {offsets = [0, 0], sizes = [8, 16], strides = [1, 1]} : vector<8x128xf32> to vector<8x16xf32>
    %63 = vector.extract_strided_slice %57 {offsets = [0, 0], sizes = [8, 16], strides = [1, 1]} : vector<8x128xf32> to vector<8x16xf32>
    %64 = vector.extract_strided_slice %58 {offsets = [0, 0], sizes = [8, 16], strides = [1, 1]} : vector<8x128xf32> to vector<8x16xf32>
    %cst_51 = arith.constant dense<0.000000e+00> : vector<8x8xf32>
    %65 = tpu.matmul %62, %63, %cst_51 {dimension_numbers = #tpu.dot_dimension_numbers<[1], [1], [0], [0], [0, 0, 1, 0], [], []>} : vector<8x16xf32>, vector<8x16xf32>, vector<8x8xf32> -> vector<8x8xf32>
    %cst_52 = arith.constant 2.500000e-01 : f32
    %66 = vector.broadcast %cst_52 : f32 to vector<8x8xf32>
    %67 = arith.mulf %65, %66 : vector<8x8xf32>
    %68 = arith.addf %67, %60 : vector<8x8xf32>
    %cst_53 = arith.constant dense<0xFF800000> : vector<8xf32>
    %69 = vector.multi_reduction <maximumf>, %68, %cst_53 [1] : vector<8x8xf32> to vector<8xf32>
    %70 = vector.shape_cast %69 : vector<8xf32> to vector<8x1xf32>
    %71 = vector.broadcast %70 : vector<8x1xf32> to vector<8x8xf32>
    %72 = arith.subf %68, %71 : vector<8x8xf32>
    %73 = math.exp %72 : vector<8x8xf32>
    %cst_54 = arith.constant dense<0.000000e+00> : vector<8xf32>
    %74 = vector.multi_reduction <add>, %73, %cst_54 [1] : vector<8x8xf32> to vector<8xf32>
    %75 = vector.shape_cast %74 : vector<8xf32> to vector<8x1xf32>
    %76 = tpu.reciprocal %75 {approx = true} : vector<8x1xf32> -> vector<8x1xf32>
    %77 = vector.broadcast %76 : vector<8x1xf32> to vector<8x8xf32>
    %78 = arith.mulf %73, %77 : vector<8x8xf32>
    %cst_55 = arith.constant dense<0.000000e+00> : vector<8x16xf32>
    %79 = tpu.matmul %78, %64, %cst_55 {dimension_numbers = #tpu.dot_dimension_numbers<[1], [0], [0], [1], [0, 0, 1, 1], [], []>} : vector<8x8xf32>, vector<8x16xf32>, vector<8x16xf32> -> vector<8x16xf32>
    %80 = arith.truncf %79 : vector<8x16xf32> to vector<8x16xbf16>
    %81 = vector.extract_strided_slice %33 {offsets = [0, 0], sizes = [16, 128], strides = [1, 1]} : vector<128x128xbf16> to vector<16x128xbf16>
    %cst_56 = arith.constant dense<0.000000e+00> : vector<8x128xf32>
    %82 = tpu.matmul %80, %81, %cst_56 {dimension_numbers = #tpu.dot_dimension_numbers<[1], [0], [0], [1], [0, 0, 1, 1], [], []>} : vector<8x16xbf16>, vector<16x128xbf16>, vector<8x128xf32> -> vector<8x128xf32>
    %83 = arith.addf %61, %82 : vector<8x128xf32>
    %84 = vector.extract_strided_slice %56 {offsets = [0, 16], sizes = [8, 16], strides = [1, 1]} : vector<8x128xf32> to vector<8x16xf32>
    %85 = vector.extract_strided_slice %57 {offsets = [0, 16], sizes = [8, 16], strides = [1, 1]} : vector<8x128xf32> to vector<8x16xf32>
    %86 = vector.extract_strided_slice %58 {offsets = [0, 16], sizes = [8, 16], strides = [1, 1]} : vector<8x128xf32> to vector<8x16xf32>
    %cst_57 = arith.constant dense<0.000000e+00> : vector<8x8xf32>
    %87 = tpu.matmul %84, %85, %cst_57 {dimension_numbers = #tpu.dot_dimension_numbers<[1], [1], [0], [0], [0, 0, 1, 0], [], []>} : vector<8x16xf32>, vector<8x16xf32>, vector<8x8xf32> -> vector<8x8xf32>
    %cst_58 = arith.constant 2.500000e-01 : f32
    %88 = vector.broadcast %cst_58 : f32 to vector<8x8xf32>
    %89 = arith.mulf %87, %88 : vector<8x8xf32>
    %90 = arith.addf %89, %60 : vector<8x8xf32>
    %cst_59 = arith.constant dense<0xFF800000> : vector<8xf32>
    %91 = vector.multi_reduction <maximumf>, %90, %cst_59 [1] : vector<8x8xf32> to vector<8xf32>
    %92 = vector.shape_cast %91 : vector<8xf32> to vector<8x1xf32>
    %93 = vector.broadcast %92 : vector<8x1xf32> to vector<8x8xf32>
    %94 = arith.subf %90, %93 : vector<8x8xf32>
    %95 = math.exp %94 : vector<8x8xf32>
    %cst_60 = arith.constant dense<0.000000e+00> : vector<8xf32>
    %96 = vector.multi_reduction <add>, %95, %cst_60 [1] : vector<8x8xf32> to vector<8xf32>
    %97 = vector.shape_cast %96 : vector<8xf32> to vector<8x1xf32>
    %98 = tpu.reciprocal %97 {approx = true} : vector<8x1xf32> -> vector<8x1xf32>
    %99 = vector.broadcast %98 : vector<8x1xf32> to vector<8x8xf32>
    %100 = arith.mulf %95, %99 : vector<8x8xf32>
    %cst_61 = arith.constant dense<0.000000e+00> : vector<8x16xf32>
    %101 = tpu.matmul %100, %86, %cst_61 {dimension_numbers = #tpu.dot_dimension_numbers<[1], [0], [0], [1], [0, 0, 1, 1], [], []>} : vector<8x8xf32>, vector<8x16xf32>, vector<8x16xf32> -> vector<8x16xf32>
    %102 = arith.truncf %101 : vector<8x16xf32> to vector<8x16xbf16>
    %103 = vector.extract_strided_slice %33 {offsets = [16, 0], sizes = [16, 128], strides = [1, 1]} : vector<128x128xbf16> to vector<16x128xbf16>
    %cst_62 = arith.constant dense<0.000000e+00> : vector<8x128xf32>
    %104 = tpu.matmul %102, %103, %cst_62 {dimension_numbers = #tpu.dot_dimension_numbers<[1], [0], [0], [1], [0, 0, 1, 1], [], []>} : vector<8x16xbf16>, vector<16x128xbf16>, vector<8x128xf32> -> vector<8x128xf32>
    %105 = arith.addf %83, %104 : vector<8x128xf32>
    %106 = vector.extract_strided_slice %56 {offsets = [0, 32], sizes = [8, 16], strides = [1, 1]} : vector<8x128xf32> to vector<8x16xf32>
    %107 = vector.extract_strided_slice %57 {offsets = [0, 32], sizes = [8, 16], strides = [1, 1]} : vector<8x128xf32> to vector<8x16xf32>
    %108 = vector.extract_strided_slice %58 {offsets = [0, 32], sizes = [8, 16], strides = [1, 1]} : vector<8x128xf32> to vector<8x16xf32>
    %cst_63 = arith.constant dense<0.000000e+00> : vector<8x8xf32>
    %109 = tpu.matmul %106, %107, %cst_63 {dimension_numbers = #tpu.dot_dimension_numbers<[1], [1], [0], [0], [0, 0, 1, 0], [], []>} : vector<8x16xf32>, vector<8x16xf32>, vector<8x8xf32> -> vector<8x8xf32>
    %cst_64 = arith.constant 2.500000e-01 : f32
    %110 = vector.broadcast %cst_64 : f32 to vector<8x8xf32>
    %111 = arith.mulf %109, %110 : vector<8x8xf32>
    %112 = arith.addf %111, %60 : vector<8x8xf32>
    %cst_65 = arith.constant dense<0xFF800000> : vector<8xf32>
    %113 = vector.multi_reduction <maximumf>, %112, %cst_65 [1] : vector<8x8xf32> to vector<8xf32>
    %114 = vector.shape_cast %113 : vector<8xf32> to vector<8x1xf32>
    %115 = vector.broadcast %114 : vector<8x1xf32> to vector<8x8xf32>
    %116 = arith.subf %112, %115 : vector<8x8xf32>
    %117 = math.exp %116 : vector<8x8xf32>
    %cst_66 = arith.constant dense<0.000000e+00> : vector<8xf32>
    %118 = vector.multi_reduction <add>, %117, %cst_66 [1] : vector<8x8xf32> to vector<8xf32>
    %119 = vector.shape_cast %118 : vector<8xf32> to vector<8x1xf32>
    %120 = tpu.reciprocal %119 {approx = true} : vector<8x1xf32> -> vector<8x1xf32>
    %121 = vector.broadcast %120 : vector<8x1xf32> to vector<8x8xf32>
    %122 = arith.mulf %117, %121 : vector<8x8xf32>
    %cst_67 = arith.constant dense<0.000000e+00> : vector<8x16xf32>
    %123 = tpu.matmul %122, %108, %cst_67 {dimension_numbers = #tpu.dot_dimension_numbers<[1], [0], [0], [1], [0, 0, 1, 1], [], []>} : vector<8x8xf32>, vector<8x16xf32>, vector<8x16xf32> -> vector<8x16xf32>
    %124 = arith.truncf %123 : vector<8x16xf32> to vector<8x16xbf16>
    %125 = vector.extract_strided_slice %33 {offsets = [32, 0], sizes = [16, 128], strides = [1, 1]} : vector<128x128xbf16> to vector<16x128xbf16>
    %cst_68 = arith.constant dense<0.000000e+00> : vector<8x128xf32>
    %126 = tpu.matmul %124, %125, %cst_68 {dimension_numbers = #tpu.dot_dimension_numbers<[1], [0], [0], [1], [0, 0, 1, 1], [], []>} : vector<8x16xbf16>, vector<16x128xbf16>, vector<8x128xf32> -> vector<8x128xf32>
    %127 = arith.addf %105, %126 : vector<8x128xf32>
    %128 = vector.extract_strided_slice %56 {offsets = [0, 48], sizes = [8, 16], strides = [1, 1]} : vector<8x128xf32> to vector<8x16xf32>
    %129 = vector.extract_strided_slice %57 {offsets = [0, 48], sizes = [8, 16], strides = [1, 1]} : vector<8x128xf32> to vector<8x16xf32>
    %130 = vector.extract_strided_slice %58 {offsets = [0, 48], sizes = [8, 16], strides = [1, 1]} : vector<8x128xf32> to vector<8x16xf32>
    %cst_69 = arith.constant dense<0.000000e+00> : vector<8x8xf32>
    %131 = tpu.matmul %128, %129, %cst_69 {dimension_numbers = #tpu.dot_dimension_numbers<[1], [1], [0], [0], [0, 0, 1, 0], [], []>} : vector<8x16xf32>, vector<8x16xf32>, vector<8x8xf32> -> vector<8x8xf32>
    %cst_70 = arith.constant 2.500000e-01 : f32
    %132 = vector.broadcast %cst_70 : f32 to vector<8x8xf32>
    %133 = arith.mulf %131, %132 : vector<8x8xf32>
    %134 = arith.addf %133, %60 : vector<8x8xf32>
    %cst_71 = arith.constant dense<0xFF800000> : vector<8xf32>
    %135 = vector.multi_reduction <maximumf>, %134, %cst_71 [1] : vector<8x8xf32> to vector<8xf32>
    %136 = vector.shape_cast %135 : vector<8xf32> to vector<8x1xf32>
    %137 = vector.broadcast %136 : vector<8x1xf32> to vector<8x8xf32>
    %138 = arith.subf %134, %137 : vector<8x8xf32>
    %139 = math.exp %138 : vector<8x8xf32>
    %cst_72 = arith.constant dense<0.000000e+00> : vector<8xf32>
    %140 = vector.multi_reduction <add>, %139, %cst_72 [1] : vector<8x8xf32> to vector<8xf32>
    %141 = vector.shape_cast %140 : vector<8xf32> to vector<8x1xf32>
    %142 = tpu.reciprocal %141 {approx = true} : vector<8x1xf32> -> vector<8x1xf32>
    %143 = vector.broadcast %142 : vector<8x1xf32> to vector<8x8xf32>
    %144 = arith.mulf %139, %143 : vector<8x8xf32>
    %cst_73 = arith.constant dense<0.000000e+00> : vector<8x16xf32>
    %145 = tpu.matmul %144, %130, %cst_73 {dimension_numbers = #tpu.dot_dimension_numbers<[1], [0], [0], [1], [0, 0, 1, 1], [], []>} : vector<8x8xf32>, vector<8x16xf32>, vector<8x16xf32> -> vector<8x16xf32>
    %146 = arith.truncf %145 : vector<8x16xf32> to vector<8x16xbf16>
    %147 = vector.extract_strided_slice %33 {offsets = [48, 0], sizes = [16, 128], strides = [1, 1]} : vector<128x128xbf16> to vector<16x128xbf16>
    %cst_74 = arith.constant dense<0.000000e+00> : vector<8x128xf32>
    %148 = tpu.matmul %146, %147, %cst_74 {dimension_numbers = #tpu.dot_dimension_numbers<[1], [0], [0], [1], [0, 0, 1, 1], [], []>} : vector<8x16xbf16>, vector<16x128xbf16>, vector<8x128xf32> -> vector<8x128xf32>
    %149 = arith.addf %127, %148 : vector<8x128xf32>
    %150 = vector.extract_strided_slice %56 {offsets = [0, 64], sizes = [8, 16], strides = [1, 1]} : vector<8x128xf32> to vector<8x16xf32>
    %151 = vector.extract_strided_slice %57 {offsets = [0, 64], sizes = [8, 16], strides = [1, 1]} : vector<8x128xf32> to vector<8x16xf32>
    %152 = vector.extract_strided_slice %58 {offsets = [0, 64], sizes = [8, 16], strides = [1, 1]} : vector<8x128xf32> to vector<8x16xf32>
    %cst_75 = arith.constant dense<0.000000e+00> : vector<8x8xf32>
    %153 = tpu.matmul %150, %151, %cst_75 {dimension_numbers = #tpu.dot_dimension_numbers<[1], [1], [0], [0], [0, 0, 1, 0], [], []>} : vector<8x16xf32>, vector<8x16xf32>, vector<8x8xf32> -> vector<8x8xf32>
    %cst_76 = arith.constant 2.500000e-01 : f32
    %154 = vector.broadcast %cst_76 : f32 to vector<8x8xf32>
    %155 = arith.mulf %153, %154 : vector<8x8xf32>
    %156 = arith.addf %155, %60 : vector<8x8xf32>
    %cst_77 = arith.constant dense<0xFF800000> : vector<8xf32>
    %157 = vector.multi_reduction <maximumf>, %156, %cst_77 [1] : vector<8x8xf32> to vector<8xf32>
    %158 = vector.shape_cast %157 : vector<8xf32> to vector<8x1xf32>
    %159 = vector.broadcast %158 : vector<8x1xf32> to vector<8x8xf32>
    %160 = arith.subf %156, %159 : vector<8x8xf32>
    %161 = math.exp %160 : vector<8x8xf32>
    %cst_78 = arith.constant dense<0.000000e+00> : vector<8xf32>
    %162 = vector.multi_reduction <add>, %161, %cst_78 [1] : vector<8x8xf32> to vector<8xf32>
    %163 = vector.shape_cast %162 : vector<8xf32> to vector<8x1xf32>
    %164 = tpu.reciprocal %163 {approx = true} : vector<8x1xf32> -> vector<8x1xf32>
    %165 = vector.broadcast %164 : vector<8x1xf32> to vector<8x8xf32>
    %166 = arith.mulf %161, %165 : vector<8x8xf32>
    %cst_79 = arith.constant dense<0.000000e+00> : vector<8x16xf32>
    %167 = tpu.matmul %166, %152, %cst_79 {dimension_numbers = #tpu.dot_dimension_numbers<[1], [0], [0], [1], [0, 0, 1, 1], [], []>} : vector<8x8xf32>, vector<8x16xf32>, vector<8x16xf32> -> vector<8x16xf32>
    %168 = arith.truncf %167 : vector<8x16xf32> to vector<8x16xbf16>
    %169 = vector.extract_strided_slice %33 {offsets = [64, 0], sizes = [16, 128], strides = [1, 1]} : vector<128x128xbf16> to vector<16x128xbf16>
    %cst_80 = arith.constant dense<0.000000e+00> : vector<8x128xf32>
    %170 = tpu.matmul %168, %169, %cst_80 {dimension_numbers = #tpu.dot_dimension_numbers<[1], [0], [0], [1], [0, 0, 1, 1], [], []>} : vector<8x16xbf16>, vector<16x128xbf16>, vector<8x128xf32> -> vector<8x128xf32>
    %171 = arith.addf %149, %170 : vector<8x128xf32>
    %172 = vector.extract_strided_slice %56 {offsets = [0, 80], sizes = [8, 16], strides = [1, 1]} : vector<8x128xf32> to vector<8x16xf32>
    %173 = vector.extract_strided_slice %57 {offsets = [0, 80], sizes = [8, 16], strides = [1, 1]} : vector<8x128xf32> to vector<8x16xf32>
    %174 = vector.extract_strided_slice %58 {offsets = [0, 80], sizes = [8, 16], strides = [1, 1]} : vector<8x128xf32> to vector<8x16xf32>
    %cst_81 = arith.constant dense<0.000000e+00> : vector<8x8xf32>
    %175 = tpu.matmul %172, %173, %cst_81 {dimension_numbers = #tpu.dot_dimension_numbers<[1], [1], [0], [0], [0, 0, 1, 0], [], []>} : vector<8x16xf32>, vector<8x16xf32>, vector<8x8xf32> -> vector<8x8xf32>
    %cst_82 = arith.constant 2.500000e-01 : f32
    %176 = vector.broadcast %cst_82 : f32 to vector<8x8xf32>
    %177 = arith.mulf %175, %176 : vector<8x8xf32>
    %178 = arith.addf %177, %60 : vector<8x8xf32>
    %cst_83 = arith.constant dense<0xFF800000> : vector<8xf32>
    %179 = vector.multi_reduction <maximumf>, %178, %cst_83 [1] : vector<8x8xf32> to vector<8xf32>
    %180 = vector.shape_cast %179 : vector<8xf32> to vector<8x1xf32>
    %181 = vector.broadcast %180 : vector<8x1xf32> to vector<8x8xf32>
    %182 = arith.subf %178, %181 : vector<8x8xf32>
    %183 = math.exp %182 : vector<8x8xf32>
    %cst_84 = arith.constant dense<0.000000e+00> : vector<8xf32>
    %184 = vector.multi_reduction <add>, %183, %cst_84 [1] : vector<8x8xf32> to vector<8xf32>
    %185 = vector.shape_cast %184 : vector<8xf32> to vector<8x1xf32>
    %186 = tpu.reciprocal %185 {approx = true} : vector<8x1xf32> -> vector<8x1xf32>
    %187 = vector.broadcast %186 : vector<8x1xf32> to vector<8x8xf32>
    %188 = arith.mulf %183, %187 : vector<8x8xf32>
    %cst_85 = arith.constant dense<0.000000e+00> : vector<8x16xf32>
    %189 = tpu.matmul %188, %174, %cst_85 {dimension_numbers = #tpu.dot_dimension_numbers<[1], [0], [0], [1], [0, 0, 1, 1], [], []>} : vector<8x8xf32>, vector<8x16xf32>, vector<8x16xf32> -> vector<8x16xf32>
    %190 = arith.truncf %189 : vector<8x16xf32> to vector<8x16xbf16>
    %191 = vector.extract_strided_slice %33 {offsets = [80, 0], sizes = [16, 128], strides = [1, 1]} : vector<128x128xbf16> to vector<16x128xbf16>
    %cst_86 = arith.constant dense<0.000000e+00> : vector<8x128xf32>
    %192 = tpu.matmul %190, %191, %cst_86 {dimension_numbers = #tpu.dot_dimension_numbers<[1], [0], [0], [1], [0, 0, 1, 1], [], []>} : vector<8x16xbf16>, vector<16x128xbf16>, vector<8x128xf32> -> vector<8x128xf32>
    %193 = arith.addf %171, %192 : vector<8x128xf32>
    %194 = vector.extract_strided_slice %56 {offsets = [0, 96], sizes = [8, 16], strides = [1, 1]} : vector<8x128xf32> to vector<8x16xf32>
    %195 = vector.extract_strided_slice %57 {offsets = [0, 96], sizes = [8, 16], strides = [1, 1]} : vector<8x128xf32> to vector<8x16xf32>
    %196 = vector.extract_strided_slice %58 {offsets = [0, 96], sizes = [8, 16], strides = [1, 1]} : vector<8x128xf32> to vector<8x16xf32>
    %cst_87 = arith.constant dense<0.000000e+00> : vector<8x8xf32>
    %197 = tpu.matmul %194, %195, %cst_87 {dimension_numbers = #tpu.dot_dimension_numbers<[1], [1], [0], [0], [0, 0, 1, 0], [], []>} : vector<8x16xf32>, vector<8x16xf32>, vector<8x8xf32> -> vector<8x8xf32>
    %cst_88 = arith.constant 2.500000e-01 : f32
    %198 = vector.broadcast %cst_88 : f32 to vector<8x8xf32>
    %199 = arith.mulf %197, %198 : vector<8x8xf32>
    %200 = arith.addf %199, %60 : vector<8x8xf32>
    %cst_89 = arith.constant dense<0xFF800000> : vector<8xf32>
    %201 = vector.multi_reduction <maximumf>, %200, %cst_89 [1] : vector<8x8xf32> to vector<8xf32>
    %202 = vector.shape_cast %201 : vector<8xf32> to vector<8x1xf32>
    %203 = vector.broadcast %202 : vector<8x1xf32> to vector<8x8xf32>
    %204 = arith.subf %200, %203 : vector<8x8xf32>
    %205 = math.exp %204 : vector<8x8xf32>
    %cst_90 = arith.constant dense<0.000000e+00> : vector<8xf32>
    %206 = vector.multi_reduction <add>, %205, %cst_90 [1] : vector<8x8xf32> to vector<8xf32>
    %207 = vector.shape_cast %206 : vector<8xf32> to vector<8x1xf32>
    %208 = tpu.reciprocal %207 {approx = true} : vector<8x1xf32> -> vector<8x1xf32>
    %209 = vector.broadcast %208 : vector<8x1xf32> to vector<8x8xf32>
    %210 = arith.mulf %205, %209 : vector<8x8xf32>
    %cst_91 = arith.constant dense<0.000000e+00> : vector<8x16xf32>
    %211 = tpu.matmul %210, %196, %cst_91 {dimension_numbers = #tpu.dot_dimension_numbers<[1], [0], [0], [1], [0, 0, 1, 1], [], []>} : vector<8x8xf32>, vector<8x16xf32>, vector<8x16xf32> -> vector<8x16xf32>
    %212 = arith.truncf %211 : vector<8x16xf32> to vector<8x16xbf16>
    %213 = vector.extract_strided_slice %33 {offsets = [96, 0], sizes = [16, 128], strides = [1, 1]} : vector<128x128xbf16> to vector<16x128xbf16>
    %cst_92 = arith.constant dense<0.000000e+00> : vector<8x128xf32>
    %214 = tpu.matmul %212, %213, %cst_92 {dimension_numbers = #tpu.dot_dimension_numbers<[1], [0], [0], [1], [0, 0, 1, 1], [], []>} : vector<8x16xbf16>, vector<16x128xbf16>, vector<8x128xf32> -> vector<8x128xf32>
    %215 = arith.addf %193, %214 : vector<8x128xf32>
    %216 = vector.extract_strided_slice %56 {offsets = [0, 112], sizes = [8, 16], strides = [1, 1]} : vector<8x128xf32> to vector<8x16xf32>
    %217 = vector.extract_strided_slice %57 {offsets = [0, 112], sizes = [8, 16], strides = [1, 1]} : vector<8x128xf32> to vector<8x16xf32>
    %218 = vector.extract_strided_slice %58 {offsets = [0, 112], sizes = [8, 16], strides = [1, 1]} : vector<8x128xf32> to vector<8x16xf32>
    %cst_93 = arith.constant dense<0.000000e+00> : vector<8x8xf32>
    %219 = tpu.matmul %216, %217, %cst_93 {dimension_numbers = #tpu.dot_dimension_numbers<[1], [1], [0], [0], [0, 0, 1, 0], [], []>} : vector<8x16xf32>, vector<8x16xf32>, vector<8x8xf32> -> vector<8x8xf32>
    %cst_94 = arith.constant 2.500000e-01 : f32
    %220 = vector.broadcast %cst_94 : f32 to vector<8x8xf32>
    %221 = arith.mulf %219, %220 : vector<8x8xf32>
    %222 = arith.addf %221, %60 : vector<8x8xf32>
    %cst_95 = arith.constant dense<0xFF800000> : vector<8xf32>
    %223 = vector.multi_reduction <maximumf>, %222, %cst_95 [1] : vector<8x8xf32> to vector<8xf32>
    %224 = vector.shape_cast %223 : vector<8xf32> to vector<8x1xf32>
    %225 = vector.broadcast %224 : vector<8x1xf32> to vector<8x8xf32>
    %226 = arith.subf %222, %225 : vector<8x8xf32>
    %227 = math.exp %226 : vector<8x8xf32>
    %cst_96 = arith.constant dense<0.000000e+00> : vector<8xf32>
    %228 = vector.multi_reduction <add>, %227, %cst_96 [1] : vector<8x8xf32> to vector<8xf32>
    %229 = vector.shape_cast %228 : vector<8xf32> to vector<8x1xf32>
    %230 = tpu.reciprocal %229 {approx = true} : vector<8x1xf32> -> vector<8x1xf32>
    %231 = vector.broadcast %230 : vector<8x1xf32> to vector<8x8xf32>
    %232 = arith.mulf %227, %231 : vector<8x8xf32>
    %cst_97 = arith.constant dense<0.000000e+00> : vector<8x16xf32>
    %233 = tpu.matmul %232, %218, %cst_97 {dimension_numbers = #tpu.dot_dimension_numbers<[1], [0], [0], [1], [0, 0, 1, 1], [], []>} : vector<8x8xf32>, vector<8x16xf32>, vector<8x16xf32> -> vector<8x16xf32>
    %234 = arith.truncf %233 : vector<8x16xf32> to vector<8x16xbf16>
    %235 = vector.extract_strided_slice %33 {offsets = [112, 0], sizes = [16, 128], strides = [1, 1]} : vector<128x128xbf16> to vector<16x128xbf16>
    %cst_98 = arith.constant dense<0.000000e+00> : vector<8x128xf32>
    %236 = tpu.matmul %234, %235, %cst_98 {dimension_numbers = #tpu.dot_dimension_numbers<[1], [0], [0], [1], [0, 0, 1, 1], [], []>} : vector<8x16xbf16>, vector<16x128xbf16>, vector<8x128xf32> -> vector<8x128xf32>
    %237 = arith.addf %215, %236 : vector<8x128xf32>
    %238 = vector.broadcast %35 : vector<1x128xf32> to vector<8x128xf32>
    %239 = arith.addf %237, %238 : vector<8x128xf32>
    %240 = arith.addf %25, %239 : vector<8x128xf32>
    %cst_99 = arith.constant dense<0.000000e+00> : vector<8xf32>
    %241 = vector.multi_reduction <add>, %240, %cst_99 [1] : vector<8x128xf32> to vector<8xf32>
    %242 = vector.shape_cast %241 : vector<8xf32> to vector<8x1xf32>
    %cst_100 = arith.constant 1.280000e+02 : f32
    %243 = vector.broadcast %cst_100 : f32 to vector<8x1xf32>
    %244 = arith.divf %242, %243 : vector<8x1xf32>
    %245 = vector.broadcast %244 : vector<8x1xf32> to vector<8x128xf32>
    %246 = arith.subf %240, %245 : vector<8x128xf32>
    %247 = arith.mulf %246, %246 : vector<8x128xf32>
    %cst_101 = arith.constant dense<0.000000e+00> : vector<8xf32>
    %248 = vector.multi_reduction <add>, %247, %cst_101 [1] : vector<8x128xf32> to vector<8xf32>
    %249 = vector.shape_cast %248 : vector<8xf32> to vector<8x1xf32>
    %cst_102 = arith.constant 1.280000e+02 : f32
    %250 = vector.broadcast %cst_102 : f32 to vector<8x1xf32>
    %251 = arith.divf %249, %250 : vector<8x1xf32>
    %252 = vector.broadcast %244 : vector<8x1xf32> to vector<8x128xf32>
    %253 = arith.subf %240, %252 : vector<8x128xf32>
    %cst_103 = arith.constant 9.99999974E-6 : f32
    %254 = vector.broadcast %cst_103 : f32 to vector<8x1xf32>
    %255 = arith.addf %251, %254 : vector<8x1xf32>
    %256 = math.rsqrt %255 : vector<8x1xf32>
    %257 = vector.broadcast %256 : vector<8x1xf32> to vector<8x128xf32>
    %258 = arith.mulf %253, %257 : vector<8x128xf32>
    %259 = vector.broadcast %37 : vector<1x128xf32> to vector<8x128xf32>
    %260 = arith.mulf %258, %259 : vector<8x128xf32>
    %261 = vector.broadcast %39 : vector<1x128xf32> to vector<8x128xf32>
    %262 = arith.addf %260, %261 : vector<8x128xf32>
    %263 = arith.truncf %262 : vector<8x128xf32> to vector<8x128xbf16>
    %cst_104 = arith.constant dense<0.000000e+00> : vector<8x256xf32>
    %264 = tpu.matmul %263, %41, %cst_104 {dimension_numbers = #tpu.dot_dimension_numbers<[1], [0], [0], [1], [0, 0, 1, 1], [], []>} : vector<8x128xbf16>, vector<128x256xbf16>, vector<8x256xf32> -> vector<8x256xf32>
    %265 = vector.broadcast %43 : vector<1x256xf32> to vector<8x256xf32>
    %266 = arith.addf %264, %265 : vector<8x256xf32>
    %cst_105 = arith.constant 0.000000e+00 : f32
    %267 = vector.broadcast %cst_105 : f32 to vector<8x256xf32>
    %268 = arith.maximumf %266, %267 : vector<8x256xf32>
    %269 = arith.truncf %268 : vector<8x256xf32> to vector<8x256xbf16>
    %cst_106 = arith.constant dense<0.000000e+00> : vector<8x128xf32>
    %270 = tpu.matmul %269, %45, %cst_106 {dimension_numbers = #tpu.dot_dimension_numbers<[1], [0], [0], [1], [0, 0, 1, 1], [], []>} : vector<8x256xbf16>, vector<256x128xbf16>, vector<8x128xf32> -> vector<8x128xf32>
    %271 = vector.broadcast %47 : vector<1x128xf32> to vector<8x128xf32>
    %272 = arith.addf %270, %271 : vector<8x128xf32>
    %273 = arith.addf %262, %272 : vector<8x128xf32>
    %cst_107 = arith.constant dense<0.000000e+00> : vector<8xf32>
    %274 = vector.multi_reduction <add>, %273, %cst_107 [1] : vector<8x128xf32> to vector<8xf32>
    %275 = vector.shape_cast %274 : vector<8xf32> to vector<8x1xf32>
    %cst_108 = arith.constant 1.280000e+02 : f32
    %276 = vector.broadcast %cst_108 : f32 to vector<8x1xf32>
    %277 = arith.divf %275, %276 : vector<8x1xf32>
    %278 = vector.broadcast %277 : vector<8x1xf32> to vector<8x128xf32>
    %279 = arith.subf %273, %278 : vector<8x128xf32>
    %280 = arith.mulf %279, %279 : vector<8x128xf32>
    %cst_109 = arith.constant dense<0.000000e+00> : vector<8xf32>
    %281 = vector.multi_reduction <add>, %280, %cst_109 [1] : vector<8x128xf32> to vector<8xf32>
    %282 = vector.shape_cast %281 : vector<8xf32> to vector<8x1xf32>
    %cst_110 = arith.constant 1.280000e+02 : f32
    %283 = vector.broadcast %cst_110 : f32 to vector<8x1xf32>
    %284 = arith.divf %282, %283 : vector<8x1xf32>
    %285 = vector.broadcast %277 : vector<8x1xf32> to vector<8x128xf32>
    %286 = arith.subf %273, %285 : vector<8x128xf32>
    %cst_111 = arith.constant 9.99999974E-6 : f32
    %287 = vector.broadcast %cst_111 : f32 to vector<8x1xf32>
    %288 = arith.addf %284, %287 : vector<8x1xf32>
    %289 = math.rsqrt %288 : vector<8x1xf32>
    %290 = vector.broadcast %289 : vector<8x1xf32> to vector<8x128xf32>
    %291 = arith.mulf %286, %290 : vector<8x128xf32>
    %292 = vector.broadcast %49 : vector<1x128xf32> to vector<8x128xf32>
    %293 = arith.mulf %291, %292 : vector<8x128xf32>
    %294 = vector.broadcast %51 : vector<1x128xf32> to vector<8x128xf32>
    %295 = arith.addf %293, %294 : vector<8x128xf32>
    %c1 = arith.constant 1 : index
    %c0_112 = arith.constant 0 : index
    %c0_113 = arith.constant 0 : index
    %296 = vector.load %arg3[%c1, %c0_112, %c0_113] : memref<2x128x384xbf16, #tpu.memory_space<vmem>>, vector<1x128x384xbf16>
    %297 = vector.shape_cast %296 : vector<1x128x384xbf16> to vector<128x384xbf16>
    %c1_114 = arith.constant 1 : index
    %c0_115 = arith.constant 0 : index
    %c0_116 = arith.constant 0 : index
    %298 = vector.load %arg4[%c1_114, %c0_115, %c0_116] : memref<2x1x384xf32, #tpu.memory_space<vmem>>, vector<1x1x384xf32>
    %299 = vector.shape_cast %298 : vector<1x1x384xf32> to vector<1x384xf32>
    %c1_117 = arith.constant 1 : index
    %c0_118 = arith.constant 0 : index
    %c0_119 = arith.constant 0 : index
    %300 = vector.load %arg5[%c1_117, %c0_118, %c0_119] : memref<2x128x128xbf16, #tpu.memory_space<vmem>>, vector<1x128x128xbf16>
    %301 = vector.shape_cast %300 : vector<1x128x128xbf16> to vector<128x128xbf16>
    %c1_120 = arith.constant 1 : index
    %c0_121 = arith.constant 0 : index
    %c0_122 = arith.constant 0 : index
    %302 = vector.load %arg6[%c1_120, %c0_121, %c0_122] : memref<2x1x128xf32, #tpu.memory_space<vmem>>, vector<1x1x128xf32>
    %303 = vector.shape_cast %302 : vector<1x1x128xf32> to vector<1x128xf32>
    %c1_123 = arith.constant 1 : index
    %c0_124 = arith.constant 0 : index
    %c0_125 = arith.constant 0 : index
    %304 = vector.load %arg7[%c1_123, %c0_124, %c0_125] : memref<2x1x128xf32, #tpu.memory_space<vmem>>, vector<1x1x128xf32>
    %305 = vector.shape_cast %304 : vector<1x1x128xf32> to vector<1x128xf32>
    %c1_126 = arith.constant 1 : index
    %c0_127 = arith.constant 0 : index
    %c0_128 = arith.constant 0 : index
    %306 = vector.load %arg8[%c1_126, %c0_127, %c0_128] : memref<2x1x128xf32, #tpu.memory_space<vmem>>, vector<1x1x128xf32>
    %307 = vector.shape_cast %306 : vector<1x1x128xf32> to vector<1x128xf32>
    %c1_129 = arith.constant 1 : index
    %c0_130 = arith.constant 0 : index
    %c0_131 = arith.constant 0 : index
    %308 = vector.load %arg9[%c1_129, %c0_130, %c0_131] : memref<2x128x256xbf16, #tpu.memory_space<vmem>>, vector<1x128x256xbf16>
    %309 = vector.shape_cast %308 : vector<1x128x256xbf16> to vector<128x256xbf16>
    %c1_132 = arith.constant 1 : index
    %c0_133 = arith.constant 0 : index
    %c0_134 = arith.constant 0 : index
    %310 = vector.load %arg10[%c1_132, %c0_133, %c0_134] : memref<2x1x256xf32, #tpu.memory_space<vmem>>, vector<1x1x256xf32>
    %311 = vector.shape_cast %310 : vector<1x1x256xf32> to vector<1x256xf32>
    %c1_135 = arith.constant 1 : index
    %c0_136 = arith.constant 0 : index
    %c0_137 = arith.constant 0 : index
    %312 = vector.load %arg11[%c1_135, %c0_136, %c0_137] : memref<2x256x128xbf16, #tpu.memory_space<vmem>>, vector<1x256x128xbf16>
    %313 = vector.shape_cast %312 : vector<1x256x128xbf16> to vector<256x128xbf16>
    %c1_138 = arith.constant 1 : index
    %c0_139 = arith.constant 0 : index
    %c0_140 = arith.constant 0 : index
    %314 = vector.load %arg12[%c1_138, %c0_139, %c0_140] : memref<2x1x128xf32, #tpu.memory_space<vmem>>, vector<1x1x128xf32>
    %315 = vector.shape_cast %314 : vector<1x1x128xf32> to vector<1x128xf32>
    %c1_141 = arith.constant 1 : index
    %c0_142 = arith.constant 0 : index
    %c0_143 = arith.constant 0 : index
    %316 = vector.load %arg13[%c1_141, %c0_142, %c0_143] : memref<2x1x128xf32, #tpu.memory_space<vmem>>, vector<1x1x128xf32>
    %317 = vector.shape_cast %316 : vector<1x1x128xf32> to vector<1x128xf32>
    %c1_144 = arith.constant 1 : index
    %c0_145 = arith.constant 0 : index
    %c0_146 = arith.constant 0 : index
    %318 = vector.load %arg14[%c1_144, %c0_145, %c0_146] : memref<2x1x128xf32, #tpu.memory_space<vmem>>, vector<1x1x128xf32>
    %319 = vector.shape_cast %318 : vector<1x1x128xf32> to vector<1x128xf32>
    %320 = arith.truncf %295 : vector<8x128xf32> to vector<8x128xbf16>
    %cst_147 = arith.constant dense<0.000000e+00> : vector<8x384xf32>
    %321 = tpu.matmul %320, %297, %cst_147 {dimension_numbers = #tpu.dot_dimension_numbers<[1], [0], [0], [1], [0, 0, 1, 1], [], []>} : vector<8x128xbf16>, vector<128x384xbf16>, vector<8x384xf32> -> vector<8x384xf32>
    %322 = vector.broadcast %299 : vector<1x384xf32> to vector<8x384xf32>
    %323 = arith.addf %321, %322 : vector<8x384xf32>
    %324 = vector.extract_strided_slice %323 {offsets = [0, 0], sizes = [8, 128], strides = [1, 1]} : vector<8x384xf32> to vector<8x128xf32>
    %325 = vector.extract_strided_slice %323 {offsets = [0, 128], sizes = [8, 128], strides = [1, 1]} : vector<8x384xf32> to vector<8x128xf32>
    %326 = vector.extract_strided_slice %323 {offsets = [0, 256], sizes = [8, 128], strides = [1, 1]} : vector<8x384xf32> to vector<8x128xf32>
    %327 = vector.shape_cast %27 : vector<1x8xf32> to vector<1x8xf32>
    %328 = vector.broadcast %327 : vector<1x8xf32> to vector<8x8xf32>
    %cst_148 = arith.constant 0.000000e+00 : f32
    %329 = vector.broadcast %cst_148 : f32 to vector<8x128xf32>
    %330 = vector.extract_strided_slice %324 {offsets = [0, 0], sizes = [8, 16], strides = [1, 1]} : vector<8x128xf32> to vector<8x16xf32>
    %331 = vector.extract_strided_slice %325 {offsets = [0, 0], sizes = [8, 16], strides = [1, 1]} : vector<8x128xf32> to vector<8x16xf32>
    %332 = vector.extract_strided_slice %326 {offsets = [0, 0], sizes = [8, 16], strides = [1, 1]} : vector<8x128xf32> to vector<8x16xf32>
    %cst_149 = arith.constant dense<0.000000e+00> : vector<8x8xf32>
    %333 = tpu.matmul %330, %331, %cst_149 {dimension_numbers = #tpu.dot_dimension_numbers<[1], [1], [0], [0], [0, 0, 1, 0], [], []>} : vector<8x16xf32>, vector<8x16xf32>, vector<8x8xf32> -> vector<8x8xf32>
    %cst_150 = arith.constant 2.500000e-01 : f32
    %334 = vector.broadcast %cst_150 : f32 to vector<8x8xf32>
    %335 = arith.mulf %333, %334 : vector<8x8xf32>
    %336 = arith.addf %335, %328 : vector<8x8xf32>
    %cst_151 = arith.constant dense<0xFF800000> : vector<8xf32>
    %337 = vector.multi_reduction <maximumf>, %336, %cst_151 [1] : vector<8x8xf32> to vector<8xf32>
    %338 = vector.shape_cast %337 : vector<8xf32> to vector<8x1xf32>
    %339 = vector.broadcast %338 : vector<8x1xf32> to vector<8x8xf32>
    %340 = arith.subf %336, %339 : vector<8x8xf32>
    %341 = math.exp %340 : vector<8x8xf32>
    %cst_152 = arith.constant dense<0.000000e+00> : vector<8xf32>
    %342 = vector.multi_reduction <add>, %341, %cst_152 [1] : vector<8x8xf32> to vector<8xf32>
    %343 = vector.shape_cast %342 : vector<8xf32> to vector<8x1xf32>
    %344 = tpu.reciprocal %343 {approx = true} : vector<8x1xf32> -> vector<8x1xf32>
    %345 = vector.broadcast %344 : vector<8x1xf32> to vector<8x8xf32>
    %346 = arith.mulf %341, %345 : vector<8x8xf32>
    %cst_153 = arith.constant dense<0.000000e+00> : vector<8x16xf32>
    %347 = tpu.matmul %346, %332, %cst_153 {dimension_numbers = #tpu.dot_dimension_numbers<[1], [0], [0], [1], [0, 0, 1, 1], [], []>} : vector<8x8xf32>, vector<8x16xf32>, vector<8x16xf32> -> vector<8x16xf32>
    %348 = arith.truncf %347 : vector<8x16xf32> to vector<8x16xbf16>
    %349 = vector.extract_strided_slice %301 {offsets = [0, 0], sizes = [16, 128], strides = [1, 1]} : vector<128x128xbf16> to vector<16x128xbf16>
    %cst_154 = arith.constant dense<0.000000e+00> : vector<8x128xf32>
    %350 = tpu.matmul %348, %349, %cst_154 {dimension_numbers = #tpu.dot_dimension_numbers<[1], [0], [0], [1], [0, 0, 1, 1], [], []>} : vector<8x16xbf16>, vector<16x128xbf16>, vector<8x128xf32> -> vector<8x128xf32>
    %351 = arith.addf %329, %350 : vector<8x128xf32>
    %352 = vector.extract_strided_slice %324 {offsets = [0, 16], sizes = [8, 16], strides = [1, 1]} : vector<8x128xf32> to vector<8x16xf32>
    %353 = vector.extract_strided_slice %325 {offsets = [0, 16], sizes = [8, 16], strides = [1, 1]} : vector<8x128xf32> to vector<8x16xf32>
    %354 = vector.extract_strided_slice %326 {offsets = [0, 16], sizes = [8, 16], strides = [1, 1]} : vector<8x128xf32> to vector<8x16xf32>
    %cst_155 = arith.constant dense<0.000000e+00> : vector<8x8xf32>
    %355 = tpu.matmul %352, %353, %cst_155 {dimension_numbers = #tpu.dot_dimension_numbers<[1], [1], [0], [0], [0, 0, 1, 0], [], []>} : vector<8x16xf32>, vector<8x16xf32>, vector<8x8xf32> -> vector<8x8xf32>
    %cst_156 = arith.constant 2.500000e-01 : f32
    %356 = vector.broadcast %cst_156 : f32 to vector<8x8xf32>
    %357 = arith.mulf %355, %356 : vector<8x8xf32>
    %358 = arith.addf %357, %328 : vector<8x8xf32>
    %cst_157 = arith.constant dense<0xFF800000> : vector<8xf32>
    %359 = vector.multi_reduction <maximumf>, %358, %cst_157 [1] : vector<8x8xf32> to vector<8xf32>
    %360 = vector.shape_cast %359 : vector<8xf32> to vector<8x1xf32>
    %361 = vector.broadcast %360 : vector<8x1xf32> to vector<8x8xf32>
    %362 = arith.subf %358, %361 : vector<8x8xf32>
    %363 = math.exp %362 : vector<8x8xf32>
    %cst_158 = arith.constant dense<0.000000e+00> : vector<8xf32>
    %364 = vector.multi_reduction <add>, %363, %cst_158 [1] : vector<8x8xf32> to vector<8xf32>
    %365 = vector.shape_cast %364 : vector<8xf32> to vector<8x1xf32>
    %366 = tpu.reciprocal %365 {approx = true} : vector<8x1xf32> -> vector<8x1xf32>
    %367 = vector.broadcast %366 : vector<8x1xf32> to vector<8x8xf32>
    %368 = arith.mulf %363, %367 : vector<8x8xf32>
    %cst_159 = arith.constant dense<0.000000e+00> : vector<8x16xf32>
    %369 = tpu.matmul %368, %354, %cst_159 {dimension_numbers = #tpu.dot_dimension_numbers<[1], [0], [0], [1], [0, 0, 1, 1], [], []>} : vector<8x8xf32>, vector<8x16xf32>, vector<8x16xf32> -> vector<8x16xf32>
    %370 = arith.truncf %369 : vector<8x16xf32> to vector<8x16xbf16>
    %371 = vector.extract_strided_slice %301 {offsets = [16, 0], sizes = [16, 128], strides = [1, 1]} : vector<128x128xbf16> to vector<16x128xbf16>
    %cst_160 = arith.constant dense<0.000000e+00> : vector<8x128xf32>
    %372 = tpu.matmul %370, %371, %cst_160 {dimension_numbers = #tpu.dot_dimension_numbers<[1], [0], [0], [1], [0, 0, 1, 1], [], []>} : vector<8x16xbf16>, vector<16x128xbf16>, vector<8x128xf32> -> vector<8x128xf32>
    %373 = arith.addf %351, %372 : vector<8x128xf32>
    %374 = vector.extract_strided_slice %324 {offsets = [0, 32], sizes = [8, 16], strides = [1, 1]} : vector<8x128xf32> to vector<8x16xf32>
    %375 = vector.extract_strided_slice %325 {offsets = [0, 32], sizes = [8, 16], strides = [1, 1]} : vector<8x128xf32> to vector<8x16xf32>
    %376 = vector.extract_strided_slice %326 {offsets = [0, 32], sizes = [8, 16], strides = [1, 1]} : vector<8x128xf32> to vector<8x16xf32>
    %cst_161 = arith.constant dense<0.000000e+00> : vector<8x8xf32>
    %377 = tpu.matmul %374, %375, %cst_161 {dimension_numbers = #tpu.dot_dimension_numbers<[1], [1], [0], [0], [0, 0, 1, 0], [], []>} : vector<8x16xf32>, vector<8x16xf32>, vector<8x8xf32> -> vector<8x8xf32>
    %cst_162 = arith.constant 2.500000e-01 : f32
    %378 = vector.broadcast %cst_162 : f32 to vector<8x8xf32>
    %379 = arith.mulf %377, %378 : vector<8x8xf32>
    %380 = arith.addf %379, %328 : vector<8x8xf32>
    %cst_163 = arith.constant dense<0xFF800000> : vector<8xf32>
    %381 = vector.multi_reduction <maximumf>, %380, %cst_163 [1] : vector<8x8xf32> to vector<8xf32>
    %382 = vector.shape_cast %381 : vector<8xf32> to vector<8x1xf32>
    %383 = vector.broadcast %382 : vector<8x1xf32> to vector<8x8xf32>
    %384 = arith.subf %380, %383 : vector<8x8xf32>
    %385 = math.exp %384 : vector<8x8xf32>
    %cst_164 = arith.constant dense<0.000000e+00> : vector<8xf32>
    %386 = vector.multi_reduction <add>, %385, %cst_164 [1] : vector<8x8xf32> to vector<8xf32>
    %387 = vector.shape_cast %386 : vector<8xf32> to vector<8x1xf32>
    %388 = tpu.reciprocal %387 {approx = true} : vector<8x1xf32> -> vector<8x1xf32>
    %389 = vector.broadcast %388 : vector<8x1xf32> to vector<8x8xf32>
    %390 = arith.mulf %385, %389 : vector<8x8xf32>
    %cst_165 = arith.constant dense<0.000000e+00> : vector<8x16xf32>
    %391 = tpu.matmul %390, %376, %cst_165 {dimension_numbers = #tpu.dot_dimension_numbers<[1], [0], [0], [1], [0, 0, 1, 1], [], []>} : vector<8x8xf32>, vector<8x16xf32>, vector<8x16xf32> -> vector<8x16xf32>
    %392 = arith.truncf %391 : vector<8x16xf32> to vector<8x16xbf16>
    %393 = vector.extract_strided_slice %301 {offsets = [32, 0], sizes = [16, 128], strides = [1, 1]} : vector<128x128xbf16> to vector<16x128xbf16>
    %cst_166 = arith.constant dense<0.000000e+00> : vector<8x128xf32>
    %394 = tpu.matmul %392, %393, %cst_166 {dimension_numbers = #tpu.dot_dimension_numbers<[1], [0], [0], [1], [0, 0, 1, 1], [], []>} : vector<8x16xbf16>, vector<16x128xbf16>, vector<8x128xf32> -> vector<8x128xf32>
    %395 = arith.addf %373, %394 : vector<8x128xf32>
    %396 = vector.extract_strided_slice %324 {offsets = [0, 48], sizes = [8, 16], strides = [1, 1]} : vector<8x128xf32> to vector<8x16xf32>
    %397 = vector.extract_strided_slice %325 {offsets = [0, 48], sizes = [8, 16], strides = [1, 1]} : vector<8x128xf32> to vector<8x16xf32>
    %398 = vector.extract_strided_slice %326 {offsets = [0, 48], sizes = [8, 16], strides = [1, 1]} : vector<8x128xf32> to vector<8x16xf32>
    %cst_167 = arith.constant dense<0.000000e+00> : vector<8x8xf32>
    %399 = tpu.matmul %396, %397, %cst_167 {dimension_numbers = #tpu.dot_dimension_numbers<[1], [1], [0], [0], [0, 0, 1, 0], [], []>} : vector<8x16xf32>, vector<8x16xf32>, vector<8x8xf32> -> vector<8x8xf32>
    %cst_168 = arith.constant 2.500000e-01 : f32
    %400 = vector.broadcast %cst_168 : f32 to vector<8x8xf32>
    %401 = arith.mulf %399, %400 : vector<8x8xf32>
    %402 = arith.addf %401, %328 : vector<8x8xf32>
    %cst_169 = arith.constant dense<0xFF800000> : vector<8xf32>
    %403 = vector.multi_reduction <maximumf>, %402, %cst_169 [1] : vector<8x8xf32> to vector<8xf32>
    %404 = vector.shape_cast %403 : vector<8xf32> to vector<8x1xf32>
    %405 = vector.broadcast %404 : vector<8x1xf32> to vector<8x8xf32>
    %406 = arith.subf %402, %405 : vector<8x8xf32>
    %407 = math.exp %406 : vector<8x8xf32>
    %cst_170 = arith.constant dense<0.000000e+00> : vector<8xf32>
    %408 = vector.multi_reduction <add>, %407, %cst_170 [1] : vector<8x8xf32> to vector<8xf32>
    %409 = vector.shape_cast %408 : vector<8xf32> to vector<8x1xf32>
    %410 = tpu.reciprocal %409 {approx = true} : vector<8x1xf32> -> vector<8x1xf32>
    %411 = vector.broadcast %410 : vector<8x1xf32> to vector<8x8xf32>
    %412 = arith.mulf %407, %411 : vector<8x8xf32>
    %cst_171 = arith.constant dense<0.000000e+00> : vector<8x16xf32>
    %413 = tpu.matmul %412, %398, %cst_171 {dimension_numbers = #tpu.dot_dimension_numbers<[1], [0], [0], [1], [0, 0, 1, 1], [], []>} : vector<8x8xf32>, vector<8x16xf32>, vector<8x16xf32> -> vector<8x16xf32>
    %414 = arith.truncf %413 : vector<8x16xf32> to vector<8x16xbf16>
    %415 = vector.extract_strided_slice %301 {offsets = [48, 0], sizes = [16, 128], strides = [1, 1]} : vector<128x128xbf16> to vector<16x128xbf16>
    %cst_172 = arith.constant dense<0.000000e+00> : vector<8x128xf32>
    %416 = tpu.matmul %414, %415, %cst_172 {dimension_numbers = #tpu.dot_dimension_numbers<[1], [0], [0], [1], [0, 0, 1, 1], [], []>} : vector<8x16xbf16>, vector<16x128xbf16>, vector<8x128xf32> -> vector<8x128xf32>
    %417 = arith.addf %395, %416 : vector<8x128xf32>
    %418 = vector.extract_strided_slice %324 {offsets = [0, 64], sizes = [8, 16], strides = [1, 1]} : vector<8x128xf32> to vector<8x16xf32>
    %419 = vector.extract_strided_slice %325 {offsets = [0, 64], sizes = [8, 16], strides = [1, 1]} : vector<8x128xf32> to vector<8x16xf32>
    %420 = vector.extract_strided_slice %326 {offsets = [0, 64], sizes = [8, 16], strides = [1, 1]} : vector<8x128xf32> to vector<8x16xf32>
    %cst_173 = arith.constant dense<0.000000e+00> : vector<8x8xf32>
    %421 = tpu.matmul %418, %419, %cst_173 {dimension_numbers = #tpu.dot_dimension_numbers<[1], [1], [0], [0], [0, 0, 1, 0], [], []>} : vector<8x16xf32>, vector<8x16xf32>, vector<8x8xf32> -> vector<8x8xf32>
    %cst_174 = arith.constant 2.500000e-01 : f32
    %422 = vector.broadcast %cst_174 : f32 to vector<8x8xf32>
    %423 = arith.mulf %421, %422 : vector<8x8xf32>
    %424 = arith.addf %423, %328 : vector<8x8xf32>
    %cst_175 = arith.constant dense<0xFF800000> : vector<8xf32>
    %425 = vector.multi_reduction <maximumf>, %424, %cst_175 [1] : vector<8x8xf32> to vector<8xf32>
    %426 = vector.shape_cast %425 : vector<8xf32> to vector<8x1xf32>
    %427 = vector.broadcast %426 : vector<8x1xf32> to vector<8x8xf32>
    %428 = arith.subf %424, %427 : vector<8x8xf32>
    %429 = math.exp %428 : vector<8x8xf32>
    %cst_176 = arith.constant dense<0.000000e+00> : vector<8xf32>
    %430 = vector.multi_reduction <add>, %429, %cst_176 [1] : vector<8x8xf32> to vector<8xf32>
    %431 = vector.shape_cast %430 : vector<8xf32> to vector<8x1xf32>
    %432 = tpu.reciprocal %431 {approx = true} : vector<8x1xf32> -> vector<8x1xf32>
    %433 = vector.broadcast %432 : vector<8x1xf32> to vector<8x8xf32>
    %434 = arith.mulf %429, %433 : vector<8x8xf32>
    %cst_177 = arith.constant dense<0.000000e+00> : vector<8x16xf32>
    %435 = tpu.matmul %434, %420, %cst_177 {dimension_numbers = #tpu.dot_dimension_numbers<[1], [0], [0], [1], [0, 0, 1, 1], [], []>} : vector<8x8xf32>, vector<8x16xf32>, vector<8x16xf32> -> vector<8x16xf32>
    %436 = arith.truncf %435 : vector<8x16xf32> to vector<8x16xbf16>
    %437 = vector.extract_strided_slice %301 {offsets = [64, 0], sizes = [16, 128], strides = [1, 1]} : vector<128x128xbf16> to vector<16x128xbf16>
    %cst_178 = arith.constant dense<0.000000e+00> : vector<8x128xf32>
    %438 = tpu.matmul %436, %437, %cst_178 {dimension_numbers = #tpu.dot_dimension_numbers<[1], [0], [0], [1], [0, 0, 1, 1], [], []>} : vector<8x16xbf16>, vector<16x128xbf16>, vector<8x128xf32> -> vector<8x128xf32>
    %439 = arith.addf %417, %438 : vector<8x128xf32>
    %440 = vector.extract_strided_slice %324 {offsets = [0, 80], sizes = [8, 16], strides = [1, 1]} : vector<8x128xf32> to vector<8x16xf32>
    %441 = vector.extract_strided_slice %325 {offsets = [0, 80], sizes = [8, 16], strides = [1, 1]} : vector<8x128xf32> to vector<8x16xf32>
    %442 = vector.extract_strided_slice %326 {offsets = [0, 80], sizes = [8, 16], strides = [1, 1]} : vector<8x128xf32> to vector<8x16xf32>
    %cst_179 = arith.constant dense<0.000000e+00> : vector<8x8xf32>
    %443 = tpu.matmul %440, %441, %cst_179 {dimension_numbers = #tpu.dot_dimension_numbers<[1], [1], [0], [0], [0, 0, 1, 0], [], []>} : vector<8x16xf32>, vector<8x16xf32>, vector<8x8xf32> -> vector<8x8xf32>
    %cst_180 = arith.constant 2.500000e-01 : f32
    %444 = vector.broadcast %cst_180 : f32 to vector<8x8xf32>
    %445 = arith.mulf %443, %444 : vector<8x8xf32>
    %446 = arith.addf %445, %328 : vector<8x8xf32>
    %cst_181 = arith.constant dense<0xFF800000> : vector<8xf32>
    %447 = vector.multi_reduction <maximumf>, %446, %cst_181 [1] : vector<8x8xf32> to vector<8xf32>
    %448 = vector.shape_cast %447 : vector<8xf32> to vector<8x1xf32>
    %449 = vector.broadcast %448 : vector<8x1xf32> to vector<8x8xf32>
    %450 = arith.subf %446, %449 : vector<8x8xf32>
    %451 = math.exp %450 : vector<8x8xf32>
    %cst_182 = arith.constant dense<0.000000e+00> : vector<8xf32>
    %452 = vector.multi_reduction <add>, %451, %cst_182 [1] : vector<8x8xf32> to vector<8xf32>
    %453 = vector.shape_cast %452 : vector<8xf32> to vector<8x1xf32>
    %454 = tpu.reciprocal %453 {approx = true} : vector<8x1xf32> -> vector<8x1xf32>
    %455 = vector.broadcast %454 : vector<8x1xf32> to vector<8x8xf32>
    %456 = arith.mulf %451, %455 : vector<8x8xf32>
    %cst_183 = arith.constant dense<0.000000e+00> : vector<8x16xf32>
    %457 = tpu.matmul %456, %442, %cst_183 {dimension_numbers = #tpu.dot_dimension_numbers<[1], [0], [0], [1], [0, 0, 1, 1], [], []>} : vector<8x8xf32>, vector<8x16xf32>, vector<8x16xf32> -> vector<8x16xf32>
    %458 = arith.truncf %457 : vector<8x16xf32> to vector<8x16xbf16>
    %459 = vector.extract_strided_slice %301 {offsets = [80, 0], sizes = [16, 128], strides = [1, 1]} : vector<128x128xbf16> to vector<16x128xbf16>
    %cst_184 = arith.constant dense<0.000000e+00> : vector<8x128xf32>
    %460 = tpu.matmul %458, %459, %cst_184 {dimension_numbers = #tpu.dot_dimension_numbers<[1], [0], [0], [1], [0, 0, 1, 1], [], []>} : vector<8x16xbf16>, vector<16x128xbf16>, vector<8x128xf32> -> vector<8x128xf32>
    %461 = arith.addf %439, %460 : vector<8x128xf32>
    %462 = vector.extract_strided_slice %324 {offsets = [0, 96], sizes = [8, 16], strides = [1, 1]} : vector<8x128xf32> to vector<8x16xf32>
    %463 = vector.extract_strided_slice %325 {offsets = [0, 96], sizes = [8, 16], strides = [1, 1]} : vector<8x128xf32> to vector<8x16xf32>
    %464 = vector.extract_strided_slice %326 {offsets = [0, 96], sizes = [8, 16], strides = [1, 1]} : vector<8x128xf32> to vector<8x16xf32>
    %cst_185 = arith.constant dense<0.000000e+00> : vector<8x8xf32>
    %465 = tpu.matmul %462, %463, %cst_185 {dimension_numbers = #tpu.dot_dimension_numbers<[1], [1], [0], [0], [0, 0, 1, 0], [], []>} : vector<8x16xf32>, vector<8x16xf32>, vector<8x8xf32> -> vector<8x8xf32>
    %cst_186 = arith.constant 2.500000e-01 : f32
    %466 = vector.broadcast %cst_186 : f32 to vector<8x8xf32>
    %467 = arith.mulf %465, %466 : vector<8x8xf32>
    %468 = arith.addf %467, %328 : vector<8x8xf32>
    %cst_187 = arith.constant dense<0xFF800000> : vector<8xf32>
    %469 = vector.multi_reduction <maximumf>, %468, %cst_187 [1] : vector<8x8xf32> to vector<8xf32>
    %470 = vector.shape_cast %469 : vector<8xf32> to vector<8x1xf32>
    %471 = vector.broadcast %470 : vector<8x1xf32> to vector<8x8xf32>
    %472 = arith.subf %468, %471 : vector<8x8xf32>
    %473 = math.exp %472 : vector<8x8xf32>
    %cst_188 = arith.constant dense<0.000000e+00> : vector<8xf32>
    %474 = vector.multi_reduction <add>, %473, %cst_188 [1] : vector<8x8xf32> to vector<8xf32>
    %475 = vector.shape_cast %474 : vector<8xf32> to vector<8x1xf32>
    %476 = tpu.reciprocal %475 {approx = true} : vector<8x1xf32> -> vector<8x1xf32>
    %477 = vector.broadcast %476 : vector<8x1xf32> to vector<8x8xf32>
    %478 = arith.mulf %473, %477 : vector<8x8xf32>
    %cst_189 = arith.constant dense<0.000000e+00> : vector<8x16xf32>
    %479 = tpu.matmul %478, %464, %cst_189 {dimension_numbers = #tpu.dot_dimension_numbers<[1], [0], [0], [1], [0, 0, 1, 1], [], []>} : vector<8x8xf32>, vector<8x16xf32>, vector<8x16xf32> -> vector<8x16xf32>
    %480 = arith.truncf %479 : vector<8x16xf32> to vector<8x16xbf16>
    %481 = vector.extract_strided_slice %301 {offsets = [96, 0], sizes = [16, 128], strides = [1, 1]} : vector<128x128xbf16> to vector<16x128xbf16>
    %cst_190 = arith.constant dense<0.000000e+00> : vector<8x128xf32>
    %482 = tpu.matmul %480, %481, %cst_190 {dimension_numbers = #tpu.dot_dimension_numbers<[1], [0], [0], [1], [0, 0, 1, 1], [], []>} : vector<8x16xbf16>, vector<16x128xbf16>, vector<8x128xf32> -> vector<8x128xf32>
    %483 = arith.addf %461, %482 : vector<8x128xf32>
    %484 = vector.extract_strided_slice %324 {offsets = [0, 112], sizes = [8, 16], strides = [1, 1]} : vector<8x128xf32> to vector<8x16xf32>
    %485 = vector.extract_strided_slice %325 {offsets = [0, 112], sizes = [8, 16], strides = [1, 1]} : vector<8x128xf32> to vector<8x16xf32>
    %486 = vector.extract_strided_slice %326 {offsets = [0, 112], sizes = [8, 16], strides = [1, 1]} : vector<8x128xf32> to vector<8x16xf32>
    %cst_191 = arith.constant dense<0.000000e+00> : vector<8x8xf32>
    %487 = tpu.matmul %484, %485, %cst_191 {dimension_numbers = #tpu.dot_dimension_numbers<[1], [1], [0], [0], [0, 0, 1, 0], [], []>} : vector<8x16xf32>, vector<8x16xf32>, vector<8x8xf32> -> vector<8x8xf32>
    %cst_192 = arith.constant 2.500000e-01 : f32
    %488 = vector.broadcast %cst_192 : f32 to vector<8x8xf32>
    %489 = arith.mulf %487, %488 : vector<8x8xf32>
    %490 = arith.addf %489, %328 : vector<8x8xf32>
    %cst_193 = arith.constant dense<0xFF800000> : vector<8xf32>
    %491 = vector.multi_reduction <maximumf>, %490, %cst_193 [1] : vector<8x8xf32> to vector<8xf32>
    %492 = vector.shape_cast %491 : vector<8xf32> to vector<8x1xf32>
    %493 = vector.broadcast %492 : vector<8x1xf32> to vector<8x8xf32>
    %494 = arith.subf %490, %493 : vector<8x8xf32>
    %495 = math.exp %494 : vector<8x8xf32>
    %cst_194 = arith.constant dense<0.000000e+00> : vector<8xf32>
    %496 = vector.multi_reduction <add>, %495, %cst_194 [1] : vector<8x8xf32> to vector<8xf32>
    %497 = vector.shape_cast %496 : vector<8xf32> to vector<8x1xf32>
    %498 = tpu.reciprocal %497 {approx = true} : vector<8x1xf32> -> vector<8x1xf32>
    %499 = vector.broadcast %498 : vector<8x1xf32> to vector<8x8xf32>
    %500 = arith.mulf %495, %499 : vector<8x8xf32>
    %cst_195 = arith.constant dense<0.000000e+00> : vector<8x16xf32>
    %501 = tpu.matmul %500, %486, %cst_195 {dimension_numbers = #tpu.dot_dimension_numbers<[1], [0], [0], [1], [0, 0, 1, 1], [], []>} : vector<8x8xf32>, vector<8x16xf32>, vector<8x16xf32> -> vector<8x16xf32>
    %502 = arith.truncf %501 : vector<8x16xf32> to vector<8x16xbf16>
    %503 = vector.extract_strided_slice %301 {offsets = [112, 0], sizes = [16, 128], strides = [1, 1]} : vector<128x128xbf16> to vector<16x128xbf16>
    %cst_196 = arith.constant dense<0.000000e+00> : vector<8x128xf32>
    %504 = tpu.matmul %502, %503, %cst_196 {dimension_numbers = #tpu.dot_dimension_numbers<[1], [0], [0], [1], [0, 0, 1, 1], [], []>} : vector<8x16xbf16>, vector<16x128xbf16>, vector<8x128xf32> -> vector<8x128xf32>
    %505 = arith.addf %483, %504 : vector<8x128xf32>
    %506 = vector.broadcast %303 : vector<1x128xf32> to vector<8x128xf32>
    %507 = arith.addf %505, %506 : vector<8x128xf32>
    %508 = arith.addf %295, %507 : vector<8x128xf32>
    %cst_197 = arith.constant dense<0.000000e+00> : vector<8xf32>
    %509 = vector.multi_reduction <add>, %508, %cst_197 [1] : vector<8x128xf32> to vector<8xf32>
    %510 = vector.shape_cast %509 : vector<8xf32> to vector<8x1xf32>
    %cst_198 = arith.constant 1.280000e+02 : f32
    %511 = vector.broadcast %cst_198 : f32 to vector<8x1xf32>
    %512 = arith.divf %510, %511 : vector<8x1xf32>
    %513 = vector.broadcast %512 : vector<8x1xf32> to vector<8x128xf32>
    %514 = arith.subf %508, %513 : vector<8x128xf32>
    %515 = arith.mulf %514, %514 : vector<8x128xf32>
    %cst_199 = arith.constant dense<0.000000e+00> : vector<8xf32>
    %516 = vector.multi_reduction <add>, %515, %cst_199 [1] : vector<8x128xf32> to vector<8xf32>
    %517 = vector.shape_cast %516 : vector<8xf32> to vector<8x1xf32>
    %cst_200 = arith.constant 1.280000e+02 : f32
    %518 = vector.broadcast %cst_200 : f32 to vector<8x1xf32>
    %519 = arith.divf %517, %518 : vector<8x1xf32>
    %520 = vector.broadcast %512 : vector<8x1xf32> to vector<8x128xf32>
    %521 = arith.subf %508, %520 : vector<8x128xf32>
    %cst_201 = arith.constant 9.99999974E-6 : f32
    %522 = vector.broadcast %cst_201 : f32 to vector<8x1xf32>
    %523 = arith.addf %519, %522 : vector<8x1xf32>
    %524 = math.rsqrt %523 : vector<8x1xf32>
    %525 = vector.broadcast %524 : vector<8x1xf32> to vector<8x128xf32>
    %526 = arith.mulf %521, %525 : vector<8x128xf32>
    %527 = vector.broadcast %305 : vector<1x128xf32> to vector<8x128xf32>
    %528 = arith.mulf %526, %527 : vector<8x128xf32>
    %529 = vector.broadcast %307 : vector<1x128xf32> to vector<8x128xf32>
    %530 = arith.addf %528, %529 : vector<8x128xf32>
    %531 = arith.truncf %530 : vector<8x128xf32> to vector<8x128xbf16>
    %cst_202 = arith.constant dense<0.000000e+00> : vector<8x256xf32>
    %532 = tpu.matmul %531, %309, %cst_202 {dimension_numbers = #tpu.dot_dimension_numbers<[1], [0], [0], [1], [0, 0, 1, 1], [], []>} : vector<8x128xbf16>, vector<128x256xbf16>, vector<8x256xf32> -> vector<8x256xf32>
    %533 = vector.broadcast %311 : vector<1x256xf32> to vector<8x256xf32>
    %534 = arith.addf %532, %533 : vector<8x256xf32>
    %cst_203 = arith.constant 0.000000e+00 : f32
    %535 = vector.broadcast %cst_203 : f32 to vector<8x256xf32>
    %536 = arith.maximumf %534, %535 : vector<8x256xf32>
    %537 = arith.truncf %536 : vector<8x256xf32> to vector<8x256xbf16>
    %cst_204 = arith.constant dense<0.000000e+00> : vector<8x128xf32>
    %538 = tpu.matmul %537, %313, %cst_204 {dimension_numbers = #tpu.dot_dimension_numbers<[1], [0], [0], [1], [0, 0, 1, 1], [], []>} : vector<8x256xbf16>, vector<256x128xbf16>, vector<8x128xf32> -> vector<8x128xf32>
    %539 = vector.broadcast %315 : vector<1x128xf32> to vector<8x128xf32>
    %540 = arith.addf %538, %539 : vector<8x128xf32>
    %541 = arith.addf %530, %540 : vector<8x128xf32>
    %cst_205 = arith.constant dense<0.000000e+00> : vector<8xf32>
    %542 = vector.multi_reduction <add>, %541, %cst_205 [1] : vector<8x128xf32> to vector<8xf32>
    %543 = vector.shape_cast %542 : vector<8xf32> to vector<8x1xf32>
    %cst_206 = arith.constant 1.280000e+02 : f32
    %544 = vector.broadcast %cst_206 : f32 to vector<8x1xf32>
    %545 = arith.divf %543, %544 : vector<8x1xf32>
    %546 = vector.broadcast %545 : vector<8x1xf32> to vector<8x128xf32>
    %547 = arith.subf %541, %546 : vector<8x128xf32>
    %548 = arith.mulf %547, %547 : vector<8x128xf32>
    %cst_207 = arith.constant dense<0.000000e+00> : vector<8xf32>
    %549 = vector.multi_reduction <add>, %548, %cst_207 [1] : vector<8x128xf32> to vector<8xf32>
    %550 = vector.shape_cast %549 : vector<8xf32> to vector<8x1xf32>
    %cst_208 = arith.constant 1.280000e+02 : f32
    %551 = vector.broadcast %cst_208 : f32 to vector<8x1xf32>
    %552 = arith.divf %550, %551 : vector<8x1xf32>
    %553 = vector.broadcast %545 : vector<8x1xf32> to vector<8x128xf32>
    %554 = arith.subf %541, %553 : vector<8x128xf32>
    %cst_209 = arith.constant 9.99999974E-6 : f32
    %555 = vector.broadcast %cst_209 : f32 to vector<8x1xf32>
    %556 = arith.addf %552, %555 : vector<8x1xf32>
    %557 = math.rsqrt %556 : vector<8x1xf32>
    %558 = vector.broadcast %557 : vector<8x1xf32> to vector<8x128xf32>
    %559 = arith.mulf %554, %558 : vector<8x128xf32>
    %560 = vector.broadcast %317 : vector<1x128xf32> to vector<8x128xf32>
    %561 = arith.mulf %559, %560 : vector<8x128xf32>
    %562 = vector.broadcast %319 : vector<1x128xf32> to vector<8x128xf32>
    %563 = arith.addf %561, %562 : vector<8x128xf32>
    %564 = vector.extract_strided_slice %563 {offsets = [0, 0], sizes = [1, 128], strides = [1, 1]} : vector<8x128xf32> to vector<1x128xf32>
    %c0_210 = arith.constant 0 : index
    %c0_211 = arith.constant 0 : index
    %c0_212 = arith.constant 0 : index
    %565 = vector.load %arg17[%c0_210, %c0_211, %c0_212] : memref<1x1x128xf32, #tpu.memory_space<vmem>>, vector<1x1x128xf32>
    %566 = vector.shape_cast %565 : vector<1x1x128xf32> to vector<1x128xf32>
    %567 = vector.shape_cast %564 : vector<1x128xf32> to vector<1x1x128xf32>
    tpu.vector_store %arg17[%c0_210, %c0_211, %c0_212], %567 {strides = array<i32>} : memref<1x1x128xf32, #tpu.memory_space<vmem>>, vector<1x1x128xf32>,
    return
  }
  func.func @transform_0(%arg0: i32) -> (i32, i32, i32) {
    %c0_i32 = arith.constant 0 : i32
    %c0_i32_0 = arith.constant 0 : i32
    %c0_i32_1 = arith.constant 0 : i32
    return %arg0, %c0_i32, %c0_i32_0 : i32, i32, i32
  }
  func.func @transform_1(%arg0: i32) -> (i32, i32, i32) {
    %c0_i32 = arith.constant 0 : i32
    %c0_i32_0 = arith.constant 0 : i32
    %c0_i32_1 = arith.constant 0 : i32
    return %arg0, %c0_i32, %c0_i32_0 : i32, i32, i32
  }
  func.func @transform_2(%arg0: i32) -> (i32, i32, i32) {
    %c0_i32 = arith.constant 0 : i32
    %c0_i32_0 = arith.constant 0 : i32
    %c0_i32_1 = arith.constant 0 : i32
    %c0_i32_2 = arith.constant 0 : i32
    return %c0_i32, %c0_i32_0, %c0_i32_1 : i32, i32, i32
  }
  func.func @transform_3(%arg0: i32) -> (i32, i32, i32) {
    %c0_i32 = arith.constant 0 : i32
    %c0_i32_0 = arith.constant 0 : i32
    %c0_i32_1 = arith.constant 0 : i32
    %c0_i32_2 = arith.constant 0 : i32
    return %c0_i32, %c0_i32_0, %c0_i32_1 : i32, i32, i32
  }
  func.func @transform_4(%arg0: i32) -> (i32, i32, i32) {
    %c0_i32 = arith.constant 0 : i32
    %c0_i32_0 = arith.constant 0 : i32
    %c0_i32_1 = arith.constant 0 : i32
    %c0_i32_2 = arith.constant 0 : i32
    return %c0_i32, %c0_i32_0, %c0_i32_1 : i32, i32, i32
  }
  func.func @transform_5(%arg0: i32) -> (i32, i32, i32) {
    %c0_i32 = arith.constant 0 : i32
    %c0_i32_0 = arith.constant 0 : i32
    %c0_i32_1 = arith.constant 0 : i32
    %c0_i32_2 = arith.constant 0 : i32
    return %c0_i32, %c0_i32_0, %c0_i32_1 : i32, i32, i32
  }
  func.func @transform_6(%arg0: i32) -> (i32, i32, i32) {
    %c0_i32 = arith.constant 0 : i32
    %c0_i32_0 = arith.constant 0 : i32
    %c0_i32_1 = arith.constant 0 : i32
    %c0_i32_2 = arith.constant 0 : i32
    return %c0_i32, %c0_i32_0, %c0_i32_1 : i32, i32, i32
  }
  func.func @transform_7(%arg0: i32) -> (i32, i32, i32) {
    %c0_i32 = arith.constant 0 : i32
    %c0_i32_0 = arith.constant 0 : i32
    %c0_i32_1 = arith.constant 0 : i32
    %c0_i32_2 = arith.constant 0 : i32
    return %c0_i32, %c0_i32_0, %c0_i32_1 : i32, i32, i32
  }
  func.func @transform_8(%arg0: i32) -> (i32, i32, i32) {
    %c0_i32 = arith.constant 0 : i32
    %c0_i32_0 = arith.constant 0 : i32
    %c0_i32_1 = arith.constant 0 : i32
    %c0_i32_2 = arith.constant 0 : i32
    return %c0_i32, %c0_i32_0, %c0_i32_1 : i32, i32, i32
  }
  func.func @transform_9(%arg0: i32) -> (i32, i32, i32) {
    %c0_i32 = arith.constant 0 : i32
    %c0_i32_0 = arith.constant 0 : i32
    %c0_i32_1 = arith.constant 0 : i32
    %c0_i32_2 = arith.constant 0 : i32
    return %c0_i32, %c0_i32_0, %c0_i32_1 : i32, i32, i32
  }
  func.func @transform_10(%arg0: i32) -> (i32, i32, i32) {
    %c0_i32 = arith.constant 0 : i32
    %c0_i32_0 = arith.constant 0 : i32
    %c0_i32_1 = arith.constant 0 : i32
    %c0_i32_2 = arith.constant 0 : i32
    return %c0_i32, %c0_i32_0, %c0_i32_1 : i32, i32, i32
  }
  func.func @transform_11(%arg0: i32) -> (i32, i32, i32) {
    %c0_i32 = arith.constant 0 : i32
    %c0_i32_0 = arith.constant 0 : i32
    %c0_i32_1 = arith.constant 0 : i32
    %c0_i32_2 = arith.constant 0 : i32
    return %c0_i32, %c0_i32_0, %c0_i32_1 : i32, i32, i32
  }
  func.func @transform_12(%arg0: i32) -> (i32, i32, i32) {
    %c0_i32 = arith.constant 0 : i32
    %c0_i32_0 = arith.constant 0 : i32
    %c0_i32_1 = arith.constant 0 : i32
    %c0_i32_2 = arith.constant 0 : i32
    return %c0_i32, %c0_i32_0, %c0_i32_1 : i32, i32, i32
  }
  func.func @transform_13(%arg0: i32) -> (i32, i32, i32) {
    %c0_i32 = arith.constant 0 : i32
    %c0_i32_0 = arith.constant 0 : i32
    %c0_i32_1 = arith.constant 0 : i32
    %c0_i32_2 = arith.constant 0 : i32
    return %c0_i32, %c0_i32_0, %c0_i32_1 : i32, i32, i32
  }
  func.func @transform_14(%arg0: i32) -> (i32, i32) {
    %c0_i32 = arith.constant 0 : i32
    %c0_i32_0 = arith.constant 0 : i32
    %c0_i32_1 = arith.constant 0 : i32
    return %c0_i32, %c0_i32_0 : i32, i32
  }
  func.func @transform_15(%arg0: i32) -> (i32, i32) {
    %c0_i32 = arith.constant 0 : i32
    %c0_i32_0 = arith.constant 0 : i32
    %c0_i32_1 = arith.constant 0 : i32
    return %c0_i32, %c0_i32_0 : i32, i32
  }
  func.func @transform_16(%arg0: i32) -> (i32, i32, i32) {
    %c0_i32 = arith.constant 0 : i32
    %c0_i32_0 = arith.constant 0 : i32
    %c0_i32_1 = arith.constant 0 : i32
    return %arg0, %c0_i32, %c0_i32_0 : i32, i32, i32
  }
}

module attributes {stable_mosaic.version = 11 : i64} {
  func.func @_graph_tail_kernel(%arg0: i32, %arg1: memref<16x128xf32, #tpu.memory_space<vmem>>, %arg2: memref<2x128xf32, #tpu.memory_space<vmem>>, %arg3: memref<2x128x384xbf16, #tpu.memory_space<vmem>>, %arg4: memref<2x1x384xf32, #tpu.memory_space<vmem>>, %arg5: memref<2x128x128xbf16, #tpu.memory_space<vmem>>, %arg6: memref<2x1x128xf32, #tpu.memory_space<vmem>>, %arg7: memref<2x1x128xf32, #tpu.memory_space<vmem>>, %arg8: memref<2x1x128xf32, #tpu.memory_space<vmem>>, %arg9: memref<2x128x256xbf16, #tpu.memory_space<vmem>>, %arg10: memref<2x1x256xf32, #tpu.memory_space<vmem>>, %arg11: memref<2x256x128xbf16, #tpu.memory_space<vmem>>, %arg12: memref<2x1x128xf32, #tpu.memory_space<vmem>>, %arg13: memref<2x1x128xf32, #tpu.memory_space<vmem>>, %arg14: memref<2x1x128xf32, #tpu.memory_space<vmem>>, %arg15: memref<128x128xbf16, #tpu.memory_space<vmem>>, %arg16: memref<1x128xf32, #tpu.memory_space<vmem>>, %arg17: memref<128x128xbf16, #tpu.memory_space<vmem>>, %arg18: memref<1x128xf32, #tpu.memory_space<vmem>>, %arg19: memref<128x128xbf16, #tpu.memory_space<vmem>>, %arg20: memref<1x128xf32, #tpu.memory_space<vmem>>, %arg21: memref<128x128xbf16, #tpu.memory_space<vmem>>, %arg22: memref<1x128xf32, #tpu.memory_space<vmem>>, %arg23: memref<2x128xf32, #tpu.memory_space<vmem>>, %arg24: memref<2x128xf32, #tpu.memory_space<vmem>>) attributes {dimension_semantics = [#tpu.dimension_semantics<arbitrary>], iteration_bounds = array<i64: 1>, scalar_prefetch = 0 : i64, scratch_operands = 0 : i64, tpu.core_type = #tpu.core_type<tc>, window_params = [{pipeline_mode = #tpu.pipeline_mode<synchronous>, transform_indices = @transform_0, window_bounds = array<i64: 16, 128>}, {pipeline_mode = #tpu.pipeline_mode<synchronous>, transform_indices = @transform_1, window_bounds = array<i64: 2, 128>}, {pipeline_mode = #tpu.pipeline_mode<synchronous>, transform_indices = @transform_2, window_bounds = array<i64: 2, 128, 384>}, {pipeline_mode = #tpu.pipeline_mode<synchronous>, transform_indices = @transform_3, window_bounds = array<i64: 2, 1, 384>}, {pipeline_mode = #tpu.pipeline_mode<synchronous>, transform_indices = @transform_4, window_bounds = array<i64: 2, 128, 128>}, {pipeline_mode = #tpu.pipeline_mode<synchronous>, transform_indices = @transform_5, window_bounds = array<i64: 2, 1, 128>}, {pipeline_mode = #tpu.pipeline_mode<synchronous>, transform_indices = @transform_6, window_bounds = array<i64: 2, 1, 128>}, {pipeline_mode = #tpu.pipeline_mode<synchronous>, transform_indices = @transform_7, window_bounds = array<i64: 2, 1, 128>}, {pipeline_mode = #tpu.pipeline_mode<synchronous>, transform_indices = @transform_8, window_bounds = array<i64: 2, 128, 256>}, {pipeline_mode = #tpu.pipeline_mode<synchronous>, transform_indices = @transform_9, window_bounds = array<i64: 2, 1, 256>}, {pipeline_mode = #tpu.pipeline_mode<synchronous>, transform_indices = @transform_10, window_bounds = array<i64: 2, 256, 128>}, {pipeline_mode = #tpu.pipeline_mode<synchronous>, transform_indices = @transform_11, window_bounds = array<i64: 2, 1, 128>}, {pipeline_mode = #tpu.pipeline_mode<synchronous>, transform_indices = @transform_12, window_bounds = array<i64: 2, 1, 128>}, {pipeline_mode = #tpu.pipeline_mode<synchronous>, transform_indices = @transform_13, window_bounds = array<i64: 2, 1, 128>}, {pipeline_mode = #tpu.pipeline_mode<synchronous>, transform_indices = @transform_14, window_bounds = array<i64: 128, 128>}, {pipeline_mode = #tpu.pipeline_mode<synchronous>, transform_indices = @transform_15, window_bounds = array<i64: 1, 128>}, {pipeline_mode = #tpu.pipeline_mode<synchronous>, transform_indices = @transform_16, window_bounds = array<i64: 128, 128>}, {pipeline_mode = #tpu.pipeline_mode<synchronous>, transform_indices = @transform_17, window_bounds = array<i64: 1, 128>}, {pipeline_mode = #tpu.pipeline_mode<synchronous>, transform_indices = @transform_18, window_bounds = array<i64: 128, 128>}, {pipeline_mode = #tpu.pipeline_mode<synchronous>, transform_indices = @transform_19, window_bounds = array<i64: 1, 128>}, {pipeline_mode = #tpu.pipeline_mode<synchronous>, transform_indices = @transform_20, window_bounds = array<i64: 128, 128>}, {pipeline_mode = #tpu.pipeline_mode<synchronous>, transform_indices = @transform_21, window_bounds = array<i64: 1, 128>}, {pipeline_mode = #tpu.pipeline_mode<synchronous>, transform_indices = @transform_22, window_bounds = array<i64: 2, 128>}, {pipeline_mode = #tpu.pipeline_mode<synchronous>, transform_indices = @transform_23, window_bounds = array<i64: 2, 128>}]} {
    %c0 = arith.constant 0 : index
    %c0_0 = arith.constant 0 : index
    %0 = vector.load %arg1[%c0, %c0_0] : memref<16x128xf32, #tpu.memory_space<vmem>>, vector<16x128xf32>
    %c0_1 = arith.constant 0 : index
    %c0_2 = arith.constant 0 : index
    %c0_3 = arith.constant 0 : index
    %1 = vector.load %arg3[%c0_1, %c0_2, %c0_3] : memref<2x128x384xbf16, #tpu.memory_space<vmem>>, vector<1x128x384xbf16>
    %2 = vector.shape_cast %1 : vector<1x128x384xbf16> to vector<128x384xbf16>
    %c0_4 = arith.constant 0 : index
    %c0_5 = arith.constant 0 : index
    %c0_6 = arith.constant 0 : index
    %3 = vector.load %arg4[%c0_4, %c0_5, %c0_6] : memref<2x1x384xf32, #tpu.memory_space<vmem>>, vector<1x1x384xf32>
    %4 = vector.shape_cast %3 : vector<1x1x384xf32> to vector<1x384xf32>
    %c0_7 = arith.constant 0 : index
    %c0_8 = arith.constant 0 : index
    %c0_9 = arith.constant 0 : index
    %5 = vector.load %arg5[%c0_7, %c0_8, %c0_9] : memref<2x128x128xbf16, #tpu.memory_space<vmem>>, vector<1x128x128xbf16>
    %6 = vector.shape_cast %5 : vector<1x128x128xbf16> to vector<128x128xbf16>
    %c0_10 = arith.constant 0 : index
    %c0_11 = arith.constant 0 : index
    %c0_12 = arith.constant 0 : index
    %7 = vector.load %arg6[%c0_10, %c0_11, %c0_12] : memref<2x1x128xf32, #tpu.memory_space<vmem>>, vector<1x1x128xf32>
    %8 = vector.shape_cast %7 : vector<1x1x128xf32> to vector<1x128xf32>
    %c0_13 = arith.constant 0 : index
    %c0_14 = arith.constant 0 : index
    %c0_15 = arith.constant 0 : index
    %9 = vector.load %arg7[%c0_13, %c0_14, %c0_15] : memref<2x1x128xf32, #tpu.memory_space<vmem>>, vector<1x1x128xf32>
    %10 = vector.shape_cast %9 : vector<1x1x128xf32> to vector<1x128xf32>
    %c0_16 = arith.constant 0 : index
    %c0_17 = arith.constant 0 : index
    %c0_18 = arith.constant 0 : index
    %11 = vector.load %arg8[%c0_16, %c0_17, %c0_18] : memref<2x1x128xf32, #tpu.memory_space<vmem>>, vector<1x1x128xf32>
    %12 = vector.shape_cast %11 : vector<1x1x128xf32> to vector<1x128xf32>
    %c0_19 = arith.constant 0 : index
    %c0_20 = arith.constant 0 : index
    %c0_21 = arith.constant 0 : index
    %13 = vector.load %arg9[%c0_19, %c0_20, %c0_21] : memref<2x128x256xbf16, #tpu.memory_space<vmem>>, vector<1x128x256xbf16>
    %14 = vector.shape_cast %13 : vector<1x128x256xbf16> to vector<128x256xbf16>
    %c0_22 = arith.constant 0 : index
    %c0_23 = arith.constant 0 : index
    %c0_24 = arith.constant 0 : index
    %15 = vector.load %arg10[%c0_22, %c0_23, %c0_24] : memref<2x1x256xf32, #tpu.memory_space<vmem>>, vector<1x1x256xf32>
    %16 = vector.shape_cast %15 : vector<1x1x256xf32> to vector<1x256xf32>
    %c0_25 = arith.constant 0 : index
    %c0_26 = arith.constant 0 : index
    %c0_27 = arith.constant 0 : index
    %17 = vector.load %arg11[%c0_25, %c0_26, %c0_27] : memref<2x256x128xbf16, #tpu.memory_space<vmem>>, vector<1x256x128xbf16>
    %18 = vector.shape_cast %17 : vector<1x256x128xbf16> to vector<256x128xbf16>
    %c0_28 = arith.constant 0 : index
    %c0_29 = arith.constant 0 : index
    %c0_30 = arith.constant 0 : index
    %19 = vector.load %arg12[%c0_28, %c0_29, %c0_30] : memref<2x1x128xf32, #tpu.memory_space<vmem>>, vector<1x1x128xf32>
    %20 = vector.shape_cast %19 : vector<1x1x128xf32> to vector<1x128xf32>
    %c0_31 = arith.constant 0 : index
    %c0_32 = arith.constant 0 : index
    %c0_33 = arith.constant 0 : index
    %21 = vector.load %arg13[%c0_31, %c0_32, %c0_33] : memref<2x1x128xf32, #tpu.memory_space<vmem>>, vector<1x1x128xf32>
    %22 = vector.shape_cast %21 : vector<1x1x128xf32> to vector<1x128xf32>
    %c0_34 = arith.constant 0 : index
    %c0_35 = arith.constant 0 : index
    %c0_36 = arith.constant 0 : index
    %23 = vector.load %arg14[%c0_34, %c0_35, %c0_36] : memref<2x1x128xf32, #tpu.memory_space<vmem>>, vector<1x1x128xf32>
    %24 = vector.shape_cast %23 : vector<1x1x128xf32> to vector<1x128xf32>
    %25 = arith.truncf %0 : vector<16x128xf32> to vector<16x128xbf16>
    %cst = arith.constant dense<0.000000e+00> : vector<16x384xf32>
    %26 = tpu.matmul %25, %2, %cst {dimension_numbers = #tpu.dot_dimension_numbers<[1], [0], [0], [1], [0, 0, 1, 1], [], []>} : vector<16x128xbf16>, vector<128x384xbf16>, vector<16x384xf32> -> vector<16x384xf32>
    %27 = vector.broadcast %4 : vector<1x384xf32> to vector<16x384xf32>
    %28 = arith.addf %26, %27 : vector<16x384xf32>
    %29 = vector.extract_strided_slice %28 {offsets = [0, 0], sizes = [16, 128], strides = [1, 1]} : vector<16x384xf32> to vector<16x128xf32>
    %30 = vector.extract_strided_slice %28 {offsets = [0, 128], sizes = [16, 128], strides = [1, 1]} : vector<16x384xf32> to vector<16x128xf32>
    %31 = vector.extract_strided_slice %28 {offsets = [0, 256], sizes = [16, 128], strides = [1, 1]} : vector<16x384xf32> to vector<16x128xf32>
    %cst_37 = arith.constant 0.000000e+00 : f32
    %32 = vector.broadcast %cst_37 : f32 to vector<16x128xf32>
    %33 = vector.extract_strided_slice %29 {offsets = [0, 0], sizes = [16, 16], strides = [1, 1]} : vector<16x128xf32> to vector<16x16xf32>
    %34 = vector.extract_strided_slice %30 {offsets = [0, 0], sizes = [16, 16], strides = [1, 1]} : vector<16x128xf32> to vector<16x16xf32>
    %35 = vector.extract_strided_slice %31 {offsets = [0, 0], sizes = [16, 16], strides = [1, 1]} : vector<16x128xf32> to vector<16x16xf32>
    %cst_38 = arith.constant dense<0.000000e+00> : vector<16x16xf32>
    %36 = tpu.matmul %33, %34, %cst_38 {dimension_numbers = #tpu.dot_dimension_numbers<[1], [1], [0], [0], [0, 0, 1, 0], [], []>} : vector<16x16xf32>, vector<16x16xf32>, vector<16x16xf32> -> vector<16x16xf32>
    %cst_39 = arith.constant 2.500000e-01 : f32
    %37 = vector.broadcast %cst_39 : f32 to vector<16x16xf32>
    %38 = arith.mulf %36, %37 : vector<16x16xf32>
    %cst_40 = arith.constant dense<0xFF800000> : vector<16xf32>
    %39 = vector.multi_reduction <maximumf>, %38, %cst_40 [1] : vector<16x16xf32> to vector<16xf32>
    %40 = vector.shape_cast %39 : vector<16xf32> to vector<16x1xf32>
    %41 = vector.broadcast %40 : vector<16x1xf32> to vector<16x16xf32>
    %42 = arith.subf %38, %41 : vector<16x16xf32>
    %43 = math.exp %42 : vector<16x16xf32>
    %cst_41 = arith.constant dense<0.000000e+00> : vector<16xf32>
    %44 = vector.multi_reduction <add>, %43, %cst_41 [1] : vector<16x16xf32> to vector<16xf32>
    %45 = vector.shape_cast %44 : vector<16xf32> to vector<16x1xf32>
    %46 = tpu.reciprocal %45 {approx = true} : vector<16x1xf32> -> vector<16x1xf32>
    %47 = vector.broadcast %46 : vector<16x1xf32> to vector<16x16xf32>
    %48 = arith.mulf %43, %47 : vector<16x16xf32>
    %cst_42 = arith.constant dense<0.000000e+00> : vector<16x16xf32>
    %49 = tpu.matmul %48, %35, %cst_42 {dimension_numbers = #tpu.dot_dimension_numbers<[1], [0], [0], [1], [0, 0, 1, 1], [], []>} : vector<16x16xf32>, vector<16x16xf32>, vector<16x16xf32> -> vector<16x16xf32>
    %50 = arith.truncf %49 : vector<16x16xf32> to vector<16x16xbf16>
    %51 = vector.extract_strided_slice %6 {offsets = [0, 0], sizes = [16, 128], strides = [1, 1]} : vector<128x128xbf16> to vector<16x128xbf16>
    %cst_43 = arith.constant dense<0.000000e+00> : vector<16x128xf32>
    %52 = tpu.matmul %50, %51, %cst_43 {dimension_numbers = #tpu.dot_dimension_numbers<[1], [0], [0], [1], [0, 0, 1, 1], [], []>} : vector<16x16xbf16>, vector<16x128xbf16>, vector<16x128xf32> -> vector<16x128xf32>
    %53 = arith.addf %32, %52 : vector<16x128xf32>
    %54 = vector.extract_strided_slice %29 {offsets = [0, 16], sizes = [16, 16], strides = [1, 1]} : vector<16x128xf32> to vector<16x16xf32>
    %55 = vector.extract_strided_slice %30 {offsets = [0, 16], sizes = [16, 16], strides = [1, 1]} : vector<16x128xf32> to vector<16x16xf32>
    %56 = vector.extract_strided_slice %31 {offsets = [0, 16], sizes = [16, 16], strides = [1, 1]} : vector<16x128xf32> to vector<16x16xf32>
    %cst_44 = arith.constant dense<0.000000e+00> : vector<16x16xf32>
    %57 = tpu.matmul %54, %55, %cst_44 {dimension_numbers = #tpu.dot_dimension_numbers<[1], [1], [0], [0], [0, 0, 1, 0], [], []>} : vector<16x16xf32>, vector<16x16xf32>, vector<16x16xf32> -> vector<16x16xf32>
    %cst_45 = arith.constant 2.500000e-01 : f32
    %58 = vector.broadcast %cst_45 : f32 to vector<16x16xf32>
    %59 = arith.mulf %57, %58 : vector<16x16xf32>
    %cst_46 = arith.constant dense<0xFF800000> : vector<16xf32>
    %60 = vector.multi_reduction <maximumf>, %59, %cst_46 [1] : vector<16x16xf32> to vector<16xf32>
    %61 = vector.shape_cast %60 : vector<16xf32> to vector<16x1xf32>
    %62 = vector.broadcast %61 : vector<16x1xf32> to vector<16x16xf32>
    %63 = arith.subf %59, %62 : vector<16x16xf32>
    %64 = math.exp %63 : vector<16x16xf32>
    %cst_47 = arith.constant dense<0.000000e+00> : vector<16xf32>
    %65 = vector.multi_reduction <add>, %64, %cst_47 [1] : vector<16x16xf32> to vector<16xf32>
    %66 = vector.shape_cast %65 : vector<16xf32> to vector<16x1xf32>
    %67 = tpu.reciprocal %66 {approx = true} : vector<16x1xf32> -> vector<16x1xf32>
    %68 = vector.broadcast %67 : vector<16x1xf32> to vector<16x16xf32>
    %69 = arith.mulf %64, %68 : vector<16x16xf32>
    %cst_48 = arith.constant dense<0.000000e+00> : vector<16x16xf32>
    %70 = tpu.matmul %69, %56, %cst_48 {dimension_numbers = #tpu.dot_dimension_numbers<[1], [0], [0], [1], [0, 0, 1, 1], [], []>} : vector<16x16xf32>, vector<16x16xf32>, vector<16x16xf32> -> vector<16x16xf32>
    %71 = arith.truncf %70 : vector<16x16xf32> to vector<16x16xbf16>
    %72 = vector.extract_strided_slice %6 {offsets = [16, 0], sizes = [16, 128], strides = [1, 1]} : vector<128x128xbf16> to vector<16x128xbf16>
    %cst_49 = arith.constant dense<0.000000e+00> : vector<16x128xf32>
    %73 = tpu.matmul %71, %72, %cst_49 {dimension_numbers = #tpu.dot_dimension_numbers<[1], [0], [0], [1], [0, 0, 1, 1], [], []>} : vector<16x16xbf16>, vector<16x128xbf16>, vector<16x128xf32> -> vector<16x128xf32>
    %74 = arith.addf %53, %73 : vector<16x128xf32>
    %75 = vector.extract_strided_slice %29 {offsets = [0, 32], sizes = [16, 16], strides = [1, 1]} : vector<16x128xf32> to vector<16x16xf32>
    %76 = vector.extract_strided_slice %30 {offsets = [0, 32], sizes = [16, 16], strides = [1, 1]} : vector<16x128xf32> to vector<16x16xf32>
    %77 = vector.extract_strided_slice %31 {offsets = [0, 32], sizes = [16, 16], strides = [1, 1]} : vector<16x128xf32> to vector<16x16xf32>
    %cst_50 = arith.constant dense<0.000000e+00> : vector<16x16xf32>
    %78 = tpu.matmul %75, %76, %cst_50 {dimension_numbers = #tpu.dot_dimension_numbers<[1], [1], [0], [0], [0, 0, 1, 0], [], []>} : vector<16x16xf32>, vector<16x16xf32>, vector<16x16xf32> -> vector<16x16xf32>
    %cst_51 = arith.constant 2.500000e-01 : f32
    %79 = vector.broadcast %cst_51 : f32 to vector<16x16xf32>
    %80 = arith.mulf %78, %79 : vector<16x16xf32>
    %cst_52 = arith.constant dense<0xFF800000> : vector<16xf32>
    %81 = vector.multi_reduction <maximumf>, %80, %cst_52 [1] : vector<16x16xf32> to vector<16xf32>
    %82 = vector.shape_cast %81 : vector<16xf32> to vector<16x1xf32>
    %83 = vector.broadcast %82 : vector<16x1xf32> to vector<16x16xf32>
    %84 = arith.subf %80, %83 : vector<16x16xf32>
    %85 = math.exp %84 : vector<16x16xf32>
    %cst_53 = arith.constant dense<0.000000e+00> : vector<16xf32>
    %86 = vector.multi_reduction <add>, %85, %cst_53 [1] : vector<16x16xf32> to vector<16xf32>
    %87 = vector.shape_cast %86 : vector<16xf32> to vector<16x1xf32>
    %88 = tpu.reciprocal %87 {approx = true} : vector<16x1xf32> -> vector<16x1xf32>
    %89 = vector.broadcast %88 : vector<16x1xf32> to vector<16x16xf32>
    %90 = arith.mulf %85, %89 : vector<16x16xf32>
    %cst_54 = arith.constant dense<0.000000e+00> : vector<16x16xf32>
    %91 = tpu.matmul %90, %77, %cst_54 {dimension_numbers = #tpu.dot_dimension_numbers<[1], [0], [0], [1], [0, 0, 1, 1], [], []>} : vector<16x16xf32>, vector<16x16xf32>, vector<16x16xf32> -> vector<16x16xf32>
    %92 = arith.truncf %91 : vector<16x16xf32> to vector<16x16xbf16>
    %93 = vector.extract_strided_slice %6 {offsets = [32, 0], sizes = [16, 128], strides = [1, 1]} : vector<128x128xbf16> to vector<16x128xbf16>
    %cst_55 = arith.constant dense<0.000000e+00> : vector<16x128xf32>
    %94 = tpu.matmul %92, %93, %cst_55 {dimension_numbers = #tpu.dot_dimension_numbers<[1], [0], [0], [1], [0, 0, 1, 1], [], []>} : vector<16x16xbf16>, vector<16x128xbf16>, vector<16x128xf32> -> vector<16x128xf32>
    %95 = arith.addf %74, %94 : vector<16x128xf32>
    %96 = vector.extract_strided_slice %29 {offsets = [0, 48], sizes = [16, 16], strides = [1, 1]} : vector<16x128xf32> to vector<16x16xf32>
    %97 = vector.extract_strided_slice %30 {offsets = [0, 48], sizes = [16, 16], strides = [1, 1]} : vector<16x128xf32> to vector<16x16xf32>
    %98 = vector.extract_strided_slice %31 {offsets = [0, 48], sizes = [16, 16], strides = [1, 1]} : vector<16x128xf32> to vector<16x16xf32>
    %cst_56 = arith.constant dense<0.000000e+00> : vector<16x16xf32>
    %99 = tpu.matmul %96, %97, %cst_56 {dimension_numbers = #tpu.dot_dimension_numbers<[1], [1], [0], [0], [0, 0, 1, 0], [], []>} : vector<16x16xf32>, vector<16x16xf32>, vector<16x16xf32> -> vector<16x16xf32>
    %cst_57 = arith.constant 2.500000e-01 : f32
    %100 = vector.broadcast %cst_57 : f32 to vector<16x16xf32>
    %101 = arith.mulf %99, %100 : vector<16x16xf32>
    %cst_58 = arith.constant dense<0xFF800000> : vector<16xf32>
    %102 = vector.multi_reduction <maximumf>, %101, %cst_58 [1] : vector<16x16xf32> to vector<16xf32>
    %103 = vector.shape_cast %102 : vector<16xf32> to vector<16x1xf32>
    %104 = vector.broadcast %103 : vector<16x1xf32> to vector<16x16xf32>
    %105 = arith.subf %101, %104 : vector<16x16xf32>
    %106 = math.exp %105 : vector<16x16xf32>
    %cst_59 = arith.constant dense<0.000000e+00> : vector<16xf32>
    %107 = vector.multi_reduction <add>, %106, %cst_59 [1] : vector<16x16xf32> to vector<16xf32>
    %108 = vector.shape_cast %107 : vector<16xf32> to vector<16x1xf32>
    %109 = tpu.reciprocal %108 {approx = true} : vector<16x1xf32> -> vector<16x1xf32>
    %110 = vector.broadcast %109 : vector<16x1xf32> to vector<16x16xf32>
    %111 = arith.mulf %106, %110 : vector<16x16xf32>
    %cst_60 = arith.constant dense<0.000000e+00> : vector<16x16xf32>
    %112 = tpu.matmul %111, %98, %cst_60 {dimension_numbers = #tpu.dot_dimension_numbers<[1], [0], [0], [1], [0, 0, 1, 1], [], []>} : vector<16x16xf32>, vector<16x16xf32>, vector<16x16xf32> -> vector<16x16xf32>
    %113 = arith.truncf %112 : vector<16x16xf32> to vector<16x16xbf16>
    %114 = vector.extract_strided_slice %6 {offsets = [48, 0], sizes = [16, 128], strides = [1, 1]} : vector<128x128xbf16> to vector<16x128xbf16>
    %cst_61 = arith.constant dense<0.000000e+00> : vector<16x128xf32>
    %115 = tpu.matmul %113, %114, %cst_61 {dimension_numbers = #tpu.dot_dimension_numbers<[1], [0], [0], [1], [0, 0, 1, 1], [], []>} : vector<16x16xbf16>, vector<16x128xbf16>, vector<16x128xf32> -> vector<16x128xf32>
    %116 = arith.addf %95, %115 : vector<16x128xf32>
    %117 = vector.extract_strided_slice %29 {offsets = [0, 64], sizes = [16, 16], strides = [1, 1]} : vector<16x128xf32> to vector<16x16xf32>
    %118 = vector.extract_strided_slice %30 {offsets = [0, 64], sizes = [16, 16], strides = [1, 1]} : vector<16x128xf32> to vector<16x16xf32>
    %119 = vector.extract_strided_slice %31 {offsets = [0, 64], sizes = [16, 16], strides = [1, 1]} : vector<16x128xf32> to vector<16x16xf32>
    %cst_62 = arith.constant dense<0.000000e+00> : vector<16x16xf32>
    %120 = tpu.matmul %117, %118, %cst_62 {dimension_numbers = #tpu.dot_dimension_numbers<[1], [1], [0], [0], [0, 0, 1, 0], [], []>} : vector<16x16xf32>, vector<16x16xf32>, vector<16x16xf32> -> vector<16x16xf32>
    %cst_63 = arith.constant 2.500000e-01 : f32
    %121 = vector.broadcast %cst_63 : f32 to vector<16x16xf32>
    %122 = arith.mulf %120, %121 : vector<16x16xf32>
    %cst_64 = arith.constant dense<0xFF800000> : vector<16xf32>
    %123 = vector.multi_reduction <maximumf>, %122, %cst_64 [1] : vector<16x16xf32> to vector<16xf32>
    %124 = vector.shape_cast %123 : vector<16xf32> to vector<16x1xf32>
    %125 = vector.broadcast %124 : vector<16x1xf32> to vector<16x16xf32>
    %126 = arith.subf %122, %125 : vector<16x16xf32>
    %127 = math.exp %126 : vector<16x16xf32>
    %cst_65 = arith.constant dense<0.000000e+00> : vector<16xf32>
    %128 = vector.multi_reduction <add>, %127, %cst_65 [1] : vector<16x16xf32> to vector<16xf32>
    %129 = vector.shape_cast %128 : vector<16xf32> to vector<16x1xf32>
    %130 = tpu.reciprocal %129 {approx = true} : vector<16x1xf32> -> vector<16x1xf32>
    %131 = vector.broadcast %130 : vector<16x1xf32> to vector<16x16xf32>
    %132 = arith.mulf %127, %131 : vector<16x16xf32>
    %cst_66 = arith.constant dense<0.000000e+00> : vector<16x16xf32>
    %133 = tpu.matmul %132, %119, %cst_66 {dimension_numbers = #tpu.dot_dimension_numbers<[1], [0], [0], [1], [0, 0, 1, 1], [], []>} : vector<16x16xf32>, vector<16x16xf32>, vector<16x16xf32> -> vector<16x16xf32>
    %134 = arith.truncf %133 : vector<16x16xf32> to vector<16x16xbf16>
    %135 = vector.extract_strided_slice %6 {offsets = [64, 0], sizes = [16, 128], strides = [1, 1]} : vector<128x128xbf16> to vector<16x128xbf16>
    %cst_67 = arith.constant dense<0.000000e+00> : vector<16x128xf32>
    %136 = tpu.matmul %134, %135, %cst_67 {dimension_numbers = #tpu.dot_dimension_numbers<[1], [0], [0], [1], [0, 0, 1, 1], [], []>} : vector<16x16xbf16>, vector<16x128xbf16>, vector<16x128xf32> -> vector<16x128xf32>
    %137 = arith.addf %116, %136 : vector<16x128xf32>
    %138 = vector.extract_strided_slice %29 {offsets = [0, 80], sizes = [16, 16], strides = [1, 1]} : vector<16x128xf32> to vector<16x16xf32>
    %139 = vector.extract_strided_slice %30 {offsets = [0, 80], sizes = [16, 16], strides = [1, 1]} : vector<16x128xf32> to vector<16x16xf32>
    %140 = vector.extract_strided_slice %31 {offsets = [0, 80], sizes = [16, 16], strides = [1, 1]} : vector<16x128xf32> to vector<16x16xf32>
    %cst_68 = arith.constant dense<0.000000e+00> : vector<16x16xf32>
    %141 = tpu.matmul %138, %139, %cst_68 {dimension_numbers = #tpu.dot_dimension_numbers<[1], [1], [0], [0], [0, 0, 1, 0], [], []>} : vector<16x16xf32>, vector<16x16xf32>, vector<16x16xf32> -> vector<16x16xf32>
    %cst_69 = arith.constant 2.500000e-01 : f32
    %142 = vector.broadcast %cst_69 : f32 to vector<16x16xf32>
    %143 = arith.mulf %141, %142 : vector<16x16xf32>
    %cst_70 = arith.constant dense<0xFF800000> : vector<16xf32>
    %144 = vector.multi_reduction <maximumf>, %143, %cst_70 [1] : vector<16x16xf32> to vector<16xf32>
    %145 = vector.shape_cast %144 : vector<16xf32> to vector<16x1xf32>
    %146 = vector.broadcast %145 : vector<16x1xf32> to vector<16x16xf32>
    %147 = arith.subf %143, %146 : vector<16x16xf32>
    %148 = math.exp %147 : vector<16x16xf32>
    %cst_71 = arith.constant dense<0.000000e+00> : vector<16xf32>
    %149 = vector.multi_reduction <add>, %148, %cst_71 [1] : vector<16x16xf32> to vector<16xf32>
    %150 = vector.shape_cast %149 : vector<16xf32> to vector<16x1xf32>
    %151 = tpu.reciprocal %150 {approx = true} : vector<16x1xf32> -> vector<16x1xf32>
    %152 = vector.broadcast %151 : vector<16x1xf32> to vector<16x16xf32>
    %153 = arith.mulf %148, %152 : vector<16x16xf32>
    %cst_72 = arith.constant dense<0.000000e+00> : vector<16x16xf32>
    %154 = tpu.matmul %153, %140, %cst_72 {dimension_numbers = #tpu.dot_dimension_numbers<[1], [0], [0], [1], [0, 0, 1, 1], [], []>} : vector<16x16xf32>, vector<16x16xf32>, vector<16x16xf32> -> vector<16x16xf32>
    %155 = arith.truncf %154 : vector<16x16xf32> to vector<16x16xbf16>
    %156 = vector.extract_strided_slice %6 {offsets = [80, 0], sizes = [16, 128], strides = [1, 1]} : vector<128x128xbf16> to vector<16x128xbf16>
    %cst_73 = arith.constant dense<0.000000e+00> : vector<16x128xf32>
    %157 = tpu.matmul %155, %156, %cst_73 {dimension_numbers = #tpu.dot_dimension_numbers<[1], [0], [0], [1], [0, 0, 1, 1], [], []>} : vector<16x16xbf16>, vector<16x128xbf16>, vector<16x128xf32> -> vector<16x128xf32>
    %158 = arith.addf %137, %157 : vector<16x128xf32>
    %159 = vector.extract_strided_slice %29 {offsets = [0, 96], sizes = [16, 16], strides = [1, 1]} : vector<16x128xf32> to vector<16x16xf32>
    %160 = vector.extract_strided_slice %30 {offsets = [0, 96], sizes = [16, 16], strides = [1, 1]} : vector<16x128xf32> to vector<16x16xf32>
    %161 = vector.extract_strided_slice %31 {offsets = [0, 96], sizes = [16, 16], strides = [1, 1]} : vector<16x128xf32> to vector<16x16xf32>
    %cst_74 = arith.constant dense<0.000000e+00> : vector<16x16xf32>
    %162 = tpu.matmul %159, %160, %cst_74 {dimension_numbers = #tpu.dot_dimension_numbers<[1], [1], [0], [0], [0, 0, 1, 0], [], []>} : vector<16x16xf32>, vector<16x16xf32>, vector<16x16xf32> -> vector<16x16xf32>
    %cst_75 = arith.constant 2.500000e-01 : f32
    %163 = vector.broadcast %cst_75 : f32 to vector<16x16xf32>
    %164 = arith.mulf %162, %163 : vector<16x16xf32>
    %cst_76 = arith.constant dense<0xFF800000> : vector<16xf32>
    %165 = vector.multi_reduction <maximumf>, %164, %cst_76 [1] : vector<16x16xf32> to vector<16xf32>
    %166 = vector.shape_cast %165 : vector<16xf32> to vector<16x1xf32>
    %167 = vector.broadcast %166 : vector<16x1xf32> to vector<16x16xf32>
    %168 = arith.subf %164, %167 : vector<16x16xf32>
    %169 = math.exp %168 : vector<16x16xf32>
    %cst_77 = arith.constant dense<0.000000e+00> : vector<16xf32>
    %170 = vector.multi_reduction <add>, %169, %cst_77 [1] : vector<16x16xf32> to vector<16xf32>
    %171 = vector.shape_cast %170 : vector<16xf32> to vector<16x1xf32>
    %172 = tpu.reciprocal %171 {approx = true} : vector<16x1xf32> -> vector<16x1xf32>
    %173 = vector.broadcast %172 : vector<16x1xf32> to vector<16x16xf32>
    %174 = arith.mulf %169, %173 : vector<16x16xf32>
    %cst_78 = arith.constant dense<0.000000e+00> : vector<16x16xf32>
    %175 = tpu.matmul %174, %161, %cst_78 {dimension_numbers = #tpu.dot_dimension_numbers<[1], [0], [0], [1], [0, 0, 1, 1], [], []>} : vector<16x16xf32>, vector<16x16xf32>, vector<16x16xf32> -> vector<16x16xf32>
    %176 = arith.truncf %175 : vector<16x16xf32> to vector<16x16xbf16>
    %177 = vector.extract_strided_slice %6 {offsets = [96, 0], sizes = [16, 128], strides = [1, 1]} : vector<128x128xbf16> to vector<16x128xbf16>
    %cst_79 = arith.constant dense<0.000000e+00> : vector<16x128xf32>
    %178 = tpu.matmul %176, %177, %cst_79 {dimension_numbers = #tpu.dot_dimension_numbers<[1], [0], [0], [1], [0, 0, 1, 1], [], []>} : vector<16x16xbf16>, vector<16x128xbf16>, vector<16x128xf32> -> vector<16x128xf32>
    %179 = arith.addf %158, %178 : vector<16x128xf32>
    %180 = vector.extract_strided_slice %29 {offsets = [0, 112], sizes = [16, 16], strides = [1, 1]} : vector<16x128xf32> to vector<16x16xf32>
    %181 = vector.extract_strided_slice %30 {offsets = [0, 112], sizes = [16, 16], strides = [1, 1]} : vector<16x128xf32> to vector<16x16xf32>
    %182 = vector.extract_strided_slice %31 {offsets = [0, 112], sizes = [16, 16], strides = [1, 1]} : vector<16x128xf32> to vector<16x16xf32>
    %cst_80 = arith.constant dense<0.000000e+00> : vector<16x16xf32>
    %183 = tpu.matmul %180, %181, %cst_80 {dimension_numbers = #tpu.dot_dimension_numbers<[1], [1], [0], [0], [0, 0, 1, 0], [], []>} : vector<16x16xf32>, vector<16x16xf32>, vector<16x16xf32> -> vector<16x16xf32>
    %cst_81 = arith.constant 2.500000e-01 : f32
    %184 = vector.broadcast %cst_81 : f32 to vector<16x16xf32>
    %185 = arith.mulf %183, %184 : vector<16x16xf32>
    %cst_82 = arith.constant dense<0xFF800000> : vector<16xf32>
    %186 = vector.multi_reduction <maximumf>, %185, %cst_82 [1] : vector<16x16xf32> to vector<16xf32>
    %187 = vector.shape_cast %186 : vector<16xf32> to vector<16x1xf32>
    %188 = vector.broadcast %187 : vector<16x1xf32> to vector<16x16xf32>
    %189 = arith.subf %185, %188 : vector<16x16xf32>
    %190 = math.exp %189 : vector<16x16xf32>
    %cst_83 = arith.constant dense<0.000000e+00> : vector<16xf32>
    %191 = vector.multi_reduction <add>, %190, %cst_83 [1] : vector<16x16xf32> to vector<16xf32>
    %192 = vector.shape_cast %191 : vector<16xf32> to vector<16x1xf32>
    %193 = tpu.reciprocal %192 {approx = true} : vector<16x1xf32> -> vector<16x1xf32>
    %194 = vector.broadcast %193 : vector<16x1xf32> to vector<16x16xf32>
    %195 = arith.mulf %190, %194 : vector<16x16xf32>
    %cst_84 = arith.constant dense<0.000000e+00> : vector<16x16xf32>
    %196 = tpu.matmul %195, %182, %cst_84 {dimension_numbers = #tpu.dot_dimension_numbers<[1], [0], [0], [1], [0, 0, 1, 1], [], []>} : vector<16x16xf32>, vector<16x16xf32>, vector<16x16xf32> -> vector<16x16xf32>
    %197 = arith.truncf %196 : vector<16x16xf32> to vector<16x16xbf16>
    %198 = vector.extract_strided_slice %6 {offsets = [112, 0], sizes = [16, 128], strides = [1, 1]} : vector<128x128xbf16> to vector<16x128xbf16>
    %cst_85 = arith.constant dense<0.000000e+00> : vector<16x128xf32>
    %199 = tpu.matmul %197, %198, %cst_85 {dimension_numbers = #tpu.dot_dimension_numbers<[1], [0], [0], [1], [0, 0, 1, 1], [], []>} : vector<16x16xbf16>, vector<16x128xbf16>, vector<16x128xf32> -> vector<16x128xf32>
    %200 = arith.addf %179, %199 : vector<16x128xf32>
    %201 = vector.broadcast %8 : vector<1x128xf32> to vector<16x128xf32>
    %202 = arith.addf %200, %201 : vector<16x128xf32>
    %203 = arith.addf %0, %202 : vector<16x128xf32>
    %cst_86 = arith.constant dense<0.000000e+00> : vector<16xf32>
    %204 = vector.multi_reduction <add>, %203, %cst_86 [1] : vector<16x128xf32> to vector<16xf32>
    %205 = vector.shape_cast %204 : vector<16xf32> to vector<16x1xf32>
    %cst_87 = arith.constant 1.280000e+02 : f32
    %206 = vector.broadcast %cst_87 : f32 to vector<16x1xf32>
    %207 = arith.divf %205, %206 : vector<16x1xf32>
    %208 = vector.broadcast %207 : vector<16x1xf32> to vector<16x128xf32>
    %209 = arith.subf %203, %208 : vector<16x128xf32>
    %210 = arith.mulf %209, %209 : vector<16x128xf32>
    %cst_88 = arith.constant dense<0.000000e+00> : vector<16xf32>
    %211 = vector.multi_reduction <add>, %210, %cst_88 [1] : vector<16x128xf32> to vector<16xf32>
    %212 = vector.shape_cast %211 : vector<16xf32> to vector<16x1xf32>
    %cst_89 = arith.constant 1.280000e+02 : f32
    %213 = vector.broadcast %cst_89 : f32 to vector<16x1xf32>
    %214 = arith.divf %212, %213 : vector<16x1xf32>
    %215 = vector.broadcast %207 : vector<16x1xf32> to vector<16x128xf32>
    %216 = arith.subf %203, %215 : vector<16x128xf32>
    %cst_90 = arith.constant 9.99999974E-6 : f32
    %217 = vector.broadcast %cst_90 : f32 to vector<16x1xf32>
    %218 = arith.addf %214, %217 : vector<16x1xf32>
    %219 = math.rsqrt %218 : vector<16x1xf32>
    %220 = vector.broadcast %219 : vector<16x1xf32> to vector<16x128xf32>
    %221 = arith.mulf %216, %220 : vector<16x128xf32>
    %222 = vector.broadcast %10 : vector<1x128xf32> to vector<16x128xf32>
    %223 = arith.mulf %221, %222 : vector<16x128xf32>
    %224 = vector.broadcast %12 : vector<1x128xf32> to vector<16x128xf32>
    %225 = arith.addf %223, %224 : vector<16x128xf32>
    %226 = arith.truncf %225 : vector<16x128xf32> to vector<16x128xbf16>
    %cst_91 = arith.constant dense<0.000000e+00> : vector<16x256xf32>
    %227 = tpu.matmul %226, %14, %cst_91 {dimension_numbers = #tpu.dot_dimension_numbers<[1], [0], [0], [1], [0, 0, 1, 1], [], []>} : vector<16x128xbf16>, vector<128x256xbf16>, vector<16x256xf32> -> vector<16x256xf32>
    %228 = vector.broadcast %16 : vector<1x256xf32> to vector<16x256xf32>
    %229 = arith.addf %227, %228 : vector<16x256xf32>
    %cst_92 = arith.constant 0.000000e+00 : f32
    %230 = vector.broadcast %cst_92 : f32 to vector<16x256xf32>
    %231 = arith.maximumf %229, %230 : vector<16x256xf32>
    %232 = arith.truncf %231 : vector<16x256xf32> to vector<16x256xbf16>
    %cst_93 = arith.constant dense<0.000000e+00> : vector<16x128xf32>
    %233 = tpu.matmul %232, %18, %cst_93 {dimension_numbers = #tpu.dot_dimension_numbers<[1], [0], [0], [1], [0, 0, 1, 1], [], []>} : vector<16x256xbf16>, vector<256x128xbf16>, vector<16x128xf32> -> vector<16x128xf32>
    %234 = vector.broadcast %20 : vector<1x128xf32> to vector<16x128xf32>
    %235 = arith.addf %233, %234 : vector<16x128xf32>
    %236 = arith.addf %225, %235 : vector<16x128xf32>
    %cst_94 = arith.constant dense<0.000000e+00> : vector<16xf32>
    %237 = vector.multi_reduction <add>, %236, %cst_94 [1] : vector<16x128xf32> to vector<16xf32>
    %238 = vector.shape_cast %237 : vector<16xf32> to vector<16x1xf32>
    %cst_95 = arith.constant 1.280000e+02 : f32
    %239 = vector.broadcast %cst_95 : f32 to vector<16x1xf32>
    %240 = arith.divf %238, %239 : vector<16x1xf32>
    %241 = vector.broadcast %240 : vector<16x1xf32> to vector<16x128xf32>
    %242 = arith.subf %236, %241 : vector<16x128xf32>
    %243 = arith.mulf %242, %242 : vector<16x128xf32>
    %cst_96 = arith.constant dense<0.000000e+00> : vector<16xf32>
    %244 = vector.multi_reduction <add>, %243, %cst_96 [1] : vector<16x128xf32> to vector<16xf32>
    %245 = vector.shape_cast %244 : vector<16xf32> to vector<16x1xf32>
    %cst_97 = arith.constant 1.280000e+02 : f32
    %246 = vector.broadcast %cst_97 : f32 to vector<16x1xf32>
    %247 = arith.divf %245, %246 : vector<16x1xf32>
    %248 = vector.broadcast %240 : vector<16x1xf32> to vector<16x128xf32>
    %249 = arith.subf %236, %248 : vector<16x128xf32>
    %cst_98 = arith.constant 9.99999974E-6 : f32
    %250 = vector.broadcast %cst_98 : f32 to vector<16x1xf32>
    %251 = arith.addf %247, %250 : vector<16x1xf32>
    %252 = math.rsqrt %251 : vector<16x1xf32>
    %253 = vector.broadcast %252 : vector<16x1xf32> to vector<16x128xf32>
    %254 = arith.mulf %249, %253 : vector<16x128xf32>
    %255 = vector.broadcast %22 : vector<1x128xf32> to vector<16x128xf32>
    %256 = arith.mulf %254, %255 : vector<16x128xf32>
    %257 = vector.broadcast %24 : vector<1x128xf32> to vector<16x128xf32>
    %258 = arith.addf %256, %257 : vector<16x128xf32>
    %c1 = arith.constant 1 : index
    %c0_99 = arith.constant 0 : index
    %c0_100 = arith.constant 0 : index
    %259 = vector.load %arg3[%c1, %c0_99, %c0_100] : memref<2x128x384xbf16, #tpu.memory_space<vmem>>, vector<1x128x384xbf16>
    %260 = vector.shape_cast %259 : vector<1x128x384xbf16> to vector<128x384xbf16>
    %c1_101 = arith.constant 1 : index
    %c0_102 = arith.constant 0 : index
    %c0_103 = arith.constant 0 : index
    %261 = vector.load %arg4[%c1_101, %c0_102, %c0_103] : memref<2x1x384xf32, #tpu.memory_space<vmem>>, vector<1x1x384xf32>
    %262 = vector.shape_cast %261 : vector<1x1x384xf32> to vector<1x384xf32>
    %c1_104 = arith.constant 1 : index
    %c0_105 = arith.constant 0 : index
    %c0_106 = arith.constant 0 : index
    %263 = vector.load %arg5[%c1_104, %c0_105, %c0_106] : memref<2x128x128xbf16, #tpu.memory_space<vmem>>, vector<1x128x128xbf16>
    %264 = vector.shape_cast %263 : vector<1x128x128xbf16> to vector<128x128xbf16>
    %c1_107 = arith.constant 1 : index
    %c0_108 = arith.constant 0 : index
    %c0_109 = arith.constant 0 : index
    %265 = vector.load %arg6[%c1_107, %c0_108, %c0_109] : memref<2x1x128xf32, #tpu.memory_space<vmem>>, vector<1x1x128xf32>
    %266 = vector.shape_cast %265 : vector<1x1x128xf32> to vector<1x128xf32>
    %c1_110 = arith.constant 1 : index
    %c0_111 = arith.constant 0 : index
    %c0_112 = arith.constant 0 : index
    %267 = vector.load %arg7[%c1_110, %c0_111, %c0_112] : memref<2x1x128xf32, #tpu.memory_space<vmem>>, vector<1x1x128xf32>
    %268 = vector.shape_cast %267 : vector<1x1x128xf32> to vector<1x128xf32>
    %c1_113 = arith.constant 1 : index
    %c0_114 = arith.constant 0 : index
    %c0_115 = arith.constant 0 : index
    %269 = vector.load %arg8[%c1_113, %c0_114, %c0_115] : memref<2x1x128xf32, #tpu.memory_space<vmem>>, vector<1x1x128xf32>
    %270 = vector.shape_cast %269 : vector<1x1x128xf32> to vector<1x128xf32>
    %c1_116 = arith.constant 1 : index
    %c0_117 = arith.constant 0 : index
    %c0_118 = arith.constant 0 : index
    %271 = vector.load %arg9[%c1_116, %c0_117, %c0_118] : memref<2x128x256xbf16, #tpu.memory_space<vmem>>, vector<1x128x256xbf16>
    %272 = vector.shape_cast %271 : vector<1x128x256xbf16> to vector<128x256xbf16>
    %c1_119 = arith.constant 1 : index
    %c0_120 = arith.constant 0 : index
    %c0_121 = arith.constant 0 : index
    %273 = vector.load %arg10[%c1_119, %c0_120, %c0_121] : memref<2x1x256xf32, #tpu.memory_space<vmem>>, vector<1x1x256xf32>
    %274 = vector.shape_cast %273 : vector<1x1x256xf32> to vector<1x256xf32>
    %c1_122 = arith.constant 1 : index
    %c0_123 = arith.constant 0 : index
    %c0_124 = arith.constant 0 : index
    %275 = vector.load %arg11[%c1_122, %c0_123, %c0_124] : memref<2x256x128xbf16, #tpu.memory_space<vmem>>, vector<1x256x128xbf16>
    %276 = vector.shape_cast %275 : vector<1x256x128xbf16> to vector<256x128xbf16>
    %c1_125 = arith.constant 1 : index
    %c0_126 = arith.constant 0 : index
    %c0_127 = arith.constant 0 : index
    %277 = vector.load %arg12[%c1_125, %c0_126, %c0_127] : memref<2x1x128xf32, #tpu.memory_space<vmem>>, vector<1x1x128xf32>
    %278 = vector.shape_cast %277 : vector<1x1x128xf32> to vector<1x128xf32>
    %c1_128 = arith.constant 1 : index
    %c0_129 = arith.constant 0 : index
    %c0_130 = arith.constant 0 : index
    %279 = vector.load %arg13[%c1_128, %c0_129, %c0_130] : memref<2x1x128xf32, #tpu.memory_space<vmem>>, vector<1x1x128xf32>
    %280 = vector.shape_cast %279 : vector<1x1x128xf32> to vector<1x128xf32>
    %c1_131 = arith.constant 1 : index
    %c0_132 = arith.constant 0 : index
    %c0_133 = arith.constant 0 : index
    %281 = vector.load %arg14[%c1_131, %c0_132, %c0_133] : memref<2x1x128xf32, #tpu.memory_space<vmem>>, vector<1x1x128xf32>
    %282 = vector.shape_cast %281 : vector<1x1x128xf32> to vector<1x128xf32>
    %283 = arith.truncf %258 : vector<16x128xf32> to vector<16x128xbf16>
    %cst_134 = arith.constant dense<0.000000e+00> : vector<16x384xf32>
    %284 = tpu.matmul %283, %260, %cst_134 {dimension_numbers = #tpu.dot_dimension_numbers<[1], [0], [0], [1], [0, 0, 1, 1], [], []>} : vector<16x128xbf16>, vector<128x384xbf16>, vector<16x384xf32> -> vector<16x384xf32>
    %285 = vector.broadcast %262 : vector<1x384xf32> to vector<16x384xf32>
    %286 = arith.addf %284, %285 : vector<16x384xf32>
    %287 = vector.extract_strided_slice %286 {offsets = [0, 0], sizes = [16, 128], strides = [1, 1]} : vector<16x384xf32> to vector<16x128xf32>
    %288 = vector.extract_strided_slice %286 {offsets = [0, 128], sizes = [16, 128], strides = [1, 1]} : vector<16x384xf32> to vector<16x128xf32>
    %289 = vector.extract_strided_slice %286 {offsets = [0, 256], sizes = [16, 128], strides = [1, 1]} : vector<16x384xf32> to vector<16x128xf32>
    %cst_135 = arith.constant 0.000000e+00 : f32
    %290 = vector.broadcast %cst_135 : f32 to vector<16x128xf32>
    %291 = vector.extract_strided_slice %287 {offsets = [0, 0], sizes = [16, 16], strides = [1, 1]} : vector<16x128xf32> to vector<16x16xf32>
    %292 = vector.extract_strided_slice %288 {offsets = [0, 0], sizes = [16, 16], strides = [1, 1]} : vector<16x128xf32> to vector<16x16xf32>
    %293 = vector.extract_strided_slice %289 {offsets = [0, 0], sizes = [16, 16], strides = [1, 1]} : vector<16x128xf32> to vector<16x16xf32>
    %cst_136 = arith.constant dense<0.000000e+00> : vector<16x16xf32>
    %294 = tpu.matmul %291, %292, %cst_136 {dimension_numbers = #tpu.dot_dimension_numbers<[1], [1], [0], [0], [0, 0, 1, 0], [], []>} : vector<16x16xf32>, vector<16x16xf32>, vector<16x16xf32> -> vector<16x16xf32>
    %cst_137 = arith.constant 2.500000e-01 : f32
    %295 = vector.broadcast %cst_137 : f32 to vector<16x16xf32>
    %296 = arith.mulf %294, %295 : vector<16x16xf32>
    %cst_138 = arith.constant dense<0xFF800000> : vector<16xf32>
    %297 = vector.multi_reduction <maximumf>, %296, %cst_138 [1] : vector<16x16xf32> to vector<16xf32>
    %298 = vector.shape_cast %297 : vector<16xf32> to vector<16x1xf32>
    %299 = vector.broadcast %298 : vector<16x1xf32> to vector<16x16xf32>
    %300 = arith.subf %296, %299 : vector<16x16xf32>
    %301 = math.exp %300 : vector<16x16xf32>
    %cst_139 = arith.constant dense<0.000000e+00> : vector<16xf32>
    %302 = vector.multi_reduction <add>, %301, %cst_139 [1] : vector<16x16xf32> to vector<16xf32>
    %303 = vector.shape_cast %302 : vector<16xf32> to vector<16x1xf32>
    %304 = tpu.reciprocal %303 {approx = true} : vector<16x1xf32> -> vector<16x1xf32>
    %305 = vector.broadcast %304 : vector<16x1xf32> to vector<16x16xf32>
    %306 = arith.mulf %301, %305 : vector<16x16xf32>
    %cst_140 = arith.constant dense<0.000000e+00> : vector<16x16xf32>
    %307 = tpu.matmul %306, %293, %cst_140 {dimension_numbers = #tpu.dot_dimension_numbers<[1], [0], [0], [1], [0, 0, 1, 1], [], []>} : vector<16x16xf32>, vector<16x16xf32>, vector<16x16xf32> -> vector<16x16xf32>
    %308 = arith.truncf %307 : vector<16x16xf32> to vector<16x16xbf16>
    %309 = vector.extract_strided_slice %264 {offsets = [0, 0], sizes = [16, 128], strides = [1, 1]} : vector<128x128xbf16> to vector<16x128xbf16>
    %cst_141 = arith.constant dense<0.000000e+00> : vector<16x128xf32>
    %310 = tpu.matmul %308, %309, %cst_141 {dimension_numbers = #tpu.dot_dimension_numbers<[1], [0], [0], [1], [0, 0, 1, 1], [], []>} : vector<16x16xbf16>, vector<16x128xbf16>, vector<16x128xf32> -> vector<16x128xf32>
    %311 = arith.addf %290, %310 : vector<16x128xf32>
    %312 = vector.extract_strided_slice %287 {offsets = [0, 16], sizes = [16, 16], strides = [1, 1]} : vector<16x128xf32> to vector<16x16xf32>
    %313 = vector.extract_strided_slice %288 {offsets = [0, 16], sizes = [16, 16], strides = [1, 1]} : vector<16x128xf32> to vector<16x16xf32>
    %314 = vector.extract_strided_slice %289 {offsets = [0, 16], sizes = [16, 16], strides = [1, 1]} : vector<16x128xf32> to vector<16x16xf32>
    %cst_142 = arith.constant dense<0.000000e+00> : vector<16x16xf32>
    %315 = tpu.matmul %312, %313, %cst_142 {dimension_numbers = #tpu.dot_dimension_numbers<[1], [1], [0], [0], [0, 0, 1, 0], [], []>} : vector<16x16xf32>, vector<16x16xf32>, vector<16x16xf32> -> vector<16x16xf32>
    %cst_143 = arith.constant 2.500000e-01 : f32
    %316 = vector.broadcast %cst_143 : f32 to vector<16x16xf32>
    %317 = arith.mulf %315, %316 : vector<16x16xf32>
    %cst_144 = arith.constant dense<0xFF800000> : vector<16xf32>
    %318 = vector.multi_reduction <maximumf>, %317, %cst_144 [1] : vector<16x16xf32> to vector<16xf32>
    %319 = vector.shape_cast %318 : vector<16xf32> to vector<16x1xf32>
    %320 = vector.broadcast %319 : vector<16x1xf32> to vector<16x16xf32>
    %321 = arith.subf %317, %320 : vector<16x16xf32>
    %322 = math.exp %321 : vector<16x16xf32>
    %cst_145 = arith.constant dense<0.000000e+00> : vector<16xf32>
    %323 = vector.multi_reduction <add>, %322, %cst_145 [1] : vector<16x16xf32> to vector<16xf32>
    %324 = vector.shape_cast %323 : vector<16xf32> to vector<16x1xf32>
    %325 = tpu.reciprocal %324 {approx = true} : vector<16x1xf32> -> vector<16x1xf32>
    %326 = vector.broadcast %325 : vector<16x1xf32> to vector<16x16xf32>
    %327 = arith.mulf %322, %326 : vector<16x16xf32>
    %cst_146 = arith.constant dense<0.000000e+00> : vector<16x16xf32>
    %328 = tpu.matmul %327, %314, %cst_146 {dimension_numbers = #tpu.dot_dimension_numbers<[1], [0], [0], [1], [0, 0, 1, 1], [], []>} : vector<16x16xf32>, vector<16x16xf32>, vector<16x16xf32> -> vector<16x16xf32>
    %329 = arith.truncf %328 : vector<16x16xf32> to vector<16x16xbf16>
    %330 = vector.extract_strided_slice %264 {offsets = [16, 0], sizes = [16, 128], strides = [1, 1]} : vector<128x128xbf16> to vector<16x128xbf16>
    %cst_147 = arith.constant dense<0.000000e+00> : vector<16x128xf32>
    %331 = tpu.matmul %329, %330, %cst_147 {dimension_numbers = #tpu.dot_dimension_numbers<[1], [0], [0], [1], [0, 0, 1, 1], [], []>} : vector<16x16xbf16>, vector<16x128xbf16>, vector<16x128xf32> -> vector<16x128xf32>
    %332 = arith.addf %311, %331 : vector<16x128xf32>
    %333 = vector.extract_strided_slice %287 {offsets = [0, 32], sizes = [16, 16], strides = [1, 1]} : vector<16x128xf32> to vector<16x16xf32>
    %334 = vector.extract_strided_slice %288 {offsets = [0, 32], sizes = [16, 16], strides = [1, 1]} : vector<16x128xf32> to vector<16x16xf32>
    %335 = vector.extract_strided_slice %289 {offsets = [0, 32], sizes = [16, 16], strides = [1, 1]} : vector<16x128xf32> to vector<16x16xf32>
    %cst_148 = arith.constant dense<0.000000e+00> : vector<16x16xf32>
    %336 = tpu.matmul %333, %334, %cst_148 {dimension_numbers = #tpu.dot_dimension_numbers<[1], [1], [0], [0], [0, 0, 1, 0], [], []>} : vector<16x16xf32>, vector<16x16xf32>, vector<16x16xf32> -> vector<16x16xf32>
    %cst_149 = arith.constant 2.500000e-01 : f32
    %337 = vector.broadcast %cst_149 : f32 to vector<16x16xf32>
    %338 = arith.mulf %336, %337 : vector<16x16xf32>
    %cst_150 = arith.constant dense<0xFF800000> : vector<16xf32>
    %339 = vector.multi_reduction <maximumf>, %338, %cst_150 [1] : vector<16x16xf32> to vector<16xf32>
    %340 = vector.shape_cast %339 : vector<16xf32> to vector<16x1xf32>
    %341 = vector.broadcast %340 : vector<16x1xf32> to vector<16x16xf32>
    %342 = arith.subf %338, %341 : vector<16x16xf32>
    %343 = math.exp %342 : vector<16x16xf32>
    %cst_151 = arith.constant dense<0.000000e+00> : vector<16xf32>
    %344 = vector.multi_reduction <add>, %343, %cst_151 [1] : vector<16x16xf32> to vector<16xf32>
    %345 = vector.shape_cast %344 : vector<16xf32> to vector<16x1xf32>
    %346 = tpu.reciprocal %345 {approx = true} : vector<16x1xf32> -> vector<16x1xf32>
    %347 = vector.broadcast %346 : vector<16x1xf32> to vector<16x16xf32>
    %348 = arith.mulf %343, %347 : vector<16x16xf32>
    %cst_152 = arith.constant dense<0.000000e+00> : vector<16x16xf32>
    %349 = tpu.matmul %348, %335, %cst_152 {dimension_numbers = #tpu.dot_dimension_numbers<[1], [0], [0], [1], [0, 0, 1, 1], [], []>} : vector<16x16xf32>, vector<16x16xf32>, vector<16x16xf32> -> vector<16x16xf32>
    %350 = arith.truncf %349 : vector<16x16xf32> to vector<16x16xbf16>
    %351 = vector.extract_strided_slice %264 {offsets = [32, 0], sizes = [16, 128], strides = [1, 1]} : vector<128x128xbf16> to vector<16x128xbf16>
    %cst_153 = arith.constant dense<0.000000e+00> : vector<16x128xf32>
    %352 = tpu.matmul %350, %351, %cst_153 {dimension_numbers = #tpu.dot_dimension_numbers<[1], [0], [0], [1], [0, 0, 1, 1], [], []>} : vector<16x16xbf16>, vector<16x128xbf16>, vector<16x128xf32> -> vector<16x128xf32>
    %353 = arith.addf %332, %352 : vector<16x128xf32>
    %354 = vector.extract_strided_slice %287 {offsets = [0, 48], sizes = [16, 16], strides = [1, 1]} : vector<16x128xf32> to vector<16x16xf32>
    %355 = vector.extract_strided_slice %288 {offsets = [0, 48], sizes = [16, 16], strides = [1, 1]} : vector<16x128xf32> to vector<16x16xf32>
    %356 = vector.extract_strided_slice %289 {offsets = [0, 48], sizes = [16, 16], strides = [1, 1]} : vector<16x128xf32> to vector<16x16xf32>
    %cst_154 = arith.constant dense<0.000000e+00> : vector<16x16xf32>
    %357 = tpu.matmul %354, %355, %cst_154 {dimension_numbers = #tpu.dot_dimension_numbers<[1], [1], [0], [0], [0, 0, 1, 0], [], []>} : vector<16x16xf32>, vector<16x16xf32>, vector<16x16xf32> -> vector<16x16xf32>
    %cst_155 = arith.constant 2.500000e-01 : f32
    %358 = vector.broadcast %cst_155 : f32 to vector<16x16xf32>
    %359 = arith.mulf %357, %358 : vector<16x16xf32>
    %cst_156 = arith.constant dense<0xFF800000> : vector<16xf32>
    %360 = vector.multi_reduction <maximumf>, %359, %cst_156 [1] : vector<16x16xf32> to vector<16xf32>
    %361 = vector.shape_cast %360 : vector<16xf32> to vector<16x1xf32>
    %362 = vector.broadcast %361 : vector<16x1xf32> to vector<16x16xf32>
    %363 = arith.subf %359, %362 : vector<16x16xf32>
    %364 = math.exp %363 : vector<16x16xf32>
    %cst_157 = arith.constant dense<0.000000e+00> : vector<16xf32>
    %365 = vector.multi_reduction <add>, %364, %cst_157 [1] : vector<16x16xf32> to vector<16xf32>
    %366 = vector.shape_cast %365 : vector<16xf32> to vector<16x1xf32>
    %367 = tpu.reciprocal %366 {approx = true} : vector<16x1xf32> -> vector<16x1xf32>
    %368 = vector.broadcast %367 : vector<16x1xf32> to vector<16x16xf32>
    %369 = arith.mulf %364, %368 : vector<16x16xf32>
    %cst_158 = arith.constant dense<0.000000e+00> : vector<16x16xf32>
    %370 = tpu.matmul %369, %356, %cst_158 {dimension_numbers = #tpu.dot_dimension_numbers<[1], [0], [0], [1], [0, 0, 1, 1], [], []>} : vector<16x16xf32>, vector<16x16xf32>, vector<16x16xf32> -> vector<16x16xf32>
    %371 = arith.truncf %370 : vector<16x16xf32> to vector<16x16xbf16>
    %372 = vector.extract_strided_slice %264 {offsets = [48, 0], sizes = [16, 128], strides = [1, 1]} : vector<128x128xbf16> to vector<16x128xbf16>
    %cst_159 = arith.constant dense<0.000000e+00> : vector<16x128xf32>
    %373 = tpu.matmul %371, %372, %cst_159 {dimension_numbers = #tpu.dot_dimension_numbers<[1], [0], [0], [1], [0, 0, 1, 1], [], []>} : vector<16x16xbf16>, vector<16x128xbf16>, vector<16x128xf32> -> vector<16x128xf32>
    %374 = arith.addf %353, %373 : vector<16x128xf32>
    %375 = vector.extract_strided_slice %287 {offsets = [0, 64], sizes = [16, 16], strides = [1, 1]} : vector<16x128xf32> to vector<16x16xf32>
    %376 = vector.extract_strided_slice %288 {offsets = [0, 64], sizes = [16, 16], strides = [1, 1]} : vector<16x128xf32> to vector<16x16xf32>
    %377 = vector.extract_strided_slice %289 {offsets = [0, 64], sizes = [16, 16], strides = [1, 1]} : vector<16x128xf32> to vector<16x16xf32>
    %cst_160 = arith.constant dense<0.000000e+00> : vector<16x16xf32>
    %378 = tpu.matmul %375, %376, %cst_160 {dimension_numbers = #tpu.dot_dimension_numbers<[1], [1], [0], [0], [0, 0, 1, 0], [], []>} : vector<16x16xf32>, vector<16x16xf32>, vector<16x16xf32> -> vector<16x16xf32>
    %cst_161 = arith.constant 2.500000e-01 : f32
    %379 = vector.broadcast %cst_161 : f32 to vector<16x16xf32>
    %380 = arith.mulf %378, %379 : vector<16x16xf32>
    %cst_162 = arith.constant dense<0xFF800000> : vector<16xf32>
    %381 = vector.multi_reduction <maximumf>, %380, %cst_162 [1] : vector<16x16xf32> to vector<16xf32>
    %382 = vector.shape_cast %381 : vector<16xf32> to vector<16x1xf32>
    %383 = vector.broadcast %382 : vector<16x1xf32> to vector<16x16xf32>
    %384 = arith.subf %380, %383 : vector<16x16xf32>
    %385 = math.exp %384 : vector<16x16xf32>
    %cst_163 = arith.constant dense<0.000000e+00> : vector<16xf32>
    %386 = vector.multi_reduction <add>, %385, %cst_163 [1] : vector<16x16xf32> to vector<16xf32>
    %387 = vector.shape_cast %386 : vector<16xf32> to vector<16x1xf32>
    %388 = tpu.reciprocal %387 {approx = true} : vector<16x1xf32> -> vector<16x1xf32>
    %389 = vector.broadcast %388 : vector<16x1xf32> to vector<16x16xf32>
    %390 = arith.mulf %385, %389 : vector<16x16xf32>
    %cst_164 = arith.constant dense<0.000000e+00> : vector<16x16xf32>
    %391 = tpu.matmul %390, %377, %cst_164 {dimension_numbers = #tpu.dot_dimension_numbers<[1], [0], [0], [1], [0, 0, 1, 1], [], []>} : vector<16x16xf32>, vector<16x16xf32>, vector<16x16xf32> -> vector<16x16xf32>
    %392 = arith.truncf %391 : vector<16x16xf32> to vector<16x16xbf16>
    %393 = vector.extract_strided_slice %264 {offsets = [64, 0], sizes = [16, 128], strides = [1, 1]} : vector<128x128xbf16> to vector<16x128xbf16>
    %cst_165 = arith.constant dense<0.000000e+00> : vector<16x128xf32>
    %394 = tpu.matmul %392, %393, %cst_165 {dimension_numbers = #tpu.dot_dimension_numbers<[1], [0], [0], [1], [0, 0, 1, 1], [], []>} : vector<16x16xbf16>, vector<16x128xbf16>, vector<16x128xf32> -> vector<16x128xf32>
    %395 = arith.addf %374, %394 : vector<16x128xf32>
    %396 = vector.extract_strided_slice %287 {offsets = [0, 80], sizes = [16, 16], strides = [1, 1]} : vector<16x128xf32> to vector<16x16xf32>
    %397 = vector.extract_strided_slice %288 {offsets = [0, 80], sizes = [16, 16], strides = [1, 1]} : vector<16x128xf32> to vector<16x16xf32>
    %398 = vector.extract_strided_slice %289 {offsets = [0, 80], sizes = [16, 16], strides = [1, 1]} : vector<16x128xf32> to vector<16x16xf32>
    %cst_166 = arith.constant dense<0.000000e+00> : vector<16x16xf32>
    %399 = tpu.matmul %396, %397, %cst_166 {dimension_numbers = #tpu.dot_dimension_numbers<[1], [1], [0], [0], [0, 0, 1, 0], [], []>} : vector<16x16xf32>, vector<16x16xf32>, vector<16x16xf32> -> vector<16x16xf32>
    %cst_167 = arith.constant 2.500000e-01 : f32
    %400 = vector.broadcast %cst_167 : f32 to vector<16x16xf32>
    %401 = arith.mulf %399, %400 : vector<16x16xf32>
    %cst_168 = arith.constant dense<0xFF800000> : vector<16xf32>
    %402 = vector.multi_reduction <maximumf>, %401, %cst_168 [1] : vector<16x16xf32> to vector<16xf32>
    %403 = vector.shape_cast %402 : vector<16xf32> to vector<16x1xf32>
    %404 = vector.broadcast %403 : vector<16x1xf32> to vector<16x16xf32>
    %405 = arith.subf %401, %404 : vector<16x16xf32>
    %406 = math.exp %405 : vector<16x16xf32>
    %cst_169 = arith.constant dense<0.000000e+00> : vector<16xf32>
    %407 = vector.multi_reduction <add>, %406, %cst_169 [1] : vector<16x16xf32> to vector<16xf32>
    %408 = vector.shape_cast %407 : vector<16xf32> to vector<16x1xf32>
    %409 = tpu.reciprocal %408 {approx = true} : vector<16x1xf32> -> vector<16x1xf32>
    %410 = vector.broadcast %409 : vector<16x1xf32> to vector<16x16xf32>
    %411 = arith.mulf %406, %410 : vector<16x16xf32>
    %cst_170 = arith.constant dense<0.000000e+00> : vector<16x16xf32>
    %412 = tpu.matmul %411, %398, %cst_170 {dimension_numbers = #tpu.dot_dimension_numbers<[1], [0], [0], [1], [0, 0, 1, 1], [], []>} : vector<16x16xf32>, vector<16x16xf32>, vector<16x16xf32> -> vector<16x16xf32>
    %413 = arith.truncf %412 : vector<16x16xf32> to vector<16x16xbf16>
    %414 = vector.extract_strided_slice %264 {offsets = [80, 0], sizes = [16, 128], strides = [1, 1]} : vector<128x128xbf16> to vector<16x128xbf16>
    %cst_171 = arith.constant dense<0.000000e+00> : vector<16x128xf32>
    %415 = tpu.matmul %413, %414, %cst_171 {dimension_numbers = #tpu.dot_dimension_numbers<[1], [0], [0], [1], [0, 0, 1, 1], [], []>} : vector<16x16xbf16>, vector<16x128xbf16>, vector<16x128xf32> -> vector<16x128xf32>
    %416 = arith.addf %395, %415 : vector<16x128xf32>
    %417 = vector.extract_strided_slice %287 {offsets = [0, 96], sizes = [16, 16], strides = [1, 1]} : vector<16x128xf32> to vector<16x16xf32>
    %418 = vector.extract_strided_slice %288 {offsets = [0, 96], sizes = [16, 16], strides = [1, 1]} : vector<16x128xf32> to vector<16x16xf32>
    %419 = vector.extract_strided_slice %289 {offsets = [0, 96], sizes = [16, 16], strides = [1, 1]} : vector<16x128xf32> to vector<16x16xf32>
    %cst_172 = arith.constant dense<0.000000e+00> : vector<16x16xf32>
    %420 = tpu.matmul %417, %418, %cst_172 {dimension_numbers = #tpu.dot_dimension_numbers<[1], [1], [0], [0], [0, 0, 1, 0], [], []>} : vector<16x16xf32>, vector<16x16xf32>, vector<16x16xf32> -> vector<16x16xf32>
    %cst_173 = arith.constant 2.500000e-01 : f32
    %421 = vector.broadcast %cst_173 : f32 to vector<16x16xf32>
    %422 = arith.mulf %420, %421 : vector<16x16xf32>
    %cst_174 = arith.constant dense<0xFF800000> : vector<16xf32>
    %423 = vector.multi_reduction <maximumf>, %422, %cst_174 [1] : vector<16x16xf32> to vector<16xf32>
    %424 = vector.shape_cast %423 : vector<16xf32> to vector<16x1xf32>
    %425 = vector.broadcast %424 : vector<16x1xf32> to vector<16x16xf32>
    %426 = arith.subf %422, %425 : vector<16x16xf32>
    %427 = math.exp %426 : vector<16x16xf32>
    %cst_175 = arith.constant dense<0.000000e+00> : vector<16xf32>
    %428 = vector.multi_reduction <add>, %427, %cst_175 [1] : vector<16x16xf32> to vector<16xf32>
    %429 = vector.shape_cast %428 : vector<16xf32> to vector<16x1xf32>
    %430 = tpu.reciprocal %429 {approx = true} : vector<16x1xf32> -> vector<16x1xf32>
    %431 = vector.broadcast %430 : vector<16x1xf32> to vector<16x16xf32>
    %432 = arith.mulf %427, %431 : vector<16x16xf32>
    %cst_176 = arith.constant dense<0.000000e+00> : vector<16x16xf32>
    %433 = tpu.matmul %432, %419, %cst_176 {dimension_numbers = #tpu.dot_dimension_numbers<[1], [0], [0], [1], [0, 0, 1, 1], [], []>} : vector<16x16xf32>, vector<16x16xf32>, vector<16x16xf32> -> vector<16x16xf32>
    %434 = arith.truncf %433 : vector<16x16xf32> to vector<16x16xbf16>
    %435 = vector.extract_strided_slice %264 {offsets = [96, 0], sizes = [16, 128], strides = [1, 1]} : vector<128x128xbf16> to vector<16x128xbf16>
    %cst_177 = arith.constant dense<0.000000e+00> : vector<16x128xf32>
    %436 = tpu.matmul %434, %435, %cst_177 {dimension_numbers = #tpu.dot_dimension_numbers<[1], [0], [0], [1], [0, 0, 1, 1], [], []>} : vector<16x16xbf16>, vector<16x128xbf16>, vector<16x128xf32> -> vector<16x128xf32>
    %437 = arith.addf %416, %436 : vector<16x128xf32>
    %438 = vector.extract_strided_slice %287 {offsets = [0, 112], sizes = [16, 16], strides = [1, 1]} : vector<16x128xf32> to vector<16x16xf32>
    %439 = vector.extract_strided_slice %288 {offsets = [0, 112], sizes = [16, 16], strides = [1, 1]} : vector<16x128xf32> to vector<16x16xf32>
    %440 = vector.extract_strided_slice %289 {offsets = [0, 112], sizes = [16, 16], strides = [1, 1]} : vector<16x128xf32> to vector<16x16xf32>
    %cst_178 = arith.constant dense<0.000000e+00> : vector<16x16xf32>
    %441 = tpu.matmul %438, %439, %cst_178 {dimension_numbers = #tpu.dot_dimension_numbers<[1], [1], [0], [0], [0, 0, 1, 0], [], []>} : vector<16x16xf32>, vector<16x16xf32>, vector<16x16xf32> -> vector<16x16xf32>
    %cst_179 = arith.constant 2.500000e-01 : f32
    %442 = vector.broadcast %cst_179 : f32 to vector<16x16xf32>
    %443 = arith.mulf %441, %442 : vector<16x16xf32>
    %cst_180 = arith.constant dense<0xFF800000> : vector<16xf32>
    %444 = vector.multi_reduction <maximumf>, %443, %cst_180 [1] : vector<16x16xf32> to vector<16xf32>
    %445 = vector.shape_cast %444 : vector<16xf32> to vector<16x1xf32>
    %446 = vector.broadcast %445 : vector<16x1xf32> to vector<16x16xf32>
    %447 = arith.subf %443, %446 : vector<16x16xf32>
    %448 = math.exp %447 : vector<16x16xf32>
    %cst_181 = arith.constant dense<0.000000e+00> : vector<16xf32>
    %449 = vector.multi_reduction <add>, %448, %cst_181 [1] : vector<16x16xf32> to vector<16xf32>
    %450 = vector.shape_cast %449 : vector<16xf32> to vector<16x1xf32>
    %451 = tpu.reciprocal %450 {approx = true} : vector<16x1xf32> -> vector<16x1xf32>
    %452 = vector.broadcast %451 : vector<16x1xf32> to vector<16x16xf32>
    %453 = arith.mulf %448, %452 : vector<16x16xf32>
    %cst_182 = arith.constant dense<0.000000e+00> : vector<16x16xf32>
    %454 = tpu.matmul %453, %440, %cst_182 {dimension_numbers = #tpu.dot_dimension_numbers<[1], [0], [0], [1], [0, 0, 1, 1], [], []>} : vector<16x16xf32>, vector<16x16xf32>, vector<16x16xf32> -> vector<16x16xf32>
    %455 = arith.truncf %454 : vector<16x16xf32> to vector<16x16xbf16>
    %456 = vector.extract_strided_slice %264 {offsets = [112, 0], sizes = [16, 128], strides = [1, 1]} : vector<128x128xbf16> to vector<16x128xbf16>
    %cst_183 = arith.constant dense<0.000000e+00> : vector<16x128xf32>
    %457 = tpu.matmul %455, %456, %cst_183 {dimension_numbers = #tpu.dot_dimension_numbers<[1], [0], [0], [1], [0, 0, 1, 1], [], []>} : vector<16x16xbf16>, vector<16x128xbf16>, vector<16x128xf32> -> vector<16x128xf32>
    %458 = arith.addf %437, %457 : vector<16x128xf32>
    %459 = vector.broadcast %266 : vector<1x128xf32> to vector<16x128xf32>
    %460 = arith.addf %458, %459 : vector<16x128xf32>
    %461 = arith.addf %258, %460 : vector<16x128xf32>
    %cst_184 = arith.constant dense<0.000000e+00> : vector<16xf32>
    %462 = vector.multi_reduction <add>, %461, %cst_184 [1] : vector<16x128xf32> to vector<16xf32>
    %463 = vector.shape_cast %462 : vector<16xf32> to vector<16x1xf32>
    %cst_185 = arith.constant 1.280000e+02 : f32
    %464 = vector.broadcast %cst_185 : f32 to vector<16x1xf32>
    %465 = arith.divf %463, %464 : vector<16x1xf32>
    %466 = vector.broadcast %465 : vector<16x1xf32> to vector<16x128xf32>
    %467 = arith.subf %461, %466 : vector<16x128xf32>
    %468 = arith.mulf %467, %467 : vector<16x128xf32>
    %cst_186 = arith.constant dense<0.000000e+00> : vector<16xf32>
    %469 = vector.multi_reduction <add>, %468, %cst_186 [1] : vector<16x128xf32> to vector<16xf32>
    %470 = vector.shape_cast %469 : vector<16xf32> to vector<16x1xf32>
    %cst_187 = arith.constant 1.280000e+02 : f32
    %471 = vector.broadcast %cst_187 : f32 to vector<16x1xf32>
    %472 = arith.divf %470, %471 : vector<16x1xf32>
    %473 = vector.broadcast %465 : vector<16x1xf32> to vector<16x128xf32>
    %474 = arith.subf %461, %473 : vector<16x128xf32>
    %cst_188 = arith.constant 9.99999974E-6 : f32
    %475 = vector.broadcast %cst_188 : f32 to vector<16x1xf32>
    %476 = arith.addf %472, %475 : vector<16x1xf32>
    %477 = math.rsqrt %476 : vector<16x1xf32>
    %478 = vector.broadcast %477 : vector<16x1xf32> to vector<16x128xf32>
    %479 = arith.mulf %474, %478 : vector<16x128xf32>
    %480 = vector.broadcast %268 : vector<1x128xf32> to vector<16x128xf32>
    %481 = arith.mulf %479, %480 : vector<16x128xf32>
    %482 = vector.broadcast %270 : vector<1x128xf32> to vector<16x128xf32>
    %483 = arith.addf %481, %482 : vector<16x128xf32>
    %484 = arith.truncf %483 : vector<16x128xf32> to vector<16x128xbf16>
    %cst_189 = arith.constant dense<0.000000e+00> : vector<16x256xf32>
    %485 = tpu.matmul %484, %272, %cst_189 {dimension_numbers = #tpu.dot_dimension_numbers<[1], [0], [0], [1], [0, 0, 1, 1], [], []>} : vector<16x128xbf16>, vector<128x256xbf16>, vector<16x256xf32> -> vector<16x256xf32>
    %486 = vector.broadcast %274 : vector<1x256xf32> to vector<16x256xf32>
    %487 = arith.addf %485, %486 : vector<16x256xf32>
    %cst_190 = arith.constant 0.000000e+00 : f32
    %488 = vector.broadcast %cst_190 : f32 to vector<16x256xf32>
    %489 = arith.maximumf %487, %488 : vector<16x256xf32>
    %490 = arith.truncf %489 : vector<16x256xf32> to vector<16x256xbf16>
    %cst_191 = arith.constant dense<0.000000e+00> : vector<16x128xf32>
    %491 = tpu.matmul %490, %276, %cst_191 {dimension_numbers = #tpu.dot_dimension_numbers<[1], [0], [0], [1], [0, 0, 1, 1], [], []>} : vector<16x256xbf16>, vector<256x128xbf16>, vector<16x128xf32> -> vector<16x128xf32>
    %492 = vector.broadcast %278 : vector<1x128xf32> to vector<16x128xf32>
    %493 = arith.addf %491, %492 : vector<16x128xf32>
    %494 = arith.addf %483, %493 : vector<16x128xf32>
    %cst_192 = arith.constant dense<0.000000e+00> : vector<16xf32>
    %495 = vector.multi_reduction <add>, %494, %cst_192 [1] : vector<16x128xf32> to vector<16xf32>
    %496 = vector.shape_cast %495 : vector<16xf32> to vector<16x1xf32>
    %cst_193 = arith.constant 1.280000e+02 : f32
    %497 = vector.broadcast %cst_193 : f32 to vector<16x1xf32>
    %498 = arith.divf %496, %497 : vector<16x1xf32>
    %499 = vector.broadcast %498 : vector<16x1xf32> to vector<16x128xf32>
    %500 = arith.subf %494, %499 : vector<16x128xf32>
    %501 = arith.mulf %500, %500 : vector<16x128xf32>
    %cst_194 = arith.constant dense<0.000000e+00> : vector<16xf32>
    %502 = vector.multi_reduction <add>, %501, %cst_194 [1] : vector<16x128xf32> to vector<16xf32>
    %503 = vector.shape_cast %502 : vector<16xf32> to vector<16x1xf32>
    %cst_195 = arith.constant 1.280000e+02 : f32
    %504 = vector.broadcast %cst_195 : f32 to vector<16x1xf32>
    %505 = arith.divf %503, %504 : vector<16x1xf32>
    %506 = vector.broadcast %498 : vector<16x1xf32> to vector<16x128xf32>
    %507 = arith.subf %494, %506 : vector<16x128xf32>
    %cst_196 = arith.constant 9.99999974E-6 : f32
    %508 = vector.broadcast %cst_196 : f32 to vector<16x1xf32>
    %509 = arith.addf %505, %508 : vector<16x1xf32>
    %510 = math.rsqrt %509 : vector<16x1xf32>
    %511 = vector.broadcast %510 : vector<16x1xf32> to vector<16x128xf32>
    %512 = arith.mulf %507, %511 : vector<16x128xf32>
    %513 = vector.broadcast %280 : vector<1x128xf32> to vector<16x128xf32>
    %514 = arith.mulf %512, %513 : vector<16x128xf32>
    %515 = vector.broadcast %282 : vector<1x128xf32> to vector<16x128xf32>
    %516 = arith.addf %514, %515 : vector<16x128xf32>
    %cst_197 = arith.constant dense<0.000000e+00> : vector<128xf32>
    %517 = vector.multi_reduction <add>, %516, %cst_197 [0] : vector<16x128xf32> to vector<128xf32>
    %518 = vector.shape_cast %517 : vector<128xf32> to vector<1x128xf32>
    %cst_198 = arith.constant 1.600000e+01 : f32
    %519 = vector.broadcast %cst_198 : f32 to vector<1x128xf32>
    %520 = arith.divf %518, %519 : vector<1x128xf32>
    %521 = arith.truncf %520 : vector<1x128xf32> to vector<1x128xbf16>
    %c0_199 = arith.constant 0 : index
    %c0_200 = arith.constant 0 : index
    %522 = vector.load %arg15[%c0_199, %c0_200] : memref<128x128xbf16, #tpu.memory_space<vmem>>, vector<128x128xbf16>
    %cst_201 = arith.constant dense<0.000000e+00> : vector<1x128xf32>
    %523 = tpu.matmul %521, %522, %cst_201 {dimension_numbers = #tpu.dot_dimension_numbers<[1], [0], [0], [1], [0, 0, 1, 1], [], []>} : vector<1x128xbf16>, vector<128x128xbf16>, vector<1x128xf32> -> vector<1x128xf32>
    %c0_202 = arith.constant 0 : index
    %c0_203 = arith.constant 0 : index
    %524 = vector.load %arg16[%c0_202, %c0_203] : memref<1x128xf32, #tpu.memory_space<vmem>>, vector<1x128xf32>
    %525 = arith.addf %523, %524 : vector<1x128xf32>
    %c0_204 = arith.constant 0 : index
    %c0_205 = arith.constant 0 : index
    %526 = vector.load %arg2[%c0_204, %c0_205] : memref<2x128xf32, #tpu.memory_space<vmem>>, vector<2x128xf32>
    %527 = vector.broadcast %525 : vector<1x128xf32> to vector<2x128xf32>
    %528 = arith.addf %526, %527 : vector<2x128xf32>
    %529 = arith.truncf %528 : vector<2x128xf32> to vector<2x128xbf16>
    %c0_206 = arith.constant 0 : index
    %c0_207 = arith.constant 0 : index
    %530 = vector.load %arg17[%c0_206, %c0_207] : memref<128x128xbf16, #tpu.memory_space<vmem>>, vector<128x128xbf16>
    %cst_208 = arith.constant dense<0.000000e+00> : vector<2x128xf32>
    %531 = tpu.matmul %529, %530, %cst_208 {dimension_numbers = #tpu.dot_dimension_numbers<[1], [0], [0], [1], [0, 0, 1, 1], [], []>} : vector<2x128xbf16>, vector<128x128xbf16>, vector<2x128xf32> -> vector<2x128xf32>
    %c0_209 = arith.constant 0 : index
    %c0_210 = arith.constant 0 : index
    %532 = vector.load %arg18[%c0_209, %c0_210] : memref<1x128xf32, #tpu.memory_space<vmem>>, vector<1x128xf32>
    %533 = vector.broadcast %532 : vector<1x128xf32> to vector<2x128xf32>
    %534 = arith.addf %531, %533 : vector<2x128xf32>
    %c0_211 = arith.constant 0 : index
    %c0_212 = arith.constant 0 : index
    %535 = vector.load %arg23[%c0_211, %c0_212] : memref<2x128xf32, #tpu.memory_space<vmem>>, vector<2x128xf32>
    tpu.vector_store %arg23[%c0_211, %c0_212], %534 {strides = array<i32>} : memref<2x128xf32, #tpu.memory_space<vmem>>, vector<2x128xf32>,
    %c0_213 = arith.constant 0 : index
    %c0_214 = arith.constant 0 : index
    %536 = vector.load %arg19[%c0_213, %c0_214] : memref<128x128xbf16, #tpu.memory_space<vmem>>, vector<128x128xbf16>
    %cst_215 = arith.constant dense<0.000000e+00> : vector<2x128xf32>
    %537 = tpu.matmul %529, %536, %cst_215 {dimension_numbers = #tpu.dot_dimension_numbers<[1], [0], [0], [1], [0, 0, 1, 1], [], []>} : vector<2x128xbf16>, vector<128x128xbf16>, vector<2x128xf32> -> vector<2x128xf32>
    %c0_216 = arith.constant 0 : index
    %c0_217 = arith.constant 0 : index
    %538 = vector.load %arg20[%c0_216, %c0_217] : memref<1x128xf32, #tpu.memory_space<vmem>>, vector<1x128xf32>
    %539 = vector.broadcast %538 : vector<1x128xf32> to vector<2x128xf32>
    %540 = arith.addf %537, %539 : vector<2x128xf32>
    %cst_218 = arith.constant 0.000000e+00 : f32
    %541 = vector.broadcast %cst_218 : f32 to vector<2x128xf32>
    %542 = arith.maximumf %540, %541 : vector<2x128xf32>
    %543 = arith.truncf %542 : vector<2x128xf32> to vector<2x128xbf16>
    %c0_219 = arith.constant 0 : index
    %c0_220 = arith.constant 0 : index
    %544 = vector.load %arg21[%c0_219, %c0_220] : memref<128x128xbf16, #tpu.memory_space<vmem>>, vector<128x128xbf16>
    %cst_221 = arith.constant dense<0.000000e+00> : vector<2x128xf32>
    %545 = tpu.matmul %543, %544, %cst_221 {dimension_numbers = #tpu.dot_dimension_numbers<[1], [0], [0], [1], [0, 0, 1, 1], [], []>} : vector<2x128xbf16>, vector<128x128xbf16>, vector<2x128xf32> -> vector<2x128xf32>
    %c0_222 = arith.constant 0 : index
    %c0_223 = arith.constant 0 : index
    %546 = vector.load %arg22[%c0_222, %c0_223] : memref<1x128xf32, #tpu.memory_space<vmem>>, vector<1x128xf32>
    %547 = vector.broadcast %546 : vector<1x128xf32> to vector<2x128xf32>
    %548 = arith.addf %545, %547 : vector<2x128xf32>
    %c0_224 = arith.constant 0 : index
    %c0_225 = arith.constant 0 : index
    %549 = vector.load %arg24[%c0_224, %c0_225] : memref<2x128xf32, #tpu.memory_space<vmem>>, vector<2x128xf32>
    tpu.vector_store %arg24[%c0_224, %c0_225], %548 {strides = array<i32>} : memref<2x128xf32, #tpu.memory_space<vmem>>, vector<2x128xf32>,
    return
  }
  func.func @transform_0(%arg0: i32) -> (i32, i32) {
    %c0_i32 = arith.constant 0 : i32
    %c0_i32_0 = arith.constant 0 : i32
    %c0_i32_1 = arith.constant 0 : i32
    return %c0_i32, %c0_i32_0 : i32, i32
  }
  func.func @transform_1(%arg0: i32) -> (i32, i32) {
    %c0_i32 = arith.constant 0 : i32
    %c0_i32_0 = arith.constant 0 : i32
    %c0_i32_1 = arith.constant 0 : i32
    return %c0_i32, %c0_i32_0 : i32, i32
  }
  func.func @transform_2(%arg0: i32) -> (i32, i32, i32) {
    %c0_i32 = arith.constant 0 : i32
    %c0_i32_0 = arith.constant 0 : i32
    %c0_i32_1 = arith.constant 0 : i32
    %c0_i32_2 = arith.constant 0 : i32
    return %c0_i32, %c0_i32_0, %c0_i32_1 : i32, i32, i32
  }
  func.func @transform_3(%arg0: i32) -> (i32, i32, i32) {
    %c0_i32 = arith.constant 0 : i32
    %c0_i32_0 = arith.constant 0 : i32
    %c0_i32_1 = arith.constant 0 : i32
    %c0_i32_2 = arith.constant 0 : i32
    return %c0_i32, %c0_i32_0, %c0_i32_1 : i32, i32, i32
  }
  func.func @transform_4(%arg0: i32) -> (i32, i32, i32) {
    %c0_i32 = arith.constant 0 : i32
    %c0_i32_0 = arith.constant 0 : i32
    %c0_i32_1 = arith.constant 0 : i32
    %c0_i32_2 = arith.constant 0 : i32
    return %c0_i32, %c0_i32_0, %c0_i32_1 : i32, i32, i32
  }
  func.func @transform_5(%arg0: i32) -> (i32, i32, i32) {
    %c0_i32 = arith.constant 0 : i32
    %c0_i32_0 = arith.constant 0 : i32
    %c0_i32_1 = arith.constant 0 : i32
    %c0_i32_2 = arith.constant 0 : i32
    return %c0_i32, %c0_i32_0, %c0_i32_1 : i32, i32, i32
  }
  func.func @transform_6(%arg0: i32) -> (i32, i32, i32) {
    %c0_i32 = arith.constant 0 : i32
    %c0_i32_0 = arith.constant 0 : i32
    %c0_i32_1 = arith.constant 0 : i32
    %c0_i32_2 = arith.constant 0 : i32
    return %c0_i32, %c0_i32_0, %c0_i32_1 : i32, i32, i32
  }
  func.func @transform_7(%arg0: i32) -> (i32, i32, i32) {
    %c0_i32 = arith.constant 0 : i32
    %c0_i32_0 = arith.constant 0 : i32
    %c0_i32_1 = arith.constant 0 : i32
    %c0_i32_2 = arith.constant 0 : i32
    return %c0_i32, %c0_i32_0, %c0_i32_1 : i32, i32, i32
  }
  func.func @transform_8(%arg0: i32) -> (i32, i32, i32) {
    %c0_i32 = arith.constant 0 : i32
    %c0_i32_0 = arith.constant 0 : i32
    %c0_i32_1 = arith.constant 0 : i32
    %c0_i32_2 = arith.constant 0 : i32
    return %c0_i32, %c0_i32_0, %c0_i32_1 : i32, i32, i32
  }
  func.func @transform_9(%arg0: i32) -> (i32, i32, i32) {
    %c0_i32 = arith.constant 0 : i32
    %c0_i32_0 = arith.constant 0 : i32
    %c0_i32_1 = arith.constant 0 : i32
    %c0_i32_2 = arith.constant 0 : i32
    return %c0_i32, %c0_i32_0, %c0_i32_1 : i32, i32, i32
  }
  func.func @transform_10(%arg0: i32) -> (i32, i32, i32) {
    %c0_i32 = arith.constant 0 : i32
    %c0_i32_0 = arith.constant 0 : i32
    %c0_i32_1 = arith.constant 0 : i32
    %c0_i32_2 = arith.constant 0 : i32
    return %c0_i32, %c0_i32_0, %c0_i32_1 : i32, i32, i32
  }
  func.func @transform_11(%arg0: i32) -> (i32, i32, i32) {
    %c0_i32 = arith.constant 0 : i32
    %c0_i32_0 = arith.constant 0 : i32
    %c0_i32_1 = arith.constant 0 : i32
    %c0_i32_2 = arith.constant 0 : i32
    return %c0_i32, %c0_i32_0, %c0_i32_1 : i32, i32, i32
  }
  func.func @transform_12(%arg0: i32) -> (i32, i32, i32) {
    %c0_i32 = arith.constant 0 : i32
    %c0_i32_0 = arith.constant 0 : i32
    %c0_i32_1 = arith.constant 0 : i32
    %c0_i32_2 = arith.constant 0 : i32
    return %c0_i32, %c0_i32_0, %c0_i32_1 : i32, i32, i32
  }
  func.func @transform_13(%arg0: i32) -> (i32, i32, i32) {
    %c0_i32 = arith.constant 0 : i32
    %c0_i32_0 = arith.constant 0 : i32
    %c0_i32_1 = arith.constant 0 : i32
    %c0_i32_2 = arith.constant 0 : i32
    return %c0_i32, %c0_i32_0, %c0_i32_1 : i32, i32, i32
  }
  func.func @transform_14(%arg0: i32) -> (i32, i32) {
    %c0_i32 = arith.constant 0 : i32
    %c0_i32_0 = arith.constant 0 : i32
    %c0_i32_1 = arith.constant 0 : i32
    return %c0_i32, %c0_i32_0 : i32, i32
  }
  func.func @transform_15(%arg0: i32) -> (i32, i32) {
    %c0_i32 = arith.constant 0 : i32
    %c0_i32_0 = arith.constant 0 : i32
    %c0_i32_1 = arith.constant 0 : i32
    return %c0_i32, %c0_i32_0 : i32, i32
  }
  func.func @transform_16(%arg0: i32) -> (i32, i32) {
    %c0_i32 = arith.constant 0 : i32
    %c0_i32_0 = arith.constant 0 : i32
    %c0_i32_1 = arith.constant 0 : i32
    return %c0_i32, %c0_i32_0 : i32, i32
  }
  func.func @transform_17(%arg0: i32) -> (i32, i32) {
    %c0_i32 = arith.constant 0 : i32
    %c0_i32_0 = arith.constant 0 : i32
    %c0_i32_1 = arith.constant 0 : i32
    return %c0_i32, %c0_i32_0 : i32, i32
  }
  func.func @transform_18(%arg0: i32) -> (i32, i32) {
    %c0_i32 = arith.constant 0 : i32
    %c0_i32_0 = arith.constant 0 : i32
    %c0_i32_1 = arith.constant 0 : i32
    return %c0_i32, %c0_i32_0 : i32, i32
  }
  func.func @transform_19(%arg0: i32) -> (i32, i32) {
    %c0_i32 = arith.constant 0 : i32
    %c0_i32_0 = arith.constant 0 : i32
    %c0_i32_1 = arith.constant 0 : i32
    return %c0_i32, %c0_i32_0 : i32, i32
  }
  func.func @transform_20(%arg0: i32) -> (i32, i32) {
    %c0_i32 = arith.constant 0 : i32
    %c0_i32_0 = arith.constant 0 : i32
    %c0_i32_1 = arith.constant 0 : i32
    return %c0_i32, %c0_i32_0 : i32, i32
  }
  func.func @transform_21(%arg0: i32) -> (i32, i32) {
    %c0_i32 = arith.constant 0 : i32
    %c0_i32_0 = arith.constant 0 : i32
    %c0_i32_1 = arith.constant 0 : i32
    return %c0_i32, %c0_i32_0 : i32, i32
  }
  func.func @transform_22(%arg0: i32) -> (i32, i32) {
    %c0_i32 = arith.constant 0 : i32
    %c0_i32_0 = arith.constant 0 : i32
    %c0_i32_1 = arith.constant 0 : i32
    return %c0_i32, %c0_i32_0 : i32, i32
  }
  func.func @transform_23(%arg0: i32) -> (i32, i32) {
    %c0_i32 = arith.constant 0 : i32
    %c0_i32_0 = arith.constant 0 : i32
    %c0_i32_1 = arith.constant 0 : i32
    return %c0_i32, %c0_i32_0 : i32, i32
  }
}

</mosaic_0001>

<bundles_post_ra>
// kernel: _lambda_.2
= control target key start
LH: loop header
LB: loop body
LE: loop exit
PB: predicated region body
PF: predicated region fallthrough
CT: control target
= control target key end

     0   :  { %s6578_s21 = smov 0   ;;  %s7465_s0 = inlined_call_operand.vmem [shape: f32[2,8,128], index: 0, kind: input, shape index: {}]   ;;  %s7466_s1 = inlined_call_operand.vmem [shape: f32[2,1,8], index: 1, kind: input, shape index: {}]   ;;  %s7467_s2 = inlined_call_operand.vmem [shape: bf16[2,128,384], index: 2, kind: input, shape index: {}]   ;;  %s7468_s3 = inlined_call_operand.vmem [shape: f32[2,1,384], index: 3, kind: input, shape index: {}]   ;;  %s7469_s4 = inlined_call_operand.vmem [shape: bf16[2,128,128], index: 4, kind: input, shape index: {}]   ;;  %s7470_s5 = inlined_call_operand.vmem [shape: f32[2,1,128], index: 5, kind: input, shape index: {}, may-alias: {5,7,11,13}]   ;;  %s7471_s6 = inlined_call_operand.vmem [shape: f32[2,1,128], index: 6, kind: input, shape index: {}, may-alias: {6,12}]   ;;  %s7472_s7 = inlined_call_operand.vmem [shape: f32[2,1,128], index: 7, kind: input, shape index: {}, may-alias: {5,7,11,13}]   ;;  %s7473_s8 = inlined_call_operand.vmem [shape: bf16[2,128,256], index: 8, kind: input, shape index: {}]   ;;  %s7474_s9 = inlined_call_operand.vmem [shape: f32[2,1,256], index: 9, kind: input, shape index: {}]   ;;  %s7475_s10 = inlined_call_operand.vmem [shape: bf16[2,256,128], index: 10, kind: input, shape index: {}]   ;;  %s7476_s11 = inlined_call_operand.vmem [shape: f32[2,1,128], index: 11, kind: input, shape index: {}, may-alias: {5,7,11,13}]   ;;  %s7477_s12 = inlined_call_operand.vmem [shape: f32[2,1,128], index: 12, kind: input, shape index: {}, may-alias: {6,12}]   ;;  %s7478_s13 = inlined_call_operand.vmem [shape: f32[2,1,128], index: 13, kind: input, shape index: {}, may-alias: {5,7,11,13}]   ;;  %s7479_s14 = inlined_call_operand.vmem [shape: f32[1,128], index: 14, kind: input, shape index: {}]   ;;  %s7480_s15 = inlined_call_operand.vmem [shape: f32[1,128], index: 15, kind: input, shape index: {}]   ;;  %s7481_s16 = inlined_call_operand.vmem [shape: f32[2,1,128], index: 16, kind: output, shape index: {}]  }
   0x1   :  { %7492 = sst [smem:[#allocation2_spill]] %s7465_s0 }
   0x2 LB: > { %s5449_s22 = sadd.s32 4294967295, %s6481_s21   ;;  %p5453_p0 = scmp.ge.s32.totalorder %s6481_s21, 1  ;;  %s6481_s21 = sphi %s6578_s21, %s26_s21  }
   0x3   : > { %p469_p1 = scmp.lt.s32.totalorder %s6481_s21, 3 }
   0x5   : > { %p470_p2 = pnand %p5453_p0, %p469_p1 }
   0x6   : > { %p519_p3 = scmp.lt.s32.totalorder (!%p470_p2), %s5449_s22, 1  ;;  %s7493_s26 = sld [smem:[#allocation2_spill]] (!%p470_p2)  ;;  %v6240_v1 = vld [vmem:[%s7467_s2 + $0x4] ss:$12 sps:$4 sm:$0xff] (!%p470_p2)   ;;  %v6242_v2 = vld [vmem:[%s7467_s2] ss:$12 sps:$4 sm:$0xff] (!%p470_p2)   ;;  %v666_v41 = vlaneseq (!%p470_p2) }
   0x7   : > { %473 = sbr.rel (%p470_p2) target bundleno = 11895 (0x2e77), region = 84  ;;  %v6483_v3 = vmov (!%p470_p2), 0.0   ;;  %v6243_v4 = vld [vmem:[%s7467_s2 + $0x8] ss:$12 sps:$4 sm:$0xff] (!%p470_p2)   ;;  %v6246_v6 = vld [vmem:[%s7467_s2 + $0x18] ss:$12 sps:$4 sm:$0xff] (!%p470_p2)   ;;  %809 = vmatprep.subr.bf16.mxu0 (!%p470_p2), %v6240_v1 }
   0x8   : > { %5926 = vmatprep.subr.bf16.mxu1 (!%p470_p2), %v6483_v3  ;;  %v6244_v5 = vld [vmem:[%s7467_s2 + $0x1c] ss:$12 sps:$4 sm:$0xff] (!%p470_p2)   ;;  %v6247_v7 = vld [vmem:[%s7467_s2 + $0x20] ss:$12 sps:$4 sm:$0xff] (!%p470_p2)   ;;  %810 = vmatpush1.bf16.msra.mxu0 (!%p470_p2), %v6242_v2  ;;  %v6251_v14 = vld [vmem:[%s7467_s2 + $0x38] ss:$12 sps:$4 sm:$0xff] (!%p470_p2)  }
   0x9   : > { %v6248_v8 = vld [vmem:[%s7467_s2 + $0x34] ss:$12 sps:$4 sm:$0xff] (!%p470_p2)   ;;  %5927 = vmatpush3.bf16.msra.mxu1 (!%p470_p2), %v6243_v4  ;;  %811 = vmatprep.subr.bf16.mxu0 (!%p470_p2), %v6244_v5  ;;  %v6250_v13 = vld [vmem:[%s7467_s2 + $0x30] ss:$12 sps:$4 sm:$0xff] (!%p470_p2)   ;;  %v6252_v15 = vld [vmem:[%s7467_s2 + $0x4c] ss:$12 sps:$4 sm:$0xff] (!%p470_p2)  }
   0xa   : > { %5928 = vmatprep.subr.bf16.mxu1 (!%p470_p2), %v6483_v3  ;;  %v6254_v16 = vld [vmem:[%s7467_s2 + $0x48] ss:$12 sps:$4 sm:$0xff] (!%p470_p2)   ;;  %v6255_v17 = vld [vmem:[%s7467_s2 + $0x50] ss:$12 sps:$4 sm:$0xff] (!%p470_p2)   ;;  %v6258_v19 = vld [vmem:[%s7467_s2 + $0x60] ss:$12 sps:$4 sm:$0xff] (!%p470_p2)  }
   0xb   : > { %v6256_v18 = vld [vmem:[%s7467_s2 + $0x64] ss:$12 sps:$4 sm:$0xff] (!%p470_p2)   ;;  %v6259_v20 = vld [vmem:[%s7467_s2 + $0x68] ss:$12 sps:$4 sm:$0xff] (!%p470_p2)   ;;  %v6263_v23 = vld [vmem:[%s7467_s2 + $0x80] ss:$12 sps:$4 sm:$0xff] (!%p470_p2)  }
   0xc   : > { %812 = vmatpush1.bf16.msra.mxu0 (!%p470_p2), %v6246_v6  ;;  %v6260_v21 = vld [vmem:[%s7467_s2 + $0x7c] ss:$12 sps:$4 sm:$0xff] (!%p470_p2)   ;;  %v6262_v22 = vld [vmem:[%s7467_s2 + $0x78] ss:$12 sps:$4 sm:$0xff] (!%p470_p2)   ;;  %v6264_v24 = vld [vmem:[%s7467_s2 + $0x94] ss:$12 sps:$4 sm:$0xff] (!%p470_p2)  }
   0xd   : > { %5929 = vmatpush3.bf16.msra.mxu1 (!%p470_p2), %v6247_v7  ;;  %813 = vmatprep.subr.bf16.mxu0 (!%p470_p2), %v6248_v8  ;;  %v6484_v25 = vmov (!%p470_p2), 0   ;;  %vm6485_vm0 = vmmov (!%p470_p2), 0   ;;  %v6266_v26 = vld [vmem:[%s7467_s2 + $0x90] ss:$12 sps:$4 sm:$0xff] (!%p470_p2)   ;;  %v6267_v27 = vld [vmem:[%s7467_s2 + $0x98] ss:$12 sps:$4 sm:$0xff] (!%p470_p2)  }
   0xe   : > { %s7500_s22 = smov (!%p519_p3, %s5449_s22), 1  ;;  %5930 = vmatprep.subr.bf16.mxu1 %v6483_v3  ;;  %841 = vmatprep.mubr.bf16.mxu0 %v6484_v25  ;;  %v6268_v28 = vld [vmem:[%s7467_s2 + $0xac] ss:$12 sps:$4 sm:$0xff]   ;;  %v6270_v29 = vld [vmem:[%s7467_s2 + $0xa8] ss:$12 sps:$4 sm:$0xff]   ;;  %v6691_v42 = vshrl.u32 %v666_v41, 7 }
   0xf   : > { %s5454_s23 = sshll.u32 %s7500_s22, 3  ;;  %5942 = vmatprep.mubr.msk.bf16.mxu1 %vm6485_vm0, %v6483_v3  ;;  %v6271_v30 = vld [vmem:[%s7467_s2 + $0xb0] ss:$12 sps:$4 sm:$0xff]   ;;  %v5455_v35 = vld [vmem:[%s7479_s14] ss:$0 sm:$0xff]  ;;  %vm896_vm1 = vcmask 130048   ;;  %s6735_s18 = scalar_lea.vmem %s7466_s1, %s7500_s22 }
  0x10   : > { %s522_s27 = scalar_lea.vmem %s7493_s26, %s5454_s23  ;;  %814 = vmatpush1.bf16.msra.mxu0 %v6250_v13  ;;  %v5456_v37 = vld [vmem:[%s7480_s15] ss:$0 sm:$0xff]  ;;  %v676_v43 = vsub.s32 2, %v6691_v42  ;;  %v6698_v45 = vsub.s32 1, %v6691_v42  ;;  %v6701_v46 = vsub.s32 0, %v6691_v42  ;;  %s6486_s30 = smov 112  }
  0x11   : > { %v530_v0 = vld [vmem:[%s522_s27] sm:$0xff]  ;;  %5931 = vmatpush3.bf16.msra.mxu1 %v6251_v14  ;;  %815 = vmatprep.subr.bf16.mxu0 %v6252_v15  ;;  %vm975_vm2 = vcmask 64512   ;;  %s6487_s19 = smov 96   ;;  %s7490_s26 = smov 80  }
  0x12   : > { %533 = vadd.xlane.f32.xlu0 %v530_v0  ;;  %5932 = vmatprep.subr.bf16.mxu1 %v6483_v3  ;;  %v592_v44 = vld [vmem:[%s7468_s3] sm:$0x7]  ;;  %s7488_s29 = smov 64   ;;  %s7486_s20 = smov 48  }
  0x13   : > { %v677_v47 = vrot.slane %v592_v44, %v676_v43  ;;  %v673_v48 = vrot.slane %v592_v44, %v6698_v45  ;;  %v669_v51 = vrot.slane %v592_v44, %v6701_v46  ;;  %v6738_v63 = vld [vmem:[%s6735_s18] ss:$0 sm:$0xff]  ;;  %s7484_s25 = smov 32   ;;  %s7482_s0 = smov 16  }
  0x14   : > { %816 = vmatpush1.bf16.msra.mxu0 %v6254_v16  ;;  %s7494_s28 = smov 80   ;;  %s7495_s23 = smov 64  }
  0x15   : > { %5933 = vmatpush3.bf16.msra.mxu1 %v6255_v17  ;;  %817 = vmatprep.subr.bf16.mxu0 %v6256_v18 }
  0x16   : > { %5934 = vmatprep.subr.bf16.mxu1 %v6483_v3 }
  0x18   : > { %818 = vmatpush1.bf16.msra.mxu0 %v6258_v19 }
  0x19   : > { %5935 = vmatpush3.bf16.msra.mxu1 %v6259_v20  ;;  %819 = vmatprep.subr.bf16.mxu0 %v6260_v21 }
  0x1a   : > { %5936 = vmatprep.subr.bf16.mxu1 %v6483_v3 }
  0x1c   : > { %820 = vmatpush1.bf16.msra.mxu0 %v6262_v22 }
  0x1d   : > { %5937 = vmatpush3.bf16.msra.mxu1 %v6263_v23  ;;  %821 = vmatprep.subr.bf16.mxu0 %v6264_v24  ;;  %v6273_v24 = vld [vmem:[%s7469_s4 + $0x8] sm:$0xff]  }
  0x1e   : > { %5938 = vmatprep.subr.bf16.mxu1 %v6483_v3 }
  0x20   : > { %822 = vmatpush1.bf16.msra.mxu0 %v6266_v26 }
  0x21   : > { %5939 = vmatpush3.bf16.msra.mxu1 %v6267_v27  ;;  %823 = vmatprep.subr.bf16.mxu0 %v6268_v28 }
  0x22   : > { %5940 = vmatprep.subr.bf16.mxu1 %v6483_v3 }
  0x24   : > { %824 = vmatpush1.bf16.msra.mxu0 %v6270_v29  ;;  %v6272_v29 = vld [vmem:[%s7469_s4] sm:$0xff]  }
  0x25   : > { %5941 = vmatpush3.bf16.msra.mxu1 %v6271_v30  ;;  %5946 = vmatprep.subr.mxu0 %v6483_v3 }
  0x26   : > { %5951 = vmatprep.subr.mxu1 %v6483_v3 }
  0x9f   : > { %v534_v9 = vpop.xlane.xlu0 %533 }
  0xa0   : > { %v536_v10 = vmul.f32 0.0078125, %v534_v9 }
  0xa2   : > { %v537_v11 = vsub.f32 %v530_v0, %v536_v10 }
  0xa4   : > { %v538_v12 = vmul.f32 %v537_v11, %v537_v11 }
  0xa6   : > { %539 = vadd.xlane.f32.xlu0 %v538_v12 }
 0x133   : > { %v540_v31 = vpop.xlane.xlu0 %539 }
 0x134   : > { %v541_v32 = vmul.f32 0.0078125, %v540_v31 }
 0x136   : > { %v542_v33 = vadd.f32 1e-05, %v541_v32 }
 0x138   : > { %6400 = vrsqrt.f32 %v542_v33 }
 0x142   : > { %v6401_v34 = vpop.eup %6400 }
 0x143   : > { %v544_v36 = vmul.f32 %v6401_v34, %v537_v11 }
 0x145   : > { %v551_v38 = vmul.f32 %v5455_v35, %v544_v36 }
 0x147   : > { %v6683_v39 = vadd.f32 %v5456_v37, %v551_v38 }
 0x149   : > { %v664_v40 = vpack.c.bf16 %v6683_v39, %v6683_v39 }
 0x14b   : > { %842 = vmatmul.mubr.bf16.vlgmr.msra.gmra.mrb[0].mxu0 %v664_v40  ;;  %5943 = vmatmul.mubr.bf16.vlgmr.msra.gmra.mrb[0].mxu1 %v664_v40 }
 0x14c   : > { %5948 = vmatprep.mubr.msk.f32.mxu0 %vm6485_vm0, %v6483_v3  ;;  %5953 = vmatprep.mubr.msk.f32.mxu1 %vm6485_vm0, %v6483_v3 }
 0x21e   : > { %v843_v49 = vpop.f32.mrb[0].mxu0  ;;  %v884_v50 = vpop.f32.mrb[0].mxu1 }
 0x21f   : > { %v6707_v52 = vadd.f32 %v884_v50, %v677_v47  ;;  %v845_v53 = vpop.f32.mrb[1].mxu0  ;;  %v5944_v54 = vpop.f32.mrb[1].mxu1  ;;  %v6716_v60 = vadd.f32 %v843_v49, %v669_v51 }
 0x220   : > { %v6709_v55 = vadd.f32 %v845_v53, %v673_v48  ;;  %v847_v56 = vpop.f32.mrb[2].mxu0  ;;  %v887_v57 = vpop.f32.mrb[2].mxu1 }
 0x221   : > { %v848_v58 = vpop.f32.mrb[3].mxu0  ;;  %v5945_v59 = vpop.f32.mrb[3].mxu1  ;;  %5952 = vmatpush3.msra.mxu1 %v6707_v52 }
 0x222   : > { %1063 = vrot.lane.b32.xlu1 %v6709_v55, %s6486_s30  ;;  %5947 = vmatpush3.xpose.msk.msra.mxu0 %vm896_vm1, %v6709_v55 }
 0x223   : > { %5956 = vmatprep.subr.mxu0 %v6483_v3  ;;  %5961 = vmatprep.subr.mxu1 %v6483_v3 }
 0x225   : > { %5949 = vmatmul.mubr.msk.f32.vlgmr.msra.gmra.mrb[4].mxu0 %vm896_vm1, %v6716_v60 }
 0x226   : > { %1061 = vrot.lane.b32.xlu1 %v6716_v60, %s6486_s30  ;;  %5958 = vmatprep.mubr.msk.f32.mxu0 %vm6485_vm0, %v6483_v3 }
 0x294   : > { %v1064_v61 = vpop.permute.xlu1 %1063 }
 0x295   : > { %5957 = vmatpush3.xpose.msk.msra.mxu0 %vm896_vm1, %v1064_v61 }
 0x296   : > { %5966 = vmatprep.subr.bf16.mxu0 %v6483_v3 }
 0x298   : > { %v1062_v62 = vpop.permute.xlu1 %1061 }
 0x299   : > { %5959 = vmatmul.mubr.msk.f32.vlgmr.msra.gmra.mrb[6].mxu0 %vm896_vm1, %v1062_v62 }
 0x29a   : > { %5968 = vmatprep.mubr.msk.bf16.mxu0 %vm6485_vm0, %v6483_v3  ;;  %5967 = vmatpush3.bf16.msra.mxu0 %v6273_v24 }
 0x29b   : > { %5978 = vmatprep.subr.mxu0 %v6483_v3 }
 0x2f8   : > { %v969_v0 = vpop.f32.mrb[4].mxu0 }
 0x2f9   : > { %v973_v1 = vmul.f32 0.25, %v969_v0  ;;  %v5950_v2 = vpop.f32.mrb[5].mxu0 }
 0x2fb   : > { %v974_v4 = vadd.f32 %v6738_v63, %v973_v1 }
 0x2fd   : > { %v976_v5 = vsel %vm975_vm2, %v974_v4, -inf }
 0x2fe   : > { %977 = vmax.xlane.f32.xlu0 %v976_v5 }
 0x36c   : > { %v1135_v6 = vpop.f32.mrb[6].mxu0 }
 0x36d   : > { %v1139_v7 = vmul.f32 0.25, %v1135_v6  ;;  %v5960_v8 = vpop.f32.mrb[7].mxu0 }
 0x36f   : > { %v1140_v9 = vadd.f32 %v6738_v63, %v1139_v7 }
 0x371   : > { %v1141_v10 = vsel %vm975_vm2, %v1140_v9, -inf }
 0x372   : > { %1142 = vmax.xlane.f32.xlu1 %v1141_v10  ;;  %v6274_v10 = vld [vmem:[%s7469_s4 + $0x10] sm:$0xff]  }
 0x383   : > { %1328 = vrot.lane.b32.xlu1 %v6716_v60, %s6487_s19 }
 0x38b   : > { %v978_v11 = vpop.xlane.xlu0 %977 }
 0x38c   : > { %v979_v12 = vsub.f32 %v974_v4, %v978_v11 }
 0x38e   : > { %v980_v13 = vmul.f32 1.442695, %v979_v12 }
 0x390   : > { %6402 = vpow2.f32 %v980_v13 }
 0x39a   : > { %v6403_v14 = vpop.eup %6402 }
 0x39b   : > { %v982_v15 = vsel %vm975_vm2, %v6403_v14, 0.0 }
 0x39c   : > { %983 = vadd.xlane.f32.xlu0 %v982_v15 }
 0x3ff   : > { %v1143_v16 = vpop.xlane.xlu1 %1142 }
 0x400   : > { %v1144_v17 = vsub.f32 %v1140_v9, %v1143_v16 }
 0x402   : > { %v1145_v18 = vmul.f32 1.442695, %v1144_v17 }
 0x403   : > { %v1329_v38 = vpop.permute.xlu1 %1328 }
 0x404   : > { %6404 = vpow2.f32 %v1145_v18 }
 0x40e   : > { %v6405_v19 = vpop.eup %6404 }
 0x40f   : > { %v1147_v20 = vsel %vm975_vm2, %v6405_v19, 0.0 }
 0x410   : > { %1148 = vadd.xlane.f32.xlu0 %v1147_v20 }
 0x426   : > { %1153 = vrot.lane.b32.xlu0 %v6707_v52, %s6486_s30 }
 0x429   : > { %v984_v21 = vpop.xlane.xlu0 %983 }
 0x42a   : > { %6406 = vrcp.f32 %v984_v21  ;;  %1330 = vrot.lane.b32.xlu0 %v6709_v55, %s6487_s19 }
 0x434   : > { %v6407_v22 = vpop.eup %6406 }
 0x435   : > { %v986_v23 = vmul.f32 %v6407_v22, %v6403_v14 }
 0x437   : > { %5954 = vmatmul.mubr.msk.f32.vlgmr.msra.gmra.mrb[4].mxu1 %vm975_vm2, %v986_v23 }
 0x438   : > { %5963 = vmatprep.mubr.msk.f32.mxu1 %vm6485_vm0, %v6483_v3 }
 0x49d   : > { %v1149_v26 = vpop.xlane.xlu0 %1148 }
 0x49e   : > { %6408 = vrcp.f32 %v1149_v26 }
 0x4a1   : > { %v1154_v27 = vpop.permute.xlu0 %1153 }
 0x4a2   : > { %5962 = vmatpush3.msra.mxu1 %v1154_v27 }
 0x4a3   : > { %5972 = vmatprep.subr.bf16.mxu1 %v6483_v3 }
 0x4a5   : > { %v1331_v37 = vpop.permute.xlu0 %1330 }
 0x4a8   : > { %v6409_v28 = vpop.eup %6408 }
 0x4a9   : > { %v1151_v30 = vmul.f32 %v6409_v28, %v6405_v19 }
 0x4ab   : > { %5964 = vmatmul.mubr.msk.f32.vlgmr.msra.gmra.mrb[6].mxu1 %vm975_vm2, %v1151_v30 }
 0x4ac   : > { %5973 = vmatpush3.bf16.msra.mxu1 %v6272_v29  ;;  %5974 = vmatprep.mubr.msk.bf16.mxu1 %vm6485_vm0, %v6483_v3 }
 0x4ad   : > { %5983 = vmatprep.subr.mxu1 %v6483_v3 }
 0x50a   : > { %v1056_v31 = vpop.f32.mrb[4].mxu1 }
 0x50b   : > { %v1060_v32 = vpack.c.bf16 %v1056_v31, %v1056_v31  ;;  %v5955_v33 = vpop.f32.mrb[5].mxu1 }
 0x50d   : > { %5975 = vmatmul.mubr.msk.bf16.vlgmr.msra.gmra.mrb[8].mxu1 %vm896_vm1, %v1060_v32 }
 0x50e   : > { %5985 = vmatprep.mubr.msk.f32.mxu1 %vm6485_vm0, %v6483_v3 }
 0x57e   : > { %v1225_v34 = vpop.f32.mrb[6].mxu1 }
 0x57f   : > { %v1229_v35 = vpack.c.bf16 %v1225_v34, %v1225_v34  ;;  %v5965_v36 = vpop.f32.mrb[7].mxu1 }
 0x580   : > { %v6275_v36 = vld [vmem:[%s7469_s4 + $0x18] sm:$0xff]  }
 0x581   : > { %5969 = vmatmul.mubr.msk.bf16.vlgmr.msra.gmra.mrb[8].mxu0 %vm896_vm1, %v1229_v35 }
 0x582   : > { %5979 = vmatpush3.xpose.msk.msra.mxu0 %vm896_vm1, %v1331_v37  ;;  %5980 = vmatprep.mubr.msk.f32.mxu0 %vm6485_vm0, %v6483_v3 }
 0x583   : > { %5988 = vmatprep.subr.bf16.mxu0 %v6483_v3 }
 0x589   : > { %5981 = vmatmul.mubr.msk.f32.vlgmr.msra.gmra.mrb[12].mxu0 %vm896_vm1, %v1329_v38 }
 0x58a   : > { %5990 = vmatprep.mubr.msk.bf16.mxu0 %vm6485_vm0, %v6483_v3  ;;  %5989 = vmatpush3.bf16.msra.mxu0 %v6274_v10 }
 0x58b   : > { %6004 = vmatprep.subr.bf16.mxu0 %v6483_v3 }
 0x5e0   : > { %v1322_v40 = vpop.f32.mrb[8].mxu1 }
 0x5e1   : > { %v5976_v41 = vpop.f32.mrb[9].mxu1 }
 0x5e2   : > { %v1325_v44 = vpop.f32.mrb[10].mxu1 }
 0x5e3   : > { %v5977_v47 = vpop.f32.mrb[11].mxu1 }
 0x654   : > { %v1273_v48 = vpop.f32.mrb[8].mxu0 }
 0x655   : > { %v6778_v49 = vadd.f32 %v1322_v40, %v1273_v48  ;;  %v5970_v50 = vpop.f32.mrb[9].mxu0 }
 0x656   : > { %v1276_v51 = vpop.f32.mrb[10].mxu0 }
 0x657   : > { %v5971_v53 = vpop.f32.mrb[11].mxu0 }
 0x65c   : > { %v1402_v54 = vpop.f32.mrb[12].mxu0 }
 0x65d   : > { %v1406_v56 = vmul.f32 0.25, %v1402_v54  ;;  %v5982_v57 = vpop.f32.mrb[13].mxu0 }
 0x65f   : > { %v1407_v58 = vadd.f32 %v6738_v63, %v1406_v56 }
 0x661   : > { %v1408_v59 = vsel %vm975_vm2, %v1407_v58, -inf }
 0x662   : > { %1409 = vmax.xlane.f32.xlu0 %v1408_v59 }
 0x678   : > { %1419 = vrot.lane.b32.xlu0 %v6707_v52, %s6487_s19 }
 0x67c   : > { %1546 = vrot.lane.b32.xlu0 %v6716_v60, %s7490_s26 }
 0x6ef   : > { %v1410_v61 = vpop.xlane.xlu0 %1409 }
 0x6f0   : > { %v1411_v62 = vsub.f32 %v1407_v58, %v1410_v61 }
 0x6f2   : > { %v1412_v0 = vmul.f32 1.442695, %v1411_v62 }
 0x6f3   : > { %v1420_v1 = vpop.permute.xlu0 %1419 }
 0x6f4   : > { %6410 = vpow2.f32 %v1412_v0  ;;  %5984 = vmatpush3.msra.mxu1 %v1420_v1 }
 0x6f5   : > { %5994 = vmatprep.subr.mxu1 %v6483_v3 }
 0x6f7   : > { %v1547_v9 = vpop.permute.xlu0 %1546 }
 0x6fe   : > { %v6411_v2 = vpop.eup %6410 }
 0x6ff   : > { %v1414_v4 = vsel %vm975_vm2, %v6411_v2, 0.0 }
 0x700   : > { %1415 = vadd.xlane.f32.xlu1 %v1414_v4 }
 0x711   : > { %1548 = vrot.lane.b32.xlu1 %v6709_v55, %s7490_s26 }
 0x78d   : > { %v1416_v5 = vpop.xlane.xlu1 %1415 }
 0x78e   : > { %6412 = vrcp.f32 %v1416_v5 }
 0x791   : > { %v1549_v8 = vpop.permute.xlu1 %1548 }
 0x798   : > { %v6413_v6 = vpop.eup %6412 }
 0x799   : > { %v1418_v7 = vmul.f32 %v6413_v6, %v6411_v2 }
 0x79b   : > { %5986 = vmatmul.mubr.msk.f32.vlgmr.msra.gmra.mrb[12].mxu1 %vm975_vm2, %v1418_v7  ;;  %v6276_v7 = vld [vmem:[%s7469_s4 + $0x20] sm:$0xff]  }
 0x79c   : > { %5995 = vmatpush3.xpose.msk.msra.mxu1 %vm896_vm1, %v1549_v8  ;;  %5996 = vmatprep.mubr.msk.f32.mxu1 %vm6485_vm0, %v6483_v3 }
 0x79d   : > { %5999 = vmatprep.subr.mxu1 %v6483_v3 }
 0x79f   : > { %5997 = vmatmul.mubr.msk.f32.vlgmr.msra.gmra.mrb[14].mxu1 %vm896_vm1, %v1547_v9 }
 0x7a0   : > { %6001 = vmatprep.mubr.msk.f32.mxu1 %vm6485_vm0, %v6483_v3 }
 0x86e   : > { %v1491_v11 = vpop.f32.mrb[12].mxu1 }
 0x86f   : > { %v1495_v12 = vpack.c.bf16 %v1491_v11, %v1491_v11  ;;  %v5987_v13 = vpop.f32.mrb[13].mxu1 }
 0x871   : > { %5991 = vmatmul.mubr.msk.bf16.vlgmr.msra.gmra.mrb[16].mxu0 %vm896_vm1, %v1495_v12 }
 0x872   : > { %v1620_v14 = vpop.f32.mrb[14].mxu1  ;;  %6006 = vmatprep.mubr.msk.bf16.mxu0 %vm6485_vm0, %v6483_v3  ;;  %6005 = vmatpush3.bf16.msra.mxu0 %v6275_v36 }
 0x873   : > { %v1624_v15 = vmul.f32 0.25, %v1620_v14  ;;  %v5998_v16 = vpop.f32.mrb[15].mxu1  ;;  %6020 = vmatprep.subr.bf16.mxu0 %v6483_v3 }
 0x875   : > { %v1625_v17 = vadd.f32 %v6738_v63, %v1624_v15 }
 0x877   : > { %v1626_v18 = vsel %vm975_vm2, %v1625_v17, -inf }
 0x878   : > { %1627 = vmax.xlane.f32.xlu0 %v1626_v18 }
 0x88e   : > { %1637 = vrot.lane.b32.xlu0 %v6707_v52, %s7490_s26 }
 0x892   : > { %1764 = vrot.lane.b32.xlu0 %v6716_v60, %s7488_s29 }
 0x905   : > { %v1628_v19 = vpop.xlane.xlu0 %1627 }
 0x906   : > { %v1629_v20 = vsub.f32 %v1625_v17, %v1628_v19 }
 0x908   : > { %v1630_v21 = vmul.f32 1.442695, %v1629_v20 }
 0x909   : > { %v1638_v22 = vpop.permute.xlu0 %1637 }
 0x90a   : > { %6414 = vpow2.f32 %v1630_v21  ;;  %6000 = vmatpush3.msra.mxu1 %v1638_v22 }
 0x90b   : > { %6010 = vmatprep.subr.mxu1 %v6483_v3 }
 0x90d   : > { %v1765_v35 = vpop.permute.xlu0 %1764 }
 0x914   : > { %v6415_v23 = vpop.eup %6414 }
 0x915   : > { %v1632_v24 = vsel %vm975_vm2, %v6415_v23, 0.0 }
 0x916   : > { %1633 = vadd.xlane.f32.xlu1 %v1632_v24 }
 0x927   : > { %1766 = vrot.lane.b32.xlu1 %v6709_v55, %s7488_s29 }
 0x944   : > { %v1539_v26 = vpop.f32.mrb[16].mxu0 }
 0x945   : > { %v1545_v27 = vadd.f32 %v1539_v26, %v6778_v49  ;;  %v5992_v28 = vpop.f32.mrb[17].mxu0 }
 0x946   : > { %v1542_v29 = vpop.f32.mrb[18].mxu0 }
 0x947   : > { %v5993_v30 = vpop.f32.mrb[19].mxu0 }
 0x9a3   : > { %v1634_v31 = vpop.xlane.xlu1 %1633 }
 0x9a4   : > { %6416 = vrcp.f32 %v1634_v31 }
 0x9a7   : > { %v1767_v34 = vpop.permute.xlu1 %1766 }
 0x9ae   : > { %v6417_v32 = vpop.eup %6416 }
 0x9af   : > { %v1636_v33 = vmul.f32 %v6417_v32, %v6415_v23 }
 0x9b1   : > { %6002 = vmatmul.mubr.msk.f32.vlgmr.msra.gmra.mrb[16].mxu1 %vm975_vm2, %v1636_v33  ;;  %v6277_v33 = vld [vmem:[%s7469_s4 + $0x28] sm:$0xff]  }
 0x9b2   : > { %6011 = vmatpush3.xpose.msk.msra.mxu1 %vm896_vm1, %v1767_v34  ;;  %6012 = vmatprep.mubr.msk.f32.mxu1 %vm6485_vm0, %v6483_v3 }
 0x9b3   : > { %6015 = vmatprep.subr.mxu1 %v6483_v3 }
 0x9b5   : > { %6013 = vmatmul.mubr.msk.f32.vlgmr.msra.gmra.mrb[18].mxu1 %vm896_vm1, %v1765_v35 }
 0x9b6   : > { %6017 = vmatprep.mubr.msk.f32.mxu1 %vm6485_vm0, %v6483_v3 }
 0xa84   : > { %v1709_v37 = vpop.f32.mrb[16].mxu1 }
 0xa85   : > { %v1713_v38 = vpack.c.bf16 %v1709_v37, %v1709_v37  ;;  %v6003_v40 = vpop.f32.mrb[17].mxu1 }
 0xa87   : > { %6007 = vmatmul.mubr.msk.bf16.vlgmr.msra.gmra.mrb[20].mxu0 %vm896_vm1, %v1713_v38 }
 0xa88   : > { %v1838_v41 = vpop.f32.mrb[18].mxu1  ;;  %6022 = vmatprep.mubr.msk.bf16.mxu0 %vm6485_vm0, %v6483_v3  ;;  %6021 = vmatpush3.bf16.msra.mxu0 %v6276_v7 }
 0xa89   : > { %v1842_v44 = vmul.f32 0.25, %v1838_v41  ;;  %v6014_v47 = vpop.f32.mrb[19].mxu1  ;;  %6036 = vmatprep.subr.bf16.mxu0 %v6483_v3 }
 0xa8b   : > { %v1843_v48 = vadd.f32 %v6738_v63, %v1842_v44 }
 0xa8d   : > { %v1844_v49 = vsel %vm975_vm2, %v1843_v48, -inf }
 0xa8e   : > { %1845 = vmax.xlane.f32.xlu0 %v1844_v49 }
 0xaa4   : > { %1855 = vrot.lane.b32.xlu0 %v6707_v52, %s7488_s29  ;;  %s7498_s29 = smov 16  }
 0xaa8   : > { %1982 = vrot.lane.b32.xlu0 %v6716_v60, %s7486_s20 }
 0xb1b   : > { %v1846_v50 = vpop.xlane.xlu0 %1845 }
 0xb1c   : > { %v1847_v51 = vsub.f32 %v1843_v48, %v1846_v50 }
 0xb1e   : > { %v1848_v53 = vmul.f32 1.442695, %v1847_v51 }
 0xb1f   : > { %v1856_v54 = vpop.permute.xlu0 %1855 }
 0xb20   : > { %6418 = vpow2.f32 %v1848_v53  ;;  %6016 = vmatpush3.msra.mxu1 %v1856_v54 }
 0xb21   : > { %6026 = vmatprep.subr.mxu1 %v6483_v3 }
 0xb23   : > { %v1983_v6 = vpop.permute.xlu0 %1982 }
 0xb2a   : > { %v6419_v56 = vpop.eup %6418 }
 0xb2b   : > { %v1850_v57 = vsel %vm975_vm2, %v6419_v56, 0.0 }
 0xb2c   : > { %1851 = vadd.xlane.f32.xlu1 %v1850_v57 }
 0xb3d   : > { %1984 = vrot.lane.b32.xlu1 %v6709_v55, %s7486_s20 }
 0xb5a   : > { %v1757_v58 = vpop.f32.mrb[20].mxu0 }
 0xb5b   : > { %v1763_v59 = vadd.f32 %v1757_v58, %v1545_v27  ;;  %v6008_v61 = vpop.f32.mrb[21].mxu0 }
 0xb5c   : > { %v1760_v62 = vpop.f32.mrb[22].mxu0 }
 0xb5d   : > { %v6009_v0 = vpop.f32.mrb[23].mxu0 }
 0xbb9   : > { %v1852_v1 = vpop.xlane.xlu1 %1851 }
 0xbba   : > { %6420 = vrcp.f32 %v1852_v1  ;;  %v6278_v1 = vld [vmem:[%s7469_s4 + $0x30] sm:$0xff]  }
 0xbbd   : > { %v1985_v5 = vpop.permute.xlu1 %1984 }
 0xbc4   : > { %v6421_v2 = vpop.eup %6420 }
 0xbc5   : > { %v1854_v4 = vmul.f32 %v6421_v2, %v6419_v56 }
 0xbc7   : > { %6018 = vmatmul.mubr.msk.f32.vlgmr.msra.gmra.mrb[20].mxu1 %vm975_vm2, %v1854_v4 }
 0xbc8   : > { %6027 = vmatpush3.xpose.msk.msra.mxu1 %vm896_vm1, %v1985_v5  ;;  %6028 = vmatprep.mubr.msk.f32.mxu1 %vm6485_vm0, %v6483_v3 }
 0xbc9   : > { %6031 = vmatprep.subr.mxu1 %v6483_v3 }
 0xbcb   : > { %6029 = vmatmul.mubr.msk.f32.vlgmr.msra.gmra.mrb[22].mxu1 %vm896_vm1, %v1983_v6 }
 0xbcc   : > { %6033 = vmatprep.mubr.msk.f32.mxu1 %vm6485_vm0, %v6483_v3 }
 0xc9a   : > { %v1927_v8 = vpop.f32.mrb[20].mxu1 }
 0xc9b   : > { %v1931_v9 = vpack.c.bf16 %v1927_v8, %v1927_v8  ;;  %v6019_v10 = vpop.f32.mrb[21].mxu1 }
 0xc9d   : > { %6023 = vmatmul.mubr.msk.bf16.vlgmr.msra.gmra.mrb[24].mxu0 %vm896_vm1, %v1931_v9 }
 0xc9e   : > { %v2056_v11 = vpop.f32.mrb[22].mxu1  ;;  %6038 = vmatprep.mubr.msk.bf16.mxu0 %vm6485_vm0, %v6483_v3  ;;  %6037 = vmatpush3.bf16.msra.mxu0 %v6277_v33 }
 0xc9f   : > { %v2060_v12 = vmul.f32 0.25, %v2056_v11  ;;  %v6030_v13 = vpop.f32.mrb[23].mxu1  ;;  %6052 = vmatprep.subr.bf16.mxu0 %v6483_v3 }
 0xca1   : > { %v2061_v14 = vadd.f32 %v6738_v63, %v2060_v12 }
 0xca3   : > { %v2062_v15 = vsel %vm975_vm2, %v2061_v14, -inf }
 0xca4   : > { %2063 = vmax.xlane.f32.xlu0 %v2062_v15 }
 0xcba   : > { %2073 = vrot.lane.b32.xlu0 %v6707_v52, %s7486_s20  ;;  %s7496_s20 = smov 48  }
 0xcbe   : > { %2200 = vrot.lane.b32.xlu0 %v6716_v60, %s7484_s25 }
 0xd31   : > { %v2064_v16 = vpop.xlane.xlu0 %2063 }
 0xd32   : > { %v2065_v17 = vsub.f32 %v2061_v14, %v2064_v16 }
 0xd34   : > { %v2066_v18 = vmul.f32 1.442695, %v2065_v17 }
 0xd35   : > { %v2074_v19 = vpop.permute.xlu0 %2073 }
 0xd36   : > { %6422 = vpow2.f32 %v2066_v18  ;;  %6032 = vmatpush3.msra.mxu1 %v2074_v19 }
 0xd37   : > { %6042 = vmatprep.subr.mxu1 %v6483_v3 }
 0xd39   : > { %v2201_v32 = vpop.permute.xlu0 %2200 }
 0xd40   : > { %v6423_v20 = vpop.eup %6422 }
 0xd41   : > { %v2068_v21 = vsel %vm975_vm2, %v6423_v20, 0.0 }
 0xd42   : > { %2069 = vadd.xlane.f32.xlu1 %v2068_v21 }
 0xd53   : > { %2202 = vrot.lane.b32.xlu1 %v6709_v55, %s7484_s25 }
 0xd70   : > { %v1975_v22 = vpop.f32.mrb[24].mxu0 }
 0xd71   : > { %v1981_v23 = vadd.f32 %v1975_v22, %v1763_v59  ;;  %v6024_v24 = vpop.f32.mrb[25].mxu0 }
 0xd72   : > { %v1978_v26 = vpop.f32.mrb[26].mxu0 }
 0xd73   : > { %v6025_v27 = vpop.f32.mrb[27].mxu0 }
 0xdcf   : > { %v2070_v28 = vpop.xlane.xlu1 %2069 }
 0xdd0   : > { %6424 = vrcp.f32 %v2070_v28  ;;  %v5522_v28 = vld [vmem:[%s7470_s5] ss:$0 sm:$0xff] }
 0xdd3   : > { %v2203_v31 = vpop.permute.xlu1 %2202 }
 0xdda   : > { %v6425_v29 = vpop.eup %6424 }
 0xddb   : > { %v2072_v30 = vmul.f32 %v6425_v29, %v6423_v20 }
 0xddd   : > { %6034 = vmatmul.mubr.msk.f32.vlgmr.msra.gmra.mrb[24].mxu1 %vm975_vm2, %v2072_v30 }
 0xdde   : > { %6043 = vmatpush3.xpose.msk.msra.mxu1 %vm896_vm1, %v2203_v31  ;;  %6044 = vmatprep.mubr.msk.f32.mxu1 %vm6485_vm0, %v6483_v3 }
 0xddf   : > { %6047 = vmatprep.subr.mxu1 %v6483_v3 }
 0xde1   : > { %6045 = vmatmul.mubr.msk.f32.vlgmr.msra.gmra.mrb[26].mxu1 %vm896_vm1, %v2201_v32 }
 0xde2   : > { %6049 = vmatprep.mubr.msk.f32.mxu1 %vm6485_vm0, %v6483_v3 }
 0xeb0   : > { %v2145_v34 = vpop.f32.mrb[24].mxu1 }
 0xeb1   : > { %v2149_v35 = vpack.c.bf16 %v2145_v34, %v2145_v34  ;;  %v6035_v36 = vpop.f32.mrb[25].mxu1 }
 0xeb2   : > { %v6280_v36 = vld [vmem:[%s7473_s8] ss:$8 sps:$4 sm:$0xff]  }
 0xeb3   : > { %6039 = vmatmul.mubr.msk.bf16.vlgmr.msra.gmra.mrb[28].mxu0 %vm896_vm1, %v2149_v35 }
 0xeb4   : > { %v2274_v37 = vpop.f32.mrb[26].mxu1  ;;  %6054 = vmatprep.mubr.msk.bf16.mxu0 %vm6485_vm0, %v6483_v3  ;;  %6053 = vmatpush3.bf16.msra.mxu0 %v6278_v1  ;;  %v6307_v1 = vld [vmem:[%s7475_s10 + $0x8] sm:$0xff]  }
 0xeb5   : > { %v2278_v38 = vmul.f32 0.25, %v2274_v37  ;;  %v6046_v40 = vpop.f32.mrb[27].mxu1  ;;  %6068 = vmatprep.subr.bf16.mxu0 %v6483_v3  ;;  %v6282_v37 = vld [vmem:[%s7473_s8 + $0x4] ss:$8 sps:$4 sm:$0xff]  }
 0xeb6   : > { %v6283_v40 = vld [vmem:[%s7473_s8 + $0x10] ss:$8 sps:$4 sm:$0xff]  }
 0xeb7   : > { %v2279_v41 = vadd.f32 %v6738_v63, %v2278_v38  ;;  %v6285_v38 = vld [vmem:[%s7473_s8 + $0x14] ss:$8 sps:$4 sm:$0xff]  }
 0xeb9   : > { %v2280_v44 = vsel %vm975_vm2, %v2279_v41, -inf }
 0xeba   : > { %2281 = vmax.xlane.f32.xlu1 %v2280_v44 }
 0xecb   : > { %2420 = vrot.lane.b32.xlu1 %v6709_v55, %s7482_s0 }
 0xecf   : > { %2418 = vrot.lane.b32.xlu1 %v6716_v60, %s7482_s0 }
 0xf47   : > { %v2282_v47 = vpop.xlane.xlu1 %2281 }
 0xf48   : > { %v2283_v48 = vsub.f32 %v2279_v41, %v2282_v47  ;;  %v6286_v41 = vld [vmem:[%s7473_s8 + $0x20] ss:$8 sps:$4 sm:$0xff]  }
 0xf4a   : > { %v2284_v49 = vmul.f32 1.442695, %v2283_v48 }
 0xf4b   : > { %v2421_v61 = vpop.permute.xlu1 %2420 }
 0xf4c   : > { %6426 = vpow2.f32 %v2284_v49 }
 0xf4f   : > { %v2419_v0 = vpop.permute.xlu1 %2418 }
 0xf56   : > { %v6427_v50 = vpop.eup %6426 }
 0xf57   : > { %v2286_v51 = vsel %vm975_vm2, %v6427_v50, 0.0 }
 0xf58   : > { %2287 = vadd.xlane.f32.xlu0 %v2286_v51  ;;  %v6289_v51 = vld [vmem:[%s7473_s8 + $0x30] ss:$8 sps:$4 sm:$0xff]  }
 0xf6e   : > { %2291 = vrot.lane.b32.xlu0 %v6707_v52, %s7484_s25 }
 0xf86   : > { %v2193_v53 = vpop.f32.mrb[28].mxu0 }
 0xf87   : > { %v2199_v54 = vadd.f32 %v2193_v53, %v1981_v23  ;;  %v6040_v56 = vpop.f32.mrb[29].mxu0  ;;  %v6294_v53 = vld [vmem:[%s7473_s8 + $0x44] ss:$8 sps:$4 sm:$0xff]  }
 0xf88   : > { %v2196_v57 = vpop.f32.mrb[30].mxu0  ;;  %v6297_v56 = vld [vmem:[%s7473_s8 + $0x54] ss:$8 sps:$4 sm:$0xff]  }
 0xf89   : > { %v6041_v58 = vpop.f32.mrb[31].mxu0  ;;  %v6295_v57 = vld [vmem:[%s7473_s8 + $0x50] ss:$8 sps:$4 sm:$0xff]  }
 0xf8a   : > { %v6300_v58 = vld [vmem:[%s7473_s8 + $0x64] ss:$8 sps:$4 sm:$0xff]  }
 0xfe5   : > { %v2288_v55 = vpop.xlane.xlu0 %2287 }
 0xfe6   : > { %6428 = vrcp.f32 %v2288_v55  ;;  %v6298_v55 = vld [vmem:[%s7473_s8 + $0x60] ss:$8 sps:$4 sm:$0xff]  }
 0xfe9   : > { %v2292_v59 = vpop.permute.xlu0 %2291 }
 0xfea   : > { %6048 = vmatpush3.msra.mxu1 %v2292_v59  ;;  %v6303_v59 = vld [vmem:[%s7473_s8 + $0x74] ss:$8 sps:$4 sm:$0xff]  }
 0xfeb   : > { %6058 = vmatprep.subr.mxu1 %v6483_v3 }
 0xff0   : > { %v6429_v60 = vpop.eup %6428 }
 0xff1   : > { %v2290_v62 = vmul.f32 %v6429_v60, %v6427_v50  ;;  %v6291_v50 = vld [vmem:[%s7473_s8 + $0x34] ss:$8 sps:$4 sm:$0xff]   ;;  %v6301_v60 = vld [vmem:[%s7473_s8 + $0x70] ss:$8 sps:$4 sm:$0xff]  }
 0xff3   : > { %6050 = vmatmul.mubr.msk.f32.vlgmr.msra.gmra.mrb[28].mxu1 %vm975_vm2, %v2290_v62  ;;  %v6305_v62 = vld [vmem:[%s7475_s10] sm:$0xff]  }
 0xff4   : > { %6059 = vmatpush3.xpose.msk.msra.mxu1 %vm896_vm1, %v2421_v61  ;;  %6060 = vmatprep.mubr.msk.f32.mxu1 %vm6485_vm0, %v6483_v3  ;;  %v6304_v61 = vld [vmem:[%s7475_s10 + $0x40] sm:$0xff]  }
 0xff5   : > { %6063 = vmatprep.subr.mxu1 %v6483_v3 }
 0xff7   : > { %6061 = vmatmul.mubr.msk.f32.vlgmr.msra.gmra.mrb[30].mxu1 %vm896_vm1, %v2419_v0  ;;  %v6306_v0 = vld [vmem:[%s7475_s10 + $0x48] sm:$0xff]  }
 0xff8   : > { %6065 = vmatprep.mubr.msk.f32.mxu1 %vm6485_vm0, %v6483_v3 }
0x10c6   : > { %v2363_v2 = vpop.f32.mrb[28].mxu1 }
0x10c7   : > { %v2367_v4 = vpack.c.bf16 %v2363_v2, %v2363_v2  ;;  %v6051_v5 = vpop.f32.mrb[29].mxu1  ;;  %v6308_v2 = vld [vmem:[%s7475_s10 + $0x50] sm:$0xff]  }
0x10c8   : > { %v6310_v5 = vld [vmem:[%s7475_s10 + $0x58] sm:$0xff]  }
0x10c9   : > { %6055 = vmatmul.mubr.msk.bf16.vlgmr.msra.gmra.mrb[32].mxu0 %vm896_vm1, %v2367_v4  ;;  %v6309_v4 = vld [vmem:[%s7475_s10 + $0x10] sm:$0xff]  }
0x10ca   : > { %v2492_v6 = vpop.f32.mrb[30].mxu1  ;;  %6070 = vmatprep.mubr.msk.bf16.mxu0 %vm6485_vm0, %v6483_v3 }
0x10cb   : > { %v2496_v7 = vmul.f32 0.25, %v2492_v6  ;;  %v6062_v8 = vpop.f32.mrb[31].mxu1  ;;  %v6311_v6 = vld [vmem:[%s7475_s10 + $0x18] sm:$0xff]  }
0x10cc   : > { %v6313_v8 = vld [vmem:[%s7475_s10 + $0x20] sm:$0xff]  }
0x10cd   : > { %v2497_v9 = vadd.f32 %v6738_v63, %v2496_v7  ;;  %v6279_v63 = vld [vmem:[%s7469_s4 + $0x38] sm:$0xff]   ;;  %v6312_v7 = vld [vmem:[%s7475_s10 + $0x60] sm:$0xff]  }
0x10ce   : > { %6069 = vmatpush3.bf16.msra.mxu0 %v6279_v63  ;;  %v5524_v63 = vld [vmem:[%s7472_s7] ss:$0 sm:$0xff] }
0x10cf   : > { %v2498_v10 = vsel %vm975_vm2, %v2497_v9, -inf  ;;  %5825 = vmatprep.subr.bf16.mxu0 %v6304_v61 }
0x10d0   : > { %2499 = vmax.xlane.f32.xlu0 %v2498_v10  ;;  %v6315_v10 = vld [vmem:[%s7475_s10 + $0x28] sm:$0xff]  }
0x10e6   : > { %2509 = vrot.lane.b32.xlu0 %v6707_v52, %s7482_s0 }
0x115d   : > { %v2500_v11 = vpop.xlane.xlu0 %2499 }
0x115e   : > { %v2501_v12 = vsub.f32 %v2497_v9, %v2500_v11  ;;  %v6314_v9 = vld [vmem:[%s7475_s10 + $0x68] sm:$0xff]  }
0x1160   : > { %v2502_v13 = vmul.f32 1.442695, %v2501_v12 }
0x1161   : > { %v2510_v14 = vpop.permute.xlu0 %2509 }
0x1162   : > { %6430 = vpow2.f32 %v2502_v13  ;;  %6064 = vmatpush3.msra.mxu1 %v2510_v14 }
0x1163   : > { %2761 = vmatprep.subr.bf16.mxu1 %v6282_v37 }
0x116c   : > { %v6431_v15 = vpop.eup %6430 }
0x116d   : > { %v2504_v16 = vsel %vm975_vm2, %v6431_v15, 0.0 }
0x116e   : > { %2505 = vadd.xlane.f32.xlu1 %v2504_v16 }
0x119c   : > { %v2411_v17 = vpop.f32.mrb[32].mxu0 }
0x119d   : > { %v2417_v18 = vadd.f32 %v2411_v17, %v2199_v54  ;;  %v6056_v19 = vpop.f32.mrb[33].mxu0  ;;  %v6292_v54 = vld [vmem:[%s7473_s8 + $0x40] ss:$8 sps:$4 sm:$0xff]  }
0x119e   : > { %v2414_v20 = vpop.f32.mrb[34].mxu0 }
0x119f   : > { %v6057_v52 = vpop.f32.mrb[35].mxu0  ;;  %v6316_v20 = vld [vmem:[%s7475_s10 + $0x70] sm:$0xff]  }
0x11a0   : > { %v6317_v52 = vld [vmem:[%s7475_s10 + $0x30] sm:$0xff]  }
0x11fb   : > { %v2506_v21 = vpop.xlane.xlu1 %2505 }
0x11fc   : > { %6432 = vrcp.f32 %v2506_v21  ;;  %v6318_v21 = vld [vmem:[%s7475_s10 + $0x78] sm:$0xff]  }
0x1206   : > { %v6433_v22 = vpop.eup %6432 }
0x1207   : > { %v2508_v23 = vmul.f32 %v6433_v22, %v6431_v15  ;;  %v5523_v15 = vld [vmem:[%s7471_s6] ss:$0 sm:$0xff]  ;;  %v6319_v22 = vld [vmem:[%s7475_s10 + $0x38] sm:$0xff]  }
0x1209   : > { %6066 = vmatmul.mubr.msk.f32.vlgmr.msra.gmra.mrb[32].mxu1 %vm975_vm2, %v2508_v23  ;;  %v628_v23 = vld [vmem:[%s7474_s9] sm:$0x3] }
0x120a   : > { %2793 = vmatprep.mubr.bf16.mxu1 %v6484_v25  ;;  %2762 = vmatpush1.bf16.msra.mxu1 %v6280_v36 }
0x120b   : > { %2763 = vmatprep.subr.bf16.mxu1 %v6285_v38  ;;  %v5541_v38 = vld [vmem:[%s7476_s11] ss:$0 sm:$0xff] }
0x120e   : > { %2764 = vmatpush1.bf16.msra.mxu1 %v6283_v40 }
0x12dc   : > { %v2581_v24 = vpop.f32.mrb[32].mxu1 }
0x12dd   : > { %v2585_v26 = vpack.c.bf16 %v2581_v24, %v2581_v24  ;;  %v6067_v27 = vpop.f32.mrb[33].mxu1  ;;  %v2674_v24 = vrot.slane %v628_v23, %v6701_v46 }
0x12df   : > { %6071 = vmatmul.mubr.msk.bf16.vlgmr.msra.gmra.mrb[36].mxu0 %vm896_vm1, %v2585_v26  ;;  %v2678_v26 = vrot.slane %v628_v23, %v6698_v45 }
0x12e0   : > { %5826 = vmatpush3.bf16.msra.mxu0 %v6305_v62  ;;  %v6331_v62 = vld [vmem:[%s7467_s2 + $0xf8] ss:$12 sps:$4 sm:$0xff]  }
0x12e1   : > { %5827 = vmatprep.subr.bf16.mxu0 %v6306_v0  ;;  %v6334_v0 = vld [vmem:[%s7467_s2 + $0x10c] ss:$12 sps:$4 sm:$0xff]  }
0x12e4   : > { %5828 = vmatpush3.bf16.msra.mxu0 %v6307_v1  ;;  %v6332_v1 = vld [vmem:[%s7467_s2 + $0x108] ss:$12 sps:$4 sm:$0xff]  }
0x12e5   : > { %5829 = vmatprep.subr.bf16.mxu0 %v6308_v2  ;;  %v6335_v2 = vld [vmem:[%s7467_s2 + $0x110] ss:$12 sps:$4 sm:$0xff]  }
0x12e8   : > { %5830 = vmatpush3.bf16.msra.mxu0 %v6309_v4  ;;  %v6338_v4 = vld [vmem:[%s7467_s2 + $0x124] ss:$12 sps:$4 sm:$0xff]  }
0x12e9   : > { %5831 = vmatprep.subr.bf16.mxu0 %v6310_v5  ;;  %v6336_v5 = vld [vmem:[%s7467_s2 + $0x120] ss:$12 sps:$4 sm:$0xff]  }
0x12ec   : > { %5832 = vmatpush3.bf16.msra.mxu0 %v6311_v6  ;;  %v6339_v6 = vld [vmem:[%s7467_s2 + $0x128] ss:$12 sps:$4 sm:$0xff]  }
0x12ed   : > { %5833 = vmatprep.subr.bf16.mxu0 %v6312_v7  ;;  %v6342_v7 = vld [vmem:[%s7467_s2 + $0x13c] ss:$12 sps:$4 sm:$0xff]  }
0x12f0   : > { %5834 = vmatpush3.bf16.msra.mxu0 %v6313_v8  ;;  %v6340_v8 = vld [vmem:[%s7467_s2 + $0x138] ss:$12 sps:$4 sm:$0xff]  }
0x12f1   : > { %5835 = vmatprep.subr.bf16.mxu0 %v6314_v9  ;;  %v6343_v9 = vld [vmem:[%s7467_s2 + $0x140] ss:$12 sps:$4 sm:$0xff]  }
0x12f4   : > { %5836 = vmatpush3.bf16.msra.mxu0 %v6315_v10  ;;  %v6346_v10 = vld [vmem:[%s7467_s2 + $0x154] ss:$12 sps:$4 sm:$0xff]  }
0x12f5   : > { %5837 = vmatprep.subr.bf16.mxu0 %v6316_v20 }
0x12f8   : > { %5838 = vmatpush3.bf16.msra.mxu0 %v6317_v52  ;;  %v5559_v52 = vld [vmem:[%s7478_s13] ss:$0 sm:$0xff] }
0x12f9   : > { %5839 = vmatprep.subr.bf16.mxu0 %v6318_v21 }
0x12fc   : > { %5840 = vmatpush3.bf16.msra.mxu0 %v6319_v22 }
0x12fd   : > { %6074 = vmatprep.subr.bf16.mxu0 %v6483_v3 }
0x13b2   : > { %v2629_v29 = vpop.f32.mrb[36].mxu0 }
0x13b3   : > { %v2635_v30 = vadd.f32 %v2629_v29, %v2417_v18  ;;  %v6072_v31 = vpop.f32.mrb[37].mxu0 }
0x13b4   : > { %v2632_v32 = vpop.f32.mrb[38].mxu0 }
0x13b5   : > { %v2642_v33 = vadd.f32 %v5522_v28, %v2635_v30  ;;  %v6073_v34 = vpop.f32.mrb[39].mxu0 }
0x13b7   : > { %v2643_v35 = vadd.f32 %v2642_v33, %v6683_v39  ;;  %v6288_v39 = vld [vmem:[%s7473_s8 + $0x24] ss:$8 sps:$4 sm:$0xff]  }
0x13b8   : > { %2765 = vmatprep.subr.bf16.mxu1 %v6288_v39 }
0x13b9   : > { %2644 = vadd.xlane.f32.xlu1 %v2643_v35  ;;  %2766 = vmatpush1.bf16.msra.mxu1 %v6286_v41 }
0x13ba   : > { %2767 = vmatprep.subr.bf16.mxu1 %v6291_v50  ;;  %v6322_v50 = vld [vmem:[%s7467_s2 + $0xc4] ss:$12 sps:$4 sm:$0xff]  }
0x13bd   : > { %2768 = vmatpush1.bf16.msra.mxu1 %v6289_v51  ;;  %v6323_v51 = vld [vmem:[%s7467_s2 + $0xc8] ss:$12 sps:$4 sm:$0xff]  }
0x13be   : > { %2769 = vmatprep.subr.bf16.mxu1 %v6294_v53  ;;  %v6326_v53 = vld [vmem:[%s7467_s2 + $0xdc] ss:$12 sps:$4 sm:$0xff]  }
0x13c1   : > { %2770 = vmatpush1.bf16.msra.mxu1 %v6292_v54  ;;  %v6327_v54 = vld [vmem:[%s7467_s2 + $0xe0] ss:$12 sps:$4 sm:$0xff]  }
0x13c2   : > { %2771 = vmatprep.subr.bf16.mxu1 %v6297_v56  ;;  %v6324_v56 = vld [vmem:[%s7467_s2 + $0xd8] ss:$12 sps:$4 sm:$0xff]  }
0x13c5   : > { %2772 = vmatpush1.bf16.msra.mxu1 %v6295_v57  ;;  %v6330_v57 = vld [vmem:[%s7467_s2 + $0xf4] ss:$12 sps:$4 sm:$0xff]  }
0x13c6   : > { %2773 = vmatprep.subr.bf16.mxu1 %v6300_v58  ;;  %v6328_v58 = vld [vmem:[%s7467_s2 + $0xf0] ss:$12 sps:$4 sm:$0xff]  }
0x13c9   : > { %2774 = vmatpush1.bf16.msra.mxu1 %v6298_v55 }
0x13ca   : > { %2775 = vmatprep.subr.bf16.mxu1 %v6303_v59 }
0x13cd   : > { %2776 = vmatpush1.bf16.msra.mxu1 %v6301_v60 }
0x13ce   : > { %3235 = vmatprep.subr.bf16.mxu1 %v6322_v50 }
0x1446   : > { %v2645_v44 = vpop.xlane.xlu1 %2644 }
0x1447   : > { %v2646_v47 = vmul.f32 0.0078125, %v2645_v44 }
0x1449   : > { %v2647_v48 = vsub.f32 %v2643_v35, %v2646_v47 }
0x144b   : > { %v2648_v49 = vmul.f32 %v2647_v48, %v2647_v48 }
0x144d   : > { %2649 = vadd.xlane.f32.xlu1 %v2648_v49  ;;  %v6320_v49 = vld [vmem:[%s7467_s2 + $0xc0] ss:$12 sps:$4 sm:$0xff]  }
0x14da   : > { %v2650_v11 = vpop.xlane.xlu1 %2649 }
0x14db   : > { %v2651_v12 = vmul.f32 0.0078125, %v2650_v11  ;;  %v6344_v11 = vld [vmem:[%s7467_s2 + $0x150] ss:$12 sps:$4 sm:$0xff]  }
0x14dd   : > { %v2652_v13 = vadd.f32 1e-05, %v2651_v12  ;;  %v6347_v12 = vld [vmem:[%s7467_s2 + $0x158] ss:$12 sps:$4 sm:$0xff]  }
0x14df   : > { %6434 = vrsqrt.f32 %v2652_v13  ;;  %v6350_v13 = vld [vmem:[%s7467_s2 + $0x16c] ss:$12 sps:$4 sm:$0xff]  }
0x14e9   : > { %v6435_v14 = vpop.eup %6434 }
0x14ea   : > { %v2654_v16 = vmul.f32 %v6435_v14, %v2647_v48  ;;  %v6348_v14 = vld [vmem:[%s7467_s2 + $0x168] ss:$12 sps:$4 sm:$0xff]  }
0x14ec   : > { %v2661_v17 = vmul.f32 %v5523_v15, %v2654_v16  ;;  %v6351_v15 = vld [vmem:[%s7467_s2 + $0x170] ss:$12 sps:$4 sm:$0xff]  }
0x14ee   : > { %v2668_v18 = vadd.f32 %v5524_v63, %v2661_v17 }
0x14f0   : > { %v2669_v19 = vpack.c.bf16 %v2668_v18, %v2668_v18 }
0x14f2   : > { %2794 = vmatmul.mubr.bf16.vlgmr.msra.gmra.mrb[36].mxu1 %v2669_v19  ;;  %v5558_v19 = vld [vmem:[%s7477_s12] ss:$0 sm:$0xff] }
0x14f3   : > { %3267 = vmatprep.mubr.bf16.mxu1 %v6484_v25  ;;  %3236 = vmatpush1.bf16.msra.mxu1 %v6320_v49 }
0x14f4   : > { %3237 = vmatprep.subr.bf16.mxu1 %v6326_v53 }
0x14f7   : > { %3238 = vmatpush1.bf16.msra.mxu1 %v6324_v56 }
0x14f8   : > { %3239 = vmatprep.subr.bf16.mxu1 %v6330_v57 }
0x14fb   : > { %3240 = vmatpush1.bf16.msra.mxu1 %v6328_v58 }
0x14fc   : > { %3241 = vmatprep.subr.bf16.mxu1 %v6334_v0 }
0x14ff   : > { %3242 = vmatpush1.bf16.msra.mxu1 %v6332_v1 }
0x1500   : > { %3243 = vmatprep.subr.bf16.mxu1 %v6338_v4 }
0x1503   : > { %3244 = vmatpush1.bf16.msra.mxu1 %v6336_v5 }
0x1504   : > { %3245 = vmatprep.subr.bf16.mxu1 %v6342_v7  ;;  %v6353_v7 = vld [vmem:[%s7469_s4 + $0x48] sm:$0xff]  }
0x1507   : > { %3246 = vmatpush1.bf16.msra.mxu1 %v6340_v8 }
0x1508   : > { %3247 = vmatprep.subr.bf16.mxu1 %v6346_v10 }
0x150b   : > { %3248 = vmatpush1.bf16.msra.mxu1 %v6344_v11  ;;  %v6352_v11 = vld [vmem:[%s7469_s4 + $0x40] sm:$0xff]  }
0x150c   : > { %3249 = vmatprep.subr.bf16.mxu1 %v6350_v13 }
0x150f   : > { %3250 = vmatpush1.bf16.msra.mxu1 %v6348_v14 }
0x1510   : > { %6094 = vmatprep.subr.mxu1 %v6483_v3 }
0x15c5   : > { %v2795_v27 = vpop.f32.mrb[36].mxu1 }
0x15c6   : > { %v2796_v28 = vadd.f32 %v2795_v27, %v2674_v24  ;;  %v2797_v29 = vpop.f32.mrb[37].mxu1  ;;  %v5592_v24 = vld [vmem:[%s7468_s3 + $0x3] sm:$0x7] }
0x15c7   : > { %v2798_v30 = vadd.f32 %v2797_v29, %v2678_v26  ;;  %v2799_v31 = vpop.f32.mrb[38].mxu1  ;;  %v3095_v26 = vrot.slane %v5592_v24, %v6701_v46  ;;  %v3103_v27 = vrot.slane %v5592_v24, %v676_v43 }
0x15c8   : > { %v2802_v32 = vmax.f32 %v2796_v28, 0.0  ;;  %v2800_v33 = vpop.f32.mrb[39].mxu1  ;;  %v3099_v28 = vrot.slane %v5592_v24, %v6698_v45 }
0x15c9   : > { %v2803_v34 = vmax.f32 %v2798_v30, 0.0 }
0x15ca   : > { %v2804_v36 = vpack.c.bf16 %v2802_v32, %v2802_v32 }
0x15cb   : > { %v2805_v35 = vpack.c.bf16 %v2803_v34, %v2803_v34 }
0x15cd   : > { %2940 = vmatprep.mubr.bf16.mxu0 %v2805_v35 }
0x15ce   : > { %2941 = vmatmul.mubr.bf16.vlgmr.msra.gmra.mrb[40].mxu0 %v2804_v36 }
0x15cf   : > { %6090 = vmatprep.mubr.msk.bf16.mxu0 %vm6485_vm0, %v6483_v3  ;;  %6075 = vmatpush3.bf16.msra.mxu0 %v6323_v51 }
0x15d0   : > { %6076 = vmatprep.subr.bf16.mxu0 %v6483_v3 }
0x15d3   : > { %6077 = vmatpush3.bf16.msra.mxu0 %v6327_v54 }
0x15d4   : > { %6078 = vmatprep.subr.bf16.mxu0 %v6483_v3 }
0x15d7   : > { %6079 = vmatpush3.bf16.msra.mxu0 %v6331_v62 }
0x15d8   : > { %6080 = vmatprep.subr.bf16.mxu0 %v6483_v3 }
0x15db   : > { %6081 = vmatpush3.bf16.msra.mxu0 %v6335_v2 }
0x15dc   : > { %6082 = vmatprep.subr.bf16.mxu0 %v6483_v3 }
0x15df   : > { %6083 = vmatpush3.bf16.msra.mxu0 %v6339_v6 }
0x15e0   : > { %6084 = vmatprep.subr.bf16.mxu0 %v6483_v3 }
0x15e3   : > { %6085 = vmatpush3.bf16.msra.mxu0 %v6343_v9 }
0x15e4   : > { %6086 = vmatprep.subr.bf16.mxu0 %v6483_v3 }
0x15e7   : > { %6087 = vmatpush3.bf16.msra.mxu0 %v6347_v12 }
0x15e8   : > { %6088 = vmatprep.subr.bf16.mxu0 %v6483_v3 }
0x15eb   : > { %6089 = vmatpush3.bf16.msra.mxu0 %v6351_v15 }
0x15ec   : > { %6099 = vmatprep.subr.mxu0 %v6483_v3 }
0x16a1   : > { %v5841_v37 = vpop.f32.mrb[40].mxu0 }
0x16a2   : > { %v5842_v40 = vpop.f32.mrb[41].mxu0 }
0x16a3   : > { %v5843_v39 = vadd.f32 %v5842_v40, %v5841_v37  ;;  %v5844_v41 = vpop.f32.mrb[42].mxu0 }
0x16a4   : > { %v5845_v44 = vpop.f32.mrb[43].mxu0 }
0x16a5   : > { %v2943_v47 = vadd.f32 %v5843_v39, %v5541_v38 }
0x16a7   : > { %v2948_v48 = vadd.f32 %v2943_v47, %v2668_v18  ;;  %v7162_v47 = vld [vmem:[%s6735_s18] ss:$0 sm:$0xff]  ;;  %s7497_s18 = smov 32  }
0x16a9   : > { %2949 = vadd.xlane.f32.xlu1 %v2948_v48 }
0x1736   : > { %v2950_v55 = vpop.xlane.xlu1 %2949 }
0x1737   : > { %v2951_v59 = vmul.f32 0.0078125, %v2950_v55 }
0x1739   : > { %v2952_v60 = vsub.f32 %v2948_v48, %v2951_v59 }
0x173b   : > { %v2953_v61 = vmul.f32 %v2952_v60, %v2952_v60 }
0x173d   : > { %2954 = vadd.xlane.f32.xlu1 %v2953_v61 }
0x17ca   : > { %v2955_v16 = vpop.xlane.xlu1 %2954 }
0x17cb   : > { %v2956_v63 = vmul.f32 0.0078125, %v2955_v16 }
0x17cd   : > { %v2957_v17 = vadd.f32 1e-05, %v2956_v63 }
0x17cf   : > { %6436 = vrsqrt.f32 %v2957_v17 }
0x17d9   : > { %v6437_v18 = vpop.eup %6436 }
0x17da   : > { %v2959_v20 = vmul.f32 %v6437_v18, %v2952_v60 }
0x17dc   : > { %v2966_v21 = vmul.f32 %v5558_v19, %v2959_v20 }
0x17de   : > { %v7122_v22 = vadd.f32 %v5559_v52, %v2966_v21 }
0x17e0   : > { %v3090_v23 = vpack.c.bf16 %v7122_v22, %v7122_v22 }
0x17e2   : > { %3268 = vmatmul.mubr.bf16.vlgmr.msra.gmra.mrb[40].mxu1 %v3090_v23  ;;  %6091 = vmatmul.mubr.bf16.vlgmr.msra.gmra.mrb[44].mxu0 %v3090_v23 }
0x17e3   : > { %6096 = vmatprep.mubr.msk.f32.mxu1 %vm6485_vm0, %v6483_v3  ;;  %6101 = vmatprep.mubr.msk.f32.mxu0 %vm6485_vm0, %v6483_v3 }
0x18b5   : > { %v3269_v29 = vpop.f32.mrb[40].mxu1  ;;  %v3310_v30 = vpop.f32.mrb[44].mxu0 }
0x18b6   : > { %v7137_v31 = vadd.f32 %v3269_v29, %v3095_v26  ;;  %v7139_v32 = vadd.f32 %v3310_v30, %v3103_v27  ;;  %v3271_v33 = vpop.f32.mrb[41].mxu1  ;;  %v6092_v34 = vpop.f32.mrb[45].mxu0 }
0x18b7   : > { %v7141_v35 = vadd.f32 %v3271_v33, %v3099_v28  ;;  %v3273_v36 = vpop.f32.mrb[42].mxu1  ;;  %v3313_v37 = vpop.f32.mrb[46].mxu0 }
0x18b8   : > { %v3274_v38 = vpop.f32.mrb[43].mxu1  ;;  %v6093_v40 = vpop.f32.mrb[47].mxu0  ;;  %6100 = vmatpush3.msra.mxu0 %v7139_v32  ;;  %3479 = vrot.lane.b32.xlu1 %v7137_v31, %s6486_s30 }
0x18b9   : > { %3481 = vrot.lane.b32.xlu0 %v7141_v35, %s6486_s30  ;;  %6095 = vmatpush3.xpose.msk.msra.mxu1 %vm896_vm1, %v7141_v35 }
0x18ba   : > { %6104 = vmatprep.subr.mxu1 %v6483_v3  ;;  %6109 = vmatprep.subr.mxu0 %v6483_v3 }
0x18bc   : > { %6097 = vmatmul.mubr.msk.f32.vlgmr.msra.gmra.mrb[34].mxu1 %vm896_vm1, %v7137_v31 }
0x18bd   : > { %6106 = vmatprep.mubr.msk.f32.mxu1 %vm6485_vm0, %v6483_v3 }
0x192a   : > { %v3480_v43 = vpop.permute.xlu1 %3479 }
0x192b   : > { %v3482_v42 = vpop.permute.xlu0 %3481 }
0x192c   : > { %6105 = vmatpush3.xpose.msk.msra.mxu1 %vm896_vm1, %v3482_v42 }
0x192d   : > { %6114 = vmatprep.subr.bf16.mxu1 %v6483_v3 }
0x192f   : > { %6107 = vmatmul.mubr.msk.f32.vlgmr.msra.gmra.mrb[44].mxu1 %vm896_vm1, %v3480_v43 }
0x1930   : > { %6116 = vmatprep.mubr.msk.bf16.mxu1 %vm6485_vm0, %v6483_v3  ;;  %6115 = vmatpush3.bf16.msra.mxu1 %v6353_v7 }
0x1931   : > { %6126 = vmatprep.subr.mxu1 %v6483_v3 }
0x198f   : > { %v3388_v39 = vpop.f32.mrb[34].mxu1 }
0x1990   : > { %v3392_v41 = vmul.f32 0.25, %v3388_v39  ;;  %v6098_v44 = vpop.f32.mrb[35].mxu1 }
0x1992   : > { %v3393_v48 = vadd.f32 %v7162_v47, %v3392_v41 }
0x1994   : > { %v3394_v49 = vsel %vm975_vm2, %v3393_v48, -inf }
0x1995   : > { %3395 = vmax.xlane.f32.xlu0 %v3394_v49 }
0x1a02   : > { %v3553_v50 = vpop.f32.mrb[44].mxu1 }
0x1a03   : > { %v3557_v51 = vmul.f32 0.25, %v3553_v50  ;;  %v6108_v53 = vpop.f32.mrb[45].mxu1 }
0x1a04   : > { %v6354_v53 = vld [vmem:[%s7469_s4 + $0x50] sm:$0xff]  }
0x1a05   : > { %v3558_v54 = vadd.f32 %v7162_v47, %v3557_v51 }
0x1a07   : > { %v3559_v56 = vsel %vm975_vm2, %v3558_v54, -inf }
0x1a08   : > { %3560 = vmax.xlane.f32.xlu1 %v3559_v56 }
0x1a19   : > { %3748 = vrot.lane.b32.xlu1 %v7141_v35, %s6487_s19 }
0x1a22   : > { %v3396_v57 = vpop.xlane.xlu0 %3395 }
0x1a23   : > { %v3397_v58 = vsub.f32 %v3393_v48, %v3396_v57 }
0x1a25   : > { %v3398_v55 = vmul.f32 1.442695, %v3397_v58 }
0x1a27   : > { %6438 = vpow2.f32 %v3398_v55 }
0x1a31   : > { %v6439_v59 = vpop.eup %6438 }
0x1a32   : > { %v3400_v60 = vsel %vm975_vm2, %v6439_v59, 0.0 }
0x1a33   : > { %3401 = vadd.xlane.f32.xlu0 %v3400_v60 }
0x1a95   : > { %v3561_v61 = vpop.xlane.xlu1 %3560 }
0x1a96   : > { %v3562_v62 = vsub.f32 %v3558_v54, %v3561_v61 }
0x1a98   : > { %v3563_v0 = vmul.f32 1.442695, %v3562_v62 }
0x1a99   : > { %v3749_v18 = vpop.permute.xlu1 %3748 }
0x1a9a   : > { %6440 = vpow2.f32 %v3563_v0 }
0x1aa4   : > { %v6441_v1 = vpop.eup %6440 }
0x1aa5   : > { %v3565_v2 = vsel %vm975_vm2, %v6441_v1, 0.0 }
0x1aa6   : > { %3566 = vadd.xlane.f32.xlu0 %v3565_v2 }
0x1abc   : > { %3571 = vrot.lane.b32.xlu0 %v7139_v32, %s6486_s30 }
0x1ac0   : > { %v3402_v4 = vpop.xlane.xlu0 %3401  ;;  %3746 = vrot.lane.b32.xlu0 %v7137_v31, %s6487_s19 }
0x1ac1   : > { %6442 = vrcp.f32 %v3402_v4 }
0x1acb   : > { %v6443_v5 = vpop.eup %6442 }
0x1acc   : > { %v3404_v6 = vmul.f32 %v6443_v5, %v6439_v59 }
0x1ace   : > { %6102 = vmatmul.mubr.msk.f32.vlgmr.msra.gmra.mrb[14].mxu0 %vm975_vm2, %v3404_v6 }
0x1acf   : > { %6111 = vmatprep.mubr.msk.f32.mxu0 %vm6485_vm0, %v6483_v3 }
0x1b33   : > { %v3567_v8 = vpop.xlane.xlu0 %3566 }
0x1b34   : > { %6444 = vrcp.f32 %v3567_v8 }
0x1b37   : > { %v3572_v9 = vpop.permute.xlu0 %3571 }
0x1b38   : > { %6110 = vmatpush3.msra.mxu0 %v3572_v9 }
0x1b39   : > { %6120 = vmatprep.subr.bf16.mxu0 %v6483_v3 }
0x1b3b   : > { %v3747_v19 = vpop.permute.xlu0 %3746 }
0x1b3e   : > { %v6445_v10 = vpop.eup %6444 }
0x1b3f   : > { %v3569_v12 = vmul.f32 %v6445_v10, %v6441_v1 }
0x1b41   : > { %6112 = vmatmul.mubr.msk.f32.vlgmr.msra.gmra.mrb[48].mxu0 %vm975_vm2, %v3569_v12 }
0x1b42   : > { %6121 = vmatpush3.bf16.msra.mxu0 %v6352_v11  ;;  %6122 = vmatprep.mubr.msk.bf16.mxu0 %vm6485_vm0, %v6483_v3 }
0x1b43   : > { %6131 = vmatprep.subr.mxu0 %v6483_v3 }
0x1ba1   : > { %v3474_v13 = vpop.f32.mrb[14].mxu0 }
0x1ba2   : > { %v3478_v14 = vpack.c.bf16 %v3474_v13, %v3474_v13  ;;  %v6103_v15 = vpop.f32.mrb[15].mxu0 }
0x1ba4   : > { %6123 = vmatmul.mubr.msk.bf16.vlgmr.msra.gmra.mrb[52].mxu0 %vm896_vm1, %v3478_v14 }
0x1ba5   : > { %6133 = vmatprep.mubr.msk.f32.mxu0 %vm6485_vm0, %v6483_v3 }
0x1c14   : > { %v3643_v16 = vpop.f32.mrb[48].mxu0 }
0x1c15   : > { %v3647_v63 = vpack.c.bf16 %v3643_v16, %v3643_v16  ;;  %v6113_v17 = vpop.f32.mrb[49].mxu0  ;;  %v6355_v16 = vld [vmem:[%s7469_s4 + $0x58] sm:$0xff]  }
0x1c17   : > { %6117 = vmatmul.mubr.msk.bf16.vlgmr.msra.gmra.mrb[48].mxu1 %vm896_vm1, %v3647_v63 }
0x1c18   : > { %6127 = vmatpush3.xpose.msk.msra.mxu1 %vm896_vm1, %v3749_v18  ;;  %6128 = vmatprep.mubr.msk.f32.mxu1 %vm6485_vm0, %v6483_v3 }
0x1c19   : > { %6136 = vmatprep.subr.bf16.mxu1 %v6483_v3 }
0x1c1f   : > { %6129 = vmatmul.mubr.msk.f32.vlgmr.msra.gmra.mrb[46].mxu1 %vm896_vm1, %v3747_v19 }
0x1c20   : > { %6138 = vmatprep.mubr.msk.bf16.mxu1 %vm6485_vm0, %v6483_v3  ;;  %6137 = vmatpush3.bf16.msra.mxu1 %v6354_v53 }
0x1c21   : > { %6152 = vmatprep.subr.bf16.mxu1 %v6483_v3 }
0x1c77   : > { %v3740_v20 = vpop.f32.mrb[52].mxu0 }
0x1c78   : > { %v6124_v52 = vpop.f32.mrb[53].mxu0 }
0x1c79   : > { %v3743_v21 = vpop.f32.mrb[54].mxu0 }
0x1c7a   : > { %v6125_v23 = vpop.f32.mrb[55].mxu0 }
0x1cea   : > { %v3691_v24 = vpop.f32.mrb[48].mxu1 }
0x1ceb   : > { %v3741_v26 = vadd.f32 %v3740_v20, %v3691_v24  ;;  %v6118_v27 = vpop.f32.mrb[49].mxu1 }
0x1cec   : > { %v3694_v28 = vpop.f32.mrb[50].mxu1 }
0x1ced   : > { %v6119_v29 = vpop.f32.mrb[51].mxu1 }
0x1cf2   : > { %v3820_v30 = vpop.f32.mrb[46].mxu1 }
0x1cf3   : > { %v3824_v33 = vmul.f32 0.25, %v3820_v30  ;;  %v6130_v34 = vpop.f32.mrb[47].mxu1 }
0x1cf5   : > { %v3825_v36 = vadd.f32 %v7162_v47, %v3824_v33 }
0x1cf7   : > { %v3826_v37 = vsel %vm975_vm2, %v3825_v36, -inf }
0x1cf8   : > { %3827 = vmax.xlane.f32.xlu0 %v3826_v37 }
0x1d0e   : > { %3837 = vrot.lane.b32.xlu0 %v7139_v32, %s6487_s19 }
0x1d12   : > { %3964 = vrot.lane.b32.xlu0 %v7137_v31, %s7494_s28 }
0x1d85   : > { %v3828_v38 = vpop.xlane.xlu0 %3827 }
0x1d86   : > { %v3829_v40 = vsub.f32 %v3825_v36, %v3828_v38 }
0x1d88   : > { %v3830_v42 = vmul.f32 1.442695, %v3829_v40 }
0x1d89   : > { %v3838_v43 = vpop.permute.xlu0 %3837 }
0x1d8a   : > { %6446 = vpow2.f32 %v3830_v42  ;;  %6132 = vmatpush3.msra.mxu0 %v3838_v43 }
0x1d8b   : > { %6142 = vmatprep.subr.mxu0 %v6483_v3 }
0x1d8d   : > { %v3965_v51 = vpop.permute.xlu0 %3964 }
0x1d94   : > { %v6447_v39 = vpop.eup %6446 }
0x1d95   : > { %v3832_v41 = vsel %vm975_vm2, %v6447_v39, 0.0 }
0x1d96   : > { %3833 = vadd.xlane.f32.xlu1 %v3832_v41 }
0x1da7   : > { %3966 = vrot.lane.b32.xlu1 %v7141_v35, %s7494_s28 }
0x1e23   : > { %v3834_v44 = vpop.xlane.xlu1 %3833 }
0x1e24   : > { %6448 = vrcp.f32 %v3834_v44  ;;  %v6356_v44 = vld [vmem:[%s7469_s4 + $0x60] sm:$0xff]  }
0x1e27   : > { %v3967_v50 = vpop.permute.xlu1 %3966 }
0x1e2e   : > { %v6449_v48 = vpop.eup %6448 }
0x1e2f   : > { %v3836_v49 = vmul.f32 %v6449_v48, %v6447_v39 }
0x1e31   : > { %6134 = vmatmul.mubr.msk.f32.vlgmr.msra.gmra.mrb[50].mxu0 %vm975_vm2, %v3836_v49 }
0x1e32   : > { %6143 = vmatpush3.xpose.msk.msra.mxu0 %vm896_vm1, %v3967_v50  ;;  %6144 = vmatprep.mubr.msk.f32.mxu0 %vm6485_vm0, %v6483_v3 }
0x1e33   : > { %6147 = vmatprep.subr.mxu0 %v6483_v3 }
0x1e35   : > { %6145 = vmatmul.mubr.msk.f32.vlgmr.msra.gmra.mrb[56].mxu0 %vm896_vm1, %v3965_v51 }
0x1e36   : > { %6149 = vmatprep.mubr.msk.f32.mxu0 %vm6485_vm0, %v6483_v3 }
0x1f04   : > { %v3909_v54 = vpop.f32.mrb[50].mxu0 }
0x1f05   : > { %v3913_v56 = vpack.c.bf16 %v3909_v54, %v3909_v54  ;;  %v6135_v57 = vpop.f32.mrb[51].mxu0 }
0x1f07   : > { %6139 = vmatmul.mubr.msk.bf16.vlgmr.msra.gmra.mrb[52].mxu1 %vm896_vm1, %v3913_v56 }
0x1f08   : > { %v4038_v58 = vpop.f32.mrb[56].mxu0  ;;  %6154 = vmatprep.mubr.msk.bf16.mxu1 %vm6485_vm0, %v6483_v3  ;;  %6153 = vmatpush3.bf16.msra.mxu1 %v6355_v16 }
0x1f09   : > { %v4042_v55 = vmul.f32 0.25, %v4038_v58  ;;  %v6146_v59 = vpop.f32.mrb[57].mxu0  ;;  %6168 = vmatprep.subr.bf16.mxu1 %v6483_v3 }
0x1f0b   : > { %v4043_v60 = vadd.f32 %v7162_v47, %v4042_v55 }
0x1f0d   : > { %v4044_v61 = vsel %vm975_vm2, %v4043_v60, -inf }
0x1f0e   : > { %4045 = vmax.xlane.f32.xlu1 %v4044_v61 }
0x1f1f   : > { %4184 = vrot.lane.b32.xlu1 %v7141_v35, %s7495_s23 }
0x1f23   : > { %4182 = vrot.lane.b32.xlu1 %v7137_v31, %s7495_s23 }
0x1f9b   : > { %v4046_v62 = vpop.xlane.xlu1 %4045 }
0x1f9c   : > { %v4047_v0 = vsub.f32 %v4043_v60, %v4046_v62 }
0x1f9e   : > { %v4048_v1 = vmul.f32 1.442695, %v4047_v0 }
0x1f9f   : > { %v4185_v13 = vpop.permute.xlu1 %4184 }
0x1fa0   : > { %6450 = vpow2.f32 %v4048_v1 }
0x1fa3   : > { %v4183_v15 = vpop.permute.xlu1 %4182 }
0x1faa   : > { %v6451_v2 = vpop.eup %6450 }
0x1fab   : > { %v4050_v4 = vsel %vm975_vm2, %v6451_v2, 0.0 }
0x1fac   : > { %4051 = vadd.xlane.f32.xlu0 %v4050_v4 }
0x1fc2   : > { %4055 = vrot.lane.b32.xlu0 %v7139_v32, %s7494_s28 }
0x1fda   : > { %v3957_v5 = vpop.f32.mrb[52].mxu1 }
0x1fdb   : > { %v3963_v6 = vadd.f32 %v3957_v5, %v3741_v26  ;;  %v6140_v7 = vpop.f32.mrb[53].mxu1 }
0x1fdc   : > { %v3960_v8 = vpop.f32.mrb[54].mxu1 }
0x1fdd   : > { %v6141_v9 = vpop.f32.mrb[55].mxu1 }
0x2039   : > { %v4052_v10 = vpop.xlane.xlu0 %4051 }
0x203a   : > { %6452 = vrcp.f32 %v4052_v10 }
0x203d   : > { %v4056_v11 = vpop.permute.xlu0 %4055 }
0x203e   : > { %6148 = vmatpush3.msra.mxu0 %v4056_v11  ;;  %v6357_v11 = vld [vmem:[%s7469_s4 + $0x68] sm:$0xff]  }
0x203f   : > { %6158 = vmatprep.subr.mxu0 %v6483_v3 }
0x2044   : > { %v6453_v12 = vpop.eup %6452 }
0x2045   : > { %v4054_v14 = vmul.f32 %v6453_v12, %v6451_v2 }
0x2047   : > { %6150 = vmatmul.mubr.msk.f32.vlgmr.msra.gmra.mrb[58].mxu0 %vm975_vm2, %v4054_v14 }
0x2048   : > { %6159 = vmatpush3.xpose.msk.msra.mxu0 %vm896_vm1, %v4185_v13  ;;  %6160 = vmatprep.mubr.msk.f32.mxu0 %vm6485_vm0, %v6483_v3 }
0x2049   : > { %6163 = vmatprep.subr.mxu0 %v6483_v3 }
0x204b   : > { %6161 = vmatmul.mubr.msk.f32.vlgmr.msra.gmra.mrb[60].mxu0 %vm896_vm1, %v4183_v15 }
0x204c   : > { %6165 = vmatprep.mubr.msk.f32.mxu0 %vm6485_vm0, %v6483_v3 }
0x211a   : > { %v4127_v63 = vpop.f32.mrb[58].mxu0 }
0x211b   : > { %v4131_v17 = vpack.c.bf16 %v4127_v63, %v4127_v63  ;;  %v6151_v18 = vpop.f32.mrb[59].mxu0 }
0x211d   : > { %6155 = vmatmul.mubr.msk.bf16.vlgmr.msra.gmra.mrb[56].mxu1 %vm896_vm1, %v4131_v17 }
0x211e   : > { %v4256_v19 = vpop.f32.mrb[60].mxu0  ;;  %6170 = vmatprep.mubr.msk.bf16.mxu1 %vm6485_vm0, %v6483_v3  ;;  %6169 = vmatpush3.bf16.msra.mxu1 %v6356_v44 }
0x211f   : > { %v4260_v20 = vmul.f32 0.25, %v4256_v19  ;;  %v6162_v52 = vpop.f32.mrb[61].mxu0  ;;  %6184 = vmatprep.subr.bf16.mxu1 %v6483_v3 }
0x2121   : > { %v4261_v21 = vadd.f32 %v7162_v47, %v4260_v20 }
0x2123   : > { %v4262_v23 = vsel %vm975_vm2, %v4261_v21, -inf }
0x2124   : > { %4263 = vmax.xlane.f32.xlu0 %v4262_v23 }
0x213a   : > { %4273 = vrot.lane.b32.xlu0 %v7139_v32, %s7495_s23 }
0x213e   : > { %4400 = vrot.lane.b32.xlu0 %v7137_v31, %s7496_s20 }
0x21b1   : > { %v4264_v24 = vpop.xlane.xlu0 %4263 }
0x21b2   : > { %v4265_v26 = vsub.f32 %v4261_v21, %v4264_v24 }
0x21b4   : > { %v4266_v27 = vmul.f32 1.442695, %v4265_v26 }
0x21b5   : > { %v4274_v28 = vpop.permute.xlu0 %4273 }
0x21b6   : > { %6454 = vpow2.f32 %v4266_v27  ;;  %6164 = vmatpush3.msra.mxu0 %v4274_v28 }
0x21b7   : > { %6174 = vmatprep.subr.mxu0 %v6483_v3 }
0x21b9   : > { %v4401_v41 = vpop.permute.xlu0 %4400 }
0x21c0   : > { %v6455_v29 = vpop.eup %6454 }
0x21c1   : > { %v4268_v30 = vsel %vm975_vm2, %v6455_v29, 0.0 }
0x21c2   : > { %4269 = vadd.xlane.f32.xlu1 %v4268_v30 }
0x21d3   : > { %4402 = vrot.lane.b32.xlu1 %v7141_v35, %s7496_s20 }
0x21f0   : > { %v4175_v33 = vpop.f32.mrb[56].mxu1 }
0x21f1   : > { %v4181_v34 = vadd.f32 %v4175_v33, %v3963_v6  ;;  %v6156_v36 = vpop.f32.mrb[57].mxu1 }
0x21f2   : > { %v4178_v37 = vpop.f32.mrb[58].mxu1 }
0x21f3   : > { %v6157_v38 = vpop.f32.mrb[59].mxu1  ;;  %v6358_v37 = vld [vmem:[%s7469_s4 + $0x70] sm:$0xff]  }
0x224f   : > { %v4270_v40 = vpop.xlane.xlu1 %4269 }
0x2250   : > { %6456 = vrcp.f32 %v4270_v40 }
0x2253   : > { %v4403_v39 = vpop.permute.xlu1 %4402 }
0x225a   : > { %v6457_v42 = vpop.eup %6456 }
0x225b   : > { %v4272_v43 = vmul.f32 %v6457_v42, %v6455_v29 }
0x225d   : > { %6166 = vmatmul.mubr.msk.f32.vlgmr.msra.gmra.mrb[62].mxu0 %vm975_vm2, %v4272_v43 }
0x225e   : > { %6175 = vmatpush3.xpose.msk.msra.mxu0 %vm896_vm1, %v4403_v39  ;;  %6176 = vmatprep.mubr.msk.f32.mxu0 %vm6485_vm0, %v6483_v3 }
0x225f   : > { %6179 = vmatprep.subr.mxu0 %v6483_v3 }
0x2261   : > { %6177 = vmatmul.mubr.msk.f32.vlgmr.msra.gmra.mrb[64].mxu0 %vm896_vm1, %v4401_v41 }
0x2262   : > { %6181 = vmatprep.mubr.msk.f32.mxu0 %vm6485_vm0, %v6483_v3 }
0x2330   : > { %v4345_v48 = vpop.f32.mrb[62].mxu0 }
0x2331   : > { %v4349_v49 = vpack.c.bf16 %v4345_v48, %v4345_v48  ;;  %v6167_v50 = vpop.f32.mrb[63].mxu0 }
0x2333   : > { %6171 = vmatmul.mubr.msk.bf16.vlgmr.msra.gmra.mrb[60].mxu1 %vm896_vm1, %v4349_v49 }
0x2334   : > { %v4474_v51 = vpop.f32.mrb[64].mxu0  ;;  %6186 = vmatprep.mubr.msk.bf16.mxu1 %vm6485_vm0, %v6483_v3  ;;  %6185 = vmatpush3.bf16.msra.mxu1 %v6357_v11  ;;  %v6362_v11 = vld [vmem:[%s7473_s8 + $0x84] ss:$8 sps:$4 sm:$0xff]  }
0x2335   : > { %v4478_v53 = vmul.f32 0.25, %v4474_v51  ;;  %v6178_v54 = vpop.f32.mrb[65].mxu0  ;;  %6200 = vmatprep.subr.bf16.mxu1 %v6483_v3 }
0x2337   : > { %v4479_v56 = vadd.f32 %v7162_v47, %v4478_v53 }
0x2339   : > { %v4480_v57 = vsel %vm975_vm2, %v4479_v56, -inf }
0x233a   : > { %4481 = vmax.xlane.f32.xlu1 %v4480_v57 }
0x234b   : > { %4620 = vrot.lane.b32.xlu1 %v7141_v35, %s7497_s18 }
0x234f   : > { %4618 = vrot.lane.b32.xlu1 %v7137_v31, %s7497_s18 }
0x23c7   : > { %v4482_v58 = vpop.xlane.xlu1 %4481 }
0x23c8   : > { %v4483_v55 = vsub.f32 %v4479_v56, %v4482_v58 }
0x23ca   : > { %v4484_v59 = vmul.f32 1.442695, %v4483_v55 }
0x23cb   : > { %v4621_v8 = vpop.permute.xlu1 %4620 }
0x23cc   : > { %6458 = vpow2.f32 %v4484_v59 }
0x23cf   : > { %v4619_v10 = vpop.permute.xlu1 %4618 }
0x23d6   : > { %v6459_v60 = vpop.eup %6458 }
0x23d7   : > { %v4486_v61 = vsel %vm975_vm2, %v6459_v60, 0.0 }
0x23d8   : > { %4487 = vadd.xlane.f32.xlu0 %v4486_v61 }
0x23ee   : > { %4491 = vrot.lane.b32.xlu0 %v7139_v32, %s7496_s20  ;;  %s528_s20 = scalar_lea.vmem %s7481_s16, %s7500_s22 }
0x2406   : > { %v4393_v62 = vpop.f32.mrb[60].mxu1 }
0x2407   : > { %v4399_v0 = vadd.f32 %v4393_v62, %v4181_v34  ;;  %v6172_v1 = vpop.f32.mrb[61].mxu1 }
0x2408   : > { %v4396_v2 = vpop.f32.mrb[62].mxu1 }
0x2409   : > { %v6173_v4 = vpop.f32.mrb[63].mxu1  ;;  %v5728_v2 = vld [vmem:[%s7470_s5 + $0x1] ss:$0 sm:$0xff] }
0x2465   : > { %v4488_v5 = vpop.xlane.xlu0 %4487 }
0x2466   : > { %6460 = vrcp.f32 %v4488_v5 }
0x2469   : > { %v4492_v6 = vpop.permute.xlu0 %4491 }
0x246a   : > { %6180 = vmatpush3.msra.mxu0 %v4492_v6 }
0x246b   : > { %6190 = vmatprep.subr.mxu0 %v6483_v3 }
0x2470   : > { %v6461_v7 = vpop.eup %6460 }
0x2471   : > { %v4490_v9 = vmul.f32 %v6461_v7, %v6459_v60 }
0x2473   : > { %6182 = vmatmul.mubr.msk.f32.vlgmr.msra.gmra.mrb[66].mxu0 %vm975_vm2, %v4490_v9 }
0x2474   : > { %6191 = vmatpush3.xpose.msk.msra.mxu0 %vm896_vm1, %v4621_v8  ;;  %6192 = vmatprep.mubr.msk.f32.mxu0 %vm6485_vm0, %v6483_v3 }
0x2475   : > { %6195 = vmatprep.subr.mxu0 %v6483_v3 }
0x2477   : > { %6193 = vmatmul.mubr.msk.f32.vlgmr.msra.gmra.mrb[68].mxu0 %vm896_vm1, %v4619_v10 }
0x2478   : > { %6197 = vmatprep.mubr.msk.f32.mxu0 %vm6485_vm0, %v6483_v3 }
0x2546   : > { %v4563_v12 = vpop.f32.mrb[66].mxu0 }
0x2547   : > { %v4567_v13 = vpack.c.bf16 %v4563_v12, %v4563_v12  ;;  %v6183_v14 = vpop.f32.mrb[67].mxu0  ;;  %v6365_v12 = vld [vmem:[%s7473_s8 + $0x94] ss:$8 sps:$4 sm:$0xff]  }
0x2548   : > { %v6366_v14 = vld [vmem:[%s7473_s8 + $0xa0] ss:$8 sps:$4 sm:$0xff]  }
0x2549   : > { %6187 = vmatmul.mubr.msk.bf16.vlgmr.msra.gmra.mrb[64].mxu1 %vm896_vm1, %v4567_v13  ;;  %v6363_v13 = vld [vmem:[%s7473_s8 + $0x90] ss:$8 sps:$4 sm:$0xff]  }
0x254a   : > { %v4692_v15 = vpop.f32.mrb[68].mxu0  ;;  %6202 = vmatprep.mubr.msk.bf16.mxu1 %vm6485_vm0, %v6483_v3  ;;  %6201 = vmatpush3.bf16.msra.mxu1 %v6358_v37  ;;  %v6391_v37 = vld [vmem:[%s7475_s10 + $0x98] sm:$0xff]  }
0x254b   : > { %v4696_v16 = vmul.f32 0.25, %v4692_v15  ;;  %v6194_v63 = vpop.f32.mrb[69].mxu0  ;;  %6216 = vmatprep.subr.bf16.mxu1 %v6483_v3 }
0x254d   : > { %v4697_v17 = vadd.f32 %v7162_v47, %v4696_v16 }
0x254f   : > { %v4698_v18 = vsel %vm975_vm2, %v4697_v17, -inf }
0x2550   : > { %4699 = vmax.xlane.f32.xlu0 %v4698_v18  ;;  %v6371_v18 = vld [vmem:[%s7473_s8 + $0xb4] ss:$8 sps:$4 sm:$0xff]  }
0x2566   : > { %4709 = vrot.lane.b32.xlu0 %v7139_v32, %s7497_s18 }
0x256a   : > { %4836 = vrot.lane.b32.xlu0 %v7137_v31, %s7498_s29 }
0x25dd   : > { %v4700_v19 = vpop.xlane.xlu0 %4699 }
0x25de   : > { %v4701_v20 = vsub.f32 %v4697_v17, %v4700_v19  ;;  %v6369_v19 = vld [vmem:[%s7473_s8 + $0xb0] ss:$8 sps:$4 sm:$0xff]  }
0x25e0   : > { %v4702_v52 = vmul.f32 1.442695, %v4701_v20  ;;  %v6374_v20 = vld [vmem:[%s7473_s8 + $0xc4] ss:$8 sps:$4 sm:$0xff]  }
0x25e1   : > { %v4710_v21 = vpop.permute.xlu0 %4709 }
0x25e2   : > { %6462 = vpow2.f32 %v4702_v52  ;;  %6196 = vmatpush3.msra.mxu0 %v4710_v21  ;;  %v6372_v52 = vld [vmem:[%s7473_s8 + $0xc0] ss:$8 sps:$4 sm:$0xff]   ;;  %v6377_v21 = vld [vmem:[%s7473_s8 + $0xd4] ss:$8 sps:$4 sm:$0xff]  }
0x25e3   : > { %6206 = vmatprep.subr.mxu0 %v6483_v3 }
0x25ec   : > { %v6463_v23 = vpop.eup %6462 }
0x25ed   : > { %v4704_v24 = vsel %vm975_vm2, %v6463_v23, 0.0 }
0x25ee   : > { %4705 = vadd.xlane.f32.xlu1 %v4704_v24  ;;  %v6380_v24 = vld [vmem:[%s7473_s8 + $0xe4] ss:$8 sps:$4 sm:$0xff]  }
0x25ff   : > { %4838 = vrot.lane.b32.xlu1 %v7141_v35, %s7498_s29  ;;  %v4837_v35 = vpop.permute.xlu0 %4836 }
0x261c   : > { %v4611_v26 = vpop.f32.mrb[64].mxu1 }
0x261d   : > { %v4617_v27 = vadd.f32 %v4611_v26, %v4399_v0  ;;  %v6188_v28 = vpop.f32.mrb[65].mxu1  ;;  %v6378_v26 = vld [vmem:[%s7473_s8 + $0xe0] ss:$8 sps:$4 sm:$0xff]  }
0x261e   : > { %v4614_v29 = vpop.f32.mrb[66].mxu1  ;;  %v6381_v28 = vld [vmem:[%s7473_s8 + $0xf0] ss:$8 sps:$4 sm:$0xff]  }
0x261f   : > { %v6189_v31 = vpop.f32.mrb[67].mxu1  ;;  %v6384_v29 = vld [vmem:[%s7475_s10 + $0xc0] sm:$0xff]  }
0x2620   : > { %v6385_v31 = vld [vmem:[%s7475_s10 + $0x80] sm:$0xff]  }
0x267b   : > { %v4706_v30 = vpop.xlane.xlu1 %4705 }
0x267c   : > { %6464 = vrcp.f32 %v4706_v30  ;;  %v6386_v30 = vld [vmem:[%s7475_s10 + $0xc8] sm:$0xff]  }
0x267f   : > { %v4839_v36 = vpop.permute.xlu1 %4838 }
0x2686   : > { %v6465_v33 = vpop.eup %6464 }
0x2687   : > { %v4708_v34 = vmul.f32 %v6465_v33, %v6463_v23  ;;  %v6375_v23 = vld [vmem:[%s7473_s8 + $0xd0] ss:$8 sps:$4 sm:$0xff]   ;;  %v6387_v33 = vld [vmem:[%s7475_s10 + $0x88] sm:$0xff]  }
0x2689   : > { %6198 = vmatmul.mubr.msk.f32.vlgmr.msra.gmra.mrb[70].mxu0 %vm975_vm2, %v4708_v34  ;;  %v6388_v34 = vld [vmem:[%s7475_s10 + $0xd0] sm:$0xff]  }
0x268a   : > { %6207 = vmatpush3.xpose.msk.msra.mxu0 %vm896_vm1, %v4839_v36  ;;  %6208 = vmatprep.mubr.msk.f32.mxu0 %vm6485_vm0, %v6483_v3  ;;  %v6389_v36 = vld [vmem:[%s7475_s10 + $0x90] sm:$0xff]  }
0x268b   : > { %6211 = vmatprep.subr.mxu0 %v6483_v3 }
0x268d   : > { %6209 = vmatmul.mubr.msk.f32.vlgmr.msra.gmra.mrb[72].mxu0 %vm896_vm1, %v4837_v35  ;;  %v6390_v35 = vld [vmem:[%s7475_s10 + $0xd8] sm:$0xff]  }
0x268e   : > { %6213 = vmatprep.mubr.msk.f32.mxu0 %vm6485_vm0, %v6483_v3 }
0x275c   : > { %v4781_v38 = vpop.f32.mrb[70].mxu0 }
0x275d   : > { %v4785_v40 = vpack.c.bf16 %v4781_v38, %v4781_v38  ;;  %v6199_v42 = vpop.f32.mrb[71].mxu0  ;;  %v6392_v38 = vld [vmem:[%s7475_s10 + $0xe0] sm:$0xff]  }
0x275e   : > { %v6394_v42 = vld [vmem:[%s7475_s10 + $0xe8] sm:$0xff]  }
0x275f   : > { %6203 = vmatmul.mubr.msk.bf16.vlgmr.msra.gmra.mrb[68].mxu1 %vm896_vm1, %v4785_v40  ;;  %v6393_v40 = vld [vmem:[%s7475_s10 + $0xa0] sm:$0xff]  }
0x2760   : > { %v4910_v43 = vpop.f32.mrb[72].mxu0  ;;  %6218 = vmatprep.mubr.msk.bf16.mxu1 %vm6485_vm0, %v6483_v3  ;;  %v6359_v3 = vld [vmem:[%s7469_s4 + $0x78] sm:$0xff]  }
0x2761   : > { %v4914_v39 = vmul.f32 0.25, %v4910_v43  ;;  %v6210_v41 = vpop.f32.mrb[73].mxu0  ;;  %6217 = vmatpush3.bf16.msra.mxu1 %v6359_v3  ;;  %v6395_v43 = vld [vmem:[%s7475_s10 + $0xa8] sm:$0xff]  }
0x2762   : > { %5904 = vmatprep.subr.bf16.mxu1 %v6384_v29 }
0x2763   : > { %v4915_v44 = vadd.f32 %v7162_v47, %v4914_v39 }
0x2765   : > { %v4916_v48 = vsel %vm975_vm2, %v4915_v44, -inf }
0x2766   : > { %4917 = vmax.xlane.f32.xlu1 %v4916_v48 }
0x27f3   : > { %v4918_v49 = vpop.xlane.xlu1 %4917 }
0x27f4   : > { %v4919_v50 = vsub.f32 %v4915_v44, %v4918_v49  ;;  %v5729_v49 = vld [vmem:[%s7471_s6 + $0x1] ss:$0 sm:$0xff] }
0x27f6   : > { %v4920_v51 = vmul.f32 1.442695, %v4919_v50 }
0x27f8   : > { %6466 = vpow2.f32 %v4920_v51  ;;  %v5730_v51 = vld [vmem:[%s7472_s7 + $0x1] ss:$0 sm:$0xff] }
0x2802   : > { %v6467_v53 = vpop.eup %6466 }
0x2803   : > { %v4922_v54 = vsel %vm975_vm2, %v6467_v53, 0.0 }
0x2804   : > { %4923 = vadd.xlane.f32.xlu0 %v4922_v54 }
0x281a   : > { %4927 = vrot.lane.b32.xlu0 %v7139_v32, %s7498_s29 }
0x2832   : > { %v4829_v47 = vpop.f32.mrb[68].mxu1 }
0x2833   : > { %v4835_v56 = vadd.f32 %v4829_v47, %v4617_v27  ;;  %v6204_v57 = vpop.f32.mrb[69].mxu1  ;;  %v6383_v27 = vld [vmem:[%s7473_s8 + $0xf4] ss:$8 sps:$4 sm:$0xff]  }
0x2834   : > { %v4832_v58 = vpop.f32.mrb[70].mxu1  ;;  %v6396_v47 = vld [vmem:[%s7475_s10 + $0xf0] sm:$0xff]   ;;  %v6398_v57 = vld [vmem:[%s7475_s10 + $0xf8] sm:$0xff]  }
0x2835   : > { %v6205_v55 = vpop.f32.mrb[71].mxu1  ;;  %v6399_v58 = vld [vmem:[%s7475_s10 + $0xb8] sm:$0xff]  }
0x2836   : > { %v5628_v55 = vld [vmem:[%s7474_s9 + $0x2] sm:$0x3] }
0x2891   : > { %v4924_v59 = vpop.xlane.xlu0 %4923 }
0x2892   : > { %6468 = vrcp.f32 %v4924_v59  ;;  %v5092_v59 = vrot.slane %v5628_v55, %v6701_v46 }
0x2895   : > { %v4928_v60 = vpop.permute.xlu0 %4927 }
0x2896   : > { %6212 = vmatpush3.msra.mxu0 %v4928_v60  ;;  %v5096_v60 = vrot.slane %v5628_v55, %v6698_v45 }
0x2897   : > { %5179 = vmatprep.subr.bf16.mxu0 %v6362_v11 }
0x289c   : > { %v6469_v61 = vpop.eup %6468 }
0x289d   : > { %v4926_v62 = vmul.f32 %v6469_v61, %v6467_v53 }
0x289f   : > { %6214 = vmatmul.mubr.msk.f32.vlgmr.msra.gmra.mrb[74].mxu0 %vm975_vm2, %v4926_v62 }
0x28a0   : > { %5211 = vmatprep.mubr.bf16.mxu0 %v6484_v25  ;;  %v6360_v25 = vld [vmem:[%s7473_s8 + $0x80] ss:$8 sps:$4 sm:$0xff]  }
0x28a1   : > { %5180 = vmatpush1.bf16.msra.mxu0 %v6360_v25 }
0x28a2   : > { %5181 = vmatprep.subr.bf16.mxu0 %v6365_v12 }
0x28a5   : > { %5182 = vmatpush1.bf16.msra.mxu0 %v6363_v13 }
0x2972   : > { %v4999_v32 = vpop.f32.mrb[74].mxu0 }
0x2973   : > { %v5003_v0 = vpack.c.bf16 %v4999_v32, %v4999_v32  ;;  %v6215_v1 = vpop.f32.mrb[75].mxu0 }
0x2975   : > { %6219 = vmatmul.mubr.msk.bf16.vlgmr.msra.gmra.mrb[72].mxu1 %vm896_vm1, %v5003_v0 }
0x2976   : > { %5905 = vmatpush3.bf16.msra.mxu1 %v6385_v31 }
0x2977   : > { %5906 = vmatprep.subr.bf16.mxu1 %v6386_v30 }
0x297a   : > { %5907 = vmatpush3.bf16.msra.mxu1 %v6387_v33 }
0x297b   : > { %5908 = vmatprep.subr.bf16.mxu1 %v6388_v34 }
0x297e   : > { %5909 = vmatpush3.bf16.msra.mxu1 %v6389_v36 }
0x297f   : > { %5910 = vmatprep.subr.bf16.mxu1 %v6390_v35 }
0x2982   : > { %5911 = vmatpush3.bf16.msra.mxu1 %v6391_v37 }
0x2983   : > { %5912 = vmatprep.subr.bf16.mxu1 %v6392_v38 }
0x2986   : > { %5913 = vmatpush3.bf16.msra.mxu1 %v6393_v40 }
0x2987   : > { %5914 = vmatprep.subr.bf16.mxu1 %v6394_v42 }
0x298a   : > { %5915 = vmatpush3.bf16.msra.mxu1 %v6395_v43 }
0x298b   : > { %5916 = vmatprep.subr.bf16.mxu1 %v6396_v47 }
0x2a48   : > { %v5047_v4 = vpop.f32.mrb[72].mxu1 }
0x2a49   : > { %v5053_v5 = vadd.f32 %v5047_v4, %v4835_v56  ;;  %v6220_v6 = vpop.f32.mrb[73].mxu1  ;;  %v6397_v56 = vld [vmem:[%s7475_s10 + $0xb0] sm:$0xff]  }
0x2a4a   : > { %v5050_v7 = vpop.f32.mrb[74].mxu1  ;;  %5917 = vmatpush3.bf16.msra.mxu1 %v6397_v56 }
0x2a4b   : > { %v5060_v8 = vadd.f32 %v5728_v2, %v5053_v5  ;;  %v6221_v9 = vpop.f32.mrb[75].mxu1  ;;  %5918 = vmatprep.subr.bf16.mxu1 %v6398_v57 }
0x2a4c   : > { %v5747_v9 = vld [vmem:[%s7476_s11 + $0x1] ss:$0 sm:$0xff] }
0x2a4d   : > { %v5061_v10 = vadd.f32 %v5060_v8, %v7122_v22  ;;  %v6368_v22 = vld [vmem:[%s7473_s8 + $0xa4] ss:$8 sps:$4 sm:$0xff]  }
0x2a4e   : > { %5183 = vmatprep.subr.bf16.mxu0 %v6368_v22  ;;  %5919 = vmatpush3.bf16.msra.mxu1 %v6399_v58 }
0x2a4f   : > { %5062 = vadd.xlane.f32.xlu1 %v5061_v10  ;;  %5184 = vmatpush1.bf16.msra.mxu0 %v6366_v14 }
0x2a50   : > { %5185 = vmatprep.subr.bf16.mxu0 %v6371_v18 }
0x2a53   : > { %5186 = vmatpush1.bf16.msra.mxu0 %v6369_v19  ;;  %v5764_v19 = vld [vmem:[%s7477_s12 + $0x1] ss:$0 sm:$0xff] }
0x2a54   : > { %5187 = vmatprep.subr.bf16.mxu0 %v6374_v20 }
0x2a57   : > { %5188 = vmatpush1.bf16.msra.mxu0 %v6372_v52  ;;  %v5765_v52 = vld [vmem:[%s7478_s13 + $0x1] ss:$0 sm:$0xff] }
0x2a58   : > { %5189 = vmatprep.subr.bf16.mxu0 %v6377_v21 }
0x2a5b   : > { %5190 = vmatpush1.bf16.msra.mxu0 %v6375_v23 }
0x2a5c   : > { %5191 = vmatprep.subr.bf16.mxu0 %v6380_v24 }
0x2a5f   : > { %5192 = vmatpush1.bf16.msra.mxu0 %v6378_v26 }
0x2a60   : > { %5193 = vmatprep.subr.bf16.mxu0 %v6383_v27 }
0x2a63   : > { %5194 = vmatpush1.bf16.msra.mxu0 %v6381_v28 }
0x2adc   : > { %v5063_v15 = vpop.xlane.xlu1 %5062 }
0x2add   : > { %v5064_v16 = vmul.f32 0.0078125, %v5063_v15 }
0x2adf   : > { %v5065_v63 = vsub.f32 %v5061_v10, %v5064_v16 }
0x2ae1   : > { %v5066_v17 = vmul.f32 %v5065_v63, %v5065_v63 }
0x2ae3   : > { %5067 = vadd.xlane.f32.xlu1 %v5066_v17 }
0x2b70   : > { %v5068_v39 = vpop.xlane.xlu1 %5067 }
0x2b71   : > { %v5069_v41 = vmul.f32 0.0078125, %v5068_v39 }
0x2b73   : > { %v5070_v44 = vadd.f32 1e-05, %v5069_v41 }
0x2b75   : > { %6470 = vrsqrt.f32 %v5070_v44 }
0x2b7f   : > { %v6471_v48 = vpop.eup %6470 }
0x2b80   : > { %v5072_v50 = vmul.f32 %v6471_v48, %v5065_v63 }
0x2b82   : > { %v5079_v53 = vmul.f32 %v5729_v49, %v5072_v50 }
0x2b84   : > { %v5086_v54 = vadd.f32 %v5730_v51, %v5079_v53 }
0x2b86   : > { %v5087_v3 = vpack.c.bf16 %v5086_v54, %v5086_v54 }
0x2b88   : > { %5212 = vmatmul.mubr.bf16.vlgmr.msra.gmra.mrb[76].mxu0 %v5087_v3 }
0x2c5b   : > { %v5213_v61 = vpop.f32.mrb[76].mxu0 }
0x2c5c   : > { %v5214_v62 = vadd.f32 %v5213_v61, %v5092_v59  ;;  %v5215_v32 = vpop.f32.mrb[77].mxu0 }
0x2c5d   : > { %v5216_v0 = vadd.f32 %v5215_v32, %v5096_v60  ;;  %v5217_v1 = vpop.f32.mrb[78].mxu0 }
0x2c5e   : > { %v5220_v2 = vmax.f32 %v5214_v62, 0.0  ;;  %v5218_v4 = vpop.f32.mrb[79].mxu0 }
0x2c5f   : > { %v5221_v5 = vmax.f32 %v5216_v0, 0.0 }
0x2c60   : > { %v5222_v7 = vpack.c.bf16 %v5220_v2, %v5220_v2 }
0x2c61   : > { %v5223_v6 = vpack.c.bf16 %v5221_v5, %v5221_v5 }
0x2c63   : > { %5358 = vmatprep.mubr.bf16.mxu1 %v5223_v6 }
0x2c64   : > { %5359 = vmatmul.mubr.bf16.vlgmr.msra.gmra.mrb[76].mxu1 %v5222_v7 }
0x2d37   : > { %v5920_v8 = vpop.f32.mrb[76].mxu1 }
0x2d38   : > { %v5921_v46 = vpop.f32.mrb[77].mxu1 }
0x2d39   : > { %v5922_v10 = vadd.f32 %v5921_v46, %v5920_v8  ;;  %v5923_v45 = vpop.f32.mrb[78].mxu1 }
0x2d3a   : > { %v5924_v25 = vpop.f32.mrb[79].mxu1 }
0x2d3b   : > { %v5361_v11 = vadd.f32 %v5922_v10, %v5747_v9 }
0x2d3d   : > { %v5366_v12 = vadd.f32 %v5361_v11, %v5086_v54 }
0x2d3f   : > { %5367 = vadd.xlane.f32.xlu1 %v5366_v12 }
0x2dcc   : > { %v5368_v13 = vpop.xlane.xlu1 %5367 }
0x2dcd   : > { %v5369_v22 = vmul.f32 0.0078125, %v5368_v13 }
0x2dcf   : > { %v5370_v14 = vsub.f32 %v5366_v12, %v5369_v22 }
0x2dd1   : > { %v5371_v15 = vmul.f32 %v5370_v14, %v5370_v14 }
0x2dd3   : > { %5372 = vadd.xlane.f32.xlu1 %v5371_v15 }
0x2e60   : > { %v5373_v16 = vpop.xlane.xlu1 %5372 }
0x2e61   : > { %v5374_v63 = vmul.f32 0.0078125, %v5373_v16 }
0x2e63   : > { %v5375_v17 = vadd.f32 1e-05, %v5374_v63 }
0x2e65   : > { %6472 = vrsqrt.f32 %v5375_v17 }
0x2e6f   : > { %v6473_v18 = vpop.eup %6472 }
0x2e70   : > { %v5377_v20 = vmul.f32 %v6473_v18, %v5370_v14 }
0x2e72   : > { %v5384_v21 = vmul.f32 %v5764_v19, %v5377_v20 }
0x2e74   : > { %v5391_v23 = vadd.f32 %v5765_v52, %v5384_v21 }
0x2e76   : > { %5392 = vst [vmem:[%s528_s20] sm:$0x1] %v5391_v23 }
0x2e77 PF: > { %s26_s21 = sadd.s32 1, %s6481_s21  }
0x2e78   : > { %p23_p4 = scmp.ge.s32.totalorder %s26_s21, 4  }
0x2e7a   :  { %25 = sbr.rel (!%p23_p4) target bundleno = 2 (0x2), region = 129 }

// kernel: _lambda_.3
= control target key start
LH: loop header
LB: loop body
LE: loop exit
PB: predicated region body
PF: predicated region fallthrough
CT: control target
= control target key end

     0   :  { %s9115_s0 = inlined_call_operand.vmem [shape: f32[16,128], index: 0, kind: input, shape index: {}]   ;;  %s9116_s1 = inlined_call_operand.vmem [shape: f32[2,128], index: 1, kind: input, shape index: {}]   ;;  %s9117_s2 = inlined_call_operand.vmem [shape: bf16[2,128,384], index: 2, kind: input, shape index: {}]   ;;  %s9118_s3 = inlined_call_operand.vmem [shape: f32[2,1,384], index: 3, kind: input, shape index: {}]   ;;  %s9119_s4 = inlined_call_operand.vmem [shape: bf16[2,128,128], index: 4, kind: input, shape index: {}]   ;;  %s9120_s5 = inlined_call_operand.vmem [shape: f32[2,1,128], index: 5, kind: input, shape index: {}, may-alias: {5,7,11,13}]   ;;  %s9121_s6 = inlined_call_operand.vmem [shape: f32[2,1,128], index: 6, kind: input, shape index: {}, may-alias: {6,12}]   ;;  %s9122_s7 = inlined_call_operand.vmem [shape: f32[2,1,128], index: 7, kind: input, shape index: {}, may-alias: {5,7,11,13}]   ;;  %s9123_s8 = inlined_call_operand.vmem [shape: bf16[2,128,256], index: 8, kind: input, shape index: {}]   ;;  %s9124_s9 = inlined_call_operand.vmem [shape: f32[2,1,256], index: 9, kind: input, shape index: {}]   ;;  %s9125_s10 = inlined_call_operand.vmem [shape: bf16[2,256,128], index: 10, kind: input, shape index: {}]   ;;  %s9126_s11 = inlined_call_operand.vmem [shape: f32[2,1,128], index: 11, kind: input, shape index: {}, may-alias: {5,7,11,13}]   ;;  %s9127_s12 = inlined_call_operand.vmem [shape: f32[2,1,128], index: 12, kind: input, shape index: {}, may-alias: {6,12}]   ;;  %s9128_s13 = inlined_call_operand.vmem [shape: f32[2,1,128], index: 13, kind: input, shape index: {}, may-alias: {5,7,11,13}]   ;;  %s9129_s14 = inlined_call_operand.vmem [shape: bf16[128,128], index: 14, kind: input, shape index: {}]   ;;  %s9130_s15 = inlined_call_operand.vmem [shape: f32[1,128], index: 15, kind: input, shape index: {}, may-alias: {15,17,19,21}]   ;;  %s9131_s16 = inlined_call_operand.vmem [shape: bf16[128,128], index: 16, kind: input, shape index: {}]   ;;  %s9132_s17 = inlined_call_operand.vmem [shape: f32[1,128], index: 17, kind: input, shape index: {}, may-alias: {15,17,19,21}]   ;;  %s9133_s18 = inlined_call_operand.vmem [shape: bf16[128,128], index: 18, kind: input, shape index: {}]   ;;  %s9134_s19 = inlined_call_operand.vmem [shape: f32[1,128], index: 19, kind: input, shape index: {}, may-alias: {15,17,19,21}]   ;;  %s9135_s20 = inlined_call_operand.vmem [shape: bf16[128,128], index: 20, kind: input, shape index: {}]   ;;  %s9136_s21 = inlined_call_operand.vmem [shape: f32[1,128], index: 21, kind: input, shape index: {}, may-alias: {15,17,19,21}]   ;;  %s9137_s22 = inlined_call_operand.hbm [shape: f32[2,128], index: 22, kind: output, shape index: {0}]   ;;  %s9138_s23 = inlined_call_operand.hbm [shape: f32[2,128], index: 23, kind: output, shape index: {1}]  }
   0x1   :  { %9161 = sst [smem:[#allocation8_spill]] %s9115_s0 }
   0x2   :  { %9162 = sst [smem:[#allocation9_spill]] %s9116_s1 }
   0x3   :  { %9163 = sst [smem:[#allocation10_spill]] %s9117_s2 }
   0x4   :  { %9164 = sst [smem:[#allocation11_spill]] %s9118_s3 }
   0x5   :  { %9165 = sst [smem:[#allocation12_spill]] %s9119_s4 }
   0x6   :  { %9166 = sst [smem:[#allocation13_spill]] %s9120_s5 }
   0x7   :  { %9167 = sst [smem:[#allocation14_spill]] %s9121_s6 }
   0x8   :  { %9168 = sst [smem:[#allocation15_spill]] %s9122_s7 }
   0x9   :  { %9169 = sst [smem:[#allocation16_spill]] %s9138_s23 }
   0xa   :  { %29 = vsyncpa [#allocation3], 0  ;;  %s9170_s24 = sld [smem:[#allocation10_spill]]  ;;  %v7832_v2 = vmov 0   ;;  %s9171_s2 = sld [smem:[#allocation8_spill]] }
   0xb   :  { %359 = vmatprep.mubr.bf16.mxu0 %v7832_v2 }
  0x10   :  { %v7446_v0 = vld [vmem:[%s9170_s24 + $0x4] ss:$12 sps:$4 sm:$0xff]   ;;  %v7448_v1 = vld [vmem:[%s9170_s24] ss:$12 sps:$4 sm:$0xff]   ;;  %v7449_v3 = vld [vmem:[%s9170_s24 + $0x1c] ss:$12 sps:$4 sm:$0xff]  }
  0x11   :  { %327 = vmatprep.subr.bf16.mxu0 %v7446_v0  ;;  %v7451_v4 = vld [vmem:[%s9170_s24 + $0x18] ss:$12 sps:$4 sm:$0xff]   ;;  %v7452_v5 = vld [vmem:[%s9170_s24 + $0x34] ss:$12 sps:$4 sm:$0xff]   ;;  %v7454_v6 = vld [vmem:[%s9170_s24 + $0x30] ss:$12 sps:$4 sm:$0xff]  }
  0x12   :  { %328 = vmatpush1.bf16.msra.mxu0 %v7448_v1  ;;  %v7455_v7 = vld [vmem:[%s9170_s24 + $0x4c] ss:$12 sps:$4 sm:$0xff]   ;;  %v7457_v8 = vld [vmem:[%s9170_s24 + $0x48] ss:$12 sps:$4 sm:$0xff]   ;;  %v7458_v9 = vld [vmem:[%s9170_s24 + $0x64] ss:$12 sps:$4 sm:$0xff]  }
  0x13   :  { %329 = vmatprep.subr.bf16.mxu0 %v7449_v3  ;;  %v7460_v10 = vld [vmem:[%s9170_s24 + $0x60] ss:$12 sps:$4 sm:$0xff]   ;;  %v7461_v11 = vld [vmem:[%s9170_s24 + $0x7c] ss:$12 sps:$4 sm:$0xff]   ;;  %v7463_v12 = vld [vmem:[%s9170_s24 + $0x78] ss:$12 sps:$4 sm:$0xff]  }
  0x14   :  { %v7464_v13 = vld [vmem:[%s9170_s24 + $0x94] ss:$12 sps:$4 sm:$0xff]   ;;  %v7466_v14 = vld [vmem:[%s9170_s24 + $0x90] ss:$12 sps:$4 sm:$0xff]   ;;  %v7467_v15 = vld [vmem:[%s9170_s24 + $0xac] ss:$12 sps:$4 sm:$0xff]  }
  0x15   :  { %v7469_v16 = vld [vmem:[%s9170_s24 + $0xa8] ss:$12 sps:$4 sm:$0xff]   ;;  %v76_v17 = vld [vmem:[%s9171_s2] sm:$0xff] }
  0x16   :  { %330 = vmatpush1.bf16.msra.mxu0 %v7451_v4  ;;  %v77_v18 = vld [vmem:[%s9171_s2 + $0x8] sm:$0xff] }
  0x17   :  { %331 = vmatprep.subr.bf16.mxu0 %v7452_v5  ;;  %v8019_v19 = vpack.c.bf16 %v77_v18, %v76_v17 }
  0x1a   :  { %332 = vmatpush1.bf16.msra.mxu0 %v7454_v6 }
  0x1b   :  { %333 = vmatprep.subr.bf16.mxu0 %v7455_v7 }
  0x1e   :  { %334 = vmatpush1.bf16.msra.mxu0 %v7457_v8 }
  0x1f   :  { %335 = vmatprep.subr.bf16.mxu0 %v7458_v9 }
  0x22   :  { %336 = vmatpush1.bf16.msra.mxu0 %v7460_v10 }
  0x23   :  { %337 = vmatprep.subr.bf16.mxu0 %v7461_v11 }
  0x26   :  { %338 = vmatpush1.bf16.msra.mxu0 %v7463_v12 }
  0x27   :  { %339 = vmatprep.subr.bf16.mxu0 %v7464_v13 }
  0x2a   :  { %340 = vmatpush1.bf16.msra.mxu0 %v7466_v14 }
  0x2b   :  { %341 = vmatprep.subr.bf16.mxu0 %v7467_v15 }
  0x2e   :  { %342 = vmatpush1.bf16.msra.mxu0 %v7469_v16 }
  0x31   :  { %360 = vmatmul.mubr.bf16.vlgmr.msra.gmra.mrb[0].mxu0 %v8019_v19 }
  0x32   :  { %30 = vsyncpa [#allocation5], 0  ;;  %v184_v20 = vlaneseq  ;;  %s9172_s29 = sld [smem:[#allocation11_spill]]  ;;  %vm411_vm0 = vcmask 130048   ;;  %s9158_s3 = smov 112   ;;  %v7834_v39 = vmov 0.0  }
  0x33   :  { %vm8049_vm1 = vmpackc.low %vm411_vm0, %vm411_vm0  ;;  %v7470_v38 = vld [vmem:[%s9170_s24 + $0x8] ss:$12 sps:$4 sm:$0xff]   ;;  %6694 = vmatprep.subr.bf16.mxu1 %v7834_v39  ;;  %vm7835_vm2 = vmmov 0   ;;  %v7471_v40 = vld [vmem:[%s9170_s24 + $0x20] ss:$12 sps:$4 sm:$0xff]   ;;  %s9156_s1 = smov 96  }
  0x34   :  { %v8022_v21 = vshrl.u32 %v184_v20, 7  ;;  %6710 = vmatprep.mubr.msk.bf16.mxu1 %vm7835_vm2, %v7834_v39  ;;  %6695 = vmatpush3.bf16.msra.mxu1 %v7470_v38  ;;  %v7472_v41 = vld [vmem:[%s9170_s24 + $0x38] ss:$12 sps:$4 sm:$0xff]   ;;  %v7473_v42 = vld [vmem:[%s9170_s24 + $0x50] ss:$12 sps:$4 sm:$0xff]   ;;  %s9175_s27 = sld [smem:[#allocation12_spill]] }
  0x35   :  { %6696 = vmatprep.subr.bf16.mxu1 %v7834_v39  ;;  %v7474_v43 = vld [vmem:[%s9170_s24 + $0x68] ss:$12 sps:$4 sm:$0xff]   ;;  %v7475_v45 = vld [vmem:[%s9170_s24 + $0x80] ss:$12 sps:$4 sm:$0xff]   ;;  %v7476_v50 = vld [vmem:[%s9170_s24 + $0x98] ss:$12 sps:$4 sm:$0xff]  }
  0x36   :  { %v8025_v22 = vsub.s32 0, %v8022_v21  ;;  %v8033_v24 = vsub.s32 1, %v8022_v21  ;;  %v7477_v51 = vld [vmem:[%s9170_s24 + $0xb0] ss:$12 sps:$4 sm:$0xff]   ;;  %v194_v14 = vsub.s32 2, %v8022_v21  ;;  %s9154_s0 = smov 80  }
  0x37   :  { %s9152_s25 = smov 64   ;;  %s9150_s6 = smov 48  }
  0x38   :  { %v8030_v23 = vld [vmem:[%s9172_s29] sm:$0x7]  ;;  %6697 = vmatpush3.bf16.msra.mxu1 %v7471_v40  ;;  %s9148_s4 = smov 32   ;;  %s9146_s26 = smov 16  }
  0x39   :  { %v187_v25 = vrot.slane %v8030_v23, %v8025_v22  ;;  %v191_v27 = vrot.slane %v8030_v23, %v8033_v24  ;;  %6698 = vmatprep.subr.bf16.mxu1 %v7834_v39  ;;  %v195_v15 = vrot.slane %v8030_v23, %v194_v14  ;;  %s9178_s7 = sld [smem:[#allocation15_spill]]  ;;  %s9181_s23 = smov 80  }
  0x3c   :  { %6699 = vmatpush3.bf16.msra.mxu1 %v7472_v41 }
  0x3d   :  { %6700 = vmatprep.subr.bf16.mxu1 %v7834_v39 }
  0x40   :  { %6701 = vmatpush3.bf16.msra.mxu1 %v7473_v42 }
  0x41   :  { %6702 = vmatprep.subr.bf16.mxu1 %v7834_v39 }
  0x44   :  { %6703 = vmatpush3.bf16.msra.mxu1 %v7474_v43 }
  0x45   :  { %6704 = vmatprep.subr.bf16.mxu1 %v7834_v39 }
  0x48   :  { %6705 = vmatpush3.bf16.msra.mxu1 %v7475_v45 }
  0x49   :  { %6706 = vmatprep.subr.bf16.mxu1 %v7834_v39 }
  0x4c   :  { %6707 = vmatpush3.bf16.msra.mxu1 %v7476_v50 }
  0x4d   :  { %6708 = vmatprep.subr.bf16.mxu1 %v7834_v39 }
  0x50   :  { %6709 = vmatpush3.bf16.msra.mxu1 %v7477_v51 }
  0x53   :  { %6711 = vmatmul.mubr.bf16.vlgmr.msra.gmra.mrb[0].mxu1 %v8019_v19 }
 0x104   :  { %v361_v26 = vpop.f32.mrb[0].mxu0 }
 0x105   :  { %v8039_v28 = vadd.f32 %v361_v26, %v187_v25  ;;  %v363_v29 = vpop.f32.mrb[1].mxu0 }
 0x106   :  { %v365_v30 = vpop.f32.mrb[2].mxu0  ;;  %v364_v33 = vadd.f32 %v363_v29, %v191_v27 }
 0x107   :  { %v8041_v31 = vadd.f32 %v365_v30, %v187_v25  ;;  %v367_v32 = vpop.f32.mrb[3].mxu0  ;;  %6718 = vmatprep.mubr.msk.f32.mxu0 %vm411_vm0, %v8039_v28 }
 0x108   :  { %v368_v34 = vadd.f32 %v367_v32, %v191_v27 }
 0x109   :  { %607 = vrot.lane.b32.xlu1 %v8041_v31, %s9158_s3 }
 0x10a   :  { %v8053_v36 = vpack.i.bf16 %v368_v34, %v364_v33  ;;  %v7134_v37 = vpack.c.bf16 %v368_v34, %v364_v33 }
 0x10c   :  { %7307 = vrot.lane.b32.xlu0 %v8053_v36, %s9158_s3  ;;  %7136 = vmatprep.subr.msk.bf16.mxu0 %vm8049_vm1, %v7134_v37 }
 0x10d   :  { %7139 = vmatpush3.bf16.xpose.msk.msra.mxu0 %vm8049_vm1, %v7134_v37 }
 0x110   :  { %605 = vrot.lane.b32.xlu0 %v8039_v28, %s9158_s3 }
 0x114   :  { %6719 = vmatmul.mubr.msk.f32.vlgmr.msra.gmra.mrb[4].mxu0 %vm411_vm0, %v8041_v31 }
 0x126   :  { %v404_v8 = vpop.f32.mrb[0].mxu1 }
 0x127   :  { %v6712_v9 = vpop.f32.mrb[1].mxu1  ;;  %v405_v16 = vadd.f32 %v404_v8, %v195_v15 }
 0x128   :  { %v407_v17 = vpop.f32.mrb[2].mxu1 }
 0x129   :  { %v408_v18 = vadd.f32 %v407_v17, %v195_v15  ;;  %v6713_v19 = vpop.f32.mrb[3].mxu1 }
 0x12b   :  { %v8119_v20 = vpack.i.bf16 %v408_v18, %v405_v16  ;;  %v7140_v25 = vpack.c.bf16 %v408_v18, %v405_v16 }
 0x12d   :  { %7141 = vmatprep.subr.bf16.mxu1 %v7140_v25 }
 0x12e   :  { %7143 = vmatpush3.bf16.msra.mxu1 %v7140_v25 }
 0x17b   :  { %v608_v52 = vpop.permute.xlu1 %607 }
 0x17e   :  { %v7308_v44 = vpop.permute.xlu0 %7307 }
 0x17f   :  { %v7310_v46 = vunpack.i.h.bf16 %v7308_v44  ;;  %v7309_v47 = vunpack.i.l.bf16 %v7308_v44 }
 0x181   :  { %v7144_v48 = vpack.c.bf16 %v7310_v46, %v7309_v47  ;;  %v7479_v46 = vld [vmem:[%s9175_s27] sm:$0xff]  }
 0x182   :  { %v606_v49 = vpop.permute.xlu0 %605 }
 0x183   :  { %7146 = vmatprep.subr.msk.bf16.mxu0 %vm8049_vm1, %v7144_v48  ;;  %6732 = vmatprep.mubr.msk.f32.mxu0 %vm411_vm0, %v606_v49 }
 0x184   :  { %7149 = vmatpush3.bf16.xpose.msk.msra.mxu0 %vm8049_vm1, %v7144_v48 }
 0x185   :  { %6748 = vmatprep.subr.bf16.mxu0 %v7834_v39 }
 0x18b   :  { %6733 = vmatmul.mubr.msk.f32.vlgmr.msra.gmra.mrb[6].mxu0 %vm411_vm0, %v608_v52 }
 0x18c   :  { %6750 = vmatprep.mubr.msk.bf16.mxu0 %vm7835_vm2, %v7834_v39  ;;  %6749 = vmatpush3.bf16.msra.mxu0 %v7479_v46 }
 0x1e7   :  { %v6720_v53 = vpop.f32.mrb[4].mxu0 }
 0x1e8   :  { %v500_v54 = vmul.f32 0.25, %v6720_v53  ;;  %v490_v55 = vpop.f32.mrb[5].mxu0 }
 0x1e9   :  { %v499_v56 = vmul.f32 0.25, %v490_v55 }
 0x1ea   :  { %v504_v57 = vsel %vm411_vm0, %v500_v54, -inf }
 0x1eb   :  { %505 = vmax.xlane.f32.xlu0 %v504_v57  ;;  %v501_v58 = vsel %vm411_vm0, %v499_v56, -inf }
 0x1ec   :  { %502 = vmax.xlane.f32.xlu1 %v501_v58 }
 0x25e   :  { %v6734_v59 = vpop.f32.mrb[6].mxu0 }
 0x25f   :  { %v697_v60 = vmul.f32 0.25, %v6734_v59  ;;  %v687_v61 = vpop.f32.mrb[7].mxu0  ;;  %v7478_v59 = vld [vmem:[%s9175_s27 + $0x8] sm:$0xff]  }
 0x260   :  { %v696_v62 = vmul.f32 0.25, %v687_v61 }
 0x261   :  { %v701_v63 = vsel %vm411_vm0, %v697_v60, -inf }
 0x262   :  { %702 = vmax.xlane.f32.xlu1 %v701_v63  ;;  %v698_v0 = vsel %vm411_vm0, %v696_v62, -inf }
 0x263   :  { %699 = vmax.xlane.f32.xlu0 %v698_v0 }
 0x278   :  { %v506_v1 = vpop.xlane.xlu0 %505 }
 0x279   :  { %v508_v3 = vsub.f32 %v500_v54, %v506_v1  ;;  %v503_v4 = vpop.xlane.xlu1 %502 }
 0x27a   :  { %v507_v5 = vsub.f32 %v499_v56, %v503_v4 }
 0x27b   :  { %v511_v6 = vmul.f32 1.442695, %v508_v3 }
 0x27c   :  { %v509_v7 = vmul.f32 1.442695, %v507_v5 }
 0x27d   :  { %7638 = vpow2.f32 %v511_v6 }
 0x27e   :  { %7640 = vpow2.f32 %v509_v7 }
 0x287   :  { %v7639_v10 = vpop.eup %7638 }
 0x288   :  { %v7641_v11 = vpop.eup %7640  ;;  %v516_v12 = vsel %vm411_vm0, %v7639_v10, 0.0 }
 0x289   :  { %517 = vadd.xlane.f32.xlu1 %v516_v12  ;;  %v513_v13 = vsel %vm411_vm0, %v7641_v11, 0.0 }
 0x28a   :  { %514 = vadd.xlane.f32.xlu0 %v513_v13 }
 0x2ef   :  { %v703_v26 = vpop.xlane.xlu1 %702 }
 0x2f0   :  { %v705_v27 = vsub.f32 %v697_v60, %v703_v26  ;;  %v700_v29 = vpop.xlane.xlu0 %699 }
 0x2f1   :  { %v704_v30 = vsub.f32 %v696_v62, %v700_v29 }
 0x2f2   :  { %v708_v32 = vmul.f32 1.442695, %v705_v27 }
 0x2f3   :  { %v706_v33 = vmul.f32 1.442695, %v704_v30 }
 0x2f4   :  { %7642 = vpow2.f32 %v708_v32 }
 0x2f5   :  { %7644 = vpow2.f32 %v706_v33 }
 0x2fe   :  { %v7643_v34 = vpop.eup %7642 }
 0x2ff   :  { %v7645_v37 = vpop.eup %7644  ;;  %v713_v23 = vsel %vm411_vm0, %v7643_v34, 0.0 }
 0x300   :  { %714 = vadd.xlane.f32.xlu1 %v713_v23  ;;  %v710_v38 = vsel %vm411_vm0, %v7645_v37, 0.0 }
 0x301   :  { %711 = vadd.xlane.f32.xlu0 %v710_v38 }
 0x311   :  { %7317 = vrot.lane.b32.xlu1 %v8053_v36, %s9156_s1 }
 0x315   :  { %910 = vrot.lane.b32.xlu1 %v8039_v28, %s9156_s1 }
 0x316   :  { %v518_v40 = vpop.xlane.xlu1 %517 }
 0x317   :  { %7646 = vrcp.f32 %v518_v40  ;;  %7312 = vrot.lane.b32.xlu0 %v8119_v20, %s9158_s3  ;;  %v515_v41 = vpop.xlane.xlu0 %514 }
 0x318   :  { %7648 = vrcp.f32 %v515_v41 }
 0x31b   :  { %912 = vrot.lane.b32.xlu0 %v8041_v31, %s9156_s1 }
 0x321   :  { %v7647_v42 = vpop.eup %7646 }
 0x322   :  { %v7649_v43 = vpop.eup %7648  ;;  %v522_v45 = vmul.f32 %v7647_v42, %v7639_v10 }
 0x323   :  { %v521_v44 = vmul.f32 %v7649_v43, %v7641_v11 }
 0x325   :  { %6725 = vmatprep.mubr.msk.f32.mxu1 %vm411_vm0, %v521_v44 }
 0x326   :  { %6726 = vmatmul.mubr.msk.f32.vlgmr.msra.gmra.mrb[4].mxu1 %vm411_vm0, %v522_v45 }
 0x38d   :  { %v715_v47 = vpop.xlane.xlu1 %714 }
 0x38e   :  { %7650 = vrcp.f32 %v715_v47  ;;  %v712_v48 = vpop.xlane.xlu0 %711 }
 0x38f   :  { %7652 = vrcp.f32 %v712_v48 }
 0x391   :  { %v7318_v53 = vpop.permute.xlu1 %7317 }
 0x392   :  { %v7313_v49 = vpop.permute.xlu0 %7312  ;;  %v7320_v56 = vunpack.i.h.bf16 %v7318_v53  ;;  %v7319_v57 = vunpack.i.l.bf16 %v7318_v53 }
 0x393   :  { %v7315_v50 = vunpack.i.h.bf16 %v7313_v49  ;;  %v7314_v51 = vunpack.i.l.bf16 %v7313_v49 }
 0x394   :  { %v7154_v61 = vpack.c.bf16 %v7320_v56, %v7319_v57 }
 0x395   :  { %v7150_v52 = vpack.c.bf16 %v7315_v50, %v7314_v51  ;;  %v911_v5 = vpop.permute.xlu1 %910 }
 0x396   :  { %v913_v6 = vpop.permute.xlu0 %912 }
 0x397   :  { %7151 = vmatprep.subr.bf16.mxu1 %v7150_v52 }
 0x398   :  { %v7651_v54 = vpop.eup %7650  ;;  %7153 = vmatpush3.bf16.msra.mxu1 %v7150_v52 }
 0x399   :  { %v7653_v55 = vpop.eup %7652  ;;  %6742 = vmatprep.subr.bf16.mxu1 %v7834_v39  ;;  %v719_v60 = vmul.f32 %v7651_v54, %v7643_v34 }
 0x39a   :  { %v718_v58 = vmul.f32 %v7653_v55, %v7645_v37 }
 0x39c   :  { %6739 = vmatprep.mubr.msk.f32.mxu1 %vm411_vm0, %v718_v58 }
 0x39d   :  { %6740 = vmatmul.mubr.msk.f32.vlgmr.msra.gmra.mrb[6].mxu1 %vm411_vm0, %v719_v60 }
 0x39e   :  { %6743 = vmatpush3.bf16.msra.mxu1 %v7478_v59  ;;  %6744 = vmatprep.mubr.msk.bf16.mxu1 %vm7835_vm2, %v7834_v39  ;;  %v7480_v59 = vld [vmem:[%s9175_s27 + $0x10] sm:$0xff]  }
 0x39f   :  { %7156 = vmatprep.subr.msk.bf16.mxu1 %vm8049_vm1, %v7154_v61 }
 0x3f9   :  { %v6727_v62 = vpop.f32.mrb[4].mxu1 }
 0x3fa   :  { %v595_v63 = vpop.f32.mrb[5].mxu1 }
 0x3fb   :  { %v604_v0 = vpack.c.bf16 %v6727_v62, %v595_v63 }
 0x3fd   :  { %6751 = vmatmul.mubr.msk.bf16.vlgmr.msra.gmra.mrb[8].mxu0 %vm411_vm0, %v604_v0 }
 0x470   :  { %v6741_v1 = vpop.f32.mrb[6].mxu1 }
 0x471   :  { %v800_v3 = vpop.f32.mrb[7].mxu1 }
 0x472   :  { %v809_v4 = vpack.c.bf16 %v6741_v1, %v800_v3 }
 0x474   :  { %6745 = vmatmul.mubr.msk.bf16.vlgmr.msra.gmra.mrb[8].mxu1 %vm411_vm0, %v809_v4 }
 0x475   :  { %7159 = vmatpush3.bf16.xpose.msk.msra.mxu1 %vm8049_vm1, %v7154_v61  ;;  %6758 = vmatprep.mubr.msk.f32.mxu1 %vm411_vm0, %v911_v5 }
 0x476   :  { %6768 = vmatprep.subr.bf16.mxu1 %v7834_v39 }
 0x47c   :  { %6759 = vmatmul.mubr.msk.f32.vlgmr.msra.gmra.mrb[12].mxu1 %vm411_vm0, %v913_v6 }
 0x47d   :  { %6770 = vmatprep.mubr.msk.bf16.mxu1 %vm7835_vm2, %v7834_v39  ;;  %6769 = vmatpush3.bf16.msra.mxu1 %v7480_v59 }
 0x4d0   :  { %v903_v7 = vpop.f32.mrb[8].mxu0 }
 0x4d1   :  { %v6752_v8 = vpop.f32.mrb[9].mxu0 }
 0x4d2   :  { %v906_v9 = vpop.f32.mrb[10].mxu0 }
 0x4d3   :  { %v6753_v10 = vpop.f32.mrb[11].mxu0 }
 0x547   :  { %v853_v11 = vpop.f32.mrb[8].mxu1 }
 0x548   :  { %v8155_v12 = vadd.f32 %v903_v7, %v853_v11  ;;  %v6746_v13 = vpop.f32.mrb[9].mxu1 }
 0x549   :  { %v856_v15 = vpop.f32.mrb[10].mxu1 }
 0x54a   :  { %v8157_v16 = vadd.f32 %v906_v9, %v856_v15  ;;  %v6747_v17 = vpop.f32.mrb[11].mxu1 }
 0x54f   :  { %v6760_v18 = vpop.f32.mrb[12].mxu1 }
 0x550   :  { %v1002_v19 = vmul.f32 0.25, %v6760_v18  ;;  %v992_v25 = vpop.f32.mrb[13].mxu1 }
 0x551   :  { %v1001_v26 = vmul.f32 0.25, %v992_v25 }
 0x552   :  { %v1006_v27 = vsel %vm411_vm0, %v1002_v19, -inf }
 0x553   :  { %1007 = vmax.xlane.f32.xlu0 %v1006_v27  ;;  %v1003_v29 = vsel %vm411_vm0, %v1001_v26, -inf }
 0x554   :  { %1004 = vmax.xlane.f32.xlu1 %v1003_v29 }
 0x5e0   :  { %v1008_v30 = vpop.xlane.xlu0 %1007 }
 0x5e1   :  { %v1010_v32 = vsub.f32 %v1002_v19, %v1008_v30  ;;  %v1005_v33 = vpop.xlane.xlu1 %1004 }
 0x5e2   :  { %v1009_v34 = vsub.f32 %v1001_v26, %v1005_v33 }
 0x5e3   :  { %v1013_v37 = vmul.f32 1.442695, %v1010_v32 }
 0x5e4   :  { %v1011_v23 = vmul.f32 1.442695, %v1009_v34 }
 0x5e5   :  { %7654 = vpow2.f32 %v1013_v37 }
 0x5e6   :  { %7656 = vpow2.f32 %v1011_v23 }
 0x5ef   :  { %v7655_v38 = vpop.eup %7654 }
 0x5f0   :  { %v7657_v40 = vpop.eup %7656  ;;  %v1018_v41 = vsel %vm411_vm0, %v7655_v38, 0.0 }
 0x5f1   :  { %1019 = vadd.xlane.f32.xlu1 %v1018_v41  ;;  %v1015_v42 = vsel %vm411_vm0, %v7657_v40, 0.0 }
 0x5f2   :  { %1016 = vadd.xlane.f32.xlu0 %v1015_v42 }
 0x602   :  { %7327 = vrot.lane.b32.xlu1 %v8053_v36, %s9154_s0 }
 0x606   :  { %1165 = vrot.lane.b32.xlu1 %v8039_v28, %s9154_s0 }
 0x608   :  { %7322 = vrot.lane.b32.xlu0 %v8119_v20, %s9156_s1 }
 0x60c   :  { %1167 = vrot.lane.b32.xlu0 %v8041_v31, %s9154_s0 }
 0x67e   :  { %v1020_v43 = vpop.xlane.xlu1 %1019 }
 0x67f   :  { %7658 = vrcp.f32 %v1020_v43  ;;  %v1017_v44 = vpop.xlane.xlu0 %1016 }
 0x680   :  { %7660 = vrcp.f32 %v1017_v44 }
 0x682   :  { %v7328_v45 = vpop.permute.xlu1 %7327 }
 0x683   :  { %v7323_v46 = vpop.permute.xlu0 %7322  ;;  %v7330_v47 = vunpack.i.h.bf16 %v7328_v45  ;;  %v7329_v48 = vunpack.i.l.bf16 %v7328_v45 }
 0x684   :  { %v7325_v49 = vunpack.i.h.bf16 %v7323_v46  ;;  %v7324_v50 = vunpack.i.l.bf16 %v7323_v46 }
 0x685   :  { %v7164_v52 = vpack.c.bf16 %v7330_v47, %v7329_v48  ;;  %v7481_v48 = vld [vmem:[%s9175_s27 + $0x18] sm:$0xff]  }
 0x686   :  { %v7160_v51 = vpack.c.bf16 %v7325_v49, %v7324_v50  ;;  %v1166_v57 = vpop.permute.xlu1 %1165 }
 0x687   :  { %v1168_v58 = vpop.permute.xlu0 %1167 }
 0x688   :  { %7161 = vmatprep.subr.bf16.mxu0 %v7160_v51 }
 0x689   :  { %v7659_v53 = vpop.eup %7658  ;;  %7163 = vmatpush3.bf16.msra.mxu0 %v7160_v51 }
 0x68a   :  { %v7661_v54 = vpop.eup %7660  ;;  %7166 = vmatprep.subr.msk.bf16.mxu0 %vm8049_vm1, %v7164_v52  ;;  %v1024_v56 = vmul.f32 %v7659_v53, %v7655_v38 }
 0x68b   :  { %v1023_v55 = vmul.f32 %v7661_v54, %v7657_v40 }
 0x68d   :  { %6765 = vmatprep.mubr.msk.f32.mxu0 %vm411_vm0, %v1023_v55 }
 0x68e   :  { %6766 = vmatmul.mubr.msk.f32.vlgmr.msra.gmra.mrb[12].mxu0 %vm411_vm0, %v1024_v56 }
 0x68f   :  { %6778 = vmatprep.mubr.msk.f32.mxu0 %vm411_vm0, %v1166_v57 }
 0x692   :  { %7169 = vmatpush3.bf16.xpose.msk.msra.mxu0 %vm8049_vm1, %v7164_v52 }
 0x693   :  { %6788 = vmatprep.subr.bf16.mxu0 %v7834_v39 }
 0x699   :  { %6779 = vmatmul.mubr.msk.f32.vlgmr.msra.gmra.mrb[14].mxu0 %vm411_vm0, %v1168_v58 }
 0x69a   :  { %6790 = vmatprep.mubr.msk.bf16.mxu0 %vm7835_vm2, %v7834_v39  ;;  %6789 = vmatpush3.bf16.msra.mxu0 %v7481_v48 }
 0x761   :  { %v6767_v60 = vpop.f32.mrb[12].mxu0 }
 0x762   :  { %v1103_v61 = vpop.f32.mrb[13].mxu0 }
 0x763   :  { %v1112_v62 = vpack.c.bf16 %v6767_v60, %v1103_v61 }
 0x765   :  { %6771 = vmatmul.mubr.msk.bf16.vlgmr.msra.gmra.mrb[16].mxu1 %vm411_vm0, %v1112_v62 }
 0x76c   :  { %v6780_v63 = vpop.f32.mrb[14].mxu0 }
 0x76d   :  { %v1257_v0 = vmul.f32 0.25, %v6780_v63  ;;  %v1247_v1 = vpop.f32.mrb[15].mxu0 }
 0x76e   :  { %v1256_v3 = vmul.f32 0.25, %v1247_v1 }
 0x76f   :  { %v1261_v4 = vsel %vm411_vm0, %v1257_v0, -inf }
 0x770   :  { %1262 = vmax.xlane.f32.xlu0 %v1261_v4  ;;  %v1258_v5 = vsel %vm411_vm0, %v1256_v3, -inf }
 0x771   :  { %1259 = vmax.xlane.f32.xlu1 %v1258_v5 }
 0x7fd   :  { %v1263_v6 = vpop.xlane.xlu0 %1262 }
 0x7fe   :  { %v1265_v7 = vsub.f32 %v1257_v0, %v1263_v6  ;;  %v1260_v8 = vpop.xlane.xlu1 %1259 }
 0x7ff   :  { %v1264_v9 = vsub.f32 %v1256_v3, %v1260_v8 }
 0x800   :  { %v1268_v10 = vmul.f32 1.442695, %v1265_v7 }
 0x801   :  { %v1266_v11 = vmul.f32 1.442695, %v1264_v9 }
 0x802   :  { %7662 = vpow2.f32 %v1268_v10 }
 0x803   :  { %7664 = vpow2.f32 %v1266_v11 }
 0x80c   :  { %v7663_v13 = vpop.eup %7662 }
 0x80d   :  { %v7665_v15 = vpop.eup %7664  ;;  %v1273_v17 = vsel %vm411_vm0, %v7663_v13, 0.0 }
 0x80e   :  { %1274 = vadd.xlane.f32.xlu1 %v1273_v17  ;;  %v1270_v18 = vsel %vm411_vm0, %v7665_v15, 0.0 }
 0x80f   :  { %1271 = vadd.xlane.f32.xlu0 %v1270_v18 }
 0x81f   :  { %7337 = vrot.lane.b32.xlu1 %v8053_v36, %s9152_s25 }
 0x823   :  { %1420 = vrot.lane.b32.xlu1 %v8039_v28, %s9152_s25 }
 0x825   :  { %7332 = vrot.lane.b32.xlu0 %v8119_v20, %s9154_s0  ;;  %s9180_s0 = smov 96  }
 0x829   :  { %1422 = vrot.lane.b32.xlu0 %v8041_v31, %s9152_s25 }
 0x838   :  { %v1156_v19 = vpop.f32.mrb[16].mxu1 }
 0x839   :  { %v8199_v25 = vadd.f32 %v1156_v19, %v8155_v12  ;;  %v6772_v26 = vpop.f32.mrb[17].mxu1 }
 0x83a   :  { %v1159_v27 = vpop.f32.mrb[18].mxu1 }
 0x83b   :  { %v8202_v29 = vadd.f32 %v1159_v27, %v8157_v16  ;;  %v6773_v30 = vpop.f32.mrb[19].mxu1 }
 0x89b   :  { %v1275_v32 = vpop.xlane.xlu1 %1274 }
 0x89c   :  { %7666 = vrcp.f32 %v1275_v32  ;;  %v1272_v33 = vpop.xlane.xlu0 %1271 }
 0x89d   :  { %7668 = vrcp.f32 %v1272_v33 }
 0x89f   :  { %v7338_v34 = vpop.permute.xlu1 %7337 }
 0x8a0   :  { %v7333_v37 = vpop.permute.xlu0 %7332  ;;  %v7340_v23 = vunpack.i.h.bf16 %v7338_v34  ;;  %v7339_v38 = vunpack.i.l.bf16 %v7338_v34 }
 0x8a1   :  { %v7335_v40 = vunpack.i.h.bf16 %v7333_v37  ;;  %v7334_v41 = vunpack.i.l.bf16 %v7333_v37 }
 0x8a2   :  { %v7174_v43 = vpack.c.bf16 %v7340_v23, %v7339_v38  ;;  %v7482_v38 = vld [vmem:[%s9175_s27 + $0x20] sm:$0xff]  }
 0x8a3   :  { %v7170_v42 = vpack.c.bf16 %v7335_v40, %v7334_v41  ;;  %v1421_v46 = vpop.permute.xlu1 %1420 }
 0x8a4   :  { %v1423_v47 = vpop.permute.xlu0 %1422 }
 0x8a5   :  { %7171 = vmatprep.subr.bf16.mxu1 %v7170_v42 }
 0x8a6   :  { %v7667_v12 = vpop.eup %7666  ;;  %7173 = vmatpush3.bf16.msra.mxu1 %v7170_v42 }
 0x8a7   :  { %v7669_v44 = vpop.eup %7668  ;;  %7176 = vmatprep.subr.msk.bf16.mxu1 %vm8049_vm1, %v7174_v43  ;;  %v1279_v45 = vmul.f32 %v7667_v12, %v7663_v13 }
 0x8a8   :  { %v1278_v16 = vmul.f32 %v7669_v44, %v7665_v15 }
 0x8aa   :  { %6785 = vmatprep.mubr.msk.f32.mxu1 %vm411_vm0, %v1278_v16 }
 0x8ab   :  { %6786 = vmatmul.mubr.msk.f32.vlgmr.msra.gmra.mrb[14].mxu1 %vm411_vm0, %v1279_v45 }
 0x8ac   :  { %6798 = vmatprep.mubr.msk.f32.mxu1 %vm411_vm0, %v1421_v46 }
 0x8af   :  { %7179 = vmatpush3.bf16.xpose.msk.msra.mxu1 %vm8049_vm1, %v7174_v43 }
 0x8b0   :  { %6808 = vmatprep.subr.bf16.mxu1 %v7834_v39 }
 0x8b6   :  { %6799 = vmatmul.mubr.msk.f32.vlgmr.msra.gmra.mrb[20].mxu1 %vm411_vm0, %v1423_v47 }
 0x8b7   :  { %6810 = vmatprep.mubr.msk.bf16.mxu1 %vm7835_vm2, %v7834_v39  ;;  %6809 = vmatpush3.bf16.msra.mxu1 %v7482_v38 }
 0x97e   :  { %v6787_v49 = vpop.f32.mrb[14].mxu1 }
 0x97f   :  { %v1358_v50 = vpop.f32.mrb[15].mxu1 }
 0x980   :  { %v1367_v51 = vpack.c.bf16 %v6787_v49, %v1358_v50 }
 0x982   :  { %6791 = vmatmul.mubr.msk.bf16.vlgmr.msra.gmra.mrb[16].mxu0 %vm411_vm0, %v1367_v51 }
 0x989   :  { %v6800_v52 = vpop.f32.mrb[20].mxu1 }
 0x98a   :  { %v1512_v53 = vmul.f32 0.25, %v6800_v52  ;;  %v1502_v54 = vpop.f32.mrb[21].mxu1 }
 0x98b   :  { %v1511_v55 = vmul.f32 0.25, %v1502_v54 }
 0x98c   :  { %v1516_v56 = vsel %vm411_vm0, %v1512_v53, -inf }
 0x98d   :  { %1517 = vmax.xlane.f32.xlu0 %v1516_v56  ;;  %v1513_v57 = vsel %vm411_vm0, %v1511_v55, -inf }
 0x98e   :  { %1514 = vmax.xlane.f32.xlu1 %v1513_v57 }
 0xa1a   :  { %v1518_v58 = vpop.xlane.xlu0 %1517 }
 0xa1b   :  { %v1520_v59 = vsub.f32 %v1512_v53, %v1518_v58  ;;  %v1515_v60 = vpop.xlane.xlu1 %1514 }
 0xa1c   :  { %v1519_v61 = vsub.f32 %v1511_v55, %v1515_v60 }
 0xa1d   :  { %v1523_v62 = vmul.f32 1.442695, %v1520_v59 }
 0xa1e   :  { %v1521_v63 = vmul.f32 1.442695, %v1519_v61 }
 0xa1f   :  { %7670 = vpow2.f32 %v1523_v62 }
 0xa20   :  { %7672 = vpow2.f32 %v1521_v63 }
 0xa29   :  { %v7671_v0 = vpop.eup %7670 }
 0xa2a   :  { %v7673_v1 = vpop.eup %7672  ;;  %v1528_v3 = vsel %vm411_vm0, %v7671_v0, 0.0 }
 0xa2b   :  { %1529 = vadd.xlane.f32.xlu1 %v1528_v3  ;;  %v1525_v4 = vsel %vm411_vm0, %v7673_v1, 0.0 }
 0xa2c   :  { %1526 = vadd.xlane.f32.xlu0 %v1525_v4 }
 0xa3c   :  { %7347 = vrot.lane.b32.xlu1 %v8053_v36, %s9150_s6 }
 0xa40   :  { %1675 = vrot.lane.b32.xlu1 %v8039_v28, %s9150_s6 }
 0xa42   :  { %7342 = vrot.lane.b32.xlu0 %v8119_v20, %s9152_s25  ;;  %s9177_s25 = sld [smem:[#allocation14_spill]] }
 0xa46   :  { %1677 = vrot.lane.b32.xlu0 %v8041_v31, %s9150_s6 }
 0xa55   :  { %v1411_v5 = vpop.f32.mrb[16].mxu0 }
 0xa56   :  { %v8232_v6 = vadd.f32 %v1411_v5, %v8199_v25  ;;  %v6792_v7 = vpop.f32.mrb[17].mxu0 }
 0xa57   :  { %v1414_v8 = vpop.f32.mrb[18].mxu0 }
 0xa58   :  { %v8235_v9 = vadd.f32 %v1414_v8, %v8202_v29  ;;  %v6793_v10 = vpop.f32.mrb[19].mxu0 }
 0xab8   :  { %v1530_v11 = vpop.xlane.xlu1 %1529 }
 0xab9   :  { %7674 = vrcp.f32 %v1530_v11  ;;  %v1527_v13 = vpop.xlane.xlu0 %1526 }
 0xaba   :  { %7676 = vrcp.f32 %v1527_v13 }
 0xabc   :  { %v7348_v15 = vpop.permute.xlu1 %7347 }
 0xabd   :  { %v7343_v17 = vpop.permute.xlu0 %7342  ;;  %v7350_v18 = vunpack.i.h.bf16 %v7348_v15  ;;  %v7349_v19 = vunpack.i.l.bf16 %v7348_v15 }
 0xabe   :  { %v7345_v26 = vunpack.i.h.bf16 %v7343_v17  ;;  %v7344_v27 = vunpack.i.l.bf16 %v7343_v17 }
 0xabf   :  { %v7184_v32 = vpack.c.bf16 %v7350_v18, %v7349_v19  ;;  %v7483_v19 = vld [vmem:[%s9175_s27 + $0x28] sm:$0xff]  }
 0xac0   :  { %v7180_v30 = vpack.c.bf16 %v7345_v26, %v7344_v27  ;;  %v1676_v37 = vpop.permute.xlu1 %1675 }
 0xac1   :  { %v1678_v23 = vpop.permute.xlu0 %1677 }
 0xac2   :  { %7181 = vmatprep.subr.bf16.mxu0 %v7180_v30 }
 0xac3   :  { %v7675_v25 = vpop.eup %7674  ;;  %7183 = vmatpush3.bf16.msra.mxu0 %v7180_v30 }
 0xac4   :  { %v7677_v33 = vpop.eup %7676  ;;  %7186 = vmatprep.subr.msk.bf16.mxu0 %vm8049_vm1, %v7184_v32  ;;  %v1534_v34 = vmul.f32 %v7675_v25, %v7671_v0 }
 0xac5   :  { %v1533_v29 = vmul.f32 %v7677_v33, %v7673_v1 }
 0xac7   :  { %6805 = vmatprep.mubr.msk.f32.mxu0 %vm411_vm0, %v1533_v29 }
 0xac8   :  { %6806 = vmatmul.mubr.msk.f32.vlgmr.msra.gmra.mrb[20].mxu0 %vm411_vm0, %v1534_v34 }
 0xac9   :  { %6818 = vmatprep.mubr.msk.f32.mxu0 %vm411_vm0, %v1676_v37 }
 0xacc   :  { %7189 = vmatpush3.bf16.xpose.msk.msra.mxu0 %vm8049_vm1, %v7184_v32 }
 0xacd   :  { %6828 = vmatprep.subr.bf16.mxu0 %v7834_v39 }
 0xad3   :  { %6819 = vmatmul.mubr.msk.f32.vlgmr.msra.gmra.mrb[22].mxu0 %vm411_vm0, %v1678_v23 }
 0xad4   :  { %6830 = vmatprep.mubr.msk.bf16.mxu0 %vm7835_vm2, %v7834_v39  ;;  %6829 = vmatpush3.bf16.msra.mxu0 %v7483_v19 }
 0xb9b   :  { %v6807_v40 = vpop.f32.mrb[20].mxu0 }
 0xb9c   :  { %v1613_v41 = vpop.f32.mrb[21].mxu0 }
 0xb9d   :  { %v1622_v42 = vpack.c.bf16 %v6807_v40, %v1613_v41 }
 0xb9f   :  { %6811 = vmatmul.mubr.msk.bf16.vlgmr.msra.gmra.mrb[24].mxu1 %vm411_vm0, %v1622_v42 }
 0xba6   :  { %v6820_v43 = vpop.f32.mrb[22].mxu0 }
 0xba7   :  { %v1767_v12 = vmul.f32 0.25, %v6820_v43  ;;  %v1757_v44 = vpop.f32.mrb[23].mxu0 }
 0xba8   :  { %v1766_v16 = vmul.f32 0.25, %v1757_v44 }
 0xba9   :  { %v1771_v45 = vsel %vm411_vm0, %v1767_v12, -inf }
 0xbaa   :  { %1772 = vmax.xlane.f32.xlu0 %v1771_v45  ;;  %v1768_v46 = vsel %vm411_vm0, %v1766_v16, -inf }
 0xbab   :  { %1769 = vmax.xlane.f32.xlu1 %v1768_v46 }
 0xc37   :  { %v1773_v47 = vpop.xlane.xlu0 %1772 }
 0xc38   :  { %v1775_v48 = vsub.f32 %v1767_v12, %v1773_v47  ;;  %v1770_v49 = vpop.xlane.xlu1 %1769 }
 0xc39   :  { %v1774_v50 = vsub.f32 %v1766_v16, %v1770_v49 }
 0xc3a   :  { %v1778_v51 = vmul.f32 1.442695, %v1775_v48 }
 0xc3b   :  { %v1776_v52 = vmul.f32 1.442695, %v1774_v50 }
 0xc3c   :  { %7678 = vpow2.f32 %v1778_v51 }
 0xc3d   :  { %7680 = vpow2.f32 %v1776_v52 }
 0xc46   :  { %v7679_v53 = vpop.eup %7678 }
 0xc47   :  { %v7681_v54 = vpop.eup %7680  ;;  %v1783_v55 = vsel %vm411_vm0, %v7679_v53, 0.0 }
 0xc48   :  { %1784 = vadd.xlane.f32.xlu1 %v1783_v55  ;;  %v1780_v56 = vsel %vm411_vm0, %v7681_v54, 0.0 }
 0xc49   :  { %1781 = vadd.xlane.f32.xlu0 %v1780_v56 }
 0xc59   :  { %7357 = vrot.lane.b32.xlu1 %v8053_v36, %s9148_s4 }
 0xc5d   :  { %1930 = vrot.lane.b32.xlu1 %v8039_v28, %s9148_s4 }
 0xc5f   :  { %7352 = vrot.lane.b32.xlu0 %v8119_v20, %s9150_s6 }
 0xc63   :  { %1932 = vrot.lane.b32.xlu0 %v8041_v31, %s9148_s4 }
 0xc72   :  { %v1666_v57 = vpop.f32.mrb[24].mxu1 }
 0xc73   :  { %v8265_v58 = vadd.f32 %v1666_v57, %v8232_v6  ;;  %v6812_v59 = vpop.f32.mrb[25].mxu1 }
 0xc74   :  { %v1669_v60 = vpop.f32.mrb[26].mxu1 }
 0xc75   :  { %v8268_v61 = vadd.f32 %v1669_v60, %v8235_v9  ;;  %v6813_v62 = vpop.f32.mrb[27].mxu1 }
 0xcd5   :  { %v1785_v63 = vpop.xlane.xlu1 %1784 }
 0xcd6   :  { %7682 = vrcp.f32 %v1785_v63  ;;  %v1782_v0 = vpop.xlane.xlu0 %1781 }
 0xcd7   :  { %7684 = vrcp.f32 %v1782_v0 }
 0xcd9   :  { %v7358_v1 = vpop.permute.xlu1 %7357 }
 0xcda   :  { %v7353_v3 = vpop.permute.xlu0 %7352  ;;  %v7360_v4 = vunpack.i.h.bf16 %v7358_v1  ;;  %v7359_v5 = vunpack.i.l.bf16 %v7358_v1  ;;  %v7484_v1 = vld [vmem:[%s9175_s27 + $0x30] sm:$0xff]  }
 0xcdb   :  { %v7355_v7 = vunpack.i.h.bf16 %v7353_v3  ;;  %v7354_v8 = vunpack.i.l.bf16 %v7353_v3 }
 0xcdc   :  { %v7194_v11 = vpack.c.bf16 %v7360_v4, %v7359_v5 }
 0xcdd   :  { %v7190_v10 = vpack.c.bf16 %v7355_v7, %v7354_v8  ;;  %v1931_v17 = vpop.permute.xlu1 %1930 }
 0xcde   :  { %v1933_v18 = vpop.permute.xlu0 %1932 }
 0xcdf   :  { %7191 = vmatprep.subr.bf16.mxu1 %v7190_v10 }
 0xce0   :  { %v7683_v6 = vpop.eup %7682  ;;  %7193 = vmatpush3.bf16.msra.mxu1 %v7190_v10 }
 0xce1   :  { %v7685_v13 = vpop.eup %7684  ;;  %7196 = vmatprep.subr.msk.bf16.mxu1 %vm8049_vm1, %v7194_v11  ;;  %v1789_v15 = vmul.f32 %v7683_v6, %v7679_v53 }
 0xce2   :  { %v1788_v9 = vmul.f32 %v7685_v13, %v7681_v54 }
 0xce4   :  { %6825 = vmatprep.mubr.msk.f32.mxu1 %vm411_vm0, %v1788_v9 }
 0xce5   :  { %6826 = vmatmul.mubr.msk.f32.vlgmr.msra.gmra.mrb[22].mxu1 %vm411_vm0, %v1789_v15 }
 0xce6   :  { %6838 = vmatprep.mubr.msk.f32.mxu1 %vm411_vm0, %v1931_v17 }
 0xce9   :  { %7199 = vmatpush3.bf16.xpose.msk.msra.mxu1 %vm8049_vm1, %v7194_v11 }
 0xcea   :  { %6848 = vmatprep.subr.bf16.mxu1 %v7834_v39 }
 0xcf0   :  { %6839 = vmatmul.mubr.msk.f32.vlgmr.msra.gmra.mrb[28].mxu1 %vm411_vm0, %v1933_v18 }
 0xcf1   :  { %6850 = vmatprep.mubr.msk.bf16.mxu1 %vm7835_vm2, %v7834_v39  ;;  %6849 = vmatpush3.bf16.msra.mxu1 %v7484_v1 }
 0xdb8   :  { %v6827_v26 = vpop.f32.mrb[22].mxu1 }
 0xdb9   :  { %v1868_v27 = vpop.f32.mrb[23].mxu1 }
 0xdba   :  { %v1877_v30 = vpack.c.bf16 %v6827_v26, %v1868_v27 }
 0xdbc   :  { %6831 = vmatmul.mubr.msk.bf16.vlgmr.msra.gmra.mrb[24].mxu0 %vm411_vm0, %v1877_v30 }
 0xdc3   :  { %v6840_v32 = vpop.f32.mrb[28].mxu1 }
 0xdc4   :  { %v2022_v25 = vmul.f32 0.25, %v6840_v32  ;;  %v2012_v33 = vpop.f32.mrb[29].mxu1 }
 0xdc5   :  { %v2021_v29 = vmul.f32 0.25, %v2012_v33 }
 0xdc6   :  { %v2026_v34 = vsel %vm411_vm0, %v2022_v25, -inf }
 0xdc7   :  { %2027 = vmax.xlane.f32.xlu0 %v2026_v34  ;;  %v2023_v37 = vsel %vm411_vm0, %v2021_v29, -inf }
 0xdc8   :  { %2024 = vmax.xlane.f32.xlu1 %v2023_v37 }
 0xe54   :  { %v2028_v23 = vpop.xlane.xlu0 %2027 }
 0xe55   :  { %v2030_v38 = vsub.f32 %v2022_v25, %v2028_v23  ;;  %v2025_v40 = vpop.xlane.xlu1 %2024 }
 0xe56   :  { %v2029_v41 = vsub.f32 %v2021_v29, %v2025_v40 }
 0xe57   :  { %v2033_v42 = vmul.f32 1.442695, %v2030_v38 }
 0xe58   :  { %v2031_v43 = vmul.f32 1.442695, %v2029_v41 }
 0xe59   :  { %7686 = vpow2.f32 %v2033_v42 }
 0xe5a   :  { %7688 = vpow2.f32 %v2031_v43 }
 0xe63   :  { %v7687_v12 = vpop.eup %7686 }
 0xe64   :  { %v7689_v44 = vpop.eup %7688  ;;  %v2038_v16 = vsel %vm411_vm0, %v7687_v12, 0.0 }
 0xe65   :  { %2039 = vadd.xlane.f32.xlu1 %v2038_v16  ;;  %v2035_v45 = vsel %vm411_vm0, %v7689_v44, 0.0 }
 0xe66   :  { %2036 = vadd.xlane.f32.xlu0 %v2035_v45 }
 0xe76   :  { %7367 = vrot.lane.b32.xlu1 %v8053_v36, %s9146_s26 }
 0xe7a   :  { %2185 = vrot.lane.b32.xlu1 %v8039_v28, %s9146_s26 }
 0xe7c   :  { %7362 = vrot.lane.b32.xlu0 %v8119_v20, %s9148_s4  ;;  %s9184_s4 = smov 32  }
 0xe80   :  { %2187 = vrot.lane.b32.xlu0 %v8041_v31, %s9146_s26 }
 0xe8f   :  { %v1921_v46 = vpop.f32.mrb[24].mxu0 }
 0xe90   :  { %v8298_v47 = vadd.f32 %v1921_v46, %v8265_v58  ;;  %v6832_v48 = vpop.f32.mrb[25].mxu0 }
 0xe91   :  { %v1924_v49 = vpop.f32.mrb[26].mxu0 }
 0xe92   :  { %v8301_v50 = vadd.f32 %v1924_v49, %v8268_v61  ;;  %v6833_v51 = vpop.f32.mrb[27].mxu0 }
 0xef2   :  { %v2040_v36 = vpop.xlane.xlu1 %2039 }
 0xef3   :  { %7690 = vrcp.f32 %v2040_v36  ;;  %v2037_v52 = vpop.xlane.xlu0 %2036 }
 0xef4   :  { %7692 = vrcp.f32 %v2037_v52 }
 0xef6   :  { %v7368_v28 = vpop.permute.xlu1 %7367 }
 0xef7   :  { %v7363_v53 = vpop.permute.xlu0 %7362  ;;  %v7370_v54 = vunpack.i.h.bf16 %v7368_v28  ;;  %v7369_v55 = vunpack.i.l.bf16 %v7368_v28 }
 0xef8   :  { %v7365_v56 = vunpack.i.h.bf16 %v7363_v53  ;;  %v7364_v31 = vunpack.i.l.bf16 %v7363_v53 }
 0xef9   :  { %v7204_v59 = vpack.c.bf16 %v7370_v54, %v7369_v55 }
 0xefa   :  { %v7200_v57 = vpack.c.bf16 %v7365_v56, %v7364_v31  ;;  %v2186_v63 = vpop.permute.xlu1 %2185 }
 0xefb   :  { %v2188_v0 = vpop.permute.xlu0 %2187 }
 0xefc   :  { %7201 = vmatprep.subr.bf16.mxu0 %v7200_v57 }
 0xefd   :  { %v7691_v58 = vpop.eup %7690  ;;  %7203 = vmatpush3.bf16.msra.mxu0 %v7200_v57  ;;  %v7782_v57 = vld [vmem:[%s9171_s2] sm:$0xff] }
 0xefe   :  { %v7693_v60 = vpop.eup %7692  ;;  %7206 = vmatprep.subr.msk.bf16.mxu0 %vm8049_vm1, %v7204_v59  ;;  %v2044_v62 = vmul.f32 %v7691_v58, %v7687_v12  ;;  %v7783_v58 = vld [vmem:[%s9171_s2 + $0x8] sm:$0xff]  ;;  %s9182_s2 = smov 64  }
 0xeff   :  { %v2043_v61 = vmul.f32 %v7693_v60, %v7689_v44 }
 0xf01   :  { %6845 = vmatprep.mubr.msk.f32.mxu0 %vm411_vm0, %v2043_v61  ;;  %v7486_v61 = vld [vmem:[%s9123_s8] ss:$8 sps:$4 sm:$0xff]  }
 0xf02   :  { %6846 = vmatmul.mubr.msk.f32.vlgmr.msra.gmra.mrb[28].mxu0 %vm411_vm0, %v2044_v62  ;;  %v7488_v62 = vld [vmem:[%s9123_s8 + $0x4] ss:$8 sps:$4 sm:$0xff]  }
 0xf03   :  { %6858 = vmatprep.mubr.msk.f32.mxu0 %vm411_vm0, %v2186_v63  ;;  %v7491_v63 = vld [vmem:[%s9123_s8 + $0x14] ss:$8 sps:$4 sm:$0xff]  }
 0xf06   :  { %7209 = vmatpush3.bf16.xpose.msk.msra.mxu0 %vm8049_vm1, %v7204_v59 }
 0xf07   :  { %6868 = vmatprep.subr.bf16.mxu0 %v7834_v39 }
 0xf0d   :  { %6859 = vmatmul.mubr.msk.f32.vlgmr.msra.gmra.mrb[30].mxu0 %vm411_vm0, %v2188_v0  ;;  %v7489_v0 = vld [vmem:[%s9123_s8 + $0x10] ss:$8 sps:$4 sm:$0xff]  }
 0xf0e   :  { %6870 = vmatprep.mubr.msk.bf16.mxu0 %vm7835_vm2, %v7834_v39 }
 0xfd5   :  { %v6847_v3 = vpop.f32.mrb[28].mxu0 }
 0xfd6   :  { %v2123_v4 = vpop.f32.mrb[29].mxu0 }
 0xfd7   :  { %v2132_v5 = vpack.c.bf16 %v6847_v3, %v2123_v4 }
 0xfd9   :  { %6851 = vmatmul.mubr.msk.bf16.vlgmr.msra.gmra.mrb[32].mxu1 %vm411_vm0, %v2132_v5 }
 0xfe0   :  { %v6860_v7 = vpop.f32.mrb[30].mxu0 }
 0xfe1   :  { %v2277_v8 = vmul.f32 0.25, %v6860_v7  ;;  %v2267_v10 = vpop.f32.mrb[31].mxu0 }
 0xfe2   :  { %v2276_v11 = vmul.f32 0.25, %v2267_v10 }
 0xfe3   :  { %v2281_v6 = vsel %vm411_vm0, %v2277_v8, -inf }
 0xfe4   :  { %2282 = vmax.xlane.f32.xlu0 %v2281_v6  ;;  %v2278_v13 = vsel %vm411_vm0, %v2276_v11, -inf  ;;  %v7494_v6 = vld [vmem:[%s9123_s8 + $0x24] ss:$8 sps:$4 sm:$0xff]  }
 0xfe5   :  { %2279 = vmax.xlane.f32.xlu1 %v2278_v13  ;;  %v7492_v13 = vld [vmem:[%s9123_s8 + $0x20] ss:$8 sps:$4 sm:$0xff]  }
0x1071   :  { %v2283_v9 = vpop.xlane.xlu0 %2282 }
0x1072   :  { %v2285_v15 = vsub.f32 %v2277_v8, %v2283_v9  ;;  %v2280_v17 = vpop.xlane.xlu1 %2279  ;;  %v7497_v9 = vld [vmem:[%s9123_s8 + $0x34] ss:$8 sps:$4 sm:$0xff]  }
0x1073   :  { %v2284_v18 = vsub.f32 %v2276_v11, %v2280_v17  ;;  %v7500_v17 = vld [vmem:[%s9123_s8 + $0x44] ss:$8 sps:$4 sm:$0xff]  }
0x1074   :  { %v2288_v19 = vmul.f32 1.442695, %v2285_v15  ;;  %v7495_v15 = vld [vmem:[%s9123_s8 + $0x30] ss:$8 sps:$4 sm:$0xff]  }
0x1075   :  { %v2286_v26 = vmul.f32 1.442695, %v2284_v18  ;;  %v7498_v18 = vld [vmem:[%s9123_s8 + $0x40] ss:$8 sps:$4 sm:$0xff]  }
0x1076   :  { %7694 = vpow2.f32 %v2288_v19  ;;  %v7503_v19 = vld [vmem:[%s9123_s8 + $0x54] ss:$8 sps:$4 sm:$0xff]  }
0x1077   :  { %7696 = vpow2.f32 %v2286_v26  ;;  %v7501_v26 = vld [vmem:[%s9123_s8 + $0x50] ss:$8 sps:$4 sm:$0xff]  }
0x1080   :  { %v7695_v27 = vpop.eup %7694 }
0x1081   :  { %v7697_v30 = vpop.eup %7696  ;;  %v2293_v32 = vsel %vm411_vm0, %v7695_v27, 0.0 }
0x1082   :  { %2294 = vadd.xlane.f32.xlu1 %v2293_v32  ;;  %v2290_v25 = vsel %vm411_vm0, %v7697_v30, 0.0  ;;  %v7509_v32 = vld [vmem:[%s9123_s8 + $0x74] ss:$8 sps:$4 sm:$0xff]  }
0x1083   :  { %2291 = vadd.xlane.f32.xlu0 %v2290_v25  ;;  %v7507_v25 = vld [vmem:[%s9123_s8 + $0x70] ss:$8 sps:$4 sm:$0xff]  }
0x1099   :  { %7372 = vrot.lane.b32.xlu0 %v8119_v20, %s9146_s26  ;;  %s9176_s26 = sld [smem:[#allocation13_spill]] }
0x109f   :  { %v6133_v51 = vld [vmem:[%s9176_s26] ss:$0 sm:$0xff] }
0x10ac   :  { %v2176_v33 = vpop.f32.mrb[32].mxu1 }
0x10ad   :  { %v2183_v29 = vadd.f32 %v2176_v33, %v8298_v47  ;;  %v6852_v34 = vpop.f32.mrb[33].mxu1  ;;  %v7485_v47 = vld [vmem:[%s9175_s27 + $0x38] sm:$0xff]   ;;  %v7510_v33 = vld [vmem:[%s9125_s10 + $0x40] sm:$0xff]  }
0x10ae   :  { %v2179_v37 = vpop.f32.mrb[34].mxu1  ;;  %6869 = vmatpush3.bf16.msra.mxu0 %v7485_v47  ;;  %v7512_v34 = vld [vmem:[%s9125_s10 + $0x48] sm:$0xff]  }
0x10af   :  { %v2184_v23 = vadd.f32 %v2179_v37, %v8301_v50  ;;  %v6853_v38 = vpop.f32.mrb[35].mxu1  ;;  %6525 = vmatprep.subr.bf16.mxu0 %v7510_v33  ;;  %v7513_v37 = vld [vmem:[%s9125_s10 + $0x8] sm:$0xff]  }
0x10b0   :  { %v7515_v38 = vld [vmem:[%s9125_s10 + $0x10] sm:$0xff]  }
0x110f   :  { %v2295_v40 = vpop.xlane.xlu1 %2294 }
0x1110   :  { %7698 = vrcp.f32 %v2295_v40  ;;  %v2292_v41 = vpop.xlane.xlu0 %2291  ;;  %v7516_v40 = vld [vmem:[%s9125_s10 + $0x58] sm:$0xff]  }
0x1111   :  { %7700 = vrcp.f32 %v2292_v41  ;;  %v7517_v41 = vld [vmem:[%s9125_s10 + $0x18] sm:$0xff]  }
0x1114   :  { %v7373_v42 = vpop.permute.xlu0 %7372 }
0x1115   :  { %v7375_v43 = vunpack.i.h.bf16 %v7373_v42  ;;  %v7374_v12 = vunpack.i.l.bf16 %v7373_v42  ;;  %v7518_v42 = vld [vmem:[%s9125_s10 + $0x60] sm:$0xff]  }
0x1117   :  { %v7210_v44 = vpack.c.bf16 %v7375_v43, %v7374_v12  ;;  %v7519_v43 = vld [vmem:[%s9125_s10 + $0x20] sm:$0xff]   ;;  %v7520_v12 = vld [vmem:[%s9125_s10 + $0x68] sm:$0xff]  }
0x1119   :  { %7211 = vmatprep.subr.bf16.mxu1 %v7210_v44 }
0x111a   :  { %v7699_v16 = vpop.eup %7698  ;;  %7213 = vmatpush3.bf16.msra.mxu1 %v7210_v44 }
0x111b   :  { %v7701_v20 = vpop.eup %7700  ;;  %v2299_v46 = vmul.f32 %v7699_v16, %v7695_v27  ;;  %2581 = vmatprep.subr.bf16.mxu1 %v7488_v62  ;;  %v7506_v27 = vld [vmem:[%s9123_s8 + $0x64] ss:$8 sps:$4 sm:$0xff]  }
0x111c   :  { %v2298_v45 = vmul.f32 %v7701_v20, %v7697_v30  ;;  %v7504_v30 = vld [vmem:[%s9123_s8 + $0x60] ss:$8 sps:$4 sm:$0xff]  }
0x111e   :  { %6865 = vmatprep.mubr.msk.f32.mxu1 %vm411_vm0, %v2298_v45 }
0x111f   :  { %6866 = vmatmul.mubr.msk.f32.vlgmr.msra.gmra.mrb[30].mxu1 %vm411_vm0, %v2299_v46 }
0x1120   :  { %2613 = vmatprep.mubr.bf16.mxu1 %v7832_v2  ;;  %2582 = vmatpush1.bf16.msra.mxu1 %v7486_v61  ;;  %v146_v61 = vld [vmem:[%s9124_s9] sm:$0x3] }
0x1121   :  { %2583 = vmatprep.subr.bf16.mxu1 %v7491_v63  ;;  %v2494_v62 = vrot.slane %v146_v61, %v8025_v22  ;;  %v2498_v63 = vrot.slane %v146_v61, %v8033_v24  ;;  %v7556_v61 = vld [vmem:[%s9170_s24 + $0x16c] ss:$12 sps:$4 sm:$0xff]  }
0x1124   :  { %2584 = vmatpush1.bf16.msra.mxu1 %v7489_v0 }
0x1125   :  { %2585 = vmatprep.subr.bf16.mxu1 %v7494_v6 }
0x1128   :  { %2586 = vmatpush1.bf16.msra.mxu1 %v7492_v13 }
0x1129   :  { %2587 = vmatprep.subr.bf16.mxu1 %v7497_v9 }
0x112c   :  { %2588 = vmatpush1.bf16.msra.mxu1 %v7495_v15 }
0x112d   :  { %2589 = vmatprep.subr.bf16.mxu1 %v7500_v17 }
0x1130   :  { %2590 = vmatpush1.bf16.msra.mxu1 %v7498_v18 }
0x1131   :  { %2591 = vmatprep.subr.bf16.mxu1 %v7503_v19  ;;  %v6152_v19 = vld [vmem:[%s9126_s11] ss:$0 sm:$0xff] }
0x1134   :  { %2592 = vmatpush1.bf16.msra.mxu1 %v7501_v26 }
0x1135   :  { %2593 = vmatprep.subr.bf16.mxu1 %v7506_v27 }
0x1138   :  { %2594 = vmatpush1.bf16.msra.mxu1 %v7504_v30 }
0x1139   :  { %2595 = vmatprep.subr.bf16.mxu1 %v7509_v32 }
0x113c   :  { %2596 = vmatpush1.bf16.msra.mxu1 %v7507_v25 }
0x11f2   :  { %v6867_v48 = vpop.f32.mrb[30].mxu1 }
0x11f3   :  { %v2378_v49 = vpop.f32.mrb[31].mxu1 }
0x11f4   :  { %v2387_v50 = vpack.c.bf16 %v6867_v48, %v2378_v49 }
0x11f6   :  { %6871 = vmatmul.mubr.msk.bf16.vlgmr.msra.gmra.mrb[32].mxu0 %vm411_vm0, %v2387_v50  ;;  %v6134_v50 = vld [vmem:[%s9177_s25] ss:$0 sm:$0xff] }
0x12c9   :  { %v2431_v36 = vpop.f32.mrb[32].mxu0 }
0x12ca   :  { %v2438_v52 = vadd.f32 %v2431_v36, %v2183_v29  ;;  %v6872_v28 = vpop.f32.mrb[33].mxu0  ;;  %v7511_v29 = vld [vmem:[%s9125_s10] sm:$0xff]  }
0x12cb   :  { %v2434_v53 = vpop.f32.mrb[34].mxu0  ;;  %6526 = vmatpush3.bf16.msra.mxu0 %v7511_v29  ;;  %v6135_v28 = vld [vmem:[%s9178_s7] ss:$0 sm:$0xff] }
0x12cc   :  { %v2446_v54 = vadd.f32 %v6133_v51, %v2438_v52  ;;  %v2439_v55 = vadd.f32 %v2434_v53, %v2184_v23  ;;  %v6873_v56 = vpop.f32.mrb[35].mxu0  ;;  %6527 = vmatprep.subr.bf16.mxu0 %v7512_v34  ;;  %v7514_v23 = vld [vmem:[%s9125_s10 + $0x50] sm:$0xff]  }
0x12ce   :  { %v2447_v31 = vadd.f32 %v6133_v51, %v2439_v55  ;;  %v2448_v59 = vadd.f32 %v7782_v57, %v2446_v54  ;;  %v7522_v57 = vld [vmem:[%s9125_s10 + $0x70] sm:$0xff]  }
0x12cf   :  { %6528 = vmatpush3.bf16.msra.mxu0 %v7513_v37 }
0x12d0   :  { %2450 = vadd.xlane.f32.xlu1 %v2448_v59  ;;  %v2449_v60 = vadd.f32 %v7783_v58, %v2447_v31  ;;  %6529 = vmatprep.subr.bf16.mxu0 %v7514_v23  ;;  %v7521_v31 = vld [vmem:[%s9125_s10 + $0x28] sm:$0xff]   ;;  %v7524_v58 = vld [vmem:[%s9125_s10 + $0x78] sm:$0xff]  }
0x12d1   :  { %v7526_v23 = vld [vmem:[%s9170_s24 + $0xc0] ss:$12 sps:$4 sm:$0xff]  }
0x12d3   :  { %6530 = vmatpush3.bf16.msra.mxu0 %v7515_v38  ;;  %v7528_v38 = vld [vmem:[%s9170_s24 + $0xc4] ss:$12 sps:$4 sm:$0xff]  }
0x12d4   :  { %2452 = vadd.xlane.f32.xlu1 %v2449_v60  ;;  %6531 = vmatprep.subr.bf16.mxu0 %v7516_v40  ;;  %v7529_v40 = vld [vmem:[%s9170_s24 + $0xc8] ss:$12 sps:$4 sm:$0xff]  }
0x12d5   :  { %3074 = vmatprep.subr.bf16.mxu1 %v7528_v38 }
0x12d7   :  { %6532 = vmatpush3.bf16.msra.mxu0 %v7517_v41  ;;  %v7532_v41 = vld [vmem:[%s9170_s24 + $0xdc] ss:$12 sps:$4 sm:$0xff]  }
0x12d8   :  { %6533 = vmatprep.subr.bf16.mxu0 %v7518_v42  ;;  %v7530_v42 = vld [vmem:[%s9170_s24 + $0xd8] ss:$12 sps:$4 sm:$0xff]  }
0x12db   :  { %6534 = vmatpush3.bf16.msra.mxu0 %v7519_v43 }
0x12dc   :  { %6535 = vmatprep.subr.bf16.mxu0 %v7520_v12 }
0x12df   :  { %6536 = vmatpush3.bf16.msra.mxu0 %v7521_v31  ;;  %v7546_v31 = vld [vmem:[%s9170_s24 + $0x138] ss:$12 sps:$4 sm:$0xff]  }
0x12e0   :  { %6537 = vmatprep.subr.bf16.mxu0 %v7522_v57  ;;  %v7549_v57 = vld [vmem:[%s9170_s24 + $0x140] ss:$12 sps:$4 sm:$0xff]  }
0x135d   :  { %v2451_v1 = vpop.xlane.xlu1 %2450 }
0x135e   :  { %v2455_v3 = vmul.f32 0.0078125, %v2451_v1 }
0x1360   :  { %v8354_v4 = vsub.f32 %v2448_v59, %v2455_v3  ;;  %v7523_v59 = vld [vmem:[%s9125_s10 + $0x30] sm:$0xff]  }
0x1361   :  { %v2453_v5 = vpop.xlane.xlu1 %2452  ;;  %6538 = vmatpush3.bf16.msra.mxu0 %v7523_v59  ;;  %v7552_v59 = vld [vmem:[%s9170_s24 + $0x154] ss:$12 sps:$4 sm:$0xff]  }
0x1362   :  { %v2456_v7 = vmul.f32 0.0078125, %v2453_v5  ;;  %v2459_v8 = vmul.f32 %v8354_v4, %v8354_v4  ;;  %6539 = vmatprep.subr.bf16.mxu0 %v7524_v58  ;;  %v7550_v58 = vld [vmem:[%s9170_s24 + $0x150] ss:$12 sps:$4 sm:$0xff]  }
0x1364   :  { %v2458_v10 = vsub.f32 %v2449_v60, %v2456_v7  ;;  %2461 = vadd.xlane.f32.xlu1 %v2459_v8  ;;  %v7525_v60 = vld [vmem:[%s9125_s10 + $0x38] sm:$0xff]  }
0x1365   :  { %6540 = vmatpush3.bf16.msra.mxu0 %v7525_v60  ;;  %v7553_v60 = vld [vmem:[%s9170_s24 + $0x158] ss:$12 sps:$4 sm:$0xff]  }
0x1366   :  { %v2460_v11 = vmul.f32 %v2458_v10, %v2458_v10  ;;  %6874 = vmatprep.subr.bf16.mxu0 %v7834_v39 }
0x1368   :  { %2463 = vadd.xlane.f32.xlu1 %v2460_v11 }
0x13f1   :  { %v2462_v44 = vpop.xlane.xlu1 %2461 }
0x13f2   :  { %v2465_v16 = vmul.f32 0.0078125, %v2462_v44 }
0x13f4   :  { %v2467_v20 = vadd.f32 1e-05, %v2465_v16 }
0x13f5   :  { %v2464_v45 = vpop.xlane.xlu1 %2463 }
0x13f6   :  { %7702 = vrsqrt.f32 %v2467_v20  ;;  %v2466_v46 = vmul.f32 0.0078125, %v2464_v45 }
0x13f8   :  { %v2468_v47 = vadd.f32 1e-05, %v2466_v46 }
0x13fa   :  { %7704 = vrsqrt.f32 %v2468_v47 }
0x1400   :  { %v7703_v48 = vpop.eup %7702 }
0x1401   :  { %v2471_v49 = vmul.f32 %v7703_v48, %v8354_v4  ;;  %v7533_v48 = vld [vmem:[%s9170_s24 + $0xe0] ss:$12 sps:$4 sm:$0xff]  }
0x1403   :  { %v2479_v52 = vmul.f32 %v6134_v50, %v2471_v49  ;;  %v7536_v49 = vld [vmem:[%s9170_s24 + $0xf4] ss:$12 sps:$4 sm:$0xff]  }
0x1404   :  { %v7705_v51 = vpop.eup %7704 }
0x1405   :  { %v2472_v36 = vmul.f32 %v7705_v51, %v2458_v10  ;;  %v2487_v54 = vadd.f32 %v6135_v28, %v2479_v52  ;;  %v7537_v51 = vld [vmem:[%s9170_s24 + $0xf8] ss:$12 sps:$4 sm:$0xff]   ;;  %v7538_v52 = vld [vmem:[%s9170_s24 + $0x108] ss:$12 sps:$4 sm:$0xff]  }
0x1407   :  { %v2480_v53 = vmul.f32 %v6134_v50, %v2472_v36  ;;  %v7534_v50 = vld [vmem:[%s9170_s24 + $0xf0] ss:$12 sps:$4 sm:$0xff]   ;;  %v7540_v36 = vld [vmem:[%s9170_s24 + $0x10c] ss:$12 sps:$4 sm:$0xff]  }
0x1409   :  { %v2488_v55 = vadd.f32 %v6135_v28, %v2480_v53  ;;  %v7541_v28 = vld [vmem:[%s9170_s24 + $0x110] ss:$12 sps:$4 sm:$0xff]  }
0x140a   :  { %v7544_v53 = vld [vmem:[%s9170_s24 + $0x124] ss:$12 sps:$4 sm:$0xff]  }
0x140b   :  { %v2489_v56 = vpack.c.bf16 %v2488_v55, %v2487_v54 }
0x140d   :  { %2614 = vmatmul.mubr.bf16.vlgmr.msra.gmra.mrb[36].mxu1 %v2489_v56  ;;  %v7548_v56 = vld [vmem:[%s9170_s24 + $0x13c] ss:$12 sps:$4 sm:$0xff]  }
0x140e   :  { %3106 = vmatprep.mubr.bf16.mxu1 %v7832_v2  ;;  %3075 = vmatpush1.bf16.msra.mxu1 %v7526_v23 }
0x140f   :  { %3076 = vmatprep.subr.bf16.mxu1 %v7532_v41 }
0x1412   :  { %3077 = vmatpush1.bf16.msra.mxu1 %v7530_v42 }
0x1413   :  { %3078 = vmatprep.subr.bf16.mxu1 %v7536_v49 }
0x1416   :  { %3079 = vmatpush1.bf16.msra.mxu1 %v7534_v50 }
0x1417   :  { %3080 = vmatprep.subr.bf16.mxu1 %v7540_v36 }
0x141a   :  { %3081 = vmatpush1.bf16.msra.mxu1 %v7538_v52 }
0x141b   :  { %3082 = vmatprep.subr.bf16.mxu1 %v7544_v53 }
0x14e0   :  { %v2615_v0 = vpop.f32.mrb[36].mxu1 }
0x14e1   :  { %v2616_v1 = vadd.f32 %v2615_v0, %v2494_v62  ;;  %v2617_v3 = vpop.f32.mrb[37].mxu1 }
0x14e2   :  { %v2618_v4 = vadd.f32 %v2617_v3, %v2498_v63  ;;  %v2619_v5 = vpop.f32.mrb[38].mxu1 }
0x14e3   :  { %v2620_v7 = vadd.f32 %v2619_v5, %v2494_v62  ;;  %v2621_v8 = vpop.f32.mrb[39].mxu1  ;;  %v2624_v11 = vmax.f32 %v2616_v1, 0.0  ;;  %v7554_v62 = vld [vmem:[%s9170_s24 + $0x168] ss:$12 sps:$4 sm:$0xff]  }
0x14e4   :  { %v2622_v10 = vadd.f32 %v2621_v8, %v2498_v63  ;;  %v2625_v13 = vmax.f32 %v2618_v4, 0.0  ;;  %v7557_v63 = vld [vmem:[%s9170_s24 + $0x170] ss:$12 sps:$4 sm:$0xff]  }
0x14e5   :  { %v2626_v6 = vmax.f32 %v2620_v7, 0.0 }
0x14e6   :  { %v2627_v9 = vmax.f32 %v2622_v10, 0.0 }
0x14e7   :  { %v2628_v15 = vpack.c.bf16 %v2626_v6, %v2624_v11  ;;  %v6169_v11 = vld [vmem:[%s9127_s12] ss:$0 sm:$0xff] }
0x14e8   :  { %v2629_v17 = vpack.c.bf16 %v2627_v9, %v2625_v13 }
0x14ea   :  { %2764 = vmatprep.mubr.bf16.mxu0 %v2629_v17 }
0x14eb   :  { %2765 = vmatmul.mubr.bf16.vlgmr.msra.gmra.mrb[36].mxu0 %v2628_v15  ;;  %v6170_v15 = vld [vmem:[%s9128_s13] ss:$0 sm:$0xff] }
0x14ec   :  { %6890 = vmatprep.mubr.msk.bf16.mxu0 %vm7835_vm2, %v7834_v39  ;;  %6875 = vmatpush3.bf16.msra.mxu0 %v7529_v40 }
0x14ed   :  { %6876 = vmatprep.subr.bf16.mxu0 %v7834_v39 }
0x14f0   :  { %6877 = vmatpush3.bf16.msra.mxu0 %v7533_v48 }
0x14f1   :  { %6878 = vmatprep.subr.bf16.mxu0 %v7834_v39 }
0x14f4   :  { %6879 = vmatpush3.bf16.msra.mxu0 %v7537_v51 }
0x14f5   :  { %6880 = vmatprep.subr.bf16.mxu0 %v7834_v39 }
0x14f8   :  { %6881 = vmatpush3.bf16.msra.mxu0 %v7541_v28 }
0x14f9   :  { %6882 = vmatprep.subr.bf16.mxu0 %v7834_v39 }
0x15be   :  { %v6541_v18 = vpop.f32.mrb[36].mxu0 }
0x15bf   :  { %v6542_v26 = vpop.f32.mrb[37].mxu0 }
0x15c0   :  { %v6543_v27 = vadd.f32 %v6542_v26, %v6541_v18  ;;  %v6544_v30 = vpop.f32.mrb[38].mxu0 }
0x15c1   :  { %v6545_v32 = vpop.f32.mrb[39].mxu0 }
0x15c2   :  { %v2767_v25 = vadd.f32 %v6543_v27, %v6152_v19  ;;  %v6546_v33 = vadd.f32 %v6545_v32, %v6544_v30  ;;  %v6203_v27 = vld [vmem:[%s9172_s29 + $0x3] sm:$0x7]  ;;  %s9179_s29 = smov 112  }
0x15c3   :  { %v2934_v30 = vrot.slane %v6203_v27, %v8025_v22  ;;  %v2942_v32 = vrot.slane %v6203_v27, %v194_v14 }
0x15c4   :  { %v2770_v29 = vadd.f32 %v6546_v33, %v6152_v19  ;;  %v2773_v34 = vadd.f32 %v2767_v25, %v2487_v54  ;;  %v7542_v54 = vld [vmem:[%s9170_s24 + $0x120] ss:$12 sps:$4 sm:$0xff]  }
0x15c5   :  { %3083 = vmatpush1.bf16.msra.mxu1 %v7542_v54 }
0x15c6   :  { %2775 = vadd.xlane.f32.xlu1 %v2773_v34  ;;  %v2774_v37 = vadd.f32 %v2770_v29, %v2488_v55  ;;  %v7545_v55 = vld [vmem:[%s9170_s24 + $0x128] ss:$12 sps:$4 sm:$0xff]   ;;  %3084 = vmatprep.subr.bf16.mxu1 %v7548_v56  ;;  %v2938_v29 = vrot.slane %v6203_v27, %v8033_v24 }
0x15c7   :  { %6883 = vmatpush3.bf16.msra.mxu0 %v7545_v55 }
0x15c8   :  { %6884 = vmatprep.subr.bf16.mxu0 %v7834_v39 }
0x15c9   :  { %3085 = vmatpush1.bf16.msra.mxu1 %v7546_v31 }
0x15ca   :  { %2777 = vadd.xlane.f32.xlu1 %v2774_v37  ;;  %3086 = vmatprep.subr.bf16.mxu1 %v7552_v59 }
0x15cb   :  { %6885 = vmatpush3.bf16.msra.mxu0 %v7549_v57 }
0x15cc   :  { %6886 = vmatprep.subr.bf16.mxu0 %v7834_v39 }
0x15cd   :  { %3087 = vmatpush1.bf16.msra.mxu1 %v7550_v58 }
0x15ce   :  { %3088 = vmatprep.subr.bf16.mxu1 %v7556_v61 }
0x15cf   :  { %6887 = vmatpush3.bf16.msra.mxu0 %v7553_v60 }
0x15d0   :  { %6888 = vmatprep.subr.bf16.mxu0 %v7834_v39 }
0x15d1   :  { %3089 = vmatpush1.bf16.msra.mxu1 %v7554_v62 }
0x15d3   :  { %6889 = vmatpush3.bf16.msra.mxu0 %v7557_v63 }
0x1653   :  { %v2776_v43 = vpop.xlane.xlu1 %2775 }
0x1654   :  { %v2779_v12 = vmul.f32 0.0078125, %v2776_v43 }
0x1656   :  { %v2781_v44 = vsub.f32 %v2773_v34, %v2779_v12 }
0x1657   :  { %v2778_v16 = vpop.xlane.xlu1 %2777 }
0x1658   :  { %v2780_v20 = vmul.f32 0.0078125, %v2778_v16  ;;  %v2783_v45 = vmul.f32 %v2781_v44, %v2781_v44 }
0x165a   :  { %v2782_v46 = vsub.f32 %v2774_v37, %v2780_v20  ;;  %2785 = vadd.xlane.f32.xlu0 %v2783_v45 }
0x165c   :  { %v2784_v47 = vmul.f32 %v2782_v46, %v2782_v46 }
0x165e   :  { %2787 = vadd.xlane.f32.xlu1 %v2784_v47 }
0x16e7   :  { %v2786_v0 = vpop.xlane.xlu0 %2785 }
0x16e8   :  { %v2789_v1 = vmul.f32 0.0078125, %v2786_v0 }
0x16ea   :  { %v2791_v3 = vadd.f32 1e-05, %v2789_v1 }
0x16eb   :  { %v2788_v4 = vpop.xlane.xlu1 %2787 }
0x16ec   :  { %7706 = vrsqrt.f32 %v2791_v3  ;;  %v2790_v5 = vmul.f32 0.0078125, %v2788_v4 }
0x16ee   :  { %v2792_v7 = vadd.f32 1e-05, %v2790_v5 }
0x16f0   :  { %7708 = vrsqrt.f32 %v2792_v7 }
0x16f6   :  { %v7707_v8 = vpop.eup %7706 }
0x16f7   :  { %v2795_v10 = vmul.f32 %v7707_v8, %v2781_v44 }
0x16f9   :  { %v2803_v9 = vmul.f32 %v6169_v11, %v2795_v10 }
0x16fa   :  { %v7709_v6 = vpop.eup %7708 }
0x16fb   :  { %v2796_v13 = vmul.f32 %v7709_v6, %v2782_v46  ;;  %v8546_v18 = vadd.f32 %v6170_v15, %v2803_v9 }
0x16fd   :  { %v2804_v17 = vmul.f32 %v6169_v11, %v2796_v13 }
0x16ff   :  { %v8548_v19 = vadd.f32 %v6170_v15, %v2804_v17 }
0x1701   :  { %v2929_v26 = vpack.c.bf16 %v8548_v19, %v8546_v18 }
0x1703   :  { %3107 = vmatmul.mubr.bf16.vlgmr.msra.gmra.mrb[40].mxu1 %v2929_v26  ;;  %6891 = vmatmul.mubr.bf16.vlgmr.msra.gmra.mrb[40].mxu0 %v2929_v26 }
0x17d6   :  { %v3108_v25 = vpop.f32.mrb[40].mxu1  ;;  %v3151_v33 = vpop.f32.mrb[40].mxu0 }
0x17d7   :  { %v8559_v34 = vadd.f32 %v3108_v25, %v2934_v30  ;;  %v3110_v37 = vpop.f32.mrb[41].mxu1  ;;  %v6892_v23 = vpop.f32.mrb[41].mxu0  ;;  %v3152_v41 = vadd.f32 %v3151_v33, %v2942_v32 }
0x17d8   :  { %v3112_v38 = vpop.f32.mrb[42].mxu1  ;;  %v3154_v40 = vpop.f32.mrb[42].mxu0  ;;  %v3111_v44 = vadd.f32 %v3110_v37, %v2938_v29 }
0x17d9   :  { %v3155_v42 = vadd.f32 %v3154_v40, %v2942_v32  ;;  %v3114_v43 = vpop.f32.mrb[43].mxu1  ;;  %v6893_v12 = vpop.f32.mrb[43].mxu0  ;;  %6898 = vmatprep.mubr.msk.f32.mxu1 %vm411_vm0, %v8559_v34  ;;  %v8575_v46 = vadd.f32 %v3112_v38, %v2934_v30  ;;  %v7559_v40 = vld [vmem:[%s9175_s27 + $0x40] sm:$0xff]  }
0x17da   :  { %v3115_v21 = vadd.f32 %v3114_v43, %v2938_v29 }
0x17db   :  { %v7220_v14 = vpack.c.bf16 %v3155_v42, %v3152_v41  ;;  %v8563_v16 = vpack.i.bf16 %v3155_v42, %v3152_v41 }
0x17dc   :  { %v8565_v20 = vpack.i.bf16 %v3115_v21, %v3111_v44  ;;  %v7214_v45 = vpack.c.bf16 %v3115_v21, %v3111_v44 }
0x17dd   :  { %7221 = vmatprep.subr.bf16.mxu0 %v7220_v14 }
0x17de   :  { %7223 = vmatpush3.bf16.msra.mxu0 %v7220_v14  ;;  %7377 = vrot.lane.b32.xlu1 %v8565_v20, %s9179_s29 }
0x17df   :  { %7216 = vmatprep.subr.msk.bf16.mxu1 %vm8049_vm1, %v7214_v45 }
0x17e0   :  { %7219 = vmatpush3.bf16.xpose.msk.msra.mxu1 %vm8049_vm1, %v7214_v45 }
0x17e2   :  { %3351 = vrot.lane.b32.xlu1 %v8559_v34, %s9179_s29 }
0x17e6   :  { %3353 = vrot.lane.b32.xlu1 %v8575_v46, %s9179_s29 }
0x17e7   :  { %6899 = vmatmul.mubr.msk.f32.vlgmr.msra.gmra.mrb[44].mxu1 %vm411_vm0, %v8575_v46 }
0x1850   :  { %v7378_v47 = vpop.permute.xlu1 %7377 }
0x1851   :  { %v7380_v48 = vunpack.i.h.bf16 %v7378_v47  ;;  %v7379_v49 = vunpack.i.l.bf16 %v7378_v47 }
0x1853   :  { %v7224_v50 = vpack.c.bf16 %v7380_v48, %v7379_v49 }
0x1854   :  { %v3352_v51 = vpop.permute.xlu1 %3351 }
0x1855   :  { %7226 = vmatprep.subr.msk.bf16.mxu1 %vm8049_vm1, %v7224_v50  ;;  %6912 = vmatprep.mubr.msk.f32.mxu1 %vm411_vm0, %v3352_v51  ;;  %v7558_v51 = vld [vmem:[%s9175_s27 + $0x48] sm:$0xff]  }
0x1856   :  { %7229 = vmatpush3.bf16.xpose.msk.msra.mxu1 %vm8049_vm1, %v7224_v50 }
0x1857   :  { %6928 = vmatprep.subr.bf16.mxu1 %v7834_v39 }
0x1858   :  { %v3354_v36 = vpop.permute.xlu1 %3353 }
0x185d   :  { %6913 = vmatmul.mubr.msk.f32.vlgmr.msra.gmra.mrb[46].mxu1 %vm411_vm0, %v3354_v36 }
0x185e   :  { %6930 = vmatprep.mubr.msk.bf16.mxu1 %vm7835_vm2, %v7834_v39  ;;  %6929 = vmatpush3.bf16.msra.mxu1 %v7559_v40 }
0x18ba   :  { %v6900_v52 = vpop.f32.mrb[44].mxu1 }
0x18bb   :  { %v3246_v28 = vmul.f32 0.25, %v6900_v52  ;;  %v3236_v53 = vpop.f32.mrb[45].mxu1 }
0x18bc   :  { %v3245_v54 = vmul.f32 0.25, %v3236_v53 }
0x18bd   :  { %v3250_v55 = vsel %vm411_vm0, %v3246_v28, -inf }
0x18be   :  { %3251 = vmax.xlane.f32.xlu1 %v3250_v55  ;;  %v3247_v56 = vsel %vm411_vm0, %v3245_v54, -inf }
0x18bf   :  { %3248 = vmax.xlane.f32.xlu0 %v3247_v56 }
0x18cf   :  { %7387 = vrot.lane.b32.xlu1 %v8565_v20, %s9180_s0 }
0x1930   :  { %v6914_v31 = vpop.f32.mrb[46].mxu1 }
0x1931   :  { %v3433_v57 = vpop.f32.mrb[47].mxu1  ;;  %v3443_v58 = vmul.f32 0.25, %v6914_v31 }
0x1932   :  { %v3442_v59 = vmul.f32 0.25, %v3433_v57 }
0x1933   :  { %v3447_v61 = vsel %vm411_vm0, %v3443_v58, -inf }
0x1934   :  { %v3444_v60 = vsel %vm411_vm0, %v3442_v59, -inf }
0x1935   :  { %3445 = vmax.xlane.f32.xlu0 %v3444_v60 }
0x1939   :  { %3448 = vmax.xlane.f32.xlu0 %v3447_v61 }
0x194b   :  { %v3252_v62 = vpop.xlane.xlu1 %3251 }
0x194c   :  { %v3254_v63 = vsub.f32 %v3246_v28, %v3252_v62  ;;  %v3249_v0 = vpop.xlane.xlu0 %3248 }
0x194d   :  { %v3253_v1 = vsub.f32 %v3245_v54, %v3249_v0 }
0x194e   :  { %v3257_v3 = vmul.f32 1.442695, %v3254_v63 }
0x194f   :  { %v3255_v4 = vmul.f32 1.442695, %v3253_v1  ;;  %v7388_v14 = vpop.permute.xlu1 %7387 }
0x1950   :  { %7710 = vpow2.f32 %v3257_v3  ;;  %v7390_v48 = vunpack.i.h.bf16 %v7388_v14  ;;  %v7389_v49 = vunpack.i.l.bf16 %v7388_v14 }
0x1951   :  { %7712 = vpow2.f32 %v3255_v4 }
0x1952   :  { %v7234_v52 = vpack.c.bf16 %v7390_v48, %v7389_v49 }
0x195a   :  { %v7711_v5 = vpop.eup %7710 }
0x195b   :  { %v3262_v7 = vsel %vm411_vm0, %v7711_v5, 0.0  ;;  %v7713_v8 = vpop.eup %7712 }
0x195c   :  { %3263 = vadd.xlane.f32.xlu0 %v3262_v7  ;;  %v3259_v10 = vsel %vm411_vm0, %v7713_v8, 0.0 }
0x1960   :  { %3260 = vadd.xlane.f32.xlu0 %v3259_v10 }
0x19c2   :  { %v3446_v11 = vpop.xlane.xlu0 %3445 }
0x19c3   :  { %v3450_v6 = vsub.f32 %v3442_v59, %v3446_v11 }
0x19c5   :  { %v3452_v15 = vmul.f32 1.442695, %v3450_v6 }
0x19c6   :  { %v3449_v13 = vpop.xlane.xlu0 %3448 }
0x19c7   :  { %v3451_v9 = vsub.f32 %v3443_v58, %v3449_v13 }
0x19c9   :  { %v3454_v17 = vmul.f32 1.442695, %v3451_v9 }
0x19cb   :  { %7714 = vpow2.f32 %v3454_v17 }
0x19cc   :  { %7716 = vpow2.f32 %v3452_v15 }
0x19d5   :  { %v7715_v26 = vpop.eup %7714 }
0x19d6   :  { %v3459_v27 = vsel %vm411_vm0, %v7715_v26, 0.0  ;;  %v7717_v30 = vpop.eup %7716 }
0x19d7   :  { %3460 = vadd.xlane.f32.xlu0 %v3459_v27  ;;  %v3456_v32 = vsel %vm411_vm0, %v7717_v30, 0.0 }
0x19db   :  { %3457 = vadd.xlane.f32.xlu0 %v3456_v32 }
0x19e9   :  { %v3264_v25 = vpop.xlane.xlu0 %3263 }
0x19ea   :  { %7718 = vrcp.f32 %v3264_v25 }
0x19ed   :  { %v3261_v33 = vpop.xlane.xlu0 %3260 }
0x19ee   :  { %7720 = vrcp.f32 %v3261_v33 }
0x19f1   :  { %7382 = vrot.lane.b32.xlu0 %v8563_v16, %s9179_s29  ;;  %s9183_s29 = smov 48  }
0x19f4   :  { %v7719_v29 = vpop.eup %7718 }
0x19f5   :  { %3656 = vrot.lane.b32.xlu0 %v8559_v34, %s9180_s0  ;;  %v3268_v38 = vmul.f32 %v7719_v29, %v7711_v5 }
0x19f8   :  { %v7721_v37 = vpop.eup %7720 }
0x19f9   :  { %3658 = vrot.lane.b32.xlu0 %v8575_v46, %s9180_s0  ;;  %v3267_v23 = vmul.f32 %v7721_v37, %v7713_v8 }
0x19fb   :  { %6905 = vmatprep.mubr.msk.f32.mxu0 %vm411_vm0, %v3267_v23 }
0x19fc   :  { %6906 = vmatmul.mubr.msk.f32.vlgmr.msra.gmra.mrb[44].mxu0 %vm411_vm0, %v3268_v38 }
0x1a64   :  { %v3461_v41 = vpop.xlane.xlu0 %3460 }
0x1a65   :  { %7722 = vrcp.f32 %v3461_v41 }
0x1a68   :  { %v3458_v42 = vpop.xlane.xlu0 %3457 }
0x1a69   :  { %7724 = vrcp.f32 %v3458_v42 }
0x1a6c   :  { %v7383_v43 = vpop.permute.xlu0 %7382 }
0x1a6d   :  { %v7385_v12 = vunpack.i.h.bf16 %v7383_v43  ;;  %v7384_v44 = vunpack.i.l.bf16 %v7383_v43 }
0x1a6f   :  { %v7230_v21 = vpack.c.bf16 %v7385_v12, %v7384_v44  ;;  %v7723_v45 = vpop.eup %7722 }
0x1a70   :  { %v3465_v36 = vmul.f32 %v7723_v45, %v7715_v26  ;;  %v3657_v57 = vpop.permute.xlu0 %3656 }
0x1a71   :  { %7231 = vmatprep.subr.bf16.mxu0 %v7230_v21 }
0x1a72   :  { %7233 = vmatpush3.bf16.msra.mxu0 %v7230_v21 }
0x1a73   :  { %v7725_v47 = vpop.eup %7724  ;;  %6922 = vmatprep.subr.bf16.mxu0 %v7834_v39 }
0x1a74   :  { %v3464_v50 = vmul.f32 %v7725_v47, %v7717_v30  ;;  %v3659_v59 = vpop.permute.xlu0 %3658 }
0x1a76   :  { %6919 = vmatprep.mubr.msk.f32.mxu0 %vm411_vm0, %v3464_v50 }
0x1a77   :  { %6920 = vmatmul.mubr.msk.f32.vlgmr.msra.gmra.mrb[46].mxu0 %vm411_vm0, %v3465_v36 }
0x1a78   :  { %6923 = vmatpush3.bf16.msra.mxu0 %v7558_v51  ;;  %6924 = vmatprep.mubr.msk.bf16.mxu0 %vm7835_vm2, %v7834_v39  ;;  %v7560_v51 = vld [vmem:[%s9175_s27 + $0x50] sm:$0xff]  }
0x1a79   :  { %7236 = vmatprep.subr.msk.bf16.mxu0 %vm8049_vm1, %v7234_v52 }
0x1acf   :  { %v6907_v28 = vpop.f32.mrb[44].mxu0 }
0x1ad0   :  { %v3341_v53 = vpop.f32.mrb[45].mxu0 }
0x1ad1   :  { %v3350_v54 = vpack.c.bf16 %v6907_v28, %v3341_v53 }
0x1ad3   :  { %6931 = vmatmul.mubr.msk.bf16.vlgmr.msra.gmra.mrb[48].mxu1 %vm411_vm0, %v3350_v54 }
0x1b4a   :  { %v6921_v55 = vpop.f32.mrb[46].mxu0 }
0x1b4b   :  { %v3546_v56 = vpop.f32.mrb[47].mxu0 }
0x1b4c   :  { %v3555_v31 = vpack.c.bf16 %v6921_v55, %v3546_v56 }
0x1b4e   :  { %6925 = vmatmul.mubr.msk.bf16.vlgmr.msra.gmra.mrb[48].mxu0 %vm411_vm0, %v3555_v31 }
0x1b4f   :  { %7239 = vmatpush3.bf16.xpose.msk.msra.mxu0 %vm8049_vm1, %v7234_v52  ;;  %6938 = vmatprep.mubr.msk.f32.mxu0 %vm411_vm0, %v3657_v57 }
0x1b50   :  { %6948 = vmatprep.subr.bf16.mxu0 %v7834_v39 }
0x1b56   :  { %6939 = vmatmul.mubr.msk.f32.vlgmr.msra.gmra.mrb[52].mxu0 %vm411_vm0, %v3659_v59 }
0x1b57   :  { %6950 = vmatprep.mubr.msk.bf16.mxu0 %vm7835_vm2, %v7834_v39  ;;  %6949 = vmatpush3.bf16.msra.mxu0 %v7560_v51 }
0x1ba6   :  { %v3649_v58 = vpop.f32.mrb[48].mxu1 }
0x1ba7   :  { %v6932_v60 = vpop.f32.mrb[49].mxu1 }
0x1ba8   :  { %v3652_v61 = vpop.f32.mrb[50].mxu1 }
0x1ba9   :  { %v6933_v62 = vpop.f32.mrb[51].mxu1 }
0x1c21   :  { %v3599_v63 = vpop.f32.mrb[48].mxu0 }
0x1c22   :  { %v8630_v0 = vadd.f32 %v3649_v58, %v3599_v63  ;;  %v6926_v1 = vpop.f32.mrb[49].mxu0 }
0x1c23   :  { %v3602_v3 = vpop.f32.mrb[50].mxu0 }
0x1c24   :  { %v8632_v4 = vadd.f32 %v3652_v61, %v3602_v3  ;;  %v6927_v5 = vpop.f32.mrb[51].mxu0 }
0x1c29   :  { %v6940_v7 = vpop.f32.mrb[52].mxu0 }
0x1c2a   :  { %v3748_v8 = vmul.f32 0.25, %v6940_v7  ;;  %v3738_v10 = vpop.f32.mrb[53].mxu0 }
0x1c2b   :  { %v3747_v11 = vmul.f32 0.25, %v3738_v10 }
0x1c2c   :  { %v3752_v6 = vsel %vm411_vm0, %v3748_v8, -inf }
0x1c2d   :  { %3753 = vmax.xlane.f32.xlu0 %v3752_v6  ;;  %v3749_v13 = vsel %vm411_vm0, %v3747_v11, -inf }
0x1c2e   :  { %3750 = vmax.xlane.f32.xlu1 %v3749_v13 }
0x1cba   :  { %v3754_v9 = vpop.xlane.xlu0 %3753 }
0x1cbb   :  { %v3756_v15 = vsub.f32 %v3748_v8, %v3754_v9  ;;  %v3751_v17 = vpop.xlane.xlu1 %3750 }
0x1cbc   :  { %v3755_v26 = vsub.f32 %v3747_v11, %v3751_v17 }
0x1cbd   :  { %v3759_v27 = vmul.f32 1.442695, %v3756_v15 }
0x1cbe   :  { %v3757_v30 = vmul.f32 1.442695, %v3755_v26 }
0x1cbf   :  { %7726 = vpow2.f32 %v3759_v27 }
0x1cc0   :  { %7728 = vpow2.f32 %v3757_v30 }
0x1cc9   :  { %v7727_v32 = vpop.eup %7726 }
0x1cca   :  { %v7729_v25 = vpop.eup %7728  ;;  %v3764_v33 = vsel %vm411_vm0, %v7727_v32, 0.0 }
0x1ccb   :  { %3765 = vadd.xlane.f32.xlu1 %v3764_v33  ;;  %v3761_v29 = vsel %vm411_vm0, %v7729_v25, 0.0 }
0x1ccc   :  { %3762 = vadd.xlane.f32.xlu0 %v3761_v29 }
0x1cdc   :  { %7397 = vrot.lane.b32.xlu1 %v8565_v20, %s9181_s23 }
0x1ce0   :  { %3911 = vrot.lane.b32.xlu1 %v8559_v34, %s9181_s23 }
0x1ce2   :  { %7392 = vrot.lane.b32.xlu0 %v8563_v16, %s9180_s0 }
0x1ce6   :  { %3913 = vrot.lane.b32.xlu0 %v8575_v46, %s9181_s23 }
0x1d58   :  { %v3766_v37 = vpop.xlane.xlu1 %3765 }
0x1d59   :  { %7730 = vrcp.f32 %v3766_v37  ;;  %v3763_v23 = vpop.xlane.xlu0 %3762 }
0x1d5a   :  { %7732 = vrcp.f32 %v3763_v23 }
0x1d5c   :  { %v7398_v38 = vpop.permute.xlu1 %7397 }
0x1d5d   :  { %v7393_v40 = vpop.permute.xlu0 %7392  ;;  %v7400_v41 = vunpack.i.h.bf16 %v7398_v38  ;;  %v7399_v42 = vunpack.i.l.bf16 %v7398_v38 }
0x1d5e   :  { %v7395_v43 = vunpack.i.h.bf16 %v7393_v40  ;;  %v7394_v12 = vunpack.i.l.bf16 %v7393_v40 }
0x1d5f   :  { %v7244_v21 = vpack.c.bf16 %v7400_v41, %v7399_v42  ;;  %v7561_v42 = vld [vmem:[%s9175_s27 + $0x58] sm:$0xff]  }
0x1d60   :  { %v7240_v44 = vpack.c.bf16 %v7395_v43, %v7394_v12  ;;  %v3912_v49 = vpop.permute.xlu1 %3911 }
0x1d61   :  { %v3914_v50 = vpop.permute.xlu0 %3913 }
0x1d62   :  { %7241 = vmatprep.subr.bf16.mxu1 %v7240_v44 }
0x1d63   :  { %v7731_v14 = vpop.eup %7730  ;;  %7243 = vmatpush3.bf16.msra.mxu1 %v7240_v44 }
0x1d64   :  { %v7733_v45 = vpop.eup %7732  ;;  %7246 = vmatprep.subr.msk.bf16.mxu1 %vm8049_vm1, %v7244_v21  ;;  %v3770_v48 = vmul.f32 %v7731_v14, %v7727_v32 }
0x1d65   :  { %v3769_v47 = vmul.f32 %v7733_v45, %v7729_v25 }
0x1d67   :  { %6945 = vmatprep.mubr.msk.f32.mxu1 %vm411_vm0, %v3769_v47 }
0x1d68   :  { %6946 = vmatmul.mubr.msk.f32.vlgmr.msra.gmra.mrb[52].mxu1 %vm411_vm0, %v3770_v48 }
0x1d69   :  { %6958 = vmatprep.mubr.msk.f32.mxu1 %vm411_vm0, %v3912_v49 }
0x1d6c   :  { %7249 = vmatpush3.bf16.xpose.msk.msra.mxu1 %vm8049_vm1, %v7244_v21 }
0x1d6d   :  { %6968 = vmatprep.subr.bf16.mxu1 %v7834_v39 }
0x1d73   :  { %6959 = vmatmul.mubr.msk.f32.vlgmr.msra.gmra.mrb[54].mxu1 %vm411_vm0, %v3914_v50 }
0x1d74   :  { %6970 = vmatprep.mubr.msk.bf16.mxu1 %vm7835_vm2, %v7834_v39  ;;  %6969 = vmatpush3.bf16.msra.mxu1 %v7561_v42 }
0x1e3b   :  { %v6947_v36 = vpop.f32.mrb[52].mxu1 }
0x1e3c   :  { %v3849_v52 = vpop.f32.mrb[53].mxu1 }
0x1e3d   :  { %v3858_v28 = vpack.c.bf16 %v6947_v36, %v3849_v52 }
0x1e3f   :  { %6951 = vmatmul.mubr.msk.bf16.vlgmr.msra.gmra.mrb[56].mxu0 %vm411_vm0, %v3858_v28 }
0x1e46   :  { %v6960_v53 = vpop.f32.mrb[54].mxu1 }
0x1e47   :  { %v4003_v54 = vmul.f32 0.25, %v6960_v53  ;;  %v3993_v55 = vpop.f32.mrb[55].mxu1 }
0x1e48   :  { %v4002_v56 = vmul.f32 0.25, %v3993_v55 }
0x1e49   :  { %v4007_v31 = vsel %vm411_vm0, %v4003_v54, -inf }
0x1e4a   :  { %4008 = vmax.xlane.f32.xlu0 %v4007_v31  ;;  %v4004_v57 = vsel %vm411_vm0, %v4002_v56, -inf }
0x1e4b   :  { %4005 = vmax.xlane.f32.xlu1 %v4004_v57 }
0x1ed7   :  { %v4009_v59 = vpop.xlane.xlu0 %4008 }
0x1ed8   :  { %v4011_v58 = vsub.f32 %v4003_v54, %v4009_v59  ;;  %v4006_v60 = vpop.xlane.xlu1 %4005 }
0x1ed9   :  { %v4010_v61 = vsub.f32 %v4002_v56, %v4006_v60 }
0x1eda   :  { %v4014_v62 = vmul.f32 1.442695, %v4011_v58 }
0x1edb   :  { %v4012_v63 = vmul.f32 1.442695, %v4010_v61 }
0x1edc   :  { %7734 = vpow2.f32 %v4014_v62 }
0x1edd   :  { %7736 = vpow2.f32 %v4012_v63 }
0x1ee6   :  { %v7735_v1 = vpop.eup %7734 }
0x1ee7   :  { %v7737_v3 = vpop.eup %7736  ;;  %v4019_v5 = vsel %vm411_vm0, %v7735_v1, 0.0 }
0x1ee8   :  { %4020 = vadd.xlane.f32.xlu1 %v4019_v5  ;;  %v4016_v7 = vsel %vm411_vm0, %v7737_v3, 0.0 }
0x1ee9   :  { %4017 = vadd.xlane.f32.xlu0 %v4016_v7 }
0x1ef9   :  { %7407 = vrot.lane.b32.xlu1 %v8565_v20, %s9182_s2 }
0x1efd   :  { %4166 = vrot.lane.b32.xlu1 %v8559_v34, %s9182_s2 }
0x1eff   :  { %7402 = vrot.lane.b32.xlu0 %v8563_v16, %s9181_s23  ;;  %s9185_s23 = smov 16  }
0x1f03   :  { %4168 = vrot.lane.b32.xlu0 %v8575_v46, %s9182_s2 }
0x1f12   :  { %v3902_v8 = vpop.f32.mrb[56].mxu0 }
0x1f13   :  { %v8674_v10 = vadd.f32 %v3902_v8, %v8630_v0  ;;  %v6952_v11 = vpop.f32.mrb[57].mxu0 }
0x1f14   :  { %v3905_v6 = vpop.f32.mrb[58].mxu0 }
0x1f15   :  { %v8677_v13 = vadd.f32 %v3905_v6, %v8632_v4  ;;  %v6953_v9 = vpop.f32.mrb[59].mxu0 }
0x1f75   :  { %v4021_v15 = vpop.xlane.xlu1 %4020 }
0x1f76   :  { %7738 = vrcp.f32 %v4021_v15  ;;  %v4018_v17 = vpop.xlane.xlu0 %4017 }
0x1f77   :  { %7740 = vrcp.f32 %v4018_v17 }
0x1f79   :  { %v7408_v26 = vpop.permute.xlu1 %7407 }
0x1f7a   :  { %v7403_v27 = vpop.permute.xlu0 %7402  ;;  %v7410_v30 = vunpack.i.h.bf16 %v7408_v26  ;;  %v7409_v32 = vunpack.i.l.bf16 %v7408_v26 }
0x1f7b   :  { %v7405_v25 = vunpack.i.h.bf16 %v7403_v27  ;;  %v7404_v33 = vunpack.i.l.bf16 %v7403_v27 }
0x1f7c   :  { %v7254_v37 = vpack.c.bf16 %v7410_v30, %v7409_v32  ;;  %v7562_v32 = vld [vmem:[%s9175_s27 + $0x60] sm:$0xff]  }
0x1f7d   :  { %v7250_v29 = vpack.c.bf16 %v7405_v25, %v7404_v33  ;;  %v4167_v40 = vpop.permute.xlu1 %4166 }
0x1f7e   :  { %v4169_v41 = vpop.permute.xlu0 %4168 }
0x1f7f   :  { %7251 = vmatprep.subr.bf16.mxu0 %v7250_v29 }
0x1f80   :  { %v7739_v0 = vpop.eup %7738  ;;  %7253 = vmatpush3.bf16.msra.mxu0 %v7250_v29 }
0x1f81   :  { %v7741_v23 = vpop.eup %7740  ;;  %7256 = vmatprep.subr.msk.bf16.mxu0 %vm8049_vm1, %v7254_v37  ;;  %v4025_v38 = vmul.f32 %v7739_v0, %v7735_v1 }
0x1f82   :  { %v4024_v4 = vmul.f32 %v7741_v23, %v7737_v3 }
0x1f84   :  { %6965 = vmatprep.mubr.msk.f32.mxu0 %vm411_vm0, %v4024_v4 }
0x1f85   :  { %6966 = vmatmul.mubr.msk.f32.vlgmr.msra.gmra.mrb[54].mxu0 %vm411_vm0, %v4025_v38 }
0x1f86   :  { %6978 = vmatprep.mubr.msk.f32.mxu0 %vm411_vm0, %v4167_v40 }
0x1f89   :  { %7259 = vmatpush3.bf16.xpose.msk.msra.mxu0 %vm8049_vm1, %v7254_v37 }
0x1f8a   :  { %6988 = vmatprep.subr.bf16.mxu0 %v7834_v39 }
0x1f90   :  { %6979 = vmatmul.mubr.msk.f32.vlgmr.msra.gmra.mrb[60].mxu0 %vm411_vm0, %v4169_v41 }
0x1f91   :  { %6990 = vmatprep.mubr.msk.bf16.mxu0 %vm7835_vm2, %v7834_v39  ;;  %6989 = vmatpush3.bf16.msra.mxu0 %v7562_v32 }
0x2058   :  { %v6967_v43 = vpop.f32.mrb[54].mxu0 }
0x2059   :  { %v4104_v12 = vpop.f32.mrb[55].mxu0 }
0x205a   :  { %v4113_v44 = vpack.c.bf16 %v6967_v43, %v4104_v12 }
0x205c   :  { %6971 = vmatmul.mubr.msk.bf16.vlgmr.msra.gmra.mrb[56].mxu1 %vm411_vm0, %v4113_v44 }
0x2063   :  { %v6980_v21 = vpop.f32.mrb[60].mxu0 }
0x2064   :  { %v4258_v14 = vmul.f32 0.25, %v6980_v21  ;;  %v4248_v45 = vpop.f32.mrb[61].mxu0 }
0x2065   :  { %v4257_v47 = vmul.f32 0.25, %v4248_v45 }
0x2066   :  { %v4262_v48 = vsel %vm411_vm0, %v4258_v14, -inf }
0x2067   :  { %4263 = vmax.xlane.f32.xlu0 %v4262_v48  ;;  %v4259_v49 = vsel %vm411_vm0, %v4257_v47, -inf }
0x2068   :  { %4260 = vmax.xlane.f32.xlu1 %v4259_v49 }
0x20f4   :  { %v4264_v50 = vpop.xlane.xlu0 %4263 }
0x20f5   :  { %v4266_v51 = vsub.f32 %v4258_v14, %v4264_v50  ;;  %v4261_v36 = vpop.xlane.xlu1 %4260 }
0x20f6   :  { %v4265_v52 = vsub.f32 %v4257_v47, %v4261_v36 }
0x20f7   :  { %v4269_v28 = vmul.f32 1.442695, %v4266_v51 }
0x20f8   :  { %v4267_v53 = vmul.f32 1.442695, %v4265_v52 }
0x20f9   :  { %7742 = vpow2.f32 %v4269_v28 }
0x20fa   :  { %7744 = vpow2.f32 %v4267_v53 }
0x2103   :  { %v7743_v54 = vpop.eup %7742 }
0x2104   :  { %v7745_v55 = vpop.eup %7744  ;;  %v4274_v56 = vsel %vm411_vm0, %v7743_v54, 0.0 }
0x2105   :  { %4275 = vadd.xlane.f32.xlu1 %v4274_v56  ;;  %v4271_v31 = vsel %vm411_vm0, %v7745_v55, 0.0 }
0x2106   :  { %4272 = vadd.xlane.f32.xlu0 %v4271_v31 }
0x2116   :  { %7417 = vrot.lane.b32.xlu1 %v8565_v20, %s9183_s29 }
0x211a   :  { %4421 = vrot.lane.b32.xlu1 %v8559_v34, %s9183_s29 }
0x211c   :  { %7412 = vrot.lane.b32.xlu0 %v8563_v16, %s9182_s2 }
0x2120   :  { %4423 = vrot.lane.b32.xlu0 %v8575_v46, %s9183_s29 }
0x212f   :  { %v4157_v57 = vpop.f32.mrb[56].mxu1 }
0x2130   :  { %v8707_v59 = vadd.f32 %v4157_v57, %v8674_v10  ;;  %v6972_v58 = vpop.f32.mrb[57].mxu1 }
0x2131   :  { %v4160_v60 = vpop.f32.mrb[58].mxu1 }
0x2132   :  { %v8710_v61 = vadd.f32 %v4160_v60, %v8677_v13  ;;  %v6973_v62 = vpop.f32.mrb[59].mxu1 }
0x2192   :  { %v4276_v63 = vpop.xlane.xlu1 %4275 }
0x2193   :  { %7746 = vrcp.f32 %v4276_v63  ;;  %v4273_v1 = vpop.xlane.xlu0 %4272 }
0x2194   :  { %7748 = vrcp.f32 %v4273_v1 }
0x2196   :  { %v7418_v3 = vpop.permute.xlu1 %7417 }
0x2197   :  { %v7413_v5 = vpop.permute.xlu0 %7412  ;;  %v7420_v7 = vunpack.i.h.bf16 %v7418_v3  ;;  %v7419_v8 = vunpack.i.l.bf16 %v7418_v3 }
0x2198   :  { %v7415_v11 = vunpack.i.h.bf16 %v7413_v5  ;;  %v7414_v6 = vunpack.i.l.bf16 %v7413_v5 }
0x2199   :  { %v7264_v15 = vpack.c.bf16 %v7420_v7, %v7419_v8  ;;  %v7563_v8 = vld [vmem:[%s9175_s27 + $0x68] sm:$0xff]  }
0x219a   :  { %v7260_v9 = vpack.c.bf16 %v7415_v11, %v7414_v6  ;;  %v4422_v27 = vpop.permute.xlu1 %4421 }
0x219b   :  { %v4424_v30 = vpop.permute.xlu0 %4423 }
0x219c   :  { %7261 = vmatprep.subr.bf16.mxu1 %v7260_v9 }
0x219d   :  { %v7747_v10 = vpop.eup %7746  ;;  %7263 = vmatpush3.bf16.msra.mxu1 %v7260_v9 }
0x219e   :  { %v7749_v17 = vpop.eup %7748  ;;  %7266 = vmatprep.subr.msk.bf16.mxu1 %vm8049_vm1, %v7264_v15  ;;  %v4280_v26 = vmul.f32 %v7747_v10, %v7743_v54 }
0x219f   :  { %v4279_v13 = vmul.f32 %v7749_v17, %v7745_v55 }
0x21a1   :  { %6985 = vmatprep.mubr.msk.f32.mxu1 %vm411_vm0, %v4279_v13 }
0x21a2   :  { %6986 = vmatmul.mubr.msk.f32.vlgmr.msra.gmra.mrb[60].mxu1 %vm411_vm0, %v4280_v26 }
0x21a3   :  { %6998 = vmatprep.mubr.msk.f32.mxu1 %vm411_vm0, %v4422_v27 }
0x21a6   :  { %7269 = vmatpush3.bf16.xpose.msk.msra.mxu1 %vm8049_vm1, %v7264_v15 }
0x21a7   :  { %7008 = vmatprep.subr.bf16.mxu1 %v7834_v39 }
0x21ad   :  { %6999 = vmatmul.mubr.msk.f32.vlgmr.msra.gmra.mrb[62].mxu1 %vm411_vm0, %v4424_v30 }
0x21ae   :  { %7010 = vmatprep.mubr.msk.bf16.mxu1 %vm7835_vm2, %v7834_v39  ;;  %7009 = vmatpush3.bf16.msra.mxu1 %v7563_v8 }
0x2275   :  { %v6987_v25 = vpop.f32.mrb[60].mxu1 }
0x2276   :  { %v4359_v33 = vpop.f32.mrb[61].mxu1 }
0x2277   :  { %v4368_v29 = vpack.c.bf16 %v6987_v25, %v4359_v33 }
0x2279   :  { %6991 = vmatmul.mubr.msk.bf16.vlgmr.msra.gmra.mrb[64].mxu0 %vm411_vm0, %v4368_v29 }
0x2280   :  { %v7000_v37 = vpop.f32.mrb[62].mxu1 }
0x2281   :  { %v4513_v0 = vmul.f32 0.25, %v7000_v37  ;;  %v4503_v23 = vpop.f32.mrb[63].mxu1 }
0x2282   :  { %v4512_v4 = vmul.f32 0.25, %v4503_v23 }
0x2283   :  { %v4517_v38 = vsel %vm411_vm0, %v4513_v0, -inf }
0x2284   :  { %4518 = vmax.xlane.f32.xlu0 %v4517_v38  ;;  %v4514_v40 = vsel %vm411_vm0, %v4512_v4, -inf }
0x2285   :  { %4515 = vmax.xlane.f32.xlu1 %v4514_v40 }
0x2311   :  { %v4519_v41 = vpop.xlane.xlu0 %4518 }
0x2312   :  { %v4521_v42 = vsub.f32 %v4513_v0, %v4519_v41  ;;  %v4516_v43 = vpop.xlane.xlu1 %4515 }
0x2313   :  { %v4520_v12 = vsub.f32 %v4512_v4, %v4516_v43 }
0x2314   :  { %v4524_v44 = vmul.f32 1.442695, %v4521_v42 }
0x2315   :  { %v4522_v21 = vmul.f32 1.442695, %v4520_v12 }
0x2316   :  { %7750 = vpow2.f32 %v4524_v44 }
0x2317   :  { %7752 = vpow2.f32 %v4522_v21 }
0x2320   :  { %v7751_v14 = vpop.eup %7750 }
0x2321   :  { %v7753_v45 = vpop.eup %7752  ;;  %v4529_v47 = vsel %vm411_vm0, %v7751_v14, 0.0 }
0x2322   :  { %4530 = vadd.xlane.f32.xlu1 %v4529_v47  ;;  %v4526_v48 = vsel %vm411_vm0, %v7753_v45, 0.0 }
0x2323   :  { %4527 = vadd.xlane.f32.xlu0 %v4526_v48 }
0x2333   :  { %7427 = vrot.lane.b32.xlu1 %v8565_v20, %s9184_s4 }
0x2337   :  { %4676 = vrot.lane.b32.xlu1 %v8559_v34, %s9184_s4 }
0x2339   :  { %7422 = vrot.lane.b32.xlu0 %v8563_v16, %s9183_s29 }
0x233d   :  { %4678 = vrot.lane.b32.xlu0 %v8575_v46, %s9184_s4 }
0x234c   :  { %v4412_v49 = vpop.f32.mrb[64].mxu0 }
0x234d   :  { %v8740_v50 = vadd.f32 %v4412_v49, %v8707_v59  ;;  %v6992_v51 = vpop.f32.mrb[65].mxu0 }
0x234e   :  { %v4415_v36 = vpop.f32.mrb[66].mxu0 }
0x234f   :  { %v8743_v52 = vadd.f32 %v4415_v36, %v8710_v61  ;;  %v6993_v28 = vpop.f32.mrb[67].mxu0 }
0x23af   :  { %v4531_v53 = vpop.xlane.xlu1 %4530 }
0x23b0   :  { %7754 = vrcp.f32 %v4531_v53  ;;  %v4528_v54 = vpop.xlane.xlu0 %4527 }
0x23b1   :  { %7756 = vrcp.f32 %v4528_v54 }
0x23b3   :  { %v7428_v55 = vpop.permute.xlu1 %7427 }
0x23b4   :  { %v7423_v56 = vpop.permute.xlu0 %7422  ;;  %v7430_v31 = vunpack.i.h.bf16 %v7428_v55  ;;  %v7429_v57 = vunpack.i.l.bf16 %v7428_v55  ;;  %v7564_v55 = vld [vmem:[%s9175_s27 + $0x70] sm:$0xff]  }
0x23b5   :  { %v7425_v58 = vunpack.i.h.bf16 %v7423_v56  ;;  %v7424_v60 = vunpack.i.l.bf16 %v7423_v56 }
0x23b6   :  { %v7274_v63 = vpack.c.bf16 %v7430_v31, %v7429_v57 }
0x23b7   :  { %v7270_v62 = vpack.c.bf16 %v7425_v58, %v7424_v60  ;;  %v4677_v5 = vpop.permute.xlu1 %4676 }
0x23b8   :  { %v4679_v7 = vpop.permute.xlu0 %4678 }
0x23b9   :  { %7271 = vmatprep.subr.bf16.mxu0 %v7270_v62 }
0x23ba   :  { %v7755_v59 = vpop.eup %7754  ;;  %7273 = vmatpush3.bf16.msra.mxu0 %v7270_v62 }
0x23bb   :  { %v7757_v1 = vpop.eup %7756  ;;  %7276 = vmatprep.subr.msk.bf16.mxu0 %vm8049_vm1, %v7274_v63  ;;  %v4535_v3 = vmul.f32 %v7755_v59, %v7751_v14 }
0x23bc   :  { %v4534_v61 = vmul.f32 %v7757_v1, %v7753_v45 }
0x23be   :  { %7005 = vmatprep.mubr.msk.f32.mxu0 %vm411_vm0, %v4534_v61 }
0x23bf   :  { %7006 = vmatmul.mubr.msk.f32.vlgmr.msra.gmra.mrb[62].mxu0 %vm411_vm0, %v4535_v3 }
0x23c0   :  { %7018 = vmatprep.mubr.msk.f32.mxu0 %vm411_vm0, %v4677_v5 }
0x23c3   :  { %7279 = vmatpush3.bf16.xpose.msk.msra.mxu0 %vm8049_vm1, %v7274_v63 }
0x23c4   :  { %7028 = vmatprep.subr.bf16.mxu0 %v7834_v39 }
0x23ca   :  { %7019 = vmatmul.mubr.msk.f32.vlgmr.msra.gmra.mrb[68].mxu0 %vm411_vm0, %v4679_v7 }
0x23cb   :  { %7030 = vmatprep.mubr.msk.bf16.mxu0 %vm7835_vm2, %v7834_v39  ;;  %7029 = vmatpush3.bf16.msra.mxu0 %v7564_v55 }
0x2492   :  { %v7007_v11 = vpop.f32.mrb[62].mxu0 }
0x2493   :  { %v4614_v6 = vpop.f32.mrb[63].mxu0 }
0x2494   :  { %v4623_v9 = vpack.c.bf16 %v7007_v11, %v4614_v6 }
0x2496   :  { %7011 = vmatmul.mubr.msk.bf16.vlgmr.msra.gmra.mrb[64].mxu1 %vm411_vm0, %v4623_v9 }
0x249d   :  { %v7020_v15 = vpop.f32.mrb[68].mxu0 }
0x249e   :  { %v4768_v10 = vmul.f32 0.25, %v7020_v15  ;;  %v4758_v17 = vpop.f32.mrb[69].mxu0 }
0x249f   :  { %v4767_v13 = vmul.f32 0.25, %v4758_v17 }
0x24a0   :  { %v4772_v26 = vsel %vm411_vm0, %v4768_v10, -inf }
0x24a1   :  { %4773 = vmax.xlane.f32.xlu0 %v4772_v26  ;;  %v4769_v27 = vsel %vm411_vm0, %v4767_v13, -inf }
0x24a2   :  { %4770 = vmax.xlane.f32.xlu1 %v4769_v27 }
0x252e   :  { %v4774_v30 = vpop.xlane.xlu0 %4773 }
0x252f   :  { %v4776_v32 = vsub.f32 %v4768_v10, %v4774_v30  ;;  %v4771_v25 = vpop.xlane.xlu1 %4770 }
0x2530   :  { %v4775_v33 = vsub.f32 %v4767_v13, %v4771_v25 }
0x2531   :  { %v4779_v29 = vmul.f32 1.442695, %v4776_v32 }
0x2532   :  { %v4777_v37 = vmul.f32 1.442695, %v4775_v33 }
0x2533   :  { %7758 = vpow2.f32 %v4779_v29 }
0x2534   :  { %7760 = vpow2.f32 %v4777_v37 }
0x253d   :  { %v7759_v0 = vpop.eup %7758 }
0x253e   :  { %v7761_v23 = vpop.eup %7760  ;;  %v4784_v4 = vsel %vm411_vm0, %v7759_v0, 0.0 }
0x253f   :  { %4785 = vadd.xlane.f32.xlu1 %v4784_v4  ;;  %v4781_v38 = vsel %vm411_vm0, %v7761_v23, 0.0 }
0x2540   :  { %4782 = vadd.xlane.f32.xlu0 %v4781_v38 }
0x2550   :  { %7437 = vrot.lane.b32.xlu1 %v8565_v20, %s9185_s23 }
0x2554   :  { %4931 = vrot.lane.b32.xlu1 %v8559_v34, %s9185_s23 }
0x2556   :  { %7432 = vrot.lane.b32.xlu0 %v8563_v16, %s9184_s4 }
0x255a   :  { %4933 = vrot.lane.b32.xlu0 %v8575_v46, %s9185_s23 }
0x2569   :  { %v4667_v40 = vpop.f32.mrb[64].mxu1 }
0x256a   :  { %v8773_v41 = vadd.f32 %v4667_v40, %v8740_v50  ;;  %v7012_v42 = vpop.f32.mrb[65].mxu1  ;;  %v7565_v40 = vld [vmem:[%s9175_s27 + $0x78] sm:$0xff]  }
0x256b   :  { %v4670_v43 = vpop.f32.mrb[66].mxu1 }
0x256c   :  { %v8776_v12 = vadd.f32 %v4670_v43, %v8743_v52  ;;  %v7013_v44 = vpop.f32.mrb[67].mxu1 }
0x25cc   :  { %v4786_v20 = vpop.xlane.xlu1 %4785 }
0x25cd   :  { %7762 = vrcp.f32 %v4786_v20  ;;  %v4783_v21 = vpop.xlane.xlu0 %4782 }
0x25ce   :  { %7764 = vrcp.f32 %v4783_v21 }
0x25d0   :  { %v7438_v34 = vpop.permute.xlu1 %7437 }
0x25d1   :  { %v7433_v14 = vpop.permute.xlu0 %7432  ;;  %v7440_v45 = vunpack.i.h.bf16 %v7438_v34  ;;  %v7439_v47 = vunpack.i.l.bf16 %v7438_v34 }
0x25d2   :  { %v7435_v48 = vunpack.i.h.bf16 %v7433_v14  ;;  %v7434_v46 = vunpack.i.l.bf16 %v7433_v14 }
0x25d3   :  { %v7284_v51 = vpack.c.bf16 %v7440_v45, %v7439_v47 }
0x25d4   :  { %v7280_v49 = vpack.c.bf16 %v7435_v48, %v7434_v46  ;;  %v4932_v53 = vpop.permute.xlu1 %4931 }
0x25d5   :  { %v4934_v54 = vpop.permute.xlu0 %4933 }
0x25d6   :  { %7281 = vmatprep.subr.bf16.mxu1 %v7280_v49 }
0x25d7   :  { %v7763_v50 = vpop.eup %7762  ;;  %7283 = vmatpush3.bf16.msra.mxu1 %v7280_v49  ;;  %v7566_v49 = vld [vmem:[%s9123_s8 + $0x80] ss:$8 sps:$4 sm:$0xff]  }
0x25d8   :  { %v7765_v36 = vpop.eup %7764  ;;  %7286 = vmatprep.subr.msk.bf16.mxu1 %vm8049_vm1, %v7284_v51  ;;  %v4790_v28 = vmul.f32 %v7763_v50, %v7759_v0  ;;  %v7571_v50 = vld [vmem:[%s9123_s8 + $0x94] ss:$8 sps:$4 sm:$0xff]  }
0x25d9   :  { %v4789_v52 = vmul.f32 %v7765_v36, %v7761_v23 }
0x25db   :  { %7025 = vmatprep.mubr.msk.f32.mxu1 %vm411_vm0, %v4789_v52 }
0x25dc   :  { %7026 = vmatmul.mubr.msk.f32.vlgmr.msra.gmra.mrb[68].mxu1 %vm411_vm0, %v4790_v28 }
0x25dd   :  { %7038 = vmatprep.mubr.msk.f32.mxu1 %vm411_vm0, %v4932_v53 }
0x25e0   :  { %7289 = vmatpush3.bf16.xpose.msk.msra.mxu1 %vm8049_vm1, %v7284_v51  ;;  %v7568_v51 = vld [vmem:[%s9123_s8 + $0x84] ss:$8 sps:$4 sm:$0xff]  }
0x25e1   :  { %7048 = vmatprep.subr.bf16.mxu1 %v7834_v39 }
0x25e7   :  { %7039 = vmatmul.mubr.msk.f32.vlgmr.msra.gmra.mrb[70].mxu1 %vm411_vm0, %v4934_v54 }
0x25e8   :  { %7050 = vmatprep.mubr.msk.bf16.mxu1 %vm7835_vm2, %v7834_v39  ;;  %7049 = vmatpush3.bf16.msra.mxu1 %v7565_v40 }
0x26af   :  { %v7027_v56 = vpop.f32.mrb[68].mxu1 }
0x26b0   :  { %v4869_v31 = vpop.f32.mrb[69].mxu1 }
0x26b1   :  { %v4878_v57 = vpack.c.bf16 %v7027_v56, %v4869_v31  ;;  %v7574_v31 = vld [vmem:[%s9123_s8 + $0xa4] ss:$8 sps:$4 sm:$0xff]  }
0x26b3   :  { %7031 = vmatmul.mubr.msk.bf16.vlgmr.msra.gmra.mrb[72].mxu0 %vm411_vm0, %v4878_v57  ;;  %v7572_v57 = vld [vmem:[%s9123_s8 + $0xa0] ss:$8 sps:$4 sm:$0xff]  }
0x26ba   :  { %v7040_v35 = vpop.f32.mrb[70].mxu1 }
0x26bb   :  { %v5023_v58 = vmul.f32 0.25, %v7040_v35  ;;  %v5013_v60 = vpop.f32.mrb[71].mxu1  ;;  %v7577_v35 = vld [vmem:[%s9123_s8 + $0xb4] ss:$8 sps:$4 sm:$0xff]  }
0x26bc   :  { %v5022_v62 = vmul.f32 0.25, %v5013_v60  ;;  %v7580_v60 = vld [vmem:[%s9123_s8 + $0xc4] ss:$8 sps:$4 sm:$0xff]  }
0x26bd   :  { %v5027_v63 = vsel %vm411_vm0, %v5023_v58, -inf }
0x26be   :  { %5028 = vmax.xlane.f32.xlu0 %v5027_v63  ;;  %v5024_v59 = vsel %vm411_vm0, %v5022_v62, -inf  ;;  %v7583_v63 = vld [vmem:[%s9123_s8 + $0xd4] ss:$8 sps:$4 sm:$0xff]  }
0x26bf   :  { %5025 = vmax.xlane.f32.xlu1 %v5024_v59  ;;  %v7581_v59 = vld [vmem:[%s9123_s8 + $0xd0] ss:$8 sps:$4 sm:$0xff]  }
0x274b   :  { %v5029_v1 = vpop.xlane.xlu0 %5028 }
0x274c   :  { %v5031_v61 = vsub.f32 %v5023_v58, %v5029_v1  ;;  %v5026_v3 = vpop.xlane.xlu1 %5025  ;;  %v7575_v58 = vld [vmem:[%s9123_s8 + $0xb0] ss:$8 sps:$4 sm:$0xff]   ;;  %v7586_v1 = vld [vmem:[%s9123_s8 + $0xe4] ss:$8 sps:$4 sm:$0xff]  }
0x274d   :  { %v5030_v5 = vsub.f32 %v5022_v62, %v5026_v3  ;;  %v7578_v62 = vld [vmem:[%s9123_s8 + $0xc0] ss:$8 sps:$4 sm:$0xff]   ;;  %v7589_v3 = vld [vmem:[%s9123_s8 + $0xf4] ss:$8 sps:$4 sm:$0xff]  }
0x274e   :  { %v5034_v7 = vmul.f32 1.442695, %v5031_v61  ;;  %v7584_v61 = vld [vmem:[%s9123_s8 + $0xe0] ss:$8 sps:$4 sm:$0xff]  }
0x274f   :  { %v5032_v8 = vmul.f32 1.442695, %v5030_v5  ;;  %v7587_v5 = vld [vmem:[%s9123_s8 + $0xf0] ss:$8 sps:$4 sm:$0xff]  }
0x2750   :  { %7766 = vpow2.f32 %v5034_v7  ;;  %v7590_v7 = vld [vmem:[%s9125_s10 + $0xc0] sm:$0xff]  }
0x2751   :  { %7768 = vpow2.f32 %v5032_v8  ;;  %v7591_v8 = vld [vmem:[%s9125_s10 + $0x80] sm:$0xff]   ;;  %6636 = vmatprep.subr.bf16.mxu1 %v7590_v7 }
0x275a   :  { %v7767_v11 = vpop.eup %7766 }
0x275b   :  { %v7769_v6 = vpop.eup %7768  ;;  %v5039_v9 = vsel %vm411_vm0, %v7767_v11, 0.0 }
0x275c   :  { %5040 = vadd.xlane.f32.xlu1 %v5039_v9  ;;  %v5036_v15 = vsel %vm411_vm0, %v7769_v6, 0.0  ;;  %v7594_v9 = vld [vmem:[%s9125_s10 + $0xd0] sm:$0xff]  }
0x275d   :  { %5037 = vadd.xlane.f32.xlu0 %v5036_v15  ;;  %v7595_v15 = vld [vmem:[%s9125_s10 + $0x90] sm:$0xff]  }
0x2773   :  { %7442 = vrot.lane.b32.xlu0 %v8563_v16, %s9185_s23 }
0x2786   :  { %v4922_v10 = vpop.f32.mrb[72].mxu0 }
0x2787   :  { %v4929_v17 = vadd.f32 %v4922_v10, %v8773_v41  ;;  %v7032_v13 = vpop.f32.mrb[73].mxu0  ;;  %v7596_v10 = vld [vmem:[%s9125_s10 + $0xd8] sm:$0xff]  }
0x2788   :  { %v4925_v26 = vpop.f32.mrb[74].mxu0  ;;  %v7598_v13 = vld [vmem:[%s9125_s10 + $0xe0] sm:$0xff]  }
0x2789   :  { %v4930_v27 = vadd.f32 %v4925_v26, %v8776_v12  ;;  %v7033_v30 = vpop.f32.mrb[75].mxu0  ;;  %v6363_v12 = vld [vmem:[%s9176_s26 + $0x1] ss:$0 sm:$0xff] }
0x278a   :  { %v7599_v26 = vld [vmem:[%s9125_s10 + $0xa0] sm:$0xff]  }
0x27e9   :  { %v5041_v32 = vpop.xlane.xlu1 %5040 }
0x27ea   :  { %7770 = vrcp.f32 %v5041_v32  ;;  %v5038_v25 = vpop.xlane.xlu0 %5037 }
0x27eb   :  { %7772 = vrcp.f32 %v5038_v25 }
0x27ee   :  { %v7443_v33 = vpop.permute.xlu0 %7442 }
0x27ef   :  { %v7445_v29 = vunpack.i.h.bf16 %v7443_v33  ;;  %v7444_v37 = vunpack.i.l.bf16 %v7443_v33 }
0x27f1   :  { %v7290_v0 = vpack.c.bf16 %v7445_v29, %v7444_v37 }
0x27f3   :  { %7291 = vmatprep.subr.bf16.mxu0 %v7290_v0 }
0x27f4   :  { %v7771_v23 = vpop.eup %7770  ;;  %7293 = vmatpush3.bf16.msra.mxu0 %v7290_v0 }
0x27f5   :  { %v7773_v16 = vpop.eup %7772  ;;  %v5045_v38 = vmul.f32 %v7771_v23, %v7767_v11  ;;  %5326 = vmatprep.subr.bf16.mxu0 %v7568_v51  ;;  %v7592_v11 = vld [vmem:[%s9125_s10 + $0xc8] sm:$0xff]  }
0x27f6   :  { %v5044_v4 = vmul.f32 %v7773_v16, %v7769_v6  ;;  %v7593_v6 = vld [vmem:[%s9125_s10 + $0x88] sm:$0xff]   ;;  %v6364_v16 = vld [vmem:[%s9177_s25 + $0x1] ss:$0 sm:$0xff] }
0x27f8   :  { %7045 = vmatprep.mubr.msk.f32.mxu0 %vm411_vm0, %v5044_v4 }
0x27f9   :  { %7046 = vmatmul.mubr.msk.f32.vlgmr.msra.gmra.mrb[70].mxu0 %vm411_vm0, %v5045_v38 }
0x27fa   :  { %5358 = vmatprep.mubr.bf16.mxu0 %v7832_v2  ;;  %5327 = vmatpush1.bf16.msra.mxu0 %v7566_v49 }
0x27fb   :  { %5328 = vmatprep.subr.bf16.mxu0 %v7571_v50 }
0x28cc   :  { %v7047_v41 = vpop.f32.mrb[70].mxu0 }
0x28cd   :  { %v5124_v42 = vpop.f32.mrb[71].mxu0 }
0x28ce   :  { %v5133_v43 = vpack.c.bf16 %v7047_v41, %v5124_v42  ;;  %v6365_v41 = vld [vmem:[%s9178_s7 + $0x1] ss:$0 sm:$0xff] }
0x28d0   :  { %7051 = vmatmul.mubr.msk.bf16.vlgmr.msra.gmra.mrb[72].mxu1 %vm411_vm0, %v5133_v43 }
0x28d1   :  { %6637 = vmatpush3.bf16.msra.mxu1 %v7591_v8 }
0x28d2   :  { %6638 = vmatprep.subr.bf16.mxu1 %v7592_v11 }
0x28d5   :  { %6639 = vmatpush3.bf16.msra.mxu1 %v7593_v6 }
0x28d6   :  { %6640 = vmatprep.subr.bf16.mxu1 %v7594_v9 }
0x28d9   :  { %6641 = vmatpush3.bf16.msra.mxu1 %v7595_v15 }
0x28da   :  { %6642 = vmatprep.subr.bf16.mxu1 %v7596_v10 }
0x29a3   :  { %v5177_v44 = vpop.f32.mrb[72].mxu1 }
0x29a4   :  { %v5184_v20 = vadd.f32 %v5177_v44, %v4929_v17  ;;  %v7052_v21 = vpop.f32.mrb[73].mxu1  ;;  %v7597_v17 = vld [vmem:[%s9125_s10 + $0x98] sm:$0xff]  }
0x29a5   :  { %v5180_v34 = vpop.f32.mrb[74].mxu1  ;;  %6643 = vmatpush3.bf16.msra.mxu1 %v7597_v17  ;;  %v7602_v21 = vld [vmem:[%s9125_s10 + $0xf0] sm:$0xff]   ;;  %v7606_v17 = vld [vmem:[%s9129_s14] sm:$0xff]  }
0x29a6   :  { %v5192_v14 = vadd.f32 %v6363_v12, %v5184_v20  ;;  %v5185_v2 = vadd.f32 %v5180_v34, %v4930_v27  ;;  %v7053_v45 = vpop.f32.mrb[75].mxu1  ;;  %6644 = vmatprep.subr.bf16.mxu1 %v7598_v13  ;;  %v7600_v27 = vld [vmem:[%s9125_s10 + $0xe8] sm:$0xff]   ;;  %v7603_v34 = vld [vmem:[%s9125_s10 + $0xb0] sm:$0xff]  }
0x29a7   :  { %v7601_v20 = vld [vmem:[%s9125_s10 + $0xa8] sm:$0xff]   ;;  %v6239_v45 = vld [vmem:[%s9124_s9 + $0x2] sm:$0x3] }
0x29a8   :  { %v5193_v47 = vadd.f32 %v6363_v12, %v5185_v2  ;;  %v5194_v48 = vadd.f32 %v5192_v14, %v8546_v18  ;;  %v7569_v18 = vld [vmem:[%s9123_s8 + $0x90] ss:$8 sps:$4 sm:$0xff]   ;;  %v7607_v13 = vld [vmem:[%s9129_s14 + $0x8] sm:$0xff]  }
0x29a9   :  { %5329 = vmatpush1.bf16.msra.mxu0 %v7569_v18  ;;  %6645 = vmatpush3.bf16.msra.mxu1 %v7599_v26  ;;  %v7604_v14 = vld [vmem:[%s9125_s10 + $0xf8] sm:$0xff]   ;;  %v7608_v26 = vld [vmem:[%s9129_s14 + $0x10] sm:$0xff]  }
0x29aa   :  { %5196 = vadd.xlane.f32.xlu1 %v5194_v48  ;;  %v5195_v46 = vadd.f32 %v5193_v47, %v8548_v19  ;;  %5330 = vmatprep.subr.bf16.mxu0 %v7574_v31  ;;  %v7605_v2 = vld [vmem:[%s9125_s10 + $0xb8] sm:$0xff]   ;;  %v5239_v47 = vrot.slane %v6239_v45, %v8025_v22 }
0x29ab   :  { %6646 = vmatprep.subr.bf16.mxu1 %v7600_v27  ;;  %v7609_v27 = vld [vmem:[%s9129_s14 + $0x18] sm:$0xff]  }
0x29ad   :  { %5331 = vmatpush1.bf16.msra.mxu0 %v7572_v57  ;;  %6647 = vmatpush3.bf16.msra.mxu1 %v7601_v20  ;;  %v6382_v57 = vld [vmem:[%s9126_s11 + $0x1] ss:$0 sm:$0xff] }
0x29ae   :  { %5198 = vadd.xlane.f32.xlu1 %v5195_v46  ;;  %5332 = vmatprep.subr.bf16.mxu0 %v7577_v35 }
0x29af   :  { %6648 = vmatprep.subr.bf16.mxu1 %v7602_v21  ;;  %v6399_v21 = vld [vmem:[%s9127_s12 + $0x1] ss:$0 sm:$0xff]  ;;  %s9186_s12 = sld [smem:[#allocation9_spill]] }
0x29b1   :  { %5333 = vmatpush1.bf16.msra.mxu0 %v7575_v58  ;;  %6649 = vmatpush3.bf16.msra.mxu1 %v7603_v34 }
0x29b2   :  { %5334 = vmatprep.subr.bf16.mxu0 %v7580_v60  ;;  %6650 = vmatprep.subr.bf16.mxu1 %v7604_v14 }
0x29b5   :  { %5335 = vmatpush1.bf16.msra.mxu0 %v7578_v62  ;;  %6651 = vmatpush3.bf16.msra.mxu1 %v7605_v2 }
0x29b6   :  { %5336 = vmatprep.subr.bf16.mxu0 %v7583_v63  ;;  %7074 = vmatprep.subr.bf16.mxu1 %v7834_v39 }
0x29b9   :  { %5337 = vmatpush1.bf16.msra.mxu0 %v7581_v59 }
0x29ba   :  { %5338 = vmatprep.subr.bf16.mxu0 %v7586_v1 }
0x29bd   :  { %5339 = vmatpush1.bf16.msra.mxu0 %v7584_v61 }
0x29be   :  { %5340 = vmatprep.subr.bf16.mxu0 %v7589_v3 }
0x29c1   :  { %5341 = vmatpush1.bf16.msra.mxu0 %v7587_v5 }
0x29c2   :  { %7054 = vmatprep.subr.bf16.mxu0 %v7834_v39 }
0x2a37   :  { %v5197_v19 = vpop.xlane.xlu1 %5196 }
0x2a38   :  { %v5200_v36 = vmul.f32 0.0078125, %v5197_v19 }
0x2a3a   :  { %v8825_v52 = vsub.f32 %v5194_v48, %v5200_v36  ;;  %v5243_v48 = vrot.slane %v6239_v45, %v8033_v24  ;;  %v6400_v45 = vld [vmem:[%s9128_s13 + $0x1] ss:$0 sm:$0xff] }
0x2a3b   :  { %v5199_v28 = vpop.xlane.xlu1 %5198 }
0x2a3c   :  { %v5201_v53 = vmul.f32 0.0078125, %v5199_v28  ;;  %v5204_v54 = vmul.f32 %v8825_v52, %v8825_v52 }
0x2a3e   :  { %v8829_v55 = vsub.f32 %v5195_v46, %v5201_v53  ;;  %5206 = vadd.xlane.f32.xlu1 %v5204_v54 }
0x2a40   :  { %v5205_v56 = vmul.f32 %v8829_v55, %v8829_v55 }
0x2a42   :  { %5208 = vadd.xlane.f32.xlu1 %v5205_v56 }
0x2acb   :  { %v5207_v30 = vpop.xlane.xlu1 %5206 }
0x2acc   :  { %v5210_v32 = vmul.f32 0.0078125, %v5207_v30  ;;  %v7610_v30 = vld [vmem:[%s9129_s14 + $0x20] sm:$0xff]  }
0x2ace   :  { %v5212_v25 = vadd.f32 1e-05, %v5210_v32  ;;  %v7611_v32 = vld [vmem:[%s9129_s14 + $0x28] sm:$0xff]  }
0x2acf   :  { %v5209_v33 = vpop.xlane.xlu1 %5208 }
0x2ad0   :  { %7774 = vrsqrt.f32 %v5212_v25  ;;  %v5211_v29 = vmul.f32 0.0078125, %v5209_v33  ;;  %v7612_v25 = vld [vmem:[%s9129_s14 + $0x30] sm:$0xff]   ;;  %v7613_v33 = vld [vmem:[%s9129_s14 + $0x38] sm:$0xff]  }
0x2ad2   :  { %v5213_v37 = vadd.f32 1e-05, %v5211_v29  ;;  %v7614_v29 = vld [vmem:[%s9131_s16] sm:$0xff]  }
0x2ad4   :  { %7776 = vrsqrt.f32 %v5213_v37  ;;  %v7616_v37 = vld [vmem:[%s9131_s16 + $0x8] sm:$0xff]  }
0x2ada   :  { %v7775_v0 = vpop.eup %7774 }
0x2adb   :  { %v5216_v23 = vmul.f32 %v7775_v0, %v8825_v52  ;;  %v7618_v0 = vld [vmem:[%s9131_s16 + $0x10] sm:$0xff]  }
0x2add   :  { %v5224_v40 = vmul.f32 %v6364_v16, %v5216_v23  ;;  %v7620_v23 = vld [vmem:[%s9131_s16 + $0x18] sm:$0xff]  }
0x2ade   :  { %v7777_v4 = vpop.eup %7776 }
0x2adf   :  { %v5217_v38 = vmul.f32 %v7777_v4, %v8829_v55  ;;  %v5232_v43 = vadd.f32 %v6365_v41, %v5224_v40  ;;  %v7624_v4 = vld [vmem:[%s9131_s16 + $0x28] sm:$0xff]  }
0x2ae1   :  { %v5225_v42 = vmul.f32 %v6364_v16, %v5217_v38  ;;  %v7622_v16 = vld [vmem:[%s9131_s16 + $0x20] sm:$0xff]  }
0x2ae3   :  { %v5233_v12 = vadd.f32 %v6365_v41, %v5225_v42 }
0x2ae5   :  { %v5234_v44 = vpack.c.bf16 %v5233_v12, %v5232_v43 }
0x2ae7   :  { %5359 = vmatmul.mubr.bf16.vlgmr.msra.gmra.mrb[76].mxu0 %v5234_v44 }
0x2ae8   :  { %7070 = vmatprep.mubr.msk.bf16.mxu0 %vm7835_vm2, %v7834_v39  ;;  %7055 = vmatpush3.bf16.msra.mxu0 %v7606_v17  ;;  %v7634_v17 = vld [vmem:[%s9135_s20 + $0x20] sm:$0xff]  }
0x2ae9   :  { %7056 = vmatprep.subr.bf16.mxu0 %v7834_v39 }
0x2aec   :  { %7057 = vmatpush3.bf16.msra.mxu0 %v7607_v13  ;;  %v7635_v13 = vld [vmem:[%s9135_s20 + $0x28] sm:$0xff]  }
0x2aed   :  { %7058 = vmatprep.subr.bf16.mxu0 %v7834_v39 }
0x2af0   :  { %7059 = vmatpush3.bf16.msra.mxu0 %v7608_v26  ;;  %v7636_v26 = vld [vmem:[%s9135_s20 + $0x30] sm:$0xff]  }
0x2af1   :  { %7060 = vmatprep.subr.bf16.mxu0 %v7834_v39 }
0x2af4   :  { %7061 = vmatpush3.bf16.msra.mxu0 %v7609_v27  ;;  %v7637_v27 = vld [vmem:[%s9135_s20 + $0x38] sm:$0xff]  }
0x2af5   :  { %7062 = vmatprep.subr.bf16.mxu0 %v7834_v39 }
0x2af8   :  { %7063 = vmatpush3.bf16.msra.mxu0 %v7610_v30  ;;  %v6409_v30 = vld [vmem:[%s9132_s17] ss:$0 sm:$0xff] }
0x2af9   :  { %7064 = vmatprep.subr.bf16.mxu0 %v7834_v39 }
0x2afc   :  { %7065 = vmatpush3.bf16.msra.mxu0 %v7611_v32  ;;  %v6418_v32 = vld [vmem:[%s9134_s19] ss:$0 sm:$0xff] }
0x2afd   :  { %7066 = vmatprep.subr.bf16.mxu0 %v7834_v39 }
0x2b00   :  { %7067 = vmatpush3.bf16.msra.mxu0 %v7612_v25 }
0x2b01   :  { %7068 = vmatprep.subr.bf16.mxu0 %v7834_v39 }
0x2b04   :  { %7069 = vmatpush3.bf16.msra.mxu0 %v7613_v33 }
0x2b05   :  { %7094 = vmatprep.subr.bf16.mxu0 %v7834_v39 }
0x2bba   :  { %v5360_v46 = vpop.f32.mrb[76].mxu0 }
0x2bbb   :  { %v5361_v49 = vadd.f32 %v5360_v46, %v5239_v47  ;;  %v5362_v51 = vpop.f32.mrb[77].mxu0 }
0x2bbc   :  { %v5363_v50 = vadd.f32 %v5362_v51, %v5243_v48  ;;  %v5364_v18 = vpop.f32.mrb[78].mxu0 }
0x2bbd   :  { %v5365_v19 = vadd.f32 %v5364_v18, %v5239_v47  ;;  %v5366_v36 = vpop.f32.mrb[79].mxu0  ;;  %v5369_v28 = vmax.f32 %v5361_v49, 0.0 }
0x2bbe   :  { %v5367_v52 = vadd.f32 %v5366_v36, %v5243_v48  ;;  %v5370_v54 = vmax.f32 %v5363_v50, 0.0 }
0x2bbf   :  { %v5371_v53 = vmax.f32 %v5365_v19, 0.0 }
0x2bc0   :  { %v5372_v55 = vmax.f32 %v5367_v52, 0.0 }
0x2bc1   :  { %v5373_v56 = vpack.c.bf16 %v5371_v53, %v5369_v28  ;;  %v7615_v53 = vld [vmem:[%s9133_s18] sm:$0xff]  }
0x2bc2   :  { %v5374_v31 = vpack.c.bf16 %v5372_v55, %v5370_v54  ;;  %v7617_v55 = vld [vmem:[%s9133_s18 + $0x8] sm:$0xff]  }
0x2bc4   :  { %5509 = vmatprep.mubr.bf16.mxu1 %v5374_v31  ;;  %v7621_v31 = vld [vmem:[%s9133_s18 + $0x18] sm:$0xff]  }
0x2bc5   :  { %5510 = vmatmul.mubr.bf16.vlgmr.msra.gmra.mrb[76].mxu1 %v5373_v56  ;;  %v7619_v56 = vld [vmem:[%s9133_s18 + $0x10] sm:$0xff]  }
0x2bc6   :  { %7090 = vmatprep.mubr.msk.bf16.mxu1 %vm7835_vm2, %v7834_v39  ;;  %7075 = vmatpush3.bf16.msra.mxu1 %v7614_v29 }
0x2bc7   :  { %7076 = vmatprep.subr.bf16.mxu1 %v7834_v39 }
0x2bca   :  { %7077 = vmatpush3.bf16.msra.mxu1 %v7616_v37 }
0x2bcb   :  { %7078 = vmatprep.subr.bf16.mxu1 %v7834_v39 }
0x2bce   :  { %7079 = vmatpush3.bf16.msra.mxu1 %v7618_v0 }
0x2bcf   :  { %7080 = vmatprep.subr.bf16.mxu1 %v7834_v39 }
0x2bd2   :  { %7081 = vmatpush3.bf16.msra.mxu1 %v7620_v23 }
0x2bd3   :  { %7082 = vmatprep.subr.bf16.mxu1 %v7834_v39 }
0x2bd6   :  { %7083 = vmatpush3.bf16.msra.mxu1 %v7622_v16 }
0x2bd7   :  { %7084 = vmatprep.subr.bf16.mxu1 %v7834_v39 }
0x2bda   :  { %7085 = vmatpush3.bf16.msra.mxu1 %v7624_v4 }
0x2bdb   :  { %7086 = vmatprep.subr.bf16.mxu1 %v7834_v39 }
0x2c98   :  { %v6652_v24 = vpop.f32.mrb[76].mxu1 }
0x2c99   :  { %v6653_v35 = vpop.f32.mrb[77].mxu1 }
0x2c9a   :  { %v6654_v58 = vadd.f32 %v6653_v35, %v6652_v24  ;;  %v6655_v60 = vpop.f32.mrb[78].mxu1  ;;  %v7623_v24 = vld [vmem:[%s9133_s18 + $0x20] sm:$0xff]   ;;  %v7626_v35 = vld [vmem:[%s9131_s16 + $0x30] sm:$0xff]  }
0x2c9b   :  { %v6656_v62 = vpop.f32.mrb[79].mxu1  ;;  %7087 = vmatpush3.bf16.msra.mxu1 %v7626_v35 }
0x2c9c   :  { %v5512_v63 = vadd.f32 %v6654_v58, %v6382_v57  ;;  %v6657_v59 = vadd.f32 %v6656_v62, %v6655_v60  ;;  %v7627_v58 = vld [vmem:[%s9133_s18 + $0x30] sm:$0xff]   ;;  %7088 = vmatprep.subr.bf16.mxu1 %v7834_v39  ;;  %v7628_v60 = vld [vmem:[%s9131_s16 + $0x38] sm:$0xff]  }
0x2c9d   :  { %v7629_v62 = vld [vmem:[%s9133_s18 + $0x38] sm:$0xff]  }
0x2c9e   :  { %v5515_v1 = vadd.f32 %v6657_v59, %v6382_v57  ;;  %v5518_v61 = vadd.f32 %v5512_v63, %v5232_v43  ;;  %v7625_v57 = vld [vmem:[%s9133_s18 + $0x28] sm:$0xff]   ;;  %v5584_v63 = vld [vmem:[%s9130_s15] sm:$0x1] }
0x2c9f   :  { %7089 = vmatpush3.bf16.msra.mxu1 %v7628_v60 }
0x2ca0   :  { %5520 = vadd.xlane.f32.xlu1 %v5518_v61  ;;  %v5519_v3 = vadd.f32 %v5515_v1, %v5233_v12  ;;  %7114 = vmatprep.subr.bf16.mxu1 %v7834_v39 }
0x2ca4   :  { %5522 = vadd.xlane.f32.xlu1 %v5519_v3 }
0x2d2d   :  { %v5521_v5 = vpop.xlane.xlu1 %5520 }
0x2d2e   :  { %v5524_v7 = vmul.f32 0.0078125, %v5521_v5 }
0x2d30   :  { %v5526_v8 = vsub.f32 %v5518_v61, %v5524_v7 }
0x2d31   :  { %v5523_v11 = vpop.xlane.xlu1 %5522 }
0x2d32   :  { %v5525_v6 = vmul.f32 0.0078125, %v5523_v11  ;;  %v5528_v9 = vmul.f32 %v5526_v8, %v5526_v8 }
0x2d34   :  { %v5527_v15 = vsub.f32 %v5519_v3, %v5525_v6  ;;  %5530 = vadd.xlane.f32.xlu0 %v5528_v9  ;;  %v5673_v3 = vld [vmem:[%s9186_s12] sm:$0x3] }
0x2d35   :  { %v7630_v6 = vld [vmem:[%s9135_s20] sm:$0xff]  }
0x2d36   :  { %v5529_v10 = vmul.f32 %v5527_v15, %v5527_v15 }
0x2d38   :  { %5532 = vadd.xlane.f32.xlu1 %v5529_v10  ;;  %v7633_v10 = vld [vmem:[%s9135_s20 + $0x18] sm:$0xff]  }
0x2dc1   :  { %v5531_v38 = vpop.xlane.xlu0 %5530 }
0x2dc2   :  { %v5534_v40 = vmul.f32 0.0078125, %v5531_v38 }
0x2dc4   :  { %v5536_v41 = vadd.f32 1e-05, %v5534_v40 }
0x2dc5   :  { %v5533_v42 = vpop.xlane.xlu1 %5532 }
0x2dc6   :  { %7778 = vrsqrt.f32 %v5536_v41  ;;  %v5535_v43 = vmul.f32 0.0078125, %v5533_v42 }
0x2dc8   :  { %v5537_v12 = vadd.f32 1e-05, %v5535_v43 }
0x2dca   :  { %7780 = vrsqrt.f32 %v5537_v12 }
0x2dd0   :  { %v7779_v44 = vpop.eup %7778 }
0x2dd1   :  { %v5540_v20 = vmul.f32 %v7779_v44, %v5526_v8 }
0x2dd3   :  { %v5548_v14 = vmul.f32 %v6399_v21, %v5540_v20 }
0x2dd4   :  { %v7781_v34 = vpop.eup %7780 }
0x2dd5   :  { %v5541_v2 = vmul.f32 %v7781_v34, %v5527_v15  ;;  %v5556_v48 = vadd.f32 %v6400_v45, %v5548_v14  ;;  %v7631_v15 = vld [vmem:[%s9135_s20 + $0x8] sm:$0xff]  }
0x2dd7   :  { %v5549_v47 = vmul.f32 %v6399_v21, %v5541_v2 }
0x2dd9   :  { %v5557_v46 = vadd.f32 %v6400_v45, %v5549_v47 }
0x2ddb   :  { %v5558_v49 = vadd.f32 %v5557_v46, %v5556_v48 }
0x2ddd   :  { %v5559_v51 = vrot.slane %v5558_v49, 4 }
0x2ddf   :  { %v5560_v50 = vadd.f32 %v5559_v51, %v5558_v49 }
0x2de1   :  { %v5561_v18 = vrot.slane %v5560_v50, 2 }
0x2de3   :  { %v5562_v19 = vadd.f32 %v5561_v18, %v5560_v50 }
0x2de5   :  { %v5563_v36 = vrot.slane %v5562_v19, 1 }
0x2de7   :  { %v5564_v52 = vadd.f32 %v5563_v36, %v5562_v19 }
0x2de9   :  { %v5566_v28 = vmul.f32 0.0625, %v5564_v52 }
0x2deb   :  { %v5567_v54 = vpack.c.bf16 %v5566_v28, %v5566_v28 }
0x2ded   :  { %7071 = vmatmul.mubr.bf16.vlgmr.msra.gmra.mrb[80].mxu0 %v5567_v54 }
0x2dee   :  { %7095 = vmatpush3.bf16.msra.mxu0 %v7615_v53  ;;  %7110 = vmatprep.mubr.msk.bf16.mxu0 %vm7835_vm2, %v7834_v39 }
0x2def   :  { %7096 = vmatprep.subr.bf16.mxu0 %v7834_v39 }
0x2df2   :  { %7097 = vmatpush3.bf16.msra.mxu0 %v7617_v55 }
0x2df3   :  { %7098 = vmatprep.subr.bf16.mxu0 %v7834_v39 }
0x2df6   :  { %7099 = vmatpush3.bf16.msra.mxu0 %v7619_v56 }
0x2df7   :  { %7100 = vmatprep.subr.bf16.mxu0 %v7834_v39 }
0x2dfa   :  { %7101 = vmatpush3.bf16.msra.mxu0 %v7621_v31 }
0x2dfb   :  { %7102 = vmatprep.subr.bf16.mxu0 %v7834_v39 }
0x2dfe   :  { %7103 = vmatpush3.bf16.msra.mxu0 %v7623_v24 }
0x2dff   :  { %7104 = vmatprep.subr.bf16.mxu0 %v7834_v39 }
0x2e02   :  { %7105 = vmatpush3.bf16.msra.mxu0 %v7625_v57 }
0x2e03   :  { %7106 = vmatprep.subr.bf16.mxu0 %v7834_v39 }
0x2e06   :  { %7107 = vmatpush3.bf16.msra.mxu0 %v7627_v58 }
0x2e07   :  { %7108 = vmatprep.subr.bf16.mxu0 %v7834_v39 }
0x2e0a   :  { %7109 = vmatpush3.bf16.msra.mxu0 %v7629_v62 }
0x2ec0   :  { %v5667_v59 = vpop.f32.mrb[80].mxu0 }
0x2ec1   :  { %v5668_v1 = vadd.f32 %v5667_v59, %v5584_v63  ;;  %v7072_v61 = vpop.f32.mrb[81].mxu0 }
0x2ec2   :  { %v5670_v5 = vpop.f32.mrb[82].mxu0 }
0x2ec3   :  { %v5677_v7 = vrot.slane %v5668_v1, %v8025_v22  ;;  %v7073_v8 = vpop.f32.mrb[83].mxu0  ;;  %v7632_v22 = vld [vmem:[%s9135_s20 + $0x10] sm:$0xff]   ;;  %s7842_s20 = smov [#allocation2]  }
0x2ec4   :  { %s6023_s17 = sshll.u32 %s7842_s20, 4  ;;  %s6024_s17 = int_to_ptr.vmem [resolvable:$true] %s6023_s17 }
0x2ec5   :  { %v5678_v11 = vadd.f32 %v5677_v7, %v5673_v3  ;;  %s7784_s0 = scalar_lea.vmem %s6024_s17, 32  ;;  %p7789_p1 = scmp.lt.s32.totalorder %s6024_s17, %s6024_s17 }
0x2ec6   :  { %p7785_p0 = scmp.ne.s32.totalorder %s6024_s17, %s7784_s0  ;;  %p7790_p2 = scmp.lt.s32.totalorder %s7784_s0, %s7784_s0 }
0x2ec7   :  { %v5679_v9 = vpack.c.bf16 %v5678_v11, %v5678_v11 }
0x2ec8   :  { %p7791_p3 = por %p7790_p2, %p7789_p1 }
0x2ec9   :  { %7091 = vmatmul.mubr.bf16.vlgmr.msra.gmra.mrb[80].mxu1 %v5679_v9  ;;  %7111 = vmatmul.mubr.bf16.vlgmr.msra.gmra.mrb[84].mxu0 %v5679_v9 }
0x2eca   :  { %7115 = vmatpush3.bf16.msra.mxu1 %v7630_v6  ;;  %7130 = vmatprep.mubr.msk.bf16.mxu1 %vm7835_vm2, %v7834_v39  ;;  %p7792_p4 = pnand %p7791_p3, %p7785_p0 }
0x2ecb   :  { %7116 = vmatprep.subr.bf16.mxu1 %v7834_v39 }
0x2ece   :  { %7117 = vmatpush3.bf16.msra.mxu1 %v7631_v15 }
0x2ecf   :  { %7118 = vmatprep.subr.bf16.mxu1 %v7834_v39 }
0x2ed2   :  { %7119 = vmatpush3.bf16.msra.mxu1 %v7632_v22 }
0x2ed3   :  { %7120 = vmatprep.subr.bf16.mxu1 %v7834_v39 }
0x2ed6   :  { %7121 = vmatpush3.bf16.msra.mxu1 %v7633_v10 }
0x2ed7   :  { %7122 = vmatprep.subr.bf16.mxu1 %v7834_v39 }
0x2eda   :  { %7123 = vmatpush3.bf16.msra.mxu1 %v7634_v17 }
0x2edb   :  { %7124 = vmatprep.subr.bf16.mxu1 %v7834_v39 }
0x2ede   :  { %7125 = vmatpush3.bf16.msra.mxu1 %v7635_v13 }
0x2edf   :  { %7126 = vmatprep.subr.bf16.mxu1 %v7834_v39 }
0x2ee2   :  { %7127 = vmatpush3.bf16.msra.mxu1 %v7636_v26 }
0x2ee3   :  { %7128 = vmatprep.subr.bf16.mxu1 %v7834_v39 }
0x2ee6   :  { %7129 = vmatpush3.bf16.msra.mxu1 %v7637_v27 }
0x2f9c   :  { %v5785_v25 = vpop.f32.mrb[80].mxu1  ;;  %v5897_v33 = vpop.f32.mrb[84].mxu0 }
0x2f9d   :  { %v5786_v29 = vadd.f32 %v6409_v30, %v5785_v25  ;;  %v5898_v37 = vadd.f32 %v6418_v32, %v5897_v33  ;;  %v7092_v0 = vpop.f32.mrb[81].mxu1  ;;  %v7112_v23 = vpop.f32.mrb[85].mxu0 }
0x2f9e   :  { %v5788_v39 = vpop.f32.mrb[82].mxu1  ;;  %v5900_v16 = vpop.f32.mrb[86].mxu0 }
0x2f9f   :  { %5791 = vst [vmem:[#allocation2] sm:$0x3] %v5786_v29  ;;  %v5903_v4 = vmax.f32 %v5898_v37, 0.0  ;;  %v7093_v38 = vpop.f32.mrb[83].mxu1  ;;  %v7113_v40 = vpop.f32.mrb[87].mxu0 }
0x2fa1   :  { %v5904_v41 = vpack.c.bf16 %v5903_v4, %v5903_v4 }
0x2fa3   :  { %7131 = vmatmul.mubr.bf16.vlgmr.msra.gmra.mrb[84].mxu1 %v5904_v41 }
0x2fa4   :  { %7795 = shalt.err (!%p7792_p4)
}
0x2fa5   :  { %s7796_s6 = scalar_lea.hbm %s9137_s22, 32 }
0x2fa6   :  { %p7797_p5 = scmp.ne.s32.totalorder %s9137_s22, %s7796_s6  ;;  %p7800_p6 = scmp.lt.u32.totalorder %s7796_s6, %s9137_s22 }
0x2fa8   :  { %p7802_p7 = pnand %p7800_p6, %p7797_p5 }
0x2faa   :  { %7805 = shalt.err (!%p7802_p7)
}
0x2fab   :  { %6026 = dma.vmem_to_hbm [thread:$0]  %s6024_s17, 32, %s9137_s22, [#allocation3]   ;;  %v6427_v42 = vld [vmem:[%s9136_s21] ss:$0 sm:$0xff] }
0x2fac   :  { %s7843_s28 = smov [#allocation4]  }
0x2fad   :  { %s6033_s30 = sshll.u32 %s7843_s28, 4  ;;  %s6034_s30 = int_to_ptr.vmem [resolvable:$true] %s6033_s30 }
0x2fae   :  { %s7806_s23 = scalar_lea.vmem %s6034_s30, 32  ;;  %p7811_p9 = scmp.lt.s32.totalorder %s6034_s30, %s6034_s30 }
0x2faf   :  { %p7807_p8 = scmp.ne.s32.totalorder %s6034_s30, %s7806_s23  ;;  %p7812_p10 = scmp.lt.s32.totalorder %s7806_s23, %s7806_s23 }
0x2fb1   :  { %p7813_p11 = por %p7812_p10, %p7811_p9 }
0x2fb3   :  { %p7814_p12 = pnand %p7813_p11, %p7807_p8 }
0x3076   :  { %v6010_v43 = vpop.f32.mrb[84].mxu1 }
0x3077   :  { %v6011_v12 = vadd.f32 %v6427_v42, %v6010_v43  ;;  %v7132_v44 = vpop.f32.mrb[85].mxu1 }
0x3078   :  { %v6013_v20 = vpop.f32.mrb[86].mxu1 }
0x3079   :  { %6016 = vst [vmem:[#allocation4] sm:$0x3] %v6011_v12  ;;  %v7133_v21 = vpop.f32.mrb[87].mxu1 }
0x307a   :  { %7817 = shalt.err (!%p7814_p12)
}
0x307b   :  { %s9187_s24 = sld [smem:[#allocation16_spill]] }
0x3081   :  { %s7818_s21 = scalar_lea.hbm %s9187_s24, 32 }
0x3082   :  { %p7819_p13 = scmp.ne.s32.totalorder %s9187_s24, %s7818_s21  ;;  %p7822_p0 = scmp.lt.u32.totalorder %s7818_s21, %s9187_s24 }
0x3084   :  { %p7824_p1 = pnand %p7822_p0, %p7819_p13 }
0x3086   :  { %7827 = shalt.err (!%p7824_p1)
}
0x3087   :  { %6036 = dma.vmem_to_hbm [thread:$0]  %s6034_s30, 32, %s9187_s24, [#allocation5]  }
0x3088   :  { %7828 = dma.done.wait [#allocation3], 32  }
0x3089   :  { %7829 = vsyncadd [#allocation3], 4294967264 }
0x308a   :  { %7830 = dma.done.wait [#allocation5], 32  }
0x308b   :  { %7831 = vsyncadd [#allocation5], 4294967264 }
0x308c   :  { %6043 = vsyncpa [#allocation3], 1 }
0x308d   :  { %6044 = vsyncpa [#allocation5], 1 }

</bundles_post_ra>
